<compile_context>
chip_gen: v5e
topology: v5e:2x2
jax: 0.10.0
libtpu: 0.0.40
codegen_flags: <defaults>
</compile_context>

<pallas_src>
import functools
import numpy as np
import jax
import jax.numpy as jnp
from jax.experimental import pallas as pl
from jax.experimental.pallas import tpu as pltpu


def _separable_taps(kernel_size: int = 5):
    """1-D taps of the rank-2 separable decomposition + combined 3-D kernel.

    kernel3d[kd,kh,kw] = (we[kd]we[kh]we[kw] - 0.5*wi[kd]wi[kh]wi[kw]) / norm
    reproduces the PyTorch buffer exp(-d^2/4) - 0.5*exp(-d^2/16), normalized
    by its abs().sum().
    """
    x = np.arange(kernel_size, dtype=np.float64) - kernel_size // 2
    we = np.exp(-(x ** 2) / 4.0)           # excitation 1-D factor
    wi = np.exp(-(x ** 2) / 16.0)          # inhibition 1-D factor
    exc = we[:, None, None] * we[None, :, None] * we[None, None, :]
    inh = 0.5 * (wi[:, None, None] * wi[None, :, None] * wi[None, None, :])
    k3 = exc - inh
    inv_norm = 1.0 / np.abs(k3).sum()
    we_d = we * inv_norm                   # normalization folded into depth taps
    wi_d = wi * (0.5 * inv_norm)           # 0.5 inhibition weight folded in too
    return (we.astype(np.float32), wi.astype(np.float32),
            we_d.astype(np.float32), wi_d.astype(np.float32),
            (k3 * inv_norm).astype(np.float32))


def _dog_conv3d_kernel(we, wi, we_d, wi_d, D, H, W, K,
                       in_ref, out_ref, pad_s, tmp_e, tmp_i):
    """One batch block per grid step.

    in_ref : (bb, D, H, W)    unpadded field block
    out_ref: (bb, D, H, W)
    pad_s  : (bb, D, Hp, Wp)  f32 scratch, H/W zero-padded copy of the block
    tmp_e  : (bb, Dp, H, W)   f32 scratch, excitation after the W+H passes
    tmp_i  : (bb, Dp, H, W)   f32 scratch, inhibition after the W+H passes
    The depth-halo planes of tmp_* are just zeroed: the separable conv of the
    zero padding is zero, so they never need to be computed.
    """
    p = K // 2
    Dp = D + 2 * p
    bb = in_ref.shape[0]

    # ---- in-kernel zero "same" padding (no HBM-side jnp.pad) ----------------
    pad_s[...] = jnp.zeros_like(pad_s)
    pad_s[:, :, p:p + H, p:p + W] = in_ref[...].astype(jnp.float32)

    zhalo = jnp.zeros((bb, p, H, W), jnp.float32)
    tmp_e[:, 0:p, :, :] = zhalo
    tmp_e[:, p + D:Dp, :, :] = zhalo
    tmp_i[:, 0:p, :, :] = zhalo
    tmp_i[:, p + D:Dp, :, :] = zhalo

    # ---- passes 1+2: 5-tap W conv then 5-tap H conv, one depth plane at a
    # time.  Excitation / inhibition branches share the plane load.  Loops are
    # short and fixed -> fully unrolled at trace time; each iteration ends in a
    # scratch store so live ranges stay at a few vregs.
    for d in range(D):
        plane = pad_s[:, d:d + 1, :, :]                      # (bb,1,Hp,Wp) f32
        rwe = we[0] * plane[:, :, :, 0:W]
        rwi = wi[0] * plane[:, :, :, 0:W]
        for kw in range(1, K):
            sh = plane[:, :, :, kw:kw + W]                   # lane-axis shift
            rwe = rwe + we[kw] * sh
            rwi = rwi + wi[kw] * sh
        rhe = we[0] * rwe[:, :, 0:H, :]
        rhi = wi[0] * rwi[:, :, 0:H, :]
        for kh in range(1, K):
            rhe = rhe + we[kh] * rwe[:, :, kh:kh + H, :]     # sublane shift
            rhi = rhi + wi[kh] * rwi[:, :, kh:kh + H, :]
        tmp_e[:, d + p:d + p + 1, :, :] = rhe
        tmp_i[:, d + p:d + p + 1, :, :] = rhi

    # ---- pass 3: 5-tap depth conv, combine exc - inh, stream one output
    # plane at a time (normalization already folded into we_d / wi_d).
    for do in range(D):
        acc = (we_d[0] * tmp_e[:, do:do + 1, :, :]
               - wi_d[0] * tmp_i[:, do:do + 1, :, :])
        for kd in range(1, K):
            acc = acc + we_d[kd] * tmp_e[:, do + kd:do + kd + 1, :, :]
            acc = acc - wi_d[kd] * tmp_i[:, do + kd:do + kd + 1, :, :]
        out_ref[:, do:do + 1, :, :] = acc.astype(out_ref.dtype)


def _choose_batch_block(B, D, H, W, K, itemsize, vmem_budget=48 << 20):
    """Pick how many batch elements to process per grid step."""
    p = K // 2
    Hp, Wp, Dp = H + 2 * p, W + 2 * p, D + 2 * p
    per_b = (2 * 2 * D * H * W * itemsize      # double-buffered in + out blocks
             + D * Hp * Wp * 4                 # padded scratch (f32)
             + 2 * Dp * H * W * 4)             # tmp_e + tmp_i (f32)
    bb = max(1, min(B, int(vmem_budget // max(per_b, 1))))
    if B >= 2:                                 # keep >=2 grid steps: v7x has 2 TCs
        bb = min(bb, (B + 1) // 2)
    while B % bb:                              # avoid a ragged final block
        bb -= 1
    return bb, per_b


def bounded_field_kernel(field: jax.Array, kernel_size: int = 5) -> jax.Array:
    """Forward pass of BoundedFieldKernel.

    Accepts (D, H, W) or (B, D, H, W); returns (1, D, H, W) or (B, D, H, W)
    respectively (mirroring the PyTorch .squeeze(1) semantics).
    """
    we, wi, we_d, wi_d, _ = _separable_taps(kernel_size)
    if field.ndim == 3:
        field = field[None]
    assert field.ndim == 4, "expected 3D or 4D field"

    B, D, H, W = field.shape
    K = kernel_size
    p = K // 2
    Hp, Wp, Dp = H + 2 * p, W + 2 * p, D + 2 * p

    bb, per_b = _choose_batch_block(B, D, H, W, K, field.dtype.itemsize)
    vmem_limit = int(max(32 << 20, min(96 << 20, bb * per_b + (4 << 20))))

    body = functools.partial(
        _dog_conv3d_kernel,
        tuple(float(v) for v in we), tuple(float(v) for v in wi),
        tuple(float(v) for v in we_d), tuple(float(v) for v in wi_d),
        D, H, W, K)

    out = pl.pallas_call(
        body,
        out_shape=jax.ShapeDtypeStruct((B, D, H, W), field.dtype),
        grid_spec=pltpu.PrefetchScalarGridSpec(
            num_scalar_prefetch=0,
            grid=(B // bb,),
            in_specs=[pl.BlockSpec((bb, D, H, W), lambda b: (b, 0, 0, 0))],
            out_specs=pl.BlockSpec((bb, D, H, W), lambda b: (b, 0, 0, 0)),
            scratch_shapes=[
                pltpu.VMEM((bb, D, Hp, Wp), jnp.float32),   # padded input
                pltpu.VMEM((bb, Dp, H, W), jnp.float32),    # excitation WH pass
                pltpu.VMEM((bb, Dp, H, W), jnp.float32),    # inhibition WH pass
            ]),
        compiler_params=pltpu.CompilerParams(
            dimension_semantics=("parallel",),
            vmem_limit_bytes=vmem_limit),
    )(field)
    return out


def _reference(field: jax.Array, kernel_size: int = 5) -> jax.Array:
    """Pure-JAX reference (lax conv) mirroring F.conv3d semantics."""
    *_, k3 = _separable_taps(kernel_size)
    w = jnp.asarray(k3)[None, None]                # (1, 1, K, K, K)
    if field.ndim == 3:
        field = field[None]
    x = field[:, None].astype(jnp.float32)         # (B, 1, D, H, W)
    p = kernel_size // 2
    y = jax.lax.conv_general_dilated(
        x, w, window_strides=(1, 1, 1),
        padding=[(p, p)] * 3,
        dimension_numbers=("NCDHW", "OIDHW", "NCDHW"),
        precision=jax.lax.Precision.HIGHEST)
    return y[:, 0].astype(field.dtype)


if __name__ == "__main__":
    key = jax.random.PRNGKey(0)
    # Small shapes consistent with the module: batch=2, spatial 16^3 field.
    field = jax.random.normal(key, (2, 16, 16, 16), dtype=jnp.float32)

    out = jax.block_until_ready(bounded_field_kernel(field))
    ref = jax.block_until_ready(_reference(field))

    assert out.shape == (2, 16, 16, 16)
    np.testing.assert_allclose(np.asarray(out), np.asarray(ref),
                               rtol=1e-5, atol=1e-5)
    print("KERNEL_OK")
</pallas_src>

<mosaic_0001>
module attributes {stable_mosaic.version = 11 : i64} {
  func.func @_dog_conv3d_kernel(%arg0: i32, %arg1: memref<1x16x16x16xf32, #tpu.memory_space<vmem>>, %arg2: memref<1x16x16x16xf32, #tpu.memory_space<vmem>>, %arg3: memref<1x16x20x20xf32, #tpu.memory_space<vmem>>, %arg4: memref<1x20x16x16xf32, #tpu.memory_space<vmem>>, %arg5: memref<1x20x16x16xf32, #tpu.memory_space<vmem>>) attributes {dimension_semantics = [#tpu.dimension_semantics<parallel>], iteration_bounds = array<i64: 2>, scalar_prefetch = 0 : i64, scratch_operands = 3 : i64, tpu.core_type = #tpu.core_type<tc>, window_params = [{transform_indices = @transform_0, window_bounds = array<i64: 1, 16, 16, 16>}, {transform_indices = @transform_1, window_bounds = array<i64: 1, 16, 16, 16>}]} {
    %cst = arith.constant 0.000000e+00 : f32
    %0 = vector.broadcast %cst : f32 to vector<1x16x20x20xf32>
    %c0 = arith.constant 0 : index
    %c0_0 = arith.constant 0 : index
    %c0_1 = arith.constant 0 : index
    %c0_2 = arith.constant 0 : index
    %1 = vector.load %arg3[%c0, %c0_0, %c0_1, %c0_2] : memref<1x16x20x20xf32, #tpu.memory_space<vmem>>, vector<1x16x20x20xf32>
    tpu.vector_store %arg3[%c0, %c0_0, %c0_1, %c0_2], %0 {strides = array<i32>} : memref<1x16x20x20xf32, #tpu.memory_space<vmem>>, vector<1x16x20x20xf32>,
    %c0_3 = arith.constant 0 : index
    %c0_4 = arith.constant 0 : index
    %c0_5 = arith.constant 0 : index
    %c0_6 = arith.constant 0 : index
    %2 = vector.load %arg1[%c0_3, %c0_4, %c0_5, %c0_6] : memref<1x16x16x16xf32, #tpu.memory_space<vmem>>, vector<1x16x16x16xf32>
    %c0_7 = arith.constant 0 : index
    %c0_8 = arith.constant 0 : index
    %c2 = arith.constant 2 : index
    %c2_9 = arith.constant 2 : index
    %3 = vector.load %arg3[%c0_7, %c0_8, %c2, %c2_9] : memref<1x16x20x20xf32, #tpu.memory_space<vmem>>, vector<1x16x16x16xf32>
    tpu.vector_store %arg3[%c0_7, %c0_8, %c2, %c2_9], %2 {strides = array<i32>} : memref<1x16x20x20xf32, #tpu.memory_space<vmem>>, vector<1x16x16x16xf32>,
    %cst_10 = arith.constant 0.000000e+00 : f32
    %4 = vector.broadcast %cst_10 : f32 to vector<1x2x16x16xf32>
    %c0_11 = arith.constant 0 : index
    %c0_12 = arith.constant 0 : index
    %c0_13 = arith.constant 0 : index
    %c0_14 = arith.constant 0 : index
    %5 = vector.load %arg4[%c0_11, %c0_12, %c0_13, %c0_14] : memref<1x20x16x16xf32, #tpu.memory_space<vmem>>, vector<1x2x16x16xf32>
    tpu.vector_store %arg4[%c0_11, %c0_12, %c0_13, %c0_14], %4 {strides = array<i32>} : memref<1x20x16x16xf32, #tpu.memory_space<vmem>>, vector<1x2x16x16xf32>,
    %c0_15 = arith.constant 0 : index
    %c18 = arith.constant 18 : index
    %c0_16 = arith.constant 0 : index
    %c0_17 = arith.constant 0 : index
    %6 = vector.load %arg4[%c0_15, %c18, %c0_16, %c0_17] : memref<1x20x16x16xf32, #tpu.memory_space<vmem>>, vector<1x2x16x16xf32>
    tpu.vector_store %arg4[%c0_15, %c18, %c0_16, %c0_17], %4 {strides = array<i32>} : memref<1x20x16x16xf32, #tpu.memory_space<vmem>>, vector<1x2x16x16xf32>,
    %c0_18 = arith.constant 0 : index
    %c0_19 = arith.constant 0 : index
    %c0_20 = arith.constant 0 : index
    %c0_21 = arith.constant 0 : index
    %7 = vector.load %arg5[%c0_18, %c0_19, %c0_20, %c0_21] : memref<1x20x16x16xf32, #tpu.memory_space<vmem>>, vector<1x2x16x16xf32>
    tpu.vector_store %arg5[%c0_18, %c0_19, %c0_20, %c0_21], %4 {strides = array<i32>} : memref<1x20x16x16xf32, #tpu.memory_space<vmem>>, vector<1x2x16x16xf32>,
    %c0_22 = arith.constant 0 : index
    %c18_23 = arith.constant 18 : index
    %c0_24 = arith.constant 0 : index
    %c0_25 = arith.constant 0 : index
    %8 = vector.load %arg5[%c0_22, %c18_23, %c0_24, %c0_25] : memref<1x20x16x16xf32, #tpu.memory_space<vmem>>, vector<1x2x16x16xf32>
    tpu.vector_store %arg5[%c0_22, %c18_23, %c0_24, %c0_25], %4 {strides = array<i32>} : memref<1x20x16x16xf32, #tpu.memory_space<vmem>>, vector<1x2x16x16xf32>,
    %c0_26 = arith.constant 0 : index
    %c0_27 = arith.constant 0 : index
    %c0_28 = arith.constant 0 : index
    %c0_29 = arith.constant 0 : index
    %9 = vector.load %arg3[%c0_26, %c0_27, %c0_28, %c0_29] : memref<1x16x20x20xf32, #tpu.memory_space<vmem>>, vector<1x1x20x20xf32>
    %10 = vector.extract_strided_slice %9 {offsets = [0, 0, 0, 0], sizes = [1, 1, 20, 16], strides = [1, 1, 1, 1]} : vector<1x1x20x20xf32> to vector<1x1x20x16xf32>
    %cst_30 = arith.constant 0.36787945 : f32
    %11 = vector.broadcast %cst_30 : f32 to vector<1x1x20x16xf32>
    %12 = arith.mulf %11, %10 : vector<1x1x20x16xf32>
    %13 = vector.extract_strided_slice %9 {offsets = [0, 0, 0, 0], sizes = [1, 1, 20, 16], strides = [1, 1, 1, 1]} : vector<1x1x20x20xf32> to vector<1x1x20x16xf32>
    %cst_31 = arith.constant 0.778800785 : f32
    %14 = vector.broadcast %cst_31 : f32 to vector<1x1x20x16xf32>
    %15 = arith.mulf %14, %13 : vector<1x1x20x16xf32>
    %16 = vector.extract_strided_slice %9 {offsets = [0, 0, 0, 1], sizes = [1, 1, 20, 16], strides = [1, 1, 1, 1]} : vector<1x1x20x20xf32> to vector<1x1x20x16xf32>
    %cst_32 = arith.constant 0.778800785 : f32
    %17 = vector.broadcast %cst_32 : f32 to vector<1x1x20x16xf32>
    %18 = arith.mulf %17, %16 : vector<1x1x20x16xf32>
    %19 = arith.addf %12, %18 : vector<1x1x20x16xf32>
    %cst_33 = arith.constant 0.93941307 : f32
    %20 = vector.broadcast %cst_33 : f32 to vector<1x1x20x16xf32>
    %21 = arith.mulf %20, %16 : vector<1x1x20x16xf32>
    %22 = arith.addf %15, %21 : vector<1x1x20x16xf32>
    %23 = vector.extract_strided_slice %9 {offsets = [0, 0, 0, 2], sizes = [1, 1, 20, 16], strides = [1, 1, 1, 1]} : vector<1x1x20x20xf32> to vector<1x1x20x16xf32>
    %cst_34 = arith.constant 1.000000e+00 : f32
    %24 = vector.broadcast %cst_34 : f32 to vector<1x1x20x16xf32>
    %25 = arith.mulf %24, %23 : vector<1x1x20x16xf32>
    %26 = arith.addf %19, %25 : vector<1x1x20x16xf32>
    %cst_35 = arith.constant 1.000000e+00 : f32
    %27 = vector.broadcast %cst_35 : f32 to vector<1x1x20x16xf32>
    %28 = arith.mulf %27, %23 : vector<1x1x20x16xf32>
    %29 = arith.addf %22, %28 : vector<1x1x20x16xf32>
    %30 = vector.extract_strided_slice %9 {offsets = [0, 0, 0, 3], sizes = [1, 1, 20, 16], strides = [1, 1, 1, 1]} : vector<1x1x20x20xf32> to vector<1x1x20x16xf32>
    %cst_36 = arith.constant 0.778800785 : f32
    %31 = vector.broadcast %cst_36 : f32 to vector<1x1x20x16xf32>
    %32 = arith.mulf %31, %30 : vector<1x1x20x16xf32>
    %33 = arith.addf %26, %32 : vector<1x1x20x16xf32>
    %cst_37 = arith.constant 0.93941307 : f32
    %34 = vector.broadcast %cst_37 : f32 to vector<1x1x20x16xf32>
    %35 = arith.mulf %34, %30 : vector<1x1x20x16xf32>
    %36 = arith.addf %29, %35 : vector<1x1x20x16xf32>
    %37 = vector.extract_strided_slice %9 {offsets = [0, 0, 0, 4], sizes = [1, 1, 20, 16], strides = [1, 1, 1, 1]} : vector<1x1x20x20xf32> to vector<1x1x20x16xf32>
    %cst_38 = arith.constant 0.36787945 : f32
    %38 = vector.broadcast %cst_38 : f32 to vector<1x1x20x16xf32>
    %39 = arith.mulf %38, %37 : vector<1x1x20x16xf32>
    %40 = arith.addf %33, %39 : vector<1x1x20x16xf32>
    %cst_39 = arith.constant 0.778800785 : f32
    %41 = vector.broadcast %cst_39 : f32 to vector<1x1x20x16xf32>
    %42 = arith.mulf %41, %37 : vector<1x1x20x16xf32>
    %43 = arith.addf %36, %42 : vector<1x1x20x16xf32>
    %44 = vector.extract_strided_slice %40 {offsets = [0, 0, 0, 0], sizes = [1, 1, 16, 16], strides = [1, 1, 1, 1]} : vector<1x1x20x16xf32> to vector<1x1x16x16xf32>
    %cst_40 = arith.constant 0.36787945 : f32
    %45 = vector.broadcast %cst_40 : f32 to vector<1x1x16x16xf32>
    %46 = arith.mulf %45, %44 : vector<1x1x16x16xf32>
    %47 = vector.extract_strided_slice %43 {offsets = [0, 0, 0, 0], sizes = [1, 1, 16, 16], strides = [1, 1, 1, 1]} : vector<1x1x20x16xf32> to vector<1x1x16x16xf32>
    %cst_41 = arith.constant 0.778800785 : f32
    %48 = vector.broadcast %cst_41 : f32 to vector<1x1x16x16xf32>
    %49 = arith.mulf %48, %47 : vector<1x1x16x16xf32>
    %50 = vector.extract_strided_slice %40 {offsets = [0, 0, 1, 0], sizes = [1, 1, 16, 16], strides = [1, 1, 1, 1]} : vector<1x1x20x16xf32> to vector<1x1x16x16xf32>
    %cst_42 = arith.constant 0.778800785 : f32
    %51 = vector.broadcast %cst_42 : f32 to vector<1x1x16x16xf32>
    %52 = arith.mulf %51, %50 : vector<1x1x16x16xf32>
    %53 = arith.addf %46, %52 : vector<1x1x16x16xf32>
    %54 = vector.extract_strided_slice %43 {offsets = [0, 0, 1, 0], sizes = [1, 1, 16, 16], strides = [1, 1, 1, 1]} : vector<1x1x20x16xf32> to vector<1x1x16x16xf32>
    %cst_43 = arith.constant 0.93941307 : f32
    %55 = vector.broadcast %cst_43 : f32 to vector<1x1x16x16xf32>
    %56 = arith.mulf %55, %54 : vector<1x1x16x16xf32>
    %57 = arith.addf %49, %56 : vector<1x1x16x16xf32>
    %58 = vector.extract_strided_slice %40 {offsets = [0, 0, 2, 0], sizes = [1, 1, 16, 16], strides = [1, 1, 1, 1]} : vector<1x1x20x16xf32> to vector<1x1x16x16xf32>
    %cst_44 = arith.constant 1.000000e+00 : f32
    %59 = vector.broadcast %cst_44 : f32 to vector<1x1x16x16xf32>
    %60 = arith.mulf %59, %58 : vector<1x1x16x16xf32>
    %61 = arith.addf %53, %60 : vector<1x1x16x16xf32>
    %62 = vector.extract_strided_slice %43 {offsets = [0, 0, 2, 0], sizes = [1, 1, 16, 16], strides = [1, 1, 1, 1]} : vector<1x1x20x16xf32> to vector<1x1x16x16xf32>
    %cst_45 = arith.constant 1.000000e+00 : f32
    %63 = vector.broadcast %cst_45 : f32 to vector<1x1x16x16xf32>
    %64 = arith.mulf %63, %62 : vector<1x1x16x16xf32>
    %65 = arith.addf %57, %64 : vector<1x1x16x16xf32>
    %66 = vector.extract_strided_slice %40 {offsets = [0, 0, 3, 0], sizes = [1, 1, 16, 16], strides = [1, 1, 1, 1]} : vector<1x1x20x16xf32> to vector<1x1x16x16xf32>
    %cst_46 = arith.constant 0.778800785 : f32
    %67 = vector.broadcast %cst_46 : f32 to vector<1x1x16x16xf32>
    %68 = arith.mulf %67, %66 : vector<1x1x16x16xf32>
    %69 = arith.addf %61, %68 : vector<1x1x16x16xf32>
    %70 = vector.extract_strided_slice %43 {offsets = [0, 0, 3, 0], sizes = [1, 1, 16, 16], strides = [1, 1, 1, 1]} : vector<1x1x20x16xf32> to vector<1x1x16x16xf32>
    %cst_47 = arith.constant 0.93941307 : f32
    %71 = vector.broadcast %cst_47 : f32 to vector<1x1x16x16xf32>
    %72 = arith.mulf %71, %70 : vector<1x1x16x16xf32>
    %73 = arith.addf %65, %72 : vector<1x1x16x16xf32>
    %74 = vector.extract_strided_slice %40 {offsets = [0, 0, 4, 0], sizes = [1, 1, 16, 16], strides = [1, 1, 1, 1]} : vector<1x1x20x16xf32> to vector<1x1x16x16xf32>
    %cst_48 = arith.constant 0.36787945 : f32
    %75 = vector.broadcast %cst_48 : f32 to vector<1x1x16x16xf32>
    %76 = arith.mulf %75, %74 : vector<1x1x16x16xf32>
    %77 = arith.addf %69, %76 : vector<1x1x16x16xf32>
    %78 = vector.extract_strided_slice %43 {offsets = [0, 0, 4, 0], sizes = [1, 1, 16, 16], strides = [1, 1, 1, 1]} : vector<1x1x20x16xf32> to vector<1x1x16x16xf32>
    %cst_49 = arith.constant 0.778800785 : f32
    %79 = vector.broadcast %cst_49 : f32 to vector<1x1x16x16xf32>
    %80 = arith.mulf %79, %78 : vector<1x1x16x16xf32>
    %81 = arith.addf %73, %80 : vector<1x1x16x16xf32>
    %c0_50 = arith.constant 0 : index
    %c2_51 = arith.constant 2 : index
    %c0_52 = arith.constant 0 : index
    %c0_53 = arith.constant 0 : index
    %82 = vector.load %arg4[%c0_50, %c2_51, %c0_52, %c0_53] : memref<1x20x16x16xf32, #tpu.memory_space<vmem>>, vector<1x1x16x16xf32>
    tpu.vector_store %arg4[%c0_50, %c2_51, %c0_52, %c0_53], %77 {strides = array<i32>} : memref<1x20x16x16xf32, #tpu.memory_space<vmem>>, vector<1x1x16x16xf32>,
    %c0_54 = arith.constant 0 : index
    %c2_55 = arith.constant 2 : index
    %c0_56 = arith.constant 0 : index
    %c0_57 = arith.constant 0 : index
    %83 = vector.load %arg5[%c0_54, %c2_55, %c0_56, %c0_57] : memref<1x20x16x16xf32, #tpu.memory_space<vmem>>, vector<1x1x16x16xf32>
    tpu.vector_store %arg5[%c0_54, %c2_55, %c0_56, %c0_57], %81 {strides = array<i32>} : memref<1x20x16x16xf32, #tpu.memory_space<vmem>>, vector<1x1x16x16xf32>,
    %c0_58 = arith.constant 0 : index
    %c1 = arith.constant 1 : index
    %c0_59 = arith.constant 0 : index
    %c0_60 = arith.constant 0 : index
    %84 = vector.load %arg3[%c0_58, %c1, %c0_59, %c0_60] : memref<1x16x20x20xf32, #tpu.memory_space<vmem>>, vector<1x1x20x20xf32>
    %85 = vector.extract_strided_slice %84 {offsets = [0, 0, 0, 0], sizes = [1, 1, 20, 16], strides = [1, 1, 1, 1]} : vector<1x1x20x20xf32> to vector<1x1x20x16xf32>
    %cst_61 = arith.constant 0.36787945 : f32
    %86 = vector.broadcast %cst_61 : f32 to vector<1x1x20x16xf32>
    %87 = arith.mulf %86, %85 : vector<1x1x20x16xf32>
    %88 = vector.extract_strided_slice %84 {offsets = [0, 0, 0, 0], sizes = [1, 1, 20, 16], strides = [1, 1, 1, 1]} : vector<1x1x20x20xf32> to vector<1x1x20x16xf32>
    %cst_62 = arith.constant 0.778800785 : f32
    %89 = vector.broadcast %cst_62 : f32 to vector<1x1x20x16xf32>
    %90 = arith.mulf %89, %88 : vector<1x1x20x16xf32>
    %91 = vector.extract_strided_slice %84 {offsets = [0, 0, 0, 1], sizes = [1, 1, 20, 16], strides = [1, 1, 1, 1]} : vector<1x1x20x20xf32> to vector<1x1x20x16xf32>
    %cst_63 = arith.constant 0.778800785 : f32
    %92 = vector.broadcast %cst_63 : f32 to vector<1x1x20x16xf32>
    %93 = arith.mulf %92, %91 : vector<1x1x20x16xf32>
    %94 = arith.addf %87, %93 : vector<1x1x20x16xf32>
    %cst_64 = arith.constant 0.93941307 : f32
    %95 = vector.broadcast %cst_64 : f32 to vector<1x1x20x16xf32>
    %96 = arith.mulf %95, %91 : vector<1x1x20x16xf32>
    %97 = arith.addf %90, %96 : vector<1x1x20x16xf32>
    %98 = vector.extract_strided_slice %84 {offsets = [0, 0, 0, 2], sizes = [1, 1, 20, 16], strides = [1, 1, 1, 1]} : vector<1x1x20x20xf32> to vector<1x1x20x16xf32>
    %cst_65 = arith.constant 1.000000e+00 : f32
    %99 = vector.broadcast %cst_65 : f32 to vector<1x1x20x16xf32>
    %100 = arith.mulf %99, %98 : vector<1x1x20x16xf32>
    %101 = arith.addf %94, %100 : vector<1x1x20x16xf32>
    %cst_66 = arith.constant 1.000000e+00 : f32
    %102 = vector.broadcast %cst_66 : f32 to vector<1x1x20x16xf32>
    %103 = arith.mulf %102, %98 : vector<1x1x20x16xf32>
    %104 = arith.addf %97, %103 : vector<1x1x20x16xf32>
    %105 = vector.extract_strided_slice %84 {offsets = [0, 0, 0, 3], sizes = [1, 1, 20, 16], strides = [1, 1, 1, 1]} : vector<1x1x20x20xf32> to vector<1x1x20x16xf32>
    %cst_67 = arith.constant 0.778800785 : f32
    %106 = vector.broadcast %cst_67 : f32 to vector<1x1x20x16xf32>
    %107 = arith.mulf %106, %105 : vector<1x1x20x16xf32>
    %108 = arith.addf %101, %107 : vector<1x1x20x16xf32>
    %cst_68 = arith.constant 0.93941307 : f32
    %109 = vector.broadcast %cst_68 : f32 to vector<1x1x20x16xf32>
    %110 = arith.mulf %109, %105 : vector<1x1x20x16xf32>
    %111 = arith.addf %104, %110 : vector<1x1x20x16xf32>
    %112 = vector.extract_strided_slice %84 {offsets = [0, 0, 0, 4], sizes = [1, 1, 20, 16], strides = [1, 1, 1, 1]} : vector<1x1x20x20xf32> to vector<1x1x20x16xf32>
    %cst_69 = arith.constant 0.36787945 : f32
    %113 = vector.broadcast %cst_69 : f32 to vector<1x1x20x16xf32>
    %114 = arith.mulf %113, %112 : vector<1x1x20x16xf32>
    %115 = arith.addf %108, %114 : vector<1x1x20x16xf32>
    %cst_70 = arith.constant 0.778800785 : f32
    %116 = vector.broadcast %cst_70 : f32 to vector<1x1x20x16xf32>
    %117 = arith.mulf %116, %112 : vector<1x1x20x16xf32>
    %118 = arith.addf %111, %117 : vector<1x1x20x16xf32>
    %119 = vector.extract_strided_slice %115 {offsets = [0, 0, 0, 0], sizes = [1, 1, 16, 16], strides = [1, 1, 1, 1]} : vector<1x1x20x16xf32> to vector<1x1x16x16xf32>
    %cst_71 = arith.constant 0.36787945 : f32
    %120 = vector.broadcast %cst_71 : f32 to vector<1x1x16x16xf32>
    %121 = arith.mulf %120, %119 : vector<1x1x16x16xf32>
    %122 = vector.extract_strided_slice %118 {offsets = [0, 0, 0, 0], sizes = [1, 1, 16, 16], strides = [1, 1, 1, 1]} : vector<1x1x20x16xf32> to vector<1x1x16x16xf32>
    %cst_72 = arith.constant 0.778800785 : f32
    %123 = vector.broadcast %cst_72 : f32 to vector<1x1x16x16xf32>
    %124 = arith.mulf %123, %122 : vector<1x1x16x16xf32>
    %125 = vector.extract_strided_slice %115 {offsets = [0, 0, 1, 0], sizes = [1, 1, 16, 16], strides = [1, 1, 1, 1]} : vector<1x1x20x16xf32> to vector<1x1x16x16xf32>
    %cst_73 = arith.constant 0.778800785 : f32
    %126 = vector.broadcast %cst_73 : f32 to vector<1x1x16x16xf32>
    %127 = arith.mulf %126, %125 : vector<1x1x16x16xf32>
    %128 = arith.addf %121, %127 : vector<1x1x16x16xf32>
    %129 = vector.extract_strided_slice %118 {offsets = [0, 0, 1, 0], sizes = [1, 1, 16, 16], strides = [1, 1, 1, 1]} : vector<1x1x20x16xf32> to vector<1x1x16x16xf32>
    %cst_74 = arith.constant 0.93941307 : f32
    %130 = vector.broadcast %cst_74 : f32 to vector<1x1x16x16xf32>
    %131 = arith.mulf %130, %129 : vector<1x1x16x16xf32>
    %132 = arith.addf %124, %131 : vector<1x1x16x16xf32>
    %133 = vector.extract_strided_slice %115 {offsets = [0, 0, 2, 0], sizes = [1, 1, 16, 16], strides = [1, 1, 1, 1]} : vector<1x1x20x16xf32> to vector<1x1x16x16xf32>
    %cst_75 = arith.constant 1.000000e+00 : f32
    %134 = vector.broadcast %cst_75 : f32 to vector<1x1x16x16xf32>
    %135 = arith.mulf %134, %133 : vector<1x1x16x16xf32>
    %136 = arith.addf %128, %135 : vector<1x1x16x16xf32>
    %137 = vector.extract_strided_slice %118 {offsets = [0, 0, 2, 0], sizes = [1, 1, 16, 16], strides = [1, 1, 1, 1]} : vector<1x1x20x16xf32> to vector<1x1x16x16xf32>
    %cst_76 = arith.constant 1.000000e+00 : f32
    %138 = vector.broadcast %cst_76 : f32 to vector<1x1x16x16xf32>
    %139 = arith.mulf %138, %137 : vector<1x1x16x16xf32>
    %140 = arith.addf %132, %139 : vector<1x1x16x16xf32>
    %141 = vector.extract_strided_slice %115 {offsets = [0, 0, 3, 0], sizes = [1, 1, 16, 16], strides = [1, 1, 1, 1]} : vector<1x1x20x16xf32> to vector<1x1x16x16xf32>
    %cst_77 = arith.constant 0.778800785 : f32
    %142 = vector.broadcast %cst_77 : f32 to vector<1x1x16x16xf32>
    %143 = arith.mulf %142, %141 : vector<1x1x16x16xf32>
    %144 = arith.addf %136, %143 : vector<1x1x16x16xf32>
    %145 = vector.extract_strided_slice %118 {offsets = [0, 0, 3, 0], sizes = [1, 1, 16, 16], strides = [1, 1, 1, 1]} : vector<1x1x20x16xf32> to vector<1x1x16x16xf32>
    %cst_78 = arith.constant 0.93941307 : f32
    %146 = vector.broadcast %cst_78 : f32 to vector<1x1x16x16xf32>
    %147 = arith.mulf %146, %145 : vector<1x1x16x16xf32>
    %148 = arith.addf %140, %147 : vector<1x1x16x16xf32>
    %149 = vector.extract_strided_slice %115 {offsets = [0, 0, 4, 0], sizes = [1, 1, 16, 16], strides = [1, 1, 1, 1]} : vector<1x1x20x16xf32> to vector<1x1x16x16xf32>
    %cst_79 = arith.constant 0.36787945 : f32
    %150 = vector.broadcast %cst_79 : f32 to vector<1x1x16x16xf32>
    %151 = arith.mulf %150, %149 : vector<1x1x16x16xf32>
    %152 = arith.addf %144, %151 : vector<1x1x16x16xf32>
    %153 = vector.extract_strided_slice %118 {offsets = [0, 0, 4, 0], sizes = [1, 1, 16, 16], strides = [1, 1, 1, 1]} : vector<1x1x20x16xf32> to vector<1x1x16x16xf32>
    %cst_80 = arith.constant 0.778800785 : f32
    %154 = vector.broadcast %cst_80 : f32 to vector<1x1x16x16xf32>
    %155 = arith.mulf %154, %153 : vector<1x1x16x16xf32>
    %156 = arith.addf %148, %155 : vector<1x1x16x16xf32>
    %c0_81 = arith.constant 0 : index
    %c3 = arith.constant 3 : index
    %c0_82 = arith.constant 0 : index
    %c0_83 = arith.constant 0 : index
    %157 = vector.load %arg4[%c0_81, %c3, %c0_82, %c0_83] : memref<1x20x16x16xf32, #tpu.memory_space<vmem>>, vector<1x1x16x16xf32>
    tpu.vector_store %arg4[%c0_81, %c3, %c0_82, %c0_83], %152 {strides = array<i32>} : memref<1x20x16x16xf32, #tpu.memory_space<vmem>>, vector<1x1x16x16xf32>,
    %c0_84 = arith.constant 0 : index
    %c3_85 = arith.constant 3 : index
    %c0_86 = arith.constant 0 : index
    %c0_87 = arith.constant 0 : index
    %158 = vector.load %arg5[%c0_84, %c3_85, %c0_86, %c0_87] : memref<1x20x16x16xf32, #tpu.memory_space<vmem>>, vector<1x1x16x16xf32>
    tpu.vector_store %arg5[%c0_84, %c3_85, %c0_86, %c0_87], %156 {strides = array<i32>} : memref<1x20x16x16xf32, #tpu.memory_space<vmem>>, vector<1x1x16x16xf32>,
    %c0_88 = arith.constant 0 : index
    %c2_89 = arith.constant 2 : index
    %c0_90 = arith.constant 0 : index
    %c0_91 = arith.constant 0 : index
    %159 = vector.load %arg3[%c0_88, %c2_89, %c0_90, %c0_91] : memref<1x16x20x20xf32, #tpu.memory_space<vmem>>, vector<1x1x20x20xf32>
    %160 = vector.extract_strided_slice %159 {offsets = [0, 0, 0, 0], sizes = [1, 1, 20, 16], strides = [1, 1, 1, 1]} : vector<1x1x20x20xf32> to vector<1x1x20x16xf32>
    %cst_92 = arith.constant 0.36787945 : f32
    %161 = vector.broadcast %cst_92 : f32 to vector<1x1x20x16xf32>
    %162 = arith.mulf %161, %160 : vector<1x1x20x16xf32>
    %163 = vector.extract_strided_slice %159 {offsets = [0, 0, 0, 0], sizes = [1, 1, 20, 16], strides = [1, 1, 1, 1]} : vector<1x1x20x20xf32> to vector<1x1x20x16xf32>
    %cst_93 = arith.constant 0.778800785 : f32
    %164 = vector.broadcast %cst_93 : f32 to vector<1x1x20x16xf32>
    %165 = arith.mulf %164, %163 : vector<1x1x20x16xf32>
    %166 = vector.extract_strided_slice %159 {offsets = [0, 0, 0, 1], sizes = [1, 1, 20, 16], strides = [1, 1, 1, 1]} : vector<1x1x20x20xf32> to vector<1x1x20x16xf32>
    %cst_94 = arith.constant 0.778800785 : f32
    %167 = vector.broadcast %cst_94 : f32 to vector<1x1x20x16xf32>
    %168 = arith.mulf %167, %166 : vector<1x1x20x16xf32>
    %169 = arith.addf %162, %168 : vector<1x1x20x16xf32>
    %cst_95 = arith.constant 0.93941307 : f32
    %170 = vector.broadcast %cst_95 : f32 to vector<1x1x20x16xf32>
    %171 = arith.mulf %170, %166 : vector<1x1x20x16xf32>
    %172 = arith.addf %165, %171 : vector<1x1x20x16xf32>
    %173 = vector.extract_strided_slice %159 {offsets = [0, 0, 0, 2], sizes = [1, 1, 20, 16], strides = [1, 1, 1, 1]} : vector<1x1x20x20xf32> to vector<1x1x20x16xf32>
    %cst_96 = arith.constant 1.000000e+00 : f32
    %174 = vector.broadcast %cst_96 : f32 to vector<1x1x20x16xf32>
    %175 = arith.mulf %174, %173 : vector<1x1x20x16xf32>
    %176 = arith.addf %169, %175 : vector<1x1x20x16xf32>
    %cst_97 = arith.constant 1.000000e+00 : f32
    %177 = vector.broadcast %cst_97 : f32 to vector<1x1x20x16xf32>
    %178 = arith.mulf %177, %173 : vector<1x1x20x16xf32>
    %179 = arith.addf %172, %178 : vector<1x1x20x16xf32>
    %180 = vector.extract_strided_slice %159 {offsets = [0, 0, 0, 3], sizes = [1, 1, 20, 16], strides = [1, 1, 1, 1]} : vector<1x1x20x20xf32> to vector<1x1x20x16xf32>
    %cst_98 = arith.constant 0.778800785 : f32
    %181 = vector.broadcast %cst_98 : f32 to vector<1x1x20x16xf32>
    %182 = arith.mulf %181, %180 : vector<1x1x20x16xf32>
    %183 = arith.addf %176, %182 : vector<1x1x20x16xf32>
    %cst_99 = arith.constant 0.93941307 : f32
    %184 = vector.broadcast %cst_99 : f32 to vector<1x1x20x16xf32>
    %185 = arith.mulf %184, %180 : vector<1x1x20x16xf32>
    %186 = arith.addf %179, %185 : vector<1x1x20x16xf32>
    %187 = vector.extract_strided_slice %159 {offsets = [0, 0, 0, 4], sizes = [1, 1, 20, 16], strides = [1, 1, 1, 1]} : vector<1x1x20x20xf32> to vector<1x1x20x16xf32>
    %cst_100 = arith.constant 0.36787945 : f32
    %188 = vector.broadcast %cst_100 : f32 to vector<1x1x20x16xf32>
    %189 = arith.mulf %188, %187 : vector<1x1x20x16xf32>
    %190 = arith.addf %183, %189 : vector<1x1x20x16xf32>
    %cst_101 = arith.constant 0.778800785 : f32
    %191 = vector.broadcast %cst_101 : f32 to vector<1x1x20x16xf32>
    %192 = arith.mulf %191, %187 : vector<1x1x20x16xf32>
    %193 = arith.addf %186, %192 : vector<1x1x20x16xf32>
    %194 = vector.extract_strided_slice %190 {offsets = [0, 0, 0, 0], sizes = [1, 1, 16, 16], strides = [1, 1, 1, 1]} : vector<1x1x20x16xf32> to vector<1x1x16x16xf32>
    %cst_102 = arith.constant 0.36787945 : f32
    %195 = vector.broadcast %cst_102 : f32 to vector<1x1x16x16xf32>
    %196 = arith.mulf %195, %194 : vector<1x1x16x16xf32>
    %197 = vector.extract_strided_slice %193 {offsets = [0, 0, 0, 0], sizes = [1, 1, 16, 16], strides = [1, 1, 1, 1]} : vector<1x1x20x16xf32> to vector<1x1x16x16xf32>
    %cst_103 = arith.constant 0.778800785 : f32
    %198 = vector.broadcast %cst_103 : f32 to vector<1x1x16x16xf32>
    %199 = arith.mulf %198, %197 : vector<1x1x16x16xf32>
    %200 = vector.extract_strided_slice %190 {offsets = [0, 0, 1, 0], sizes = [1, 1, 16, 16], strides = [1, 1, 1, 1]} : vector<1x1x20x16xf32> to vector<1x1x16x16xf32>
    %cst_104 = arith.constant 0.778800785 : f32
    %201 = vector.broadcast %cst_104 : f32 to vector<1x1x16x16xf32>
    %202 = arith.mulf %201, %200 : vector<1x1x16x16xf32>
    %203 = arith.addf %196, %202 : vector<1x1x16x16xf32>
    %204 = vector.extract_strided_slice %193 {offsets = [0, 0, 1, 0], sizes = [1, 1, 16, 16], strides = [1, 1, 1, 1]} : vector<1x1x20x16xf32> to vector<1x1x16x16xf32>
    %cst_105 = arith.constant 0.93941307 : f32
    %205 = vector.broadcast %cst_105 : f32 to vector<1x1x16x16xf32>
    %206 = arith.mulf %205, %204 : vector<1x1x16x16xf32>
    %207 = arith.addf %199, %206 : vector<1x1x16x16xf32>
    %208 = vector.extract_strided_slice %190 {offsets = [0, 0, 2, 0], sizes = [1, 1, 16, 16], strides = [1, 1, 1, 1]} : vector<1x1x20x16xf32> to vector<1x1x16x16xf32>
    %cst_106 = arith.constant 1.000000e+00 : f32
    %209 = vector.broadcast %cst_106 : f32 to vector<1x1x16x16xf32>
    %210 = arith.mulf %209, %208 : vector<1x1x16x16xf32>
    %211 = arith.addf %203, %210 : vector<1x1x16x16xf32>
    %212 = vector.extract_strided_slice %193 {offsets = [0, 0, 2, 0], sizes = [1, 1, 16, 16], strides = [1, 1, 1, 1]} : vector<1x1x20x16xf32> to vector<1x1x16x16xf32>
    %cst_107 = arith.constant 1.000000e+00 : f32
    %213 = vector.broadcast %cst_107 : f32 to vector<1x1x16x16xf32>
    %214 = arith.mulf %213, %212 : vector<1x1x16x16xf32>
    %215 = arith.addf %207, %214 : vector<1x1x16x16xf32>
    %216 = vector.extract_strided_slice %190 {offsets = [0, 0, 3, 0], sizes = [1, 1, 16, 16], strides = [1, 1, 1, 1]} : vector<1x1x20x16xf32> to vector<1x1x16x16xf32>
    %cst_108 = arith.constant 0.778800785 : f32
    %217 = vector.broadcast %cst_108 : f32 to vector<1x1x16x16xf32>
    %218 = arith.mulf %217, %216 : vector<1x1x16x16xf32>
    %219 = arith.addf %211, %218 : vector<1x1x16x16xf32>
    %220 = vector.extract_strided_slice %193 {offsets = [0, 0, 3, 0], sizes = [1, 1, 16, 16], strides = [1, 1, 1, 1]} : vector<1x1x20x16xf32> to vector<1x1x16x16xf32>
    %cst_109 = arith.constant 0.93941307 : f32
    %221 = vector.broadcast %cst_109 : f32 to vector<1x1x16x16xf32>
    %222 = arith.mulf %221, %220 : vector<1x1x16x16xf32>
    %223 = arith.addf %215, %222 : vector<1x1x16x16xf32>
    %224 = vector.extract_strided_slice %190 {offsets = [0, 0, 4, 0], sizes = [1, 1, 16, 16], strides = [1, 1, 1, 1]} : vector<1x1x20x16xf32> to vector<1x1x16x16xf32>
    %cst_110 = arith.constant 0.36787945 : f32
    %225 = vector.broadcast %cst_110 : f32 to vector<1x1x16x16xf32>
    %226 = arith.mulf %225, %224 : vector<1x1x16x16xf32>
    %227 = arith.addf %219, %226 : vector<1x1x16x16xf32>
    %228 = vector.extract_strided_slice %193 {offsets = [0, 0, 4, 0], sizes = [1, 1, 16, 16], strides = [1, 1, 1, 1]} : vector<1x1x20x16xf32> to vector<1x1x16x16xf32>
    %cst_111 = arith.constant 0.778800785 : f32
    %229 = vector.broadcast %cst_111 : f32 to vector<1x1x16x16xf32>
    %230 = arith.mulf %229, %228 : vector<1x1x16x16xf32>
    %231 = arith.addf %223, %230 : vector<1x1x16x16xf32>
    %c0_112 = arith.constant 0 : index
    %c4 = arith.constant 4 : index
    %c0_113 = arith.constant 0 : index
    %c0_114 = arith.constant 0 : index
    %232 = vector.load %arg4[%c0_112, %c4, %c0_113, %c0_114] : memref<1x20x16x16xf32, #tpu.memory_space<vmem>>, vector<1x1x16x16xf32>
    tpu.vector_store %arg4[%c0_112, %c4, %c0_113, %c0_114], %227 {strides = array<i32>} : memref<1x20x16x16xf32, #tpu.memory_space<vmem>>, vector<1x1x16x16xf32>,
    %c0_115 = arith.constant 0 : index
    %c4_116 = arith.constant 4 : index
    %c0_117 = arith.constant 0 : index
    %c0_118 = arith.constant 0 : index
    %233 = vector.load %arg5[%c0_115, %c4_116, %c0_117, %c0_118] : memref<1x20x16x16xf32, #tpu.memory_space<vmem>>, vector<1x1x16x16xf32>
    tpu.vector_store %arg5[%c0_115, %c4_116, %c0_117, %c0_118], %231 {strides = array<i32>} : memref<1x20x16x16xf32, #tpu.memory_space<vmem>>, vector<1x1x16x16xf32>,
    %c0_119 = arith.constant 0 : index
    %c3_120 = arith.constant 3 : index
    %c0_121 = arith.constant 0 : index
    %c0_122 = arith.constant 0 : index
    %234 = vector.load %arg3[%c0_119, %c3_120, %c0_121, %c0_122] : memref<1x16x20x20xf32, #tpu.memory_space<vmem>>, vector<1x1x20x20xf32>
    %235 = vector.extract_strided_slice %234 {offsets = [0, 0, 0, 0], sizes = [1, 1, 20, 16], strides = [1, 1, 1, 1]} : vector<1x1x20x20xf32> to vector<1x1x20x16xf32>
    %cst_123 = arith.constant 0.36787945 : f32
    %236 = vector.broadcast %cst_123 : f32 to vector<1x1x20x16xf32>
    %237 = arith.mulf %236, %235 : vector<1x1x20x16xf32>
    %238 = vector.extract_strided_slice %234 {offsets = [0, 0, 0, 0], sizes = [1, 1, 20, 16], strides = [1, 1, 1, 1]} : vector<1x1x20x20xf32> to vector<1x1x20x16xf32>
    %cst_124 = arith.constant 0.778800785 : f32
    %239 = vector.broadcast %cst_124 : f32 to vector<1x1x20x16xf32>
    %240 = arith.mulf %239, %238 : vector<1x1x20x16xf32>
    %241 = vector.extract_strided_slice %234 {offsets = [0, 0, 0, 1], sizes = [1, 1, 20, 16], strides = [1, 1, 1, 1]} : vector<1x1x20x20xf32> to vector<1x1x20x16xf32>
    %cst_125 = arith.constant 0.778800785 : f32
    %242 = vector.broadcast %cst_125 : f32 to vector<1x1x20x16xf32>
    %243 = arith.mulf %242, %241 : vector<1x1x20x16xf32>
    %244 = arith.addf %237, %243 : vector<1x1x20x16xf32>
    %cst_126 = arith.constant 0.93941307 : f32
    %245 = vector.broadcast %cst_126 : f32 to vector<1x1x20x16xf32>
    %246 = arith.mulf %245, %241 : vector<1x1x20x16xf32>
    %247 = arith.addf %240, %246 : vector<1x1x20x16xf32>
    %248 = vector.extract_strided_slice %234 {offsets = [0, 0, 0, 2], sizes = [1, 1, 20, 16], strides = [1, 1, 1, 1]} : vector<1x1x20x20xf32> to vector<1x1x20x16xf32>
    %cst_127 = arith.constant 1.000000e+00 : f32
    %249 = vector.broadcast %cst_127 : f32 to vector<1x1x20x16xf32>
    %250 = arith.mulf %249, %248 : vector<1x1x20x16xf32>
    %251 = arith.addf %244, %250 : vector<1x1x20x16xf32>
    %cst_128 = arith.constant 1.000000e+00 : f32
    %252 = vector.broadcast %cst_128 : f32 to vector<1x1x20x16xf32>
    %253 = arith.mulf %252, %248 : vector<1x1x20x16xf32>
    %254 = arith.addf %247, %253 : vector<1x1x20x16xf32>
    %255 = vector.extract_strided_slice %234 {offsets = [0, 0, 0, 3], sizes = [1, 1, 20, 16], strides = [1, 1, 1, 1]} : vector<1x1x20x20xf32> to vector<1x1x20x16xf32>
    %cst_129 = arith.constant 0.778800785 : f32
    %256 = vector.broadcast %cst_129 : f32 to vector<1x1x20x16xf32>
    %257 = arith.mulf %256, %255 : vector<1x1x20x16xf32>
    %258 = arith.addf %251, %257 : vector<1x1x20x16xf32>
    %cst_130 = arith.constant 0.93941307 : f32
    %259 = vector.broadcast %cst_130 : f32 to vector<1x1x20x16xf32>
    %260 = arith.mulf %259, %255 : vector<1x1x20x16xf32>
    %261 = arith.addf %254, %260 : vector<1x1x20x16xf32>
    %262 = vector.extract_strided_slice %234 {offsets = [0, 0, 0, 4], sizes = [1, 1, 20, 16], strides = [1, 1, 1, 1]} : vector<1x1x20x20xf32> to vector<1x1x20x16xf32>
    %cst_131 = arith.constant 0.36787945 : f32
    %263 = vector.broadcast %cst_131 : f32 to vector<1x1x20x16xf32>
    %264 = arith.mulf %263, %262 : vector<1x1x20x16xf32>
    %265 = arith.addf %258, %264 : vector<1x1x20x16xf32>
    %cst_132 = arith.constant 0.778800785 : f32
    %266 = vector.broadcast %cst_132 : f32 to vector<1x1x20x16xf32>
    %267 = arith.mulf %266, %262 : vector<1x1x20x16xf32>
    %268 = arith.addf %261, %267 : vector<1x1x20x16xf32>
    %269 = vector.extract_strided_slice %265 {offsets = [0, 0, 0, 0], sizes = [1, 1, 16, 16], strides = [1, 1, 1, 1]} : vector<1x1x20x16xf32> to vector<1x1x16x16xf32>
    %cst_133 = arith.constant 0.36787945 : f32
    %270 = vector.broadcast %cst_133 : f32 to vector<1x1x16x16xf32>
    %271 = arith.mulf %270, %269 : vector<1x1x16x16xf32>
    %272 = vector.extract_strided_slice %268 {offsets = [0, 0, 0, 0], sizes = [1, 1, 16, 16], strides = [1, 1, 1, 1]} : vector<1x1x20x16xf32> to vector<1x1x16x16xf32>
    %cst_134 = arith.constant 0.778800785 : f32
    %273 = vector.broadcast %cst_134 : f32 to vector<1x1x16x16xf32>
    %274 = arith.mulf %273, %272 : vector<1x1x16x16xf32>
    %275 = vector.extract_strided_slice %265 {offsets = [0, 0, 1, 0], sizes = [1, 1, 16, 16], strides = [1, 1, 1, 1]} : vector<1x1x20x16xf32> to vector<1x1x16x16xf32>
    %cst_135 = arith.constant 0.778800785 : f32
    %276 = vector.broadcast %cst_135 : f32 to vector<1x1x16x16xf32>
    %277 = arith.mulf %276, %275 : vector<1x1x16x16xf32>
    %278 = arith.addf %271, %277 : vector<1x1x16x16xf32>
    %279 = vector.extract_strided_slice %268 {offsets = [0, 0, 1, 0], sizes = [1, 1, 16, 16], strides = [1, 1, 1, 1]} : vector<1x1x20x16xf32> to vector<1x1x16x16xf32>
    %cst_136 = arith.constant 0.93941307 : f32
    %280 = vector.broadcast %cst_136 : f32 to vector<1x1x16x16xf32>
    %281 = arith.mulf %280, %279 : vector<1x1x16x16xf32>
    %282 = arith.addf %274, %281 : vector<1x1x16x16xf32>
    %283 = vector.extract_strided_slice %265 {offsets = [0, 0, 2, 0], sizes = [1, 1, 16, 16], strides = [1, 1, 1, 1]} : vector<1x1x20x16xf32> to vector<1x1x16x16xf32>
    %cst_137 = arith.constant 1.000000e+00 : f32
    %284 = vector.broadcast %cst_137 : f32 to vector<1x1x16x16xf32>
    %285 = arith.mulf %284, %283 : vector<1x1x16x16xf32>
    %286 = arith.addf %278, %285 : vector<1x1x16x16xf32>
    %287 = vector.extract_strided_slice %268 {offsets = [0, 0, 2, 0], sizes = [1, 1, 16, 16], strides = [1, 1, 1, 1]} : vector<1x1x20x16xf32> to vector<1x1x16x16xf32>
    %cst_138 = arith.constant 1.000000e+00 : f32
    %288 = vector.broadcast %cst_138 : f32 to vector<1x1x16x16xf32>
    %289 = arith.mulf %288, %287 : vector<1x1x16x16xf32>
    %290 = arith.addf %282, %289 : vector<1x1x16x16xf32>
    %291 = vector.extract_strided_slice %265 {offsets = [0, 0, 3, 0], sizes = [1, 1, 16, 16], strides = [1, 1, 1, 1]} : vector<1x1x20x16xf32> to vector<1x1x16x16xf32>
    %cst_139 = arith.constant 0.778800785 : f32
    %292 = vector.broadcast %cst_139 : f32 to vector<1x1x16x16xf32>
    %293 = arith.mulf %292, %291 : vector<1x1x16x16xf32>
    %294 = arith.addf %286, %293 : vector<1x1x16x16xf32>
    %295 = vector.extract_strided_slice %268 {offsets = [0, 0, 3, 0], sizes = [1, 1, 16, 16], strides = [1, 1, 1, 1]} : vector<1x1x20x16xf32> to vector<1x1x16x16xf32>
    %cst_140 = arith.constant 0.93941307 : f32
    %296 = vector.broadcast %cst_140 : f32 to vector<1x1x16x16xf32>
    %297 = arith.mulf %296, %295 : vector<1x1x16x16xf32>
    %298 = arith.addf %290, %297 : vector<1x1x16x16xf32>
    %299 = vector.extract_strided_slice %265 {offsets = [0, 0, 4, 0], sizes = [1, 1, 16, 16], strides = [1, 1, 1, 1]} : vector<1x1x20x16xf32> to vector<1x1x16x16xf32>
    %cst_141 = arith.constant 0.36787945 : f32
    %300 = vector.broadcast %cst_141 : f32 to vector<1x1x16x16xf32>
    %301 = arith.mulf %300, %299 : vector<1x1x16x16xf32>
    %302 = arith.addf %294, %301 : vector<1x1x16x16xf32>
    %303 = vector.extract_strided_slice %268 {offsets = [0, 0, 4, 0], sizes = [1, 1, 16, 16], strides = [1, 1, 1, 1]} : vector<1x1x20x16xf32> to vector<1x1x16x16xf32>
    %cst_142 = arith.constant 0.778800785 : f32
    %304 = vector.broadcast %cst_142 : f32 to vector<1x1x16x16xf32>
    %305 = arith.mulf %304, %303 : vector<1x1x16x16xf32>
    %306 = arith.addf %298, %305 : vector<1x1x16x16xf32>
    %c0_143 = arith.constant 0 : index
    %c5 = arith.constant 5 : index
    %c0_144 = arith.constant 0 : index
    %c0_145 = arith.constant 0 : index
    %307 = vector.load %arg4[%c0_143, %c5, %c0_144, %c0_145] : memref<1x20x16x16xf32, #tpu.memory_space<vmem>>, vector<1x1x16x16xf32>
    tpu.vector_store %arg4[%c0_143, %c5, %c0_144, %c0_145], %302 {strides = array<i32>} : memref<1x20x16x16xf32, #tpu.memory_space<vmem>>, vector<1x1x16x16xf32>,
    %c0_146 = arith.constant 0 : index
    %c5_147 = arith.constant 5 : index
    %c0_148 = arith.constant 0 : index
    %c0_149 = arith.constant 0 : index
    %308 = vector.load %arg5[%c0_146, %c5_147, %c0_148, %c0_149] : memref<1x20x16x16xf32, #tpu.memory_space<vmem>>, vector<1x1x16x16xf32>
    tpu.vector_store %arg5[%c0_146, %c5_147, %c0_148, %c0_149], %306 {strides = array<i32>} : memref<1x20x16x16xf32, #tpu.memory_space<vmem>>, vector<1x1x16x16xf32>,
    %c0_150 = arith.constant 0 : index
    %c4_151 = arith.constant 4 : index
    %c0_152 = arith.constant 0 : index
    %c0_153 = arith.constant 0 : index
    %309 = vector.load %arg3[%c0_150, %c4_151, %c0_152, %c0_153] : memref<1x16x20x20xf32, #tpu.memory_space<vmem>>, vector<1x1x20x20xf32>
    %310 = vector.extract_strided_slice %309 {offsets = [0, 0, 0, 0], sizes = [1, 1, 20, 16], strides = [1, 1, 1, 1]} : vector<1x1x20x20xf32> to vector<1x1x20x16xf32>
    %cst_154 = arith.constant 0.36787945 : f32
    %311 = vector.broadcast %cst_154 : f32 to vector<1x1x20x16xf32>
    %312 = arith.mulf %311, %310 : vector<1x1x20x16xf32>
    %313 = vector.extract_strided_slice %309 {offsets = [0, 0, 0, 0], sizes = [1, 1, 20, 16], strides = [1, 1, 1, 1]} : vector<1x1x20x20xf32> to vector<1x1x20x16xf32>
    %cst_155 = arith.constant 0.778800785 : f32
    %314 = vector.broadcast %cst_155 : f32 to vector<1x1x20x16xf32>
    %315 = arith.mulf %314, %313 : vector<1x1x20x16xf32>
    %316 = vector.extract_strided_slice %309 {offsets = [0, 0, 0, 1], sizes = [1, 1, 20, 16], strides = [1, 1, 1, 1]} : vector<1x1x20x20xf32> to vector<1x1x20x16xf32>
    %cst_156 = arith.constant 0.778800785 : f32
    %317 = vector.broadcast %cst_156 : f32 to vector<1x1x20x16xf32>
    %318 = arith.mulf %317, %316 : vector<1x1x20x16xf32>
    %319 = arith.addf %312, %318 : vector<1x1x20x16xf32>
    %cst_157 = arith.constant 0.93941307 : f32
    %320 = vector.broadcast %cst_157 : f32 to vector<1x1x20x16xf32>
    %321 = arith.mulf %320, %316 : vector<1x1x20x16xf32>
    %322 = arith.addf %315, %321 : vector<1x1x20x16xf32>
    %323 = vector.extract_strided_slice %309 {offsets = [0, 0, 0, 2], sizes = [1, 1, 20, 16], strides = [1, 1, 1, 1]} : vector<1x1x20x20xf32> to vector<1x1x20x16xf32>
    %cst_158 = arith.constant 1.000000e+00 : f32
    %324 = vector.broadcast %cst_158 : f32 to vector<1x1x20x16xf32>
    %325 = arith.mulf %324, %323 : vector<1x1x20x16xf32>
    %326 = arith.addf %319, %325 : vector<1x1x20x16xf32>
    %cst_159 = arith.constant 1.000000e+00 : f32
    %327 = vector.broadcast %cst_159 : f32 to vector<1x1x20x16xf32>
    %328 = arith.mulf %327, %323 : vector<1x1x20x16xf32>
    %329 = arith.addf %322, %328 : vector<1x1x20x16xf32>
    %330 = vector.extract_strided_slice %309 {offsets = [0, 0, 0, 3], sizes = [1, 1, 20, 16], strides = [1, 1, 1, 1]} : vector<1x1x20x20xf32> to vector<1x1x20x16xf32>
    %cst_160 = arith.constant 0.778800785 : f32
    %331 = vector.broadcast %cst_160 : f32 to vector<1x1x20x16xf32>
    %332 = arith.mulf %331, %330 : vector<1x1x20x16xf32>
    %333 = arith.addf %326, %332 : vector<1x1x20x16xf32>
    %cst_161 = arith.constant 0.93941307 : f32
    %334 = vector.broadcast %cst_161 : f32 to vector<1x1x20x16xf32>
    %335 = arith.mulf %334, %330 : vector<1x1x20x16xf32>
    %336 = arith.addf %329, %335 : vector<1x1x20x16xf32>
    %337 = vector.extract_strided_slice %309 {offsets = [0, 0, 0, 4], sizes = [1, 1, 20, 16], strides = [1, 1, 1, 1]} : vector<1x1x20x20xf32> to vector<1x1x20x16xf32>
    %cst_162 = arith.constant 0.36787945 : f32
    %338 = vector.broadcast %cst_162 : f32 to vector<1x1x20x16xf32>
    %339 = arith.mulf %338, %337 : vector<1x1x20x16xf32>
    %340 = arith.addf %333, %339 : vector<1x1x20x16xf32>
    %cst_163 = arith.constant 0.778800785 : f32
    %341 = vector.broadcast %cst_163 : f32 to vector<1x1x20x16xf32>
    %342 = arith.mulf %341, %337 : vector<1x1x20x16xf32>
    %343 = arith.addf %336, %342 : vector<1x1x20x16xf32>
    %344 = vector.extract_strided_slice %340 {offsets = [0, 0, 0, 0], sizes = [1, 1, 16, 16], strides = [1, 1, 1, 1]} : vector<1x1x20x16xf32> to vector<1x1x16x16xf32>
    %cst_164 = arith.constant 0.36787945 : f32
    %345 = vector.broadcast %cst_164 : f32 to vector<1x1x16x16xf32>
    %346 = arith.mulf %345, %344 : vector<1x1x16x16xf32>
    %347 = vector.extract_strided_slice %343 {offsets = [0, 0, 0, 0], sizes = [1, 1, 16, 16], strides = [1, 1, 1, 1]} : vector<1x1x20x16xf32> to vector<1x1x16x16xf32>
    %cst_165 = arith.constant 0.778800785 : f32
    %348 = vector.broadcast %cst_165 : f32 to vector<1x1x16x16xf32>
    %349 = arith.mulf %348, %347 : vector<1x1x16x16xf32>
    %350 = vector.extract_strided_slice %340 {offsets = [0, 0, 1, 0], sizes = [1, 1, 16, 16], strides = [1, 1, 1, 1]} : vector<1x1x20x16xf32> to vector<1x1x16x16xf32>
    %cst_166 = arith.constant 0.778800785 : f32
    %351 = vector.broadcast %cst_166 : f32 to vector<1x1x16x16xf32>
    %352 = arith.mulf %351, %350 : vector<1x1x16x16xf32>
    %353 = arith.addf %346, %352 : vector<1x1x16x16xf32>
    %354 = vector.extract_strided_slice %343 {offsets = [0, 0, 1, 0], sizes = [1, 1, 16, 16], strides = [1, 1, 1, 1]} : vector<1x1x20x16xf32> to vector<1x1x16x16xf32>
    %cst_167 = arith.constant 0.93941307 : f32
    %355 = vector.broadcast %cst_167 : f32 to vector<1x1x16x16xf32>
    %356 = arith.mulf %355, %354 : vector<1x1x16x16xf32>
    %357 = arith.addf %349, %356 : vector<1x1x16x16xf32>
    %358 = vector.extract_strided_slice %340 {offsets = [0, 0, 2, 0], sizes = [1, 1, 16, 16], strides = [1, 1, 1, 1]} : vector<1x1x20x16xf32> to vector<1x1x16x16xf32>
    %cst_168 = arith.constant 1.000000e+00 : f32
    %359 = vector.broadcast %cst_168 : f32 to vector<1x1x16x16xf32>
    %360 = arith.mulf %359, %358 : vector<1x1x16x16xf32>
    %361 = arith.addf %353, %360 : vector<1x1x16x16xf32>
    %362 = vector.extract_strided_slice %343 {offsets = [0, 0, 2, 0], sizes = [1, 1, 16, 16], strides = [1, 1, 1, 1]} : vector<1x1x20x16xf32> to vector<1x1x16x16xf32>
    %cst_169 = arith.constant 1.000000e+00 : f32
    %363 = vector.broadcast %cst_169 : f32 to vector<1x1x16x16xf32>
    %364 = arith.mulf %363, %362 : vector<1x1x16x16xf32>
    %365 = arith.addf %357, %364 : vector<1x1x16x16xf32>
    %366 = vector.extract_strided_slice %340 {offsets = [0, 0, 3, 0], sizes = [1, 1, 16, 16], strides = [1, 1, 1, 1]} : vector<1x1x20x16xf32> to vector<1x1x16x16xf32>
    %cst_170 = arith.constant 0.778800785 : f32
    %367 = vector.broadcast %cst_170 : f32 to vector<1x1x16x16xf32>
    %368 = arith.mulf %367, %366 : vector<1x1x16x16xf32>
    %369 = arith.addf %361, %368 : vector<1x1x16x16xf32>
    %370 = vector.extract_strided_slice %343 {offsets = [0, 0, 3, 0], sizes = [1, 1, 16, 16], strides = [1, 1, 1, 1]} : vector<1x1x20x16xf32> to vector<1x1x16x16xf32>
    %cst_171 = arith.constant 0.93941307 : f32
    %371 = vector.broadcast %cst_171 : f32 to vector<1x1x16x16xf32>
    %372 = arith.mulf %371, %370 : vector<1x1x16x16xf32>
    %373 = arith.addf %365, %372 : vector<1x1x16x16xf32>
    %374 = vector.extract_strided_slice %340 {offsets = [0, 0, 4, 0], sizes = [1, 1, 16, 16], strides = [1, 1, 1, 1]} : vector<1x1x20x16xf32> to vector<1x1x16x16xf32>
    %cst_172 = arith.constant 0.36787945 : f32
    %375 = vector.broadcast %cst_172 : f32 to vector<1x1x16x16xf32>
    %376 = arith.mulf %375, %374 : vector<1x1x16x16xf32>
    %377 = arith.addf %369, %376 : vector<1x1x16x16xf32>
    %378 = vector.extract_strided_slice %343 {offsets = [0, 0, 4, 0], sizes = [1, 1, 16, 16], strides = [1, 1, 1, 1]} : vector<1x1x20x16xf32> to vector<1x1x16x16xf32>
    %cst_173 = arith.constant 0.778800785 : f32
    %379 = vector.broadcast %cst_173 : f32 to vector<1x1x16x16xf32>
    %380 = arith.mulf %379, %378 : vector<1x1x16x16xf32>
    %381 = arith.addf %373, %380 : vector<1x1x16x16xf32>
    %c0_174 = arith.constant 0 : index
    %c6 = arith.constant 6 : index
    %c0_175 = arith.constant 0 : index
    %c0_176 = arith.constant 0 : index
    %382 = vector.load %arg4[%c0_174, %c6, %c0_175, %c0_176] : memref<1x20x16x16xf32, #tpu.memory_space<vmem>>, vector<1x1x16x16xf32>
    tpu.vector_store %arg4[%c0_174, %c6, %c0_175, %c0_176], %377 {strides = array<i32>} : memref<1x20x16x16xf32, #tpu.memory_space<vmem>>, vector<1x1x16x16xf32>,
    %c0_177 = arith.constant 0 : index
    %c6_178 = arith.constant 6 : index
    %c0_179 = arith.constant 0 : index
    %c0_180 = arith.constant 0 : index
    %383 = vector.load %arg5[%c0_177, %c6_178, %c0_179, %c0_180] : memref<1x20x16x16xf32, #tpu.memory_space<vmem>>, vector<1x1x16x16xf32>
    tpu.vector_store %arg5[%c0_177, %c6_178, %c0_179, %c0_180], %381 {strides = array<i32>} : memref<1x20x16x16xf32, #tpu.memory_space<vmem>>, vector<1x1x16x16xf32>,
    %c0_181 = arith.constant 0 : index
    %c5_182 = arith.constant 5 : index
    %c0_183 = arith.constant 0 : index
    %c0_184 = arith.constant 0 : index
    %384 = vector.load %arg3[%c0_181, %c5_182, %c0_183, %c0_184] : memref<1x16x20x20xf32, #tpu.memory_space<vmem>>, vector<1x1x20x20xf32>
    %385 = vector.extract_strided_slice %384 {offsets = [0, 0, 0, 0], sizes = [1, 1, 20, 16], strides = [1, 1, 1, 1]} : vector<1x1x20x20xf32> to vector<1x1x20x16xf32>
    %cst_185 = arith.constant 0.36787945 : f32
    %386 = vector.broadcast %cst_185 : f32 to vector<1x1x20x16xf32>
    %387 = arith.mulf %386, %385 : vector<1x1x20x16xf32>
    %388 = vector.extract_strided_slice %384 {offsets = [0, 0, 0, 0], sizes = [1, 1, 20, 16], strides = [1, 1, 1, 1]} : vector<1x1x20x20xf32> to vector<1x1x20x16xf32>
    %cst_186 = arith.constant 0.778800785 : f32
    %389 = vector.broadcast %cst_186 : f32 to vector<1x1x20x16xf32>
    %390 = arith.mulf %389, %388 : vector<1x1x20x16xf32>
    %391 = vector.extract_strided_slice %384 {offsets = [0, 0, 0, 1], sizes = [1, 1, 20, 16], strides = [1, 1, 1, 1]} : vector<1x1x20x20xf32> to vector<1x1x20x16xf32>
    %cst_187 = arith.constant 0.778800785 : f32
    %392 = vector.broadcast %cst_187 : f32 to vector<1x1x20x16xf32>
    %393 = arith.mulf %392, %391 : vector<1x1x20x16xf32>
    %394 = arith.addf %387, %393 : vector<1x1x20x16xf32>
    %cst_188 = arith.constant 0.93941307 : f32
    %395 = vector.broadcast %cst_188 : f32 to vector<1x1x20x16xf32>
    %396 = arith.mulf %395, %391 : vector<1x1x20x16xf32>
    %397 = arith.addf %390, %396 : vector<1x1x20x16xf32>
    %398 = vector.extract_strided_slice %384 {offsets = [0, 0, 0, 2], sizes = [1, 1, 20, 16], strides = [1, 1, 1, 1]} : vector<1x1x20x20xf32> to vector<1x1x20x16xf32>
    %cst_189 = arith.constant 1.000000e+00 : f32
    %399 = vector.broadcast %cst_189 : f32 to vector<1x1x20x16xf32>
    %400 = arith.mulf %399, %398 : vector<1x1x20x16xf32>
    %401 = arith.addf %394, %400 : vector<1x1x20x16xf32>
    %cst_190 = arith.constant 1.000000e+00 : f32
    %402 = vector.broadcast %cst_190 : f32 to vector<1x1x20x16xf32>
    %403 = arith.mulf %402, %398 : vector<1x1x20x16xf32>
    %404 = arith.addf %397, %403 : vector<1x1x20x16xf32>
    %405 = vector.extract_strided_slice %384 {offsets = [0, 0, 0, 3], sizes = [1, 1, 20, 16], strides = [1, 1, 1, 1]} : vector<1x1x20x20xf32> to vector<1x1x20x16xf32>
    %cst_191 = arith.constant 0.778800785 : f32
    %406 = vector.broadcast %cst_191 : f32 to vector<1x1x20x16xf32>
    %407 = arith.mulf %406, %405 : vector<1x1x20x16xf32>
    %408 = arith.addf %401, %407 : vector<1x1x20x16xf32>
    %cst_192 = arith.constant 0.93941307 : f32
    %409 = vector.broadcast %cst_192 : f32 to vector<1x1x20x16xf32>
    %410 = arith.mulf %409, %405 : vector<1x1x20x16xf32>
    %411 = arith.addf %404, %410 : vector<1x1x20x16xf32>
    %412 = vector.extract_strided_slice %384 {offsets = [0, 0, 0, 4], sizes = [1, 1, 20, 16], strides = [1, 1, 1, 1]} : vector<1x1x20x20xf32> to vector<1x1x20x16xf32>
    %cst_193 = arith.constant 0.36787945 : f32
    %413 = vector.broadcast %cst_193 : f32 to vector<1x1x20x16xf32>
    %414 = arith.mulf %413, %412 : vector<1x1x20x16xf32>
    %415 = arith.addf %408, %414 : vector<1x1x20x16xf32>
    %cst_194 = arith.constant 0.778800785 : f32
    %416 = vector.broadcast %cst_194 : f32 to vector<1x1x20x16xf32>
    %417 = arith.mulf %416, %412 : vector<1x1x20x16xf32>
    %418 = arith.addf %411, %417 : vector<1x1x20x16xf32>
    %419 = vector.extract_strided_slice %415 {offsets = [0, 0, 0, 0], sizes = [1, 1, 16, 16], strides = [1, 1, 1, 1]} : vector<1x1x20x16xf32> to vector<1x1x16x16xf32>
    %cst_195 = arith.constant 0.36787945 : f32
    %420 = vector.broadcast %cst_195 : f32 to vector<1x1x16x16xf32>
    %421 = arith.mulf %420, %419 : vector<1x1x16x16xf32>
    %422 = vector.extract_strided_slice %418 {offsets = [0, 0, 0, 0], sizes = [1, 1, 16, 16], strides = [1, 1, 1, 1]} : vector<1x1x20x16xf32> to vector<1x1x16x16xf32>
    %cst_196 = arith.constant 0.778800785 : f32
    %423 = vector.broadcast %cst_196 : f32 to vector<1x1x16x16xf32>
    %424 = arith.mulf %423, %422 : vector<1x1x16x16xf32>
    %425 = vector.extract_strided_slice %415 {offsets = [0, 0, 1, 0], sizes = [1, 1, 16, 16], strides = [1, 1, 1, 1]} : vector<1x1x20x16xf32> to vector<1x1x16x16xf32>
    %cst_197 = arith.constant 0.778800785 : f32
    %426 = vector.broadcast %cst_197 : f32 to vector<1x1x16x16xf32>
    %427 = arith.mulf %426, %425 : vector<1x1x16x16xf32>
    %428 = arith.addf %421, %427 : vector<1x1x16x16xf32>
    %429 = vector.extract_strided_slice %418 {offsets = [0, 0, 1, 0], sizes = [1, 1, 16, 16], strides = [1, 1, 1, 1]} : vector<1x1x20x16xf32> to vector<1x1x16x16xf32>
    %cst_198 = arith.constant 0.93941307 : f32
    %430 = vector.broadcast %cst_198 : f32 to vector<1x1x16x16xf32>
    %431 = arith.mulf %430, %429 : vector<1x1x16x16xf32>
    %432 = arith.addf %424, %431 : vector<1x1x16x16xf32>
    %433 = vector.extract_strided_slice %415 {offsets = [0, 0, 2, 0], sizes = [1, 1, 16, 16], strides = [1, 1, 1, 1]} : vector<1x1x20x16xf32> to vector<1x1x16x16xf32>
    %cst_199 = arith.constant 1.000000e+00 : f32
    %434 = vector.broadcast %cst_199 : f32 to vector<1x1x16x16xf32>
    %435 = arith.mulf %434, %433 : vector<1x1x16x16xf32>
    %436 = arith.addf %428, %435 : vector<1x1x16x16xf32>
    %437 = vector.extract_strided_slice %418 {offsets = [0, 0, 2, 0], sizes = [1, 1, 16, 16], strides = [1, 1, 1, 1]} : vector<1x1x20x16xf32> to vector<1x1x16x16xf32>
    %cst_200 = arith.constant 1.000000e+00 : f32
    %438 = vector.broadcast %cst_200 : f32 to vector<1x1x16x16xf32>
    %439 = arith.mulf %438, %437 : vector<1x1x16x16xf32>
    %440 = arith.addf %432, %439 : vector<1x1x16x16xf32>
    %441 = vector.extract_strided_slice %415 {offsets = [0, 0, 3, 0], sizes = [1, 1, 16, 16], strides = [1, 1, 1, 1]} : vector<1x1x20x16xf32> to vector<1x1x16x16xf32>
    %cst_201 = arith.constant 0.778800785 : f32
    %442 = vector.broadcast %cst_201 : f32 to vector<1x1x16x16xf32>
    %443 = arith.mulf %442, %441 : vector<1x1x16x16xf32>
    %444 = arith.addf %436, %443 : vector<1x1x16x16xf32>
    %445 = vector.extract_strided_slice %418 {offsets = [0, 0, 3, 0], sizes = [1, 1, 16, 16], strides = [1, 1, 1, 1]} : vector<1x1x20x16xf32> to vector<1x1x16x16xf32>
    %cst_202 = arith.constant 0.93941307 : f32
    %446 = vector.broadcast %cst_202 : f32 to vector<1x1x16x16xf32>
    %447 = arith.mulf %446, %445 : vector<1x1x16x16xf32>
    %448 = arith.addf %440, %447 : vector<1x1x16x16xf32>
    %449 = vector.extract_strided_slice %415 {offsets = [0, 0, 4, 0], sizes = [1, 1, 16, 16], strides = [1, 1, 1, 1]} : vector<1x1x20x16xf32> to vector<1x1x16x16xf32>
    %cst_203 = arith.constant 0.36787945 : f32
    %450 = vector.broadcast %cst_203 : f32 to vector<1x1x16x16xf32>
    %451 = arith.mulf %450, %449 : vector<1x1x16x16xf32>
    %452 = arith.addf %444, %451 : vector<1x1x16x16xf32>
    %453 = vector.extract_strided_slice %418 {offsets = [0, 0, 4, 0], sizes = [1, 1, 16, 16], strides = [1, 1, 1, 1]} : vector<1x1x20x16xf32> to vector<1x1x16x16xf32>
    %cst_204 = arith.constant 0.778800785 : f32
    %454 = vector.broadcast %cst_204 : f32 to vector<1x1x16x16xf32>
    %455 = arith.mulf %454, %453 : vector<1x1x16x16xf32>
    %456 = arith.addf %448, %455 : vector<1x1x16x16xf32>
    %c0_205 = arith.constant 0 : index
    %c7 = arith.constant 7 : index
    %c0_206 = arith.constant 0 : index
    %c0_207 = arith.constant 0 : index
    %457 = vector.load %arg4[%c0_205, %c7, %c0_206, %c0_207] : memref<1x20x16x16xf32, #tpu.memory_space<vmem>>, vector<1x1x16x16xf32>
    tpu.vector_store %arg4[%c0_205, %c7, %c0_206, %c0_207], %452 {strides = array<i32>} : memref<1x20x16x16xf32, #tpu.memory_space<vmem>>, vector<1x1x16x16xf32>,
    %c0_208 = arith.constant 0 : index
    %c7_209 = arith.constant 7 : index
    %c0_210 = arith.constant 0 : index
    %c0_211 = arith.constant 0 : index
    %458 = vector.load %arg5[%c0_208, %c7_209, %c0_210, %c0_211] : memref<1x20x16x16xf32, #tpu.memory_space<vmem>>, vector<1x1x16x16xf32>
    tpu.vector_store %arg5[%c0_208, %c7_209, %c0_210, %c0_211], %456 {strides = array<i32>} : memref<1x20x16x16xf32, #tpu.memory_space<vmem>>, vector<1x1x16x16xf32>,
    %c0_212 = arith.constant 0 : index
    %c6_213 = arith.constant 6 : index
    %c0_214 = arith.constant 0 : index
    %c0_215 = arith.constant 0 : index
    %459 = vector.load %arg3[%c0_212, %c6_213, %c0_214, %c0_215] : memref<1x16x20x20xf32, #tpu.memory_space<vmem>>, vector<1x1x20x20xf32>
    %460 = vector.extract_strided_slice %459 {offsets = [0, 0, 0, 0], sizes = [1, 1, 20, 16], strides = [1, 1, 1, 1]} : vector<1x1x20x20xf32> to vector<1x1x20x16xf32>
    %cst_216 = arith.constant 0.36787945 : f32
    %461 = vector.broadcast %cst_216 : f32 to vector<1x1x20x16xf32>
    %462 = arith.mulf %461, %460 : vector<1x1x20x16xf32>
    %463 = vector.extract_strided_slice %459 {offsets = [0, 0, 0, 0], sizes = [1, 1, 20, 16], strides = [1, 1, 1, 1]} : vector<1x1x20x20xf32> to vector<1x1x20x16xf32>
    %cst_217 = arith.constant 0.778800785 : f32
    %464 = vector.broadcast %cst_217 : f32 to vector<1x1x20x16xf32>
    %465 = arith.mulf %464, %463 : vector<1x1x20x16xf32>
    %466 = vector.extract_strided_slice %459 {offsets = [0, 0, 0, 1], sizes = [1, 1, 20, 16], strides = [1, 1, 1, 1]} : vector<1x1x20x20xf32> to vector<1x1x20x16xf32>
    %cst_218 = arith.constant 0.778800785 : f32
    %467 = vector.broadcast %cst_218 : f32 to vector<1x1x20x16xf32>
    %468 = arith.mulf %467, %466 : vector<1x1x20x16xf32>
    %469 = arith.addf %462, %468 : vector<1x1x20x16xf32>
    %cst_219 = arith.constant 0.93941307 : f32
    %470 = vector.broadcast %cst_219 : f32 to vector<1x1x20x16xf32>
    %471 = arith.mulf %470, %466 : vector<1x1x20x16xf32>
    %472 = arith.addf %465, %471 : vector<1x1x20x16xf32>
    %473 = vector.extract_strided_slice %459 {offsets = [0, 0, 0, 2], sizes = [1, 1, 20, 16], strides = [1, 1, 1, 1]} : vector<1x1x20x20xf32> to vector<1x1x20x16xf32>
    %cst_220 = arith.constant 1.000000e+00 : f32
    %474 = vector.broadcast %cst_220 : f32 to vector<1x1x20x16xf32>
    %475 = arith.mulf %474, %473 : vector<1x1x20x16xf32>
    %476 = arith.addf %469, %475 : vector<1x1x20x16xf32>
    %cst_221 = arith.constant 1.000000e+00 : f32
    %477 = vector.broadcast %cst_221 : f32 to vector<1x1x20x16xf32>
    %478 = arith.mulf %477, %473 : vector<1x1x20x16xf32>
    %479 = arith.addf %472, %478 : vector<1x1x20x16xf32>
    %480 = vector.extract_strided_slice %459 {offsets = [0, 0, 0, 3], sizes = [1, 1, 20, 16], strides = [1, 1, 1, 1]} : vector<1x1x20x20xf32> to vector<1x1x20x16xf32>
    %cst_222 = arith.constant 0.778800785 : f32
    %481 = vector.broadcast %cst_222 : f32 to vector<1x1x20x16xf32>
    %482 = arith.mulf %481, %480 : vector<1x1x20x16xf32>
    %483 = arith.addf %476, %482 : vector<1x1x20x16xf32>
    %cst_223 = arith.constant 0.93941307 : f32
    %484 = vector.broadcast %cst_223 : f32 to vector<1x1x20x16xf32>
    %485 = arith.mulf %484, %480 : vector<1x1x20x16xf32>
    %486 = arith.addf %479, %485 : vector<1x1x20x16xf32>
    %487 = vector.extract_strided_slice %459 {offsets = [0, 0, 0, 4], sizes = [1, 1, 20, 16], strides = [1, 1, 1, 1]} : vector<1x1x20x20xf32> to vector<1x1x20x16xf32>
    %cst_224 = arith.constant 0.36787945 : f32
    %488 = vector.broadcast %cst_224 : f32 to vector<1x1x20x16xf32>
    %489 = arith.mulf %488, %487 : vector<1x1x20x16xf32>
    %490 = arith.addf %483, %489 : vector<1x1x20x16xf32>
    %cst_225 = arith.constant 0.778800785 : f32
    %491 = vector.broadcast %cst_225 : f32 to vector<1x1x20x16xf32>
    %492 = arith.mulf %491, %487 : vector<1x1x20x16xf32>
    %493 = arith.addf %486, %492 : vector<1x1x20x16xf32>
    %494 = vector.extract_strided_slice %490 {offsets = [0, 0, 0, 0], sizes = [1, 1, 16, 16], strides = [1, 1, 1, 1]} : vector<1x1x20x16xf32> to vector<1x1x16x16xf32>
    %cst_226 = arith.constant 0.36787945 : f32
    %495 = vector.broadcast %cst_226 : f32 to vector<1x1x16x16xf32>
    %496 = arith.mulf %495, %494 : vector<1x1x16x16xf32>
    %497 = vector.extract_strided_slice %493 {offsets = [0, 0, 0, 0], sizes = [1, 1, 16, 16], strides = [1, 1, 1, 1]} : vector<1x1x20x16xf32> to vector<1x1x16x16xf32>
    %cst_227 = arith.constant 0.778800785 : f32
    %498 = vector.broadcast %cst_227 : f32 to vector<1x1x16x16xf32>
    %499 = arith.mulf %498, %497 : vector<1x1x16x16xf32>
    %500 = vector.extract_strided_slice %490 {offsets = [0, 0, 1, 0], sizes = [1, 1, 16, 16], strides = [1, 1, 1, 1]} : vector<1x1x20x16xf32> to vector<1x1x16x16xf32>
    %cst_228 = arith.constant 0.778800785 : f32
    %501 = vector.broadcast %cst_228 : f32 to vector<1x1x16x16xf32>
    %502 = arith.mulf %501, %500 : vector<1x1x16x16xf32>
    %503 = arith.addf %496, %502 : vector<1x1x16x16xf32>
    %504 = vector.extract_strided_slice %493 {offsets = [0, 0, 1, 0], sizes = [1, 1, 16, 16], strides = [1, 1, 1, 1]} : vector<1x1x20x16xf32> to vector<1x1x16x16xf32>
    %cst_229 = arith.constant 0.93941307 : f32
    %505 = vector.broadcast %cst_229 : f32 to vector<1x1x16x16xf32>
    %506 = arith.mulf %505, %504 : vector<1x1x16x16xf32>
    %507 = arith.addf %499, %506 : vector<1x1x16x16xf32>
    %508 = vector.extract_strided_slice %490 {offsets = [0, 0, 2, 0], sizes = [1, 1, 16, 16], strides = [1, 1, 1, 1]} : vector<1x1x20x16xf32> to vector<1x1x16x16xf32>
    %cst_230 = arith.constant 1.000000e+00 : f32
    %509 = vector.broadcast %cst_230 : f32 to vector<1x1x16x16xf32>
    %510 = arith.mulf %509, %508 : vector<1x1x16x16xf32>
    %511 = arith.addf %503, %510 : vector<1x1x16x16xf32>
    %512 = vector.extract_strided_slice %493 {offsets = [0, 0, 2, 0], sizes = [1, 1, 16, 16], strides = [1, 1, 1, 1]} : vector<1x1x20x16xf32> to vector<1x1x16x16xf32>
    %cst_231 = arith.constant 1.000000e+00 : f32
    %513 = vector.broadcast %cst_231 : f32 to vector<1x1x16x16xf32>
    %514 = arith.mulf %513, %512 : vector<1x1x16x16xf32>
    %515 = arith.addf %507, %514 : vector<1x1x16x16xf32>
    %516 = vector.extract_strided_slice %490 {offsets = [0, 0, 3, 0], sizes = [1, 1, 16, 16], strides = [1, 1, 1, 1]} : vector<1x1x20x16xf32> to vector<1x1x16x16xf32>
    %cst_232 = arith.constant 0.778800785 : f32
    %517 = vector.broadcast %cst_232 : f32 to vector<1x1x16x16xf32>
    %518 = arith.mulf %517, %516 : vector<1x1x16x16xf32>
    %519 = arith.addf %511, %518 : vector<1x1x16x16xf32>
    %520 = vector.extract_strided_slice %493 {offsets = [0, 0, 3, 0], sizes = [1, 1, 16, 16], strides = [1, 1, 1, 1]} : vector<1x1x20x16xf32> to vector<1x1x16x16xf32>
    %cst_233 = arith.constant 0.93941307 : f32
    %521 = vector.broadcast %cst_233 : f32 to vector<1x1x16x16xf32>
    %522 = arith.mulf %521, %520 : vector<1x1x16x16xf32>
    %523 = arith.addf %515, %522 : vector<1x1x16x16xf32>
    %524 = vector.extract_strided_slice %490 {offsets = [0, 0, 4, 0], sizes = [1, 1, 16, 16], strides = [1, 1, 1, 1]} : vector<1x1x20x16xf32> to vector<1x1x16x16xf32>
    %cst_234 = arith.constant 0.36787945 : f32
    %525 = vector.broadcast %cst_234 : f32 to vector<1x1x16x16xf32>
    %526 = arith.mulf %525, %524 : vector<1x1x16x16xf32>
    %527 = arith.addf %519, %526 : vector<1x1x16x16xf32>
    %528 = vector.extract_strided_slice %493 {offsets = [0, 0, 4, 0], sizes = [1, 1, 16, 16], strides = [1, 1, 1, 1]} : vector<1x1x20x16xf32> to vector<1x1x16x16xf32>
    %cst_235 = arith.constant 0.778800785 : f32
    %529 = vector.broadcast %cst_235 : f32 to vector<1x1x16x16xf32>
    %530 = arith.mulf %529, %528 : vector<1x1x16x16xf32>
    %531 = arith.addf %523, %530 : vector<1x1x16x16xf32>
    %c0_236 = arith.constant 0 : index
    %c8 = arith.constant 8 : index
    %c0_237 = arith.constant 0 : index
    %c0_238 = arith.constant 0 : index
    %532 = vector.load %arg4[%c0_236, %c8, %c0_237, %c0_238] : memref<1x20x16x16xf32, #tpu.memory_space<vmem>>, vector<1x1x16x16xf32>
    tpu.vector_store %arg4[%c0_236, %c8, %c0_237, %c0_238], %527 {strides = array<i32>} : memref<1x20x16x16xf32, #tpu.memory_space<vmem>>, vector<1x1x16x16xf32>,
    %c0_239 = arith.constant 0 : index
    %c8_240 = arith.constant 8 : index
    %c0_241 = arith.constant 0 : index
    %c0_242 = arith.constant 0 : index
    %533 = vector.load %arg5[%c0_239, %c8_240, %c0_241, %c0_242] : memref<1x20x16x16xf32, #tpu.memory_space<vmem>>, vector<1x1x16x16xf32>
    tpu.vector_store %arg5[%c0_239, %c8_240, %c0_241, %c0_242], %531 {strides = array<i32>} : memref<1x20x16x16xf32, #tpu.memory_space<vmem>>, vector<1x1x16x16xf32>,
    %c0_243 = arith.constant 0 : index
    %c7_244 = arith.constant 7 : index
    %c0_245 = arith.constant 0 : index
    %c0_246 = arith.constant 0 : index
    %534 = vector.load %arg3[%c0_243, %c7_244, %c0_245, %c0_246] : memref<1x16x20x20xf32, #tpu.memory_space<vmem>>, vector<1x1x20x20xf32>
    %535 = vector.extract_strided_slice %534 {offsets = [0, 0, 0, 0], sizes = [1, 1, 20, 16], strides = [1, 1, 1, 1]} : vector<1x1x20x20xf32> to vector<1x1x20x16xf32>
    %cst_247 = arith.constant 0.36787945 : f32
    %536 = vector.broadcast %cst_247 : f32 to vector<1x1x20x16xf32>
    %537 = arith.mulf %536, %535 : vector<1x1x20x16xf32>
    %538 = vector.extract_strided_slice %534 {offsets = [0, 0, 0, 0], sizes = [1, 1, 20, 16], strides = [1, 1, 1, 1]} : vector<1x1x20x20xf32> to vector<1x1x20x16xf32>
    %cst_248 = arith.constant 0.778800785 : f32
    %539 = vector.broadcast %cst_248 : f32 to vector<1x1x20x16xf32>
    %540 = arith.mulf %539, %538 : vector<1x1x20x16xf32>
    %541 = vector.extract_strided_slice %534 {offsets = [0, 0, 0, 1], sizes = [1, 1, 20, 16], strides = [1, 1, 1, 1]} : vector<1x1x20x20xf32> to vector<1x1x20x16xf32>
    %cst_249 = arith.constant 0.778800785 : f32
    %542 = vector.broadcast %cst_249 : f32 to vector<1x1x20x16xf32>
    %543 = arith.mulf %542, %541 : vector<1x1x20x16xf32>
    %544 = arith.addf %537, %543 : vector<1x1x20x16xf32>
    %cst_250 = arith.constant 0.93941307 : f32
    %545 = vector.broadcast %cst_250 : f32 to vector<1x1x20x16xf32>
    %546 = arith.mulf %545, %541 : vector<1x1x20x16xf32>
    %547 = arith.addf %540, %546 : vector<1x1x20x16xf32>
    %548 = vector.extract_strided_slice %534 {offsets = [0, 0, 0, 2], sizes = [1, 1, 20, 16], strides = [1, 1, 1, 1]} : vector<1x1x20x20xf32> to vector<1x1x20x16xf32>
    %cst_251 = arith.constant 1.000000e+00 : f32
    %549 = vector.broadcast %cst_251 : f32 to vector<1x1x20x16xf32>
    %550 = arith.mulf %549, %548 : vector<1x1x20x16xf32>
    %551 = arith.addf %544, %550 : vector<1x1x20x16xf32>
    %cst_252 = arith.constant 1.000000e+00 : f32
    %552 = vector.broadcast %cst_252 : f32 to vector<1x1x20x16xf32>
    %553 = arith.mulf %552, %548 : vector<1x1x20x16xf32>
    %554 = arith.addf %547, %553 : vector<1x1x20x16xf32>
    %555 = vector.extract_strided_slice %534 {offsets = [0, 0, 0, 3], sizes = [1, 1, 20, 16], strides = [1, 1, 1, 1]} : vector<1x1x20x20xf32> to vector<1x1x20x16xf32>
    %cst_253 = arith.constant 0.778800785 : f32
    %556 = vector.broadcast %cst_253 : f32 to vector<1x1x20x16xf32>
    %557 = arith.mulf %556, %555 : vector<1x1x20x16xf32>
    %558 = arith.addf %551, %557 : vector<1x1x20x16xf32>
    %cst_254 = arith.constant 0.93941307 : f32
    %559 = vector.broadcast %cst_254 : f32 to vector<1x1x20x16xf32>
    %560 = arith.mulf %559, %555 : vector<1x1x20x16xf32>
    %561 = arith.addf %554, %560 : vector<1x1x20x16xf32>
    %562 = vector.extract_strided_slice %534 {offsets = [0, 0, 0, 4], sizes = [1, 1, 20, 16], strides = [1, 1, 1, 1]} : vector<1x1x20x20xf32> to vector<1x1x20x16xf32>
    %cst_255 = arith.constant 0.36787945 : f32
    %563 = vector.broadcast %cst_255 : f32 to vector<1x1x20x16xf32>
    %564 = arith.mulf %563, %562 : vector<1x1x20x16xf32>
    %565 = arith.addf %558, %564 : vector<1x1x20x16xf32>
    %cst_256 = arith.constant 0.778800785 : f32
    %566 = vector.broadcast %cst_256 : f32 to vector<1x1x20x16xf32>
    %567 = arith.mulf %566, %562 : vector<1x1x20x16xf32>
    %568 = arith.addf %561, %567 : vector<1x1x20x16xf32>
    %569 = vector.extract_strided_slice %565 {offsets = [0, 0, 0, 0], sizes = [1, 1, 16, 16], strides = [1, 1, 1, 1]} : vector<1x1x20x16xf32> to vector<1x1x16x16xf32>
    %cst_257 = arith.constant 0.36787945 : f32
    %570 = vector.broadcast %cst_257 : f32 to vector<1x1x16x16xf32>
    %571 = arith.mulf %570, %569 : vector<1x1x16x16xf32>
    %572 = vector.extract_strided_slice %568 {offsets = [0, 0, 0, 0], sizes = [1, 1, 16, 16], strides = [1, 1, 1, 1]} : vector<1x1x20x16xf32> to vector<1x1x16x16xf32>
    %cst_258 = arith.constant 0.778800785 : f32
    %573 = vector.broadcast %cst_258 : f32 to vector<1x1x16x16xf32>
    %574 = arith.mulf %573, %572 : vector<1x1x16x16xf32>
    %575 = vector.extract_strided_slice %565 {offsets = [0, 0, 1, 0], sizes = [1, 1, 16, 16], strides = [1, 1, 1, 1]} : vector<1x1x20x16xf32> to vector<1x1x16x16xf32>
    %cst_259 = arith.constant 0.778800785 : f32
    %576 = vector.broadcast %cst_259 : f32 to vector<1x1x16x16xf32>
    %577 = arith.mulf %576, %575 : vector<1x1x16x16xf32>
    %578 = arith.addf %571, %577 : vector<1x1x16x16xf32>
    %579 = vector.extract_strided_slice %568 {offsets = [0, 0, 1, 0], sizes = [1, 1, 16, 16], strides = [1, 1, 1, 1]} : vector<1x1x20x16xf32> to vector<1x1x16x16xf32>
    %cst_260 = arith.constant 0.93941307 : f32
    %580 = vector.broadcast %cst_260 : f32 to vector<1x1x16x16xf32>
    %581 = arith.mulf %580, %579 : vector<1x1x16x16xf32>
    %582 = arith.addf %574, %581 : vector<1x1x16x16xf32>
    %583 = vector.extract_strided_slice %565 {offsets = [0, 0, 2, 0], sizes = [1, 1, 16, 16], strides = [1, 1, 1, 1]} : vector<1x1x20x16xf32> to vector<1x1x16x16xf32>
    %cst_261 = arith.constant 1.000000e+00 : f32
    %584 = vector.broadcast %cst_261 : f32 to vector<1x1x16x16xf32>
    %585 = arith.mulf %584, %583 : vector<1x1x16x16xf32>
    %586 = arith.addf %578, %585 : vector<1x1x16x16xf32>
    %587 = vector.extract_strided_slice %568 {offsets = [0, 0, 2, 0], sizes = [1, 1, 16, 16], strides = [1, 1, 1, 1]} : vector<1x1x20x16xf32> to vector<1x1x16x16xf32>
    %cst_262 = arith.constant 1.000000e+00 : f32
    %588 = vector.broadcast %cst_262 : f32 to vector<1x1x16x16xf32>
    %589 = arith.mulf %588, %587 : vector<1x1x16x16xf32>
    %590 = arith.addf %582, %589 : vector<1x1x16x16xf32>
    %591 = vector.extract_strided_slice %565 {offsets = [0, 0, 3, 0], sizes = [1, 1, 16, 16], strides = [1, 1, 1, 1]} : vector<1x1x20x16xf32> to vector<1x1x16x16xf32>
    %cst_263 = arith.constant 0.778800785 : f32
    %592 = vector.broadcast %cst_263 : f32 to vector<1x1x16x16xf32>
    %593 = arith.mulf %592, %591 : vector<1x1x16x16xf32>
    %594 = arith.addf %586, %593 : vector<1x1x16x16xf32>
    %595 = vector.extract_strided_slice %568 {offsets = [0, 0, 3, 0], sizes = [1, 1, 16, 16], strides = [1, 1, 1, 1]} : vector<1x1x20x16xf32> to vector<1x1x16x16xf32>
    %cst_264 = arith.constant 0.93941307 : f32
    %596 = vector.broadcast %cst_264 : f32 to vector<1x1x16x16xf32>
    %597 = arith.mulf %596, %595 : vector<1x1x16x16xf32>
    %598 = arith.addf %590, %597 : vector<1x1x16x16xf32>
    %599 = vector.extract_strided_slice %565 {offsets = [0, 0, 4, 0], sizes = [1, 1, 16, 16], strides = [1, 1, 1, 1]} : vector<1x1x20x16xf32> to vector<1x1x16x16xf32>
    %cst_265 = arith.constant 0.36787945 : f32
    %600 = vector.broadcast %cst_265 : f32 to vector<1x1x16x16xf32>
    %601 = arith.mulf %600, %599 : vector<1x1x16x16xf32>
    %602 = arith.addf %594, %601 : vector<1x1x16x16xf32>
    %603 = vector.extract_strided_slice %568 {offsets = [0, 0, 4, 0], sizes = [1, 1, 16, 16], strides = [1, 1, 1, 1]} : vector<1x1x20x16xf32> to vector<1x1x16x16xf32>
    %cst_266 = arith.constant 0.778800785 : f32
    %604 = vector.broadcast %cst_266 : f32 to vector<1x1x16x16xf32>
    %605 = arith.mulf %604, %603 : vector<1x1x16x16xf32>
    %606 = arith.addf %598, %605 : vector<1x1x16x16xf32>
    %c0_267 = arith.constant 0 : index
    %c9 = arith.constant 9 : index
    %c0_268 = arith.constant 0 : index
    %c0_269 = arith.constant 0 : index
    %607 = vector.load %arg4[%c0_267, %c9, %c0_268, %c0_269] : memref<1x20x16x16xf32, #tpu.memory_space<vmem>>, vector<1x1x16x16xf32>
    tpu.vector_store %arg4[%c0_267, %c9, %c0_268, %c0_269], %602 {strides = array<i32>} : memref<1x20x16x16xf32, #tpu.memory_space<vmem>>, vector<1x1x16x16xf32>,
    %c0_270 = arith.constant 0 : index
    %c9_271 = arith.constant 9 : index
    %c0_272 = arith.constant 0 : index
    %c0_273 = arith.constant 0 : index
    %608 = vector.load %arg5[%c0_270, %c9_271, %c0_272, %c0_273] : memref<1x20x16x16xf32, #tpu.memory_space<vmem>>, vector<1x1x16x16xf32>
    tpu.vector_store %arg5[%c0_270, %c9_271, %c0_272, %c0_273], %606 {strides = array<i32>} : memref<1x20x16x16xf32, #tpu.memory_space<vmem>>, vector<1x1x16x16xf32>,
    %c0_274 = arith.constant 0 : index
    %c8_275 = arith.constant 8 : index
    %c0_276 = arith.constant 0 : index
    %c0_277 = arith.constant 0 : index
    %609 = vector.load %arg3[%c0_274, %c8_275, %c0_276, %c0_277] : memref<1x16x20x20xf32, #tpu.memory_space<vmem>>, vector<1x1x20x20xf32>
    %610 = vector.extract_strided_slice %609 {offsets = [0, 0, 0, 0], sizes = [1, 1, 20, 16], strides = [1, 1, 1, 1]} : vector<1x1x20x20xf32> to vector<1x1x20x16xf32>
    %cst_278 = arith.constant 0.36787945 : f32
    %611 = vector.broadcast %cst_278 : f32 to vector<1x1x20x16xf32>
    %612 = arith.mulf %611, %610 : vector<1x1x20x16xf32>
    %613 = vector.extract_strided_slice %609 {offsets = [0, 0, 0, 0], sizes = [1, 1, 20, 16], strides = [1, 1, 1, 1]} : vector<1x1x20x20xf32> to vector<1x1x20x16xf32>
    %cst_279 = arith.constant 0.778800785 : f32
    %614 = vector.broadcast %cst_279 : f32 to vector<1x1x20x16xf32>
    %615 = arith.mulf %614, %613 : vector<1x1x20x16xf32>
    %616 = vector.extract_strided_slice %609 {offsets = [0, 0, 0, 1], sizes = [1, 1, 20, 16], strides = [1, 1, 1, 1]} : vector<1x1x20x20xf32> to vector<1x1x20x16xf32>
    %cst_280 = arith.constant 0.778800785 : f32
    %617 = vector.broadcast %cst_280 : f32 to vector<1x1x20x16xf32>
    %618 = arith.mulf %617, %616 : vector<1x1x20x16xf32>
    %619 = arith.addf %612, %618 : vector<1x1x20x16xf32>
    %cst_281 = arith.constant 0.93941307 : f32
    %620 = vector.broadcast %cst_281 : f32 to vector<1x1x20x16xf32>
    %621 = arith.mulf %620, %616 : vector<1x1x20x16xf32>
    %622 = arith.addf %615, %621 : vector<1x1x20x16xf32>
    %623 = vector.extract_strided_slice %609 {offsets = [0, 0, 0, 2], sizes = [1, 1, 20, 16], strides = [1, 1, 1, 1]} : vector<1x1x20x20xf32> to vector<1x1x20x16xf32>
    %cst_282 = arith.constant 1.000000e+00 : f32
    %624 = vector.broadcast %cst_282 : f32 to vector<1x1x20x16xf32>
    %625 = arith.mulf %624, %623 : vector<1x1x20x16xf32>
    %626 = arith.addf %619, %625 : vector<1x1x20x16xf32>
    %cst_283 = arith.constant 1.000000e+00 : f32
    %627 = vector.broadcast %cst_283 : f32 to vector<1x1x20x16xf32>
    %628 = arith.mulf %627, %623 : vector<1x1x20x16xf32>
    %629 = arith.addf %622, %628 : vector<1x1x20x16xf32>
    %630 = vector.extract_strided_slice %609 {offsets = [0, 0, 0, 3], sizes = [1, 1, 20, 16], strides = [1, 1, 1, 1]} : vector<1x1x20x20xf32> to vector<1x1x20x16xf32>
    %cst_284 = arith.constant 0.778800785 : f32
    %631 = vector.broadcast %cst_284 : f32 to vector<1x1x20x16xf32>
    %632 = arith.mulf %631, %630 : vector<1x1x20x16xf32>
    %633 = arith.addf %626, %632 : vector<1x1x20x16xf32>
    %cst_285 = arith.constant 0.93941307 : f32
    %634 = vector.broadcast %cst_285 : f32 to vector<1x1x20x16xf32>
    %635 = arith.mulf %634, %630 : vector<1x1x20x16xf32>
    %636 = arith.addf %629, %635 : vector<1x1x20x16xf32>
    %637 = vector.extract_strided_slice %609 {offsets = [0, 0, 0, 4], sizes = [1, 1, 20, 16], strides = [1, 1, 1, 1]} : vector<1x1x20x20xf32> to vector<1x1x20x16xf32>
    %cst_286 = arith.constant 0.36787945 : f32
    %638 = vector.broadcast %cst_286 : f32 to vector<1x1x20x16xf32>
    %639 = arith.mulf %638, %637 : vector<1x1x20x16xf32>
    %640 = arith.addf %633, %639 : vector<1x1x20x16xf32>
    %cst_287 = arith.constant 0.778800785 : f32
    %641 = vector.broadcast %cst_287 : f32 to vector<1x1x20x16xf32>
    %642 = arith.mulf %641, %637 : vector<1x1x20x16xf32>
    %643 = arith.addf %636, %642 : vector<1x1x20x16xf32>
    %644 = vector.extract_strided_slice %640 {offsets = [0, 0, 0, 0], sizes = [1, 1, 16, 16], strides = [1, 1, 1, 1]} : vector<1x1x20x16xf32> to vector<1x1x16x16xf32>
    %cst_288 = arith.constant 0.36787945 : f32
    %645 = vector.broadcast %cst_288 : f32 to vector<1x1x16x16xf32>
    %646 = arith.mulf %645, %644 : vector<1x1x16x16xf32>
    %647 = vector.extract_strided_slice %643 {offsets = [0, 0, 0, 0], sizes = [1, 1, 16, 16], strides = [1, 1, 1, 1]} : vector<1x1x20x16xf32> to vector<1x1x16x16xf32>
    %cst_289 = arith.constant 0.778800785 : f32
    %648 = vector.broadcast %cst_289 : f32 to vector<1x1x16x16xf32>
    %649 = arith.mulf %648, %647 : vector<1x1x16x16xf32>
    %650 = vector.extract_strided_slice %640 {offsets = [0, 0, 1, 0], sizes = [1, 1, 16, 16], strides = [1, 1, 1, 1]} : vector<1x1x20x16xf32> to vector<1x1x16x16xf32>
    %cst_290 = arith.constant 0.778800785 : f32
    %651 = vector.broadcast %cst_290 : f32 to vector<1x1x16x16xf32>
    %652 = arith.mulf %651, %650 : vector<1x1x16x16xf32>
    %653 = arith.addf %646, %652 : vector<1x1x16x16xf32>
    %654 = vector.extract_strided_slice %643 {offsets = [0, 0, 1, 0], sizes = [1, 1, 16, 16], strides = [1, 1, 1, 1]} : vector<1x1x20x16xf32> to vector<1x1x16x16xf32>
    %cst_291 = arith.constant 0.93941307 : f32
    %655 = vector.broadcast %cst_291 : f32 to vector<1x1x16x16xf32>
    %656 = arith.mulf %655, %654 : vector<1x1x16x16xf32>
    %657 = arith.addf %649, %656 : vector<1x1x16x16xf32>
    %658 = vector.extract_strided_slice %640 {offsets = [0, 0, 2, 0], sizes = [1, 1, 16, 16], strides = [1, 1, 1, 1]} : vector<1x1x20x16xf32> to vector<1x1x16x16xf32>
    %cst_292 = arith.constant 1.000000e+00 : f32
    %659 = vector.broadcast %cst_292 : f32 to vector<1x1x16x16xf32>
    %660 = arith.mulf %659, %658 : vector<1x1x16x16xf32>
    %661 = arith.addf %653, %660 : vector<1x1x16x16xf32>
    %662 = vector.extract_strided_slice %643 {offsets = [0, 0, 2, 0], sizes = [1, 1, 16, 16], strides = [1, 1, 1, 1]} : vector<1x1x20x16xf32> to vector<1x1x16x16xf32>
    %cst_293 = arith.constant 1.000000e+00 : f32
    %663 = vector.broadcast %cst_293 : f32 to vector<1x1x16x16xf32>
    %664 = arith.mulf %663, %662 : vector<1x1x16x16xf32>
    %665 = arith.addf %657, %664 : vector<1x1x16x16xf32>
    %666 = vector.extract_strided_slice %640 {offsets = [0, 0, 3, 0], sizes = [1, 1, 16, 16], strides = [1, 1, 1, 1]} : vector<1x1x20x16xf32> to vector<1x1x16x16xf32>
    %cst_294 = arith.constant 0.778800785 : f32
    %667 = vector.broadcast %cst_294 : f32 to vector<1x1x16x16xf32>
    %668 = arith.mulf %667, %666 : vector<1x1x16x16xf32>
    %669 = arith.addf %661, %668 : vector<1x1x16x16xf32>
    %670 = vector.extract_strided_slice %643 {offsets = [0, 0, 3, 0], sizes = [1, 1, 16, 16], strides = [1, 1, 1, 1]} : vector<1x1x20x16xf32> to vector<1x1x16x16xf32>
    %cst_295 = arith.constant 0.93941307 : f32
    %671 = vector.broadcast %cst_295 : f32 to vector<1x1x16x16xf32>
    %672 = arith.mulf %671, %670 : vector<1x1x16x16xf32>
    %673 = arith.addf %665, %672 : vector<1x1x16x16xf32>
    %674 = vector.extract_strided_slice %640 {offsets = [0, 0, 4, 0], sizes = [1, 1, 16, 16], strides = [1, 1, 1, 1]} : vector<1x1x20x16xf32> to vector<1x1x16x16xf32>
    %cst_296 = arith.constant 0.36787945 : f32
    %675 = vector.broadcast %cst_296 : f32 to vector<1x1x16x16xf32>
    %676 = arith.mulf %675, %674 : vector<1x1x16x16xf32>
    %677 = arith.addf %669, %676 : vector<1x1x16x16xf32>
    %678 = vector.extract_strided_slice %643 {offsets = [0, 0, 4, 0], sizes = [1, 1, 16, 16], strides = [1, 1, 1, 1]} : vector<1x1x20x16xf32> to vector<1x1x16x16xf32>
    %cst_297 = arith.constant 0.778800785 : f32
    %679 = vector.broadcast %cst_297 : f32 to vector<1x1x16x16xf32>
    %680 = arith.mulf %679, %678 : vector<1x1x16x16xf32>
    %681 = arith.addf %673, %680 : vector<1x1x16x16xf32>
    %c0_298 = arith.constant 0 : index
    %c10 = arith.constant 10 : index
    %c0_299 = arith.constant 0 : index
    %c0_300 = arith.constant 0 : index
    %682 = vector.load %arg4[%c0_298, %c10, %c0_299, %c0_300] : memref<1x20x16x16xf32, #tpu.memory_space<vmem>>, vector<1x1x16x16xf32>
    tpu.vector_store %arg4[%c0_298, %c10, %c0_299, %c0_300], %677 {strides = array<i32>} : memref<1x20x16x16xf32, #tpu.memory_space<vmem>>, vector<1x1x16x16xf32>,
    %c0_301 = arith.constant 0 : index
    %c10_302 = arith.constant 10 : index
    %c0_303 = arith.constant 0 : index
    %c0_304 = arith.constant 0 : index
    %683 = vector.load %arg5[%c0_301, %c10_302, %c0_303, %c0_304] : memref<1x20x16x16xf32, #tpu.memory_space<vmem>>, vector<1x1x16x16xf32>
    tpu.vector_store %arg5[%c0_301, %c10_302, %c0_303, %c0_304], %681 {strides = array<i32>} : memref<1x20x16x16xf32, #tpu.memory_space<vmem>>, vector<1x1x16x16xf32>,
    %c0_305 = arith.constant 0 : index
    %c9_306 = arith.constant 9 : index
    %c0_307 = arith.constant 0 : index
    %c0_308 = arith.constant 0 : index
    %684 = vector.load %arg3[%c0_305, %c9_306, %c0_307, %c0_308] : memref<1x16x20x20xf32, #tpu.memory_space<vmem>>, vector<1x1x20x20xf32>
    %685 = vector.extract_strided_slice %684 {offsets = [0, 0, 0, 0], sizes = [1, 1, 20, 16], strides = [1, 1, 1, 1]} : vector<1x1x20x20xf32> to vector<1x1x20x16xf32>
    %cst_309 = arith.constant 0.36787945 : f32
    %686 = vector.broadcast %cst_309 : f32 to vector<1x1x20x16xf32>
    %687 = arith.mulf %686, %685 : vector<1x1x20x16xf32>
    %688 = vector.extract_strided_slice %684 {offsets = [0, 0, 0, 0], sizes = [1, 1, 20, 16], strides = [1, 1, 1, 1]} : vector<1x1x20x20xf32> to vector<1x1x20x16xf32>
    %cst_310 = arith.constant 0.778800785 : f32
    %689 = vector.broadcast %cst_310 : f32 to vector<1x1x20x16xf32>
    %690 = arith.mulf %689, %688 : vector<1x1x20x16xf32>
    %691 = vector.extract_strided_slice %684 {offsets = [0, 0, 0, 1], sizes = [1, 1, 20, 16], strides = [1, 1, 1, 1]} : vector<1x1x20x20xf32> to vector<1x1x20x16xf32>
    %cst_311 = arith.constant 0.778800785 : f32
    %692 = vector.broadcast %cst_311 : f32 to vector<1x1x20x16xf32>
    %693 = arith.mulf %692, %691 : vector<1x1x20x16xf32>
    %694 = arith.addf %687, %693 : vector<1x1x20x16xf32>
    %cst_312 = arith.constant 0.93941307 : f32
    %695 = vector.broadcast %cst_312 : f32 to vector<1x1x20x16xf32>
    %696 = arith.mulf %695, %691 : vector<1x1x20x16xf32>
    %697 = arith.addf %690, %696 : vector<1x1x20x16xf32>
    %698 = vector.extract_strided_slice %684 {offsets = [0, 0, 0, 2], sizes = [1, 1, 20, 16], strides = [1, 1, 1, 1]} : vector<1x1x20x20xf32> to vector<1x1x20x16xf32>
    %cst_313 = arith.constant 1.000000e+00 : f32
    %699 = vector.broadcast %cst_313 : f32 to vector<1x1x20x16xf32>
    %700 = arith.mulf %699, %698 : vector<1x1x20x16xf32>
    %701 = arith.addf %694, %700 : vector<1x1x20x16xf32>
    %cst_314 = arith.constant 1.000000e+00 : f32
    %702 = vector.broadcast %cst_314 : f32 to vector<1x1x20x16xf32>
    %703 = arith.mulf %702, %698 : vector<1x1x20x16xf32>
    %704 = arith.addf %697, %703 : vector<1x1x20x16xf32>
    %705 = vector.extract_strided_slice %684 {offsets = [0, 0, 0, 3], sizes = [1, 1, 20, 16], strides = [1, 1, 1, 1]} : vector<1x1x20x20xf32> to vector<1x1x20x16xf32>
    %cst_315 = arith.constant 0.778800785 : f32
    %706 = vector.broadcast %cst_315 : f32 to vector<1x1x20x16xf32>
    %707 = arith.mulf %706, %705 : vector<1x1x20x16xf32>
    %708 = arith.addf %701, %707 : vector<1x1x20x16xf32>
    %cst_316 = arith.constant 0.93941307 : f32
    %709 = vector.broadcast %cst_316 : f32 to vector<1x1x20x16xf32>
    %710 = arith.mulf %709, %705 : vector<1x1x20x16xf32>
    %711 = arith.addf %704, %710 : vector<1x1x20x16xf32>
    %712 = vector.extract_strided_slice %684 {offsets = [0, 0, 0, 4], sizes = [1, 1, 20, 16], strides = [1, 1, 1, 1]} : vector<1x1x20x20xf32> to vector<1x1x20x16xf32>
    %cst_317 = arith.constant 0.36787945 : f32
    %713 = vector.broadcast %cst_317 : f32 to vector<1x1x20x16xf32>
    %714 = arith.mulf %713, %712 : vector<1x1x20x16xf32>
    %715 = arith.addf %708, %714 : vector<1x1x20x16xf32>
    %cst_318 = arith.constant 0.778800785 : f32
    %716 = vector.broadcast %cst_318 : f32 to vector<1x1x20x16xf32>
    %717 = arith.mulf %716, %712 : vector<1x1x20x16xf32>
    %718 = arith.addf %711, %717 : vector<1x1x20x16xf32>
    %719 = vector.extract_strided_slice %715 {offsets = [0, 0, 0, 0], sizes = [1, 1, 16, 16], strides = [1, 1, 1, 1]} : vector<1x1x20x16xf32> to vector<1x1x16x16xf32>
    %cst_319 = arith.constant 0.36787945 : f32
    %720 = vector.broadcast %cst_319 : f32 to vector<1x1x16x16xf32>
    %721 = arith.mulf %720, %719 : vector<1x1x16x16xf32>
    %722 = vector.extract_strided_slice %718 {offsets = [0, 0, 0, 0], sizes = [1, 1, 16, 16], strides = [1, 1, 1, 1]} : vector<1x1x20x16xf32> to vector<1x1x16x16xf32>
    %cst_320 = arith.constant 0.778800785 : f32
    %723 = vector.broadcast %cst_320 : f32 to vector<1x1x16x16xf32>
    %724 = arith.mulf %723, %722 : vector<1x1x16x16xf32>
    %725 = vector.extract_strided_slice %715 {offsets = [0, 0, 1, 0], sizes = [1, 1, 16, 16], strides = [1, 1, 1, 1]} : vector<1x1x20x16xf32> to vector<1x1x16x16xf32>
    %cst_321 = arith.constant 0.778800785 : f32
    %726 = vector.broadcast %cst_321 : f32 to vector<1x1x16x16xf32>
    %727 = arith.mulf %726, %725 : vector<1x1x16x16xf32>
    %728 = arith.addf %721, %727 : vector<1x1x16x16xf32>
    %729 = vector.extract_strided_slice %718 {offsets = [0, 0, 1, 0], sizes = [1, 1, 16, 16], strides = [1, 1, 1, 1]} : vector<1x1x20x16xf32> to vector<1x1x16x16xf32>
    %cst_322 = arith.constant 0.93941307 : f32
    %730 = vector.broadcast %cst_322 : f32 to vector<1x1x16x16xf32>
    %731 = arith.mulf %730, %729 : vector<1x1x16x16xf32>
    %732 = arith.addf %724, %731 : vector<1x1x16x16xf32>
    %733 = vector.extract_strided_slice %715 {offsets = [0, 0, 2, 0], sizes = [1, 1, 16, 16], strides = [1, 1, 1, 1]} : vector<1x1x20x16xf32> to vector<1x1x16x16xf32>
    %cst_323 = arith.constant 1.000000e+00 : f32
    %734 = vector.broadcast %cst_323 : f32 to vector<1x1x16x16xf32>
    %735 = arith.mulf %734, %733 : vector<1x1x16x16xf32>
    %736 = arith.addf %728, %735 : vector<1x1x16x16xf32>
    %737 = vector.extract_strided_slice %718 {offsets = [0, 0, 2, 0], sizes = [1, 1, 16, 16], strides = [1, 1, 1, 1]} : vector<1x1x20x16xf32> to vector<1x1x16x16xf32>
    %cst_324 = arith.constant 1.000000e+00 : f32
    %738 = vector.broadcast %cst_324 : f32 to vector<1x1x16x16xf32>
    %739 = arith.mulf %738, %737 : vector<1x1x16x16xf32>
    %740 = arith.addf %732, %739 : vector<1x1x16x16xf32>
    %741 = vector.extract_strided_slice %715 {offsets = [0, 0, 3, 0], sizes = [1, 1, 16, 16], strides = [1, 1, 1, 1]} : vector<1x1x20x16xf32> to vector<1x1x16x16xf32>
    %cst_325 = arith.constant 0.778800785 : f32
    %742 = vector.broadcast %cst_325 : f32 to vector<1x1x16x16xf32>
    %743 = arith.mulf %742, %741 : vector<1x1x16x16xf32>
    %744 = arith.addf %736, %743 : vector<1x1x16x16xf32>
    %745 = vector.extract_strided_slice %718 {offsets = [0, 0, 3, 0], sizes = [1, 1, 16, 16], strides = [1, 1, 1, 1]} : vector<1x1x20x16xf32> to vector<1x1x16x16xf32>
    %cst_326 = arith.constant 0.93941307 : f32
    %746 = vector.broadcast %cst_326 : f32 to vector<1x1x16x16xf32>
    %747 = arith.mulf %746, %745 : vector<1x1x16x16xf32>
    %748 = arith.addf %740, %747 : vector<1x1x16x16xf32>
    %749 = vector.extract_strided_slice %715 {offsets = [0, 0, 4, 0], sizes = [1, 1, 16, 16], strides = [1, 1, 1, 1]} : vector<1x1x20x16xf32> to vector<1x1x16x16xf32>
    %cst_327 = arith.constant 0.36787945 : f32
    %750 = vector.broadcast %cst_327 : f32 to vector<1x1x16x16xf32>
    %751 = arith.mulf %750, %749 : vector<1x1x16x16xf32>
    %752 = arith.addf %744, %751 : vector<1x1x16x16xf32>
    %753 = vector.extract_strided_slice %718 {offsets = [0, 0, 4, 0], sizes = [1, 1, 16, 16], strides = [1, 1, 1, 1]} : vector<1x1x20x16xf32> to vector<1x1x16x16xf32>
    %cst_328 = arith.constant 0.778800785 : f32
    %754 = vector.broadcast %cst_328 : f32 to vector<1x1x16x16xf32>
    %755 = arith.mulf %754, %753 : vector<1x1x16x16xf32>
    %756 = arith.addf %748, %755 : vector<1x1x16x16xf32>
    %c0_329 = arith.constant 0 : index
    %c11 = arith.constant 11 : index
    %c0_330 = arith.constant 0 : index
    %c0_331 = arith.constant 0 : index
    %757 = vector.load %arg4[%c0_329, %c11, %c0_330, %c0_331] : memref<1x20x16x16xf32, #tpu.memory_space<vmem>>, vector<1x1x16x16xf32>
    tpu.vector_store %arg4[%c0_329, %c11, %c0_330, %c0_331], %752 {strides = array<i32>} : memref<1x20x16x16xf32, #tpu.memory_space<vmem>>, vector<1x1x16x16xf32>,
    %c0_332 = arith.constant 0 : index
    %c11_333 = arith.constant 11 : index
    %c0_334 = arith.constant 0 : index
    %c0_335 = arith.constant 0 : index
    %758 = vector.load %arg5[%c0_332, %c11_333, %c0_334, %c0_335] : memref<1x20x16x16xf32, #tpu.memory_space<vmem>>, vector<1x1x16x16xf32>
    tpu.vector_store %arg5[%c0_332, %c11_333, %c0_334, %c0_335], %756 {strides = array<i32>} : memref<1x20x16x16xf32, #tpu.memory_space<vmem>>, vector<1x1x16x16xf32>,
    %c0_336 = arith.constant 0 : index
    %c10_337 = arith.constant 10 : index
    %c0_338 = arith.constant 0 : index
    %c0_339 = arith.constant 0 : index
    %759 = vector.load %arg3[%c0_336, %c10_337, %c0_338, %c0_339] : memref<1x16x20x20xf32, #tpu.memory_space<vmem>>, vector<1x1x20x20xf32>
    %760 = vector.extract_strided_slice %759 {offsets = [0, 0, 0, 0], sizes = [1, 1, 20, 16], strides = [1, 1, 1, 1]} : vector<1x1x20x20xf32> to vector<1x1x20x16xf32>
    %cst_340 = arith.constant 0.36787945 : f32
    %761 = vector.broadcast %cst_340 : f32 to vector<1x1x20x16xf32>
    %762 = arith.mulf %761, %760 : vector<1x1x20x16xf32>
    %763 = vector.extract_strided_slice %759 {offsets = [0, 0, 0, 0], sizes = [1, 1, 20, 16], strides = [1, 1, 1, 1]} : vector<1x1x20x20xf32> to vector<1x1x20x16xf32>
    %cst_341 = arith.constant 0.778800785 : f32
    %764 = vector.broadcast %cst_341 : f32 to vector<1x1x20x16xf32>
    %765 = arith.mulf %764, %763 : vector<1x1x20x16xf32>
    %766 = vector.extract_strided_slice %759 {offsets = [0, 0, 0, 1], sizes = [1, 1, 20, 16], strides = [1, 1, 1, 1]} : vector<1x1x20x20xf32> to vector<1x1x20x16xf32>
    %cst_342 = arith.constant 0.778800785 : f32
    %767 = vector.broadcast %cst_342 : f32 to vector<1x1x20x16xf32>
    %768 = arith.mulf %767, %766 : vector<1x1x20x16xf32>
    %769 = arith.addf %762, %768 : vector<1x1x20x16xf32>
    %cst_343 = arith.constant 0.93941307 : f32
    %770 = vector.broadcast %cst_343 : f32 to vector<1x1x20x16xf32>
    %771 = arith.mulf %770, %766 : vector<1x1x20x16xf32>
    %772 = arith.addf %765, %771 : vector<1x1x20x16xf32>
    %773 = vector.extract_strided_slice %759 {offsets = [0, 0, 0, 2], sizes = [1, 1, 20, 16], strides = [1, 1, 1, 1]} : vector<1x1x20x20xf32> to vector<1x1x20x16xf32>
    %cst_344 = arith.constant 1.000000e+00 : f32
    %774 = vector.broadcast %cst_344 : f32 to vector<1x1x20x16xf32>
    %775 = arith.mulf %774, %773 : vector<1x1x20x16xf32>
    %776 = arith.addf %769, %775 : vector<1x1x20x16xf32>
    %cst_345 = arith.constant 1.000000e+00 : f32
    %777 = vector.broadcast %cst_345 : f32 to vector<1x1x20x16xf32>
    %778 = arith.mulf %777, %773 : vector<1x1x20x16xf32>
    %779 = arith.addf %772, %778 : vector<1x1x20x16xf32>
    %780 = vector.extract_strided_slice %759 {offsets = [0, 0, 0, 3], sizes = [1, 1, 20, 16], strides = [1, 1, 1, 1]} : vector<1x1x20x20xf32> to vector<1x1x20x16xf32>
    %cst_346 = arith.constant 0.778800785 : f32
    %781 = vector.broadcast %cst_346 : f32 to vector<1x1x20x16xf32>
    %782 = arith.mulf %781, %780 : vector<1x1x20x16xf32>
    %783 = arith.addf %776, %782 : vector<1x1x20x16xf32>
    %cst_347 = arith.constant 0.93941307 : f32
    %784 = vector.broadcast %cst_347 : f32 to vector<1x1x20x16xf32>
    %785 = arith.mulf %784, %780 : vector<1x1x20x16xf32>
    %786 = arith.addf %779, %785 : vector<1x1x20x16xf32>
    %787 = vector.extract_strided_slice %759 {offsets = [0, 0, 0, 4], sizes = [1, 1, 20, 16], strides = [1, 1, 1, 1]} : vector<1x1x20x20xf32> to vector<1x1x20x16xf32>
    %cst_348 = arith.constant 0.36787945 : f32
    %788 = vector.broadcast %cst_348 : f32 to vector<1x1x20x16xf32>
    %789 = arith.mulf %788, %787 : vector<1x1x20x16xf32>
    %790 = arith.addf %783, %789 : vector<1x1x20x16xf32>
    %cst_349 = arith.constant 0.778800785 : f32
    %791 = vector.broadcast %cst_349 : f32 to vector<1x1x20x16xf32>
    %792 = arith.mulf %791, %787 : vector<1x1x20x16xf32>
    %793 = arith.addf %786, %792 : vector<1x1x20x16xf32>
    %794 = vector.extract_strided_slice %790 {offsets = [0, 0, 0, 0], sizes = [1, 1, 16, 16], strides = [1, 1, 1, 1]} : vector<1x1x20x16xf32> to vector<1x1x16x16xf32>
    %cst_350 = arith.constant 0.36787945 : f32
    %795 = vector.broadcast %cst_350 : f32 to vector<1x1x16x16xf32>
    %796 = arith.mulf %795, %794 : vector<1x1x16x16xf32>
    %797 = vector.extract_strided_slice %793 {offsets = [0, 0, 0, 0], sizes = [1, 1, 16, 16], strides = [1, 1, 1, 1]} : vector<1x1x20x16xf32> to vector<1x1x16x16xf32>
    %cst_351 = arith.constant 0.778800785 : f32
    %798 = vector.broadcast %cst_351 : f32 to vector<1x1x16x16xf32>
    %799 = arith.mulf %798, %797 : vector<1x1x16x16xf32>
    %800 = vector.extract_strided_slice %790 {offsets = [0, 0, 1, 0], sizes = [1, 1, 16, 16], strides = [1, 1, 1, 1]} : vector<1x1x20x16xf32> to vector<1x1x16x16xf32>
    %cst_352 = arith.constant 0.778800785 : f32
    %801 = vector.broadcast %cst_352 : f32 to vector<1x1x16x16xf32>
    %802 = arith.mulf %801, %800 : vector<1x1x16x16xf32>
    %803 = arith.addf %796, %802 : vector<1x1x16x16xf32>
    %804 = vector.extract_strided_slice %793 {offsets = [0, 0, 1, 0], sizes = [1, 1, 16, 16], strides = [1, 1, 1, 1]} : vector<1x1x20x16xf32> to vector<1x1x16x16xf32>
    %cst_353 = arith.constant 0.93941307 : f32
    %805 = vector.broadcast %cst_353 : f32 to vector<1x1x16x16xf32>
    %806 = arith.mulf %805, %804 : vector<1x1x16x16xf32>
    %807 = arith.addf %799, %806 : vector<1x1x16x16xf32>
    %808 = vector.extract_strided_slice %790 {offsets = [0, 0, 2, 0], sizes = [1, 1, 16, 16], strides = [1, 1, 1, 1]} : vector<1x1x20x16xf32> to vector<1x1x16x16xf32>
    %cst_354 = arith.constant 1.000000e+00 : f32
    %809 = vector.broadcast %cst_354 : f32 to vector<1x1x16x16xf32>
    %810 = arith.mulf %809, %808 : vector<1x1x16x16xf32>
    %811 = arith.addf %803, %810 : vector<1x1x16x16xf32>
    %812 = vector.extract_strided_slice %793 {offsets = [0, 0, 2, 0], sizes = [1, 1, 16, 16], strides = [1, 1, 1, 1]} : vector<1x1x20x16xf32> to vector<1x1x16x16xf32>
    %cst_355 = arith.constant 1.000000e+00 : f32
    %813 = vector.broadcast %cst_355 : f32 to vector<1x1x16x16xf32>
    %814 = arith.mulf %813, %812 : vector<1x1x16x16xf32>
    %815 = arith.addf %807, %814 : vector<1x1x16x16xf32>
    %816 = vector.extract_strided_slice %790 {offsets = [0, 0, 3, 0], sizes = [1, 1, 16, 16], strides = [1, 1, 1, 1]} : vector<1x1x20x16xf32> to vector<1x1x16x16xf32>
    %cst_356 = arith.constant 0.778800785 : f32
    %817 = vector.broadcast %cst_356 : f32 to vector<1x1x16x16xf32>
    %818 = arith.mulf %817, %816 : vector<1x1x16x16xf32>
    %819 = arith.addf %811, %818 : vector<1x1x16x16xf32>
    %820 = vector.extract_strided_slice %793 {offsets = [0, 0, 3, 0], sizes = [1, 1, 16, 16], strides = [1, 1, 1, 1]} : vector<1x1x20x16xf32> to vector<1x1x16x16xf32>
    %cst_357 = arith.constant 0.93941307 : f32
    %821 = vector.broadcast %cst_357 : f32 to vector<1x1x16x16xf32>
    %822 = arith.mulf %821, %820 : vector<1x1x16x16xf32>
    %823 = arith.addf %815, %822 : vector<1x1x16x16xf32>
    %824 = vector.extract_strided_slice %790 {offsets = [0, 0, 4, 0], sizes = [1, 1, 16, 16], strides = [1, 1, 1, 1]} : vector<1x1x20x16xf32> to vector<1x1x16x16xf32>
    %cst_358 = arith.constant 0.36787945 : f32
    %825 = vector.broadcast %cst_358 : f32 to vector<1x1x16x16xf32>
    %826 = arith.mulf %825, %824 : vector<1x1x16x16xf32>
    %827 = arith.addf %819, %826 : vector<1x1x16x16xf32>
    %828 = vector.extract_strided_slice %793 {offsets = [0, 0, 4, 0], sizes = [1, 1, 16, 16], strides = [1, 1, 1, 1]} : vector<1x1x20x16xf32> to vector<1x1x16x16xf32>
    %cst_359 = arith.constant 0.778800785 : f32
    %829 = vector.broadcast %cst_359 : f32 to vector<1x1x16x16xf32>
    %830 = arith.mulf %829, %828 : vector<1x1x16x16xf32>
    %831 = arith.addf %823, %830 : vector<1x1x16x16xf32>
    %c0_360 = arith.constant 0 : index
    %c12 = arith.constant 12 : index
    %c0_361 = arith.constant 0 : index
    %c0_362 = arith.constant 0 : index
    %832 = vector.load %arg4[%c0_360, %c12, %c0_361, %c0_362] : memref<1x20x16x16xf32, #tpu.memory_space<vmem>>, vector<1x1x16x16xf32>
    tpu.vector_store %arg4[%c0_360, %c12, %c0_361, %c0_362], %827 {strides = array<i32>} : memref<1x20x16x16xf32, #tpu.memory_space<vmem>>, vector<1x1x16x16xf32>,
    %c0_363 = arith.constant 0 : index
    %c12_364 = arith.constant 12 : index
    %c0_365 = arith.constant 0 : index
    %c0_366 = arith.constant 0 : index
    %833 = vector.load %arg5[%c0_363, %c12_364, %c0_365, %c0_366] : memref<1x20x16x16xf32, #tpu.memory_space<vmem>>, vector<1x1x16x16xf32>
    tpu.vector_store %arg5[%c0_363, %c12_364, %c0_365, %c0_366], %831 {strides = array<i32>} : memref<1x20x16x16xf32, #tpu.memory_space<vmem>>, vector<1x1x16x16xf32>,
    %c0_367 = arith.constant 0 : index
    %c11_368 = arith.constant 11 : index
    %c0_369 = arith.constant 0 : index
    %c0_370 = arith.constant 0 : index
    %834 = vector.load %arg3[%c0_367, %c11_368, %c0_369, %c0_370] : memref<1x16x20x20xf32, #tpu.memory_space<vmem>>, vector<1x1x20x20xf32>
    %835 = vector.extract_strided_slice %834 {offsets = [0, 0, 0, 0], sizes = [1, 1, 20, 16], strides = [1, 1, 1, 1]} : vector<1x1x20x20xf32> to vector<1x1x20x16xf32>
    %cst_371 = arith.constant 0.36787945 : f32
    %836 = vector.broadcast %cst_371 : f32 to vector<1x1x20x16xf32>
    %837 = arith.mulf %836, %835 : vector<1x1x20x16xf32>
    %838 = vector.extract_strided_slice %834 {offsets = [0, 0, 0, 0], sizes = [1, 1, 20, 16], strides = [1, 1, 1, 1]} : vector<1x1x20x20xf32> to vector<1x1x20x16xf32>
    %cst_372 = arith.constant 0.778800785 : f32
    %839 = vector.broadcast %cst_372 : f32 to vector<1x1x20x16xf32>
    %840 = arith.mulf %839, %838 : vector<1x1x20x16xf32>
    %841 = vector.extract_strided_slice %834 {offsets = [0, 0, 0, 1], sizes = [1, 1, 20, 16], strides = [1, 1, 1, 1]} : vector<1x1x20x20xf32> to vector<1x1x20x16xf32>
    %cst_373 = arith.constant 0.778800785 : f32
    %842 = vector.broadcast %cst_373 : f32 to vector<1x1x20x16xf32>
    %843 = arith.mulf %842, %841 : vector<1x1x20x16xf32>
    %844 = arith.addf %837, %843 : vector<1x1x20x16xf32>
    %cst_374 = arith.constant 0.93941307 : f32
    %845 = vector.broadcast %cst_374 : f32 to vector<1x1x20x16xf32>
    %846 = arith.mulf %845, %841 : vector<1x1x20x16xf32>
    %847 = arith.addf %840, %846 : vector<1x1x20x16xf32>
    %848 = vector.extract_strided_slice %834 {offsets = [0, 0, 0, 2], sizes = [1, 1, 20, 16], strides = [1, 1, 1, 1]} : vector<1x1x20x20xf32> to vector<1x1x20x16xf32>
    %cst_375 = arith.constant 1.000000e+00 : f32
    %849 = vector.broadcast %cst_375 : f32 to vector<1x1x20x16xf32>
    %850 = arith.mulf %849, %848 : vector<1x1x20x16xf32>
    %851 = arith.addf %844, %850 : vector<1x1x20x16xf32>
    %cst_376 = arith.constant 1.000000e+00 : f32
    %852 = vector.broadcast %cst_376 : f32 to vector<1x1x20x16xf32>
    %853 = arith.mulf %852, %848 : vector<1x1x20x16xf32>
    %854 = arith.addf %847, %853 : vector<1x1x20x16xf32>
    %855 = vector.extract_strided_slice %834 {offsets = [0, 0, 0, 3], sizes = [1, 1, 20, 16], strides = [1, 1, 1, 1]} : vector<1x1x20x20xf32> to vector<1x1x20x16xf32>
    %cst_377 = arith.constant 0.778800785 : f32
    %856 = vector.broadcast %cst_377 : f32 to vector<1x1x20x16xf32>
    %857 = arith.mulf %856, %855 : vector<1x1x20x16xf32>
    %858 = arith.addf %851, %857 : vector<1x1x20x16xf32>
    %cst_378 = arith.constant 0.93941307 : f32
    %859 = vector.broadcast %cst_378 : f32 to vector<1x1x20x16xf32>
    %860 = arith.mulf %859, %855 : vector<1x1x20x16xf32>
    %861 = arith.addf %854, %860 : vector<1x1x20x16xf32>
    %862 = vector.extract_strided_slice %834 {offsets = [0, 0, 0, 4], sizes = [1, 1, 20, 16], strides = [1, 1, 1, 1]} : vector<1x1x20x20xf32> to vector<1x1x20x16xf32>
    %cst_379 = arith.constant 0.36787945 : f32
    %863 = vector.broadcast %cst_379 : f32 to vector<1x1x20x16xf32>
    %864 = arith.mulf %863, %862 : vector<1x1x20x16xf32>
    %865 = arith.addf %858, %864 : vector<1x1x20x16xf32>
    %cst_380 = arith.constant 0.778800785 : f32
    %866 = vector.broadcast %cst_380 : f32 to vector<1x1x20x16xf32>
    %867 = arith.mulf %866, %862 : vector<1x1x20x16xf32>
    %868 = arith.addf %861, %867 : vector<1x1x20x16xf32>
    %869 = vector.extract_strided_slice %865 {offsets = [0, 0, 0, 0], sizes = [1, 1, 16, 16], strides = [1, 1, 1, 1]} : vector<1x1x20x16xf32> to vector<1x1x16x16xf32>
    %cst_381 = arith.constant 0.36787945 : f32
    %870 = vector.broadcast %cst_381 : f32 to vector<1x1x16x16xf32>
    %871 = arith.mulf %870, %869 : vector<1x1x16x16xf32>
    %872 = vector.extract_strided_slice %868 {offsets = [0, 0, 0, 0], sizes = [1, 1, 16, 16], strides = [1, 1, 1, 1]} : vector<1x1x20x16xf32> to vector<1x1x16x16xf32>
    %cst_382 = arith.constant 0.778800785 : f32
    %873 = vector.broadcast %cst_382 : f32 to vector<1x1x16x16xf32>
    %874 = arith.mulf %873, %872 : vector<1x1x16x16xf32>
    %875 = vector.extract_strided_slice %865 {offsets = [0, 0, 1, 0], sizes = [1, 1, 16, 16], strides = [1, 1, 1, 1]} : vector<1x1x20x16xf32> to vector<1x1x16x16xf32>
    %cst_383 = arith.constant 0.778800785 : f32
    %876 = vector.broadcast %cst_383 : f32 to vector<1x1x16x16xf32>
    %877 = arith.mulf %876, %875 : vector<1x1x16x16xf32>
    %878 = arith.addf %871, %877 : vector<1x1x16x16xf32>
    %879 = vector.extract_strided_slice %868 {offsets = [0, 0, 1, 0], sizes = [1, 1, 16, 16], strides = [1, 1, 1, 1]} : vector<1x1x20x16xf32> to vector<1x1x16x16xf32>
    %cst_384 = arith.constant 0.93941307 : f32
    %880 = vector.broadcast %cst_384 : f32 to vector<1x1x16x16xf32>
    %881 = arith.mulf %880, %879 : vector<1x1x16x16xf32>
    %882 = arith.addf %874, %881 : vector<1x1x16x16xf32>
    %883 = vector.extract_strided_slice %865 {offsets = [0, 0, 2, 0], sizes = [1, 1, 16, 16], strides = [1, 1, 1, 1]} : vector<1x1x20x16xf32> to vector<1x1x16x16xf32>
    %cst_385 = arith.constant 1.000000e+00 : f32
    %884 = vector.broadcast %cst_385 : f32 to vector<1x1x16x16xf32>
    %885 = arith.mulf %884, %883 : vector<1x1x16x16xf32>
    %886 = arith.addf %878, %885 : vector<1x1x16x16xf32>
    %887 = vector.extract_strided_slice %868 {offsets = [0, 0, 2, 0], sizes = [1, 1, 16, 16], strides = [1, 1, 1, 1]} : vector<1x1x20x16xf32> to vector<1x1x16x16xf32>
    %cst_386 = arith.constant 1.000000e+00 : f32
    %888 = vector.broadcast %cst_386 : f32 to vector<1x1x16x16xf32>
    %889 = arith.mulf %888, %887 : vector<1x1x16x16xf32>
    %890 = arith.addf %882, %889 : vector<1x1x16x16xf32>
    %891 = vector.extract_strided_slice %865 {offsets = [0, 0, 3, 0], sizes = [1, 1, 16, 16], strides = [1, 1, 1, 1]} : vector<1x1x20x16xf32> to vector<1x1x16x16xf32>
    %cst_387 = arith.constant 0.778800785 : f32
    %892 = vector.broadcast %cst_387 : f32 to vector<1x1x16x16xf32>
    %893 = arith.mulf %892, %891 : vector<1x1x16x16xf32>
    %894 = arith.addf %886, %893 : vector<1x1x16x16xf32>
    %895 = vector.extract_strided_slice %868 {offsets = [0, 0, 3, 0], sizes = [1, 1, 16, 16], strides = [1, 1, 1, 1]} : vector<1x1x20x16xf32> to vector<1x1x16x16xf32>
    %cst_388 = arith.constant 0.93941307 : f32
    %896 = vector.broadcast %cst_388 : f32 to vector<1x1x16x16xf32>
    %897 = arith.mulf %896, %895 : vector<1x1x16x16xf32>
    %898 = arith.addf %890, %897 : vector<1x1x16x16xf32>
    %899 = vector.extract_strided_slice %865 {offsets = [0, 0, 4, 0], sizes = [1, 1, 16, 16], strides = [1, 1, 1, 1]} : vector<1x1x20x16xf32> to vector<1x1x16x16xf32>
    %cst_389 = arith.constant 0.36787945 : f32
    %900 = vector.broadcast %cst_389 : f32 to vector<1x1x16x16xf32>
    %901 = arith.mulf %900, %899 : vector<1x1x16x16xf32>
    %902 = arith.addf %894, %901 : vector<1x1x16x16xf32>
    %903 = vector.extract_strided_slice %868 {offsets = [0, 0, 4, 0], sizes = [1, 1, 16, 16], strides = [1, 1, 1, 1]} : vector<1x1x20x16xf32> to vector<1x1x16x16xf32>
    %cst_390 = arith.constant 0.778800785 : f32
    %904 = vector.broadcast %cst_390 : f32 to vector<1x1x16x16xf32>
    %905 = arith.mulf %904, %903 : vector<1x1x16x16xf32>
    %906 = arith.addf %898, %905 : vector<1x1x16x16xf32>
    %c0_391 = arith.constant 0 : index
    %c13 = arith.constant 13 : index
    %c0_392 = arith.constant 0 : index
    %c0_393 = arith.constant 0 : index
    %907 = vector.load %arg4[%c0_391, %c13, %c0_392, %c0_393] : memref<1x20x16x16xf32, #tpu.memory_space<vmem>>, vector<1x1x16x16xf32>
    tpu.vector_store %arg4[%c0_391, %c13, %c0_392, %c0_393], %902 {strides = array<i32>} : memref<1x20x16x16xf32, #tpu.memory_space<vmem>>, vector<1x1x16x16xf32>,
    %c0_394 = arith.constant 0 : index
    %c13_395 = arith.constant 13 : index
    %c0_396 = arith.constant 0 : index
    %c0_397 = arith.constant 0 : index
    %908 = vector.load %arg5[%c0_394, %c13_395, %c0_396, %c0_397] : memref<1x20x16x16xf32, #tpu.memory_space<vmem>>, vector<1x1x16x16xf32>
    tpu.vector_store %arg5[%c0_394, %c13_395, %c0_396, %c0_397], %906 {strides = array<i32>} : memref<1x20x16x16xf32, #tpu.memory_space<vmem>>, vector<1x1x16x16xf32>,
    %c0_398 = arith.constant 0 : index
    %c12_399 = arith.constant 12 : index
    %c0_400 = arith.constant 0 : index
    %c0_401 = arith.constant 0 : index
    %909 = vector.load %arg3[%c0_398, %c12_399, %c0_400, %c0_401] : memref<1x16x20x20xf32, #tpu.memory_space<vmem>>, vector<1x1x20x20xf32>
    %910 = vector.extract_strided_slice %909 {offsets = [0, 0, 0, 0], sizes = [1, 1, 20, 16], strides = [1, 1, 1, 1]} : vector<1x1x20x20xf32> to vector<1x1x20x16xf32>
    %cst_402 = arith.constant 0.36787945 : f32
    %911 = vector.broadcast %cst_402 : f32 to vector<1x1x20x16xf32>
    %912 = arith.mulf %911, %910 : vector<1x1x20x16xf32>
    %913 = vector.extract_strided_slice %909 {offsets = [0, 0, 0, 0], sizes = [1, 1, 20, 16], strides = [1, 1, 1, 1]} : vector<1x1x20x20xf32> to vector<1x1x20x16xf32>
    %cst_403 = arith.constant 0.778800785 : f32
    %914 = vector.broadcast %cst_403 : f32 to vector<1x1x20x16xf32>
    %915 = arith.mulf %914, %913 : vector<1x1x20x16xf32>
    %916 = vector.extract_strided_slice %909 {offsets = [0, 0, 0, 1], sizes = [1, 1, 20, 16], strides = [1, 1, 1, 1]} : vector<1x1x20x20xf32> to vector<1x1x20x16xf32>
    %cst_404 = arith.constant 0.778800785 : f32
    %917 = vector.broadcast %cst_404 : f32 to vector<1x1x20x16xf32>
    %918 = arith.mulf %917, %916 : vector<1x1x20x16xf32>
    %919 = arith.addf %912, %918 : vector<1x1x20x16xf32>
    %cst_405 = arith.constant 0.93941307 : f32
    %920 = vector.broadcast %cst_405 : f32 to vector<1x1x20x16xf32>
    %921 = arith.mulf %920, %916 : vector<1x1x20x16xf32>
    %922 = arith.addf %915, %921 : vector<1x1x20x16xf32>
    %923 = vector.extract_strided_slice %909 {offsets = [0, 0, 0, 2], sizes = [1, 1, 20, 16], strides = [1, 1, 1, 1]} : vector<1x1x20x20xf32> to vector<1x1x20x16xf32>
    %cst_406 = arith.constant 1.000000e+00 : f32
    %924 = vector.broadcast %cst_406 : f32 to vector<1x1x20x16xf32>
    %925 = arith.mulf %924, %923 : vector<1x1x20x16xf32>
    %926 = arith.addf %919, %925 : vector<1x1x20x16xf32>
    %cst_407 = arith.constant 1.000000e+00 : f32
    %927 = vector.broadcast %cst_407 : f32 to vector<1x1x20x16xf32>
    %928 = arith.mulf %927, %923 : vector<1x1x20x16xf32>
    %929 = arith.addf %922, %928 : vector<1x1x20x16xf32>
    %930 = vector.extract_strided_slice %909 {offsets = [0, 0, 0, 3], sizes = [1, 1, 20, 16], strides = [1, 1, 1, 1]} : vector<1x1x20x20xf32> to vector<1x1x20x16xf32>
    %cst_408 = arith.constant 0.778800785 : f32
    %931 = vector.broadcast %cst_408 : f32 to vector<1x1x20x16xf32>
    %932 = arith.mulf %931, %930 : vector<1x1x20x16xf32>
    %933 = arith.addf %926, %932 : vector<1x1x20x16xf32>
    %cst_409 = arith.constant 0.93941307 : f32
    %934 = vector.broadcast %cst_409 : f32 to vector<1x1x20x16xf32>
    %935 = arith.mulf %934, %930 : vector<1x1x20x16xf32>
    %936 = arith.addf %929, %935 : vector<1x1x20x16xf32>
    %937 = vector.extract_strided_slice %909 {offsets = [0, 0, 0, 4], sizes = [1, 1, 20, 16], strides = [1, 1, 1, 1]} : vector<1x1x20x20xf32> to vector<1x1x20x16xf32>
    %cst_410 = arith.constant 0.36787945 : f32
    %938 = vector.broadcast %cst_410 : f32 to vector<1x1x20x16xf32>
    %939 = arith.mulf %938, %937 : vector<1x1x20x16xf32>
    %940 = arith.addf %933, %939 : vector<1x1x20x16xf32>
    %cst_411 = arith.constant 0.778800785 : f32
    %941 = vector.broadcast %cst_411 : f32 to vector<1x1x20x16xf32>
    %942 = arith.mulf %941, %937 : vector<1x1x20x16xf32>
    %943 = arith.addf %936, %942 : vector<1x1x20x16xf32>
    %944 = vector.extract_strided_slice %940 {offsets = [0, 0, 0, 0], sizes = [1, 1, 16, 16], strides = [1, 1, 1, 1]} : vector<1x1x20x16xf32> to vector<1x1x16x16xf32>
    %cst_412 = arith.constant 0.36787945 : f32
    %945 = vector.broadcast %cst_412 : f32 to vector<1x1x16x16xf32>
    %946 = arith.mulf %945, %944 : vector<1x1x16x16xf32>
    %947 = vector.extract_strided_slice %943 {offsets = [0, 0, 0, 0], sizes = [1, 1, 16, 16], strides = [1, 1, 1, 1]} : vector<1x1x20x16xf32> to vector<1x1x16x16xf32>
    %cst_413 = arith.constant 0.778800785 : f32
    %948 = vector.broadcast %cst_413 : f32 to vector<1x1x16x16xf32>
    %949 = arith.mulf %948, %947 : vector<1x1x16x16xf32>
    %950 = vector.extract_strided_slice %940 {offsets = [0, 0, 1, 0], sizes = [1, 1, 16, 16], strides = [1, 1, 1, 1]} : vector<1x1x20x16xf32> to vector<1x1x16x16xf32>
    %cst_414 = arith.constant 0.778800785 : f32
    %951 = vector.broadcast %cst_414 : f32 to vector<1x1x16x16xf32>
    %952 = arith.mulf %951, %950 : vector<1x1x16x16xf32>
    %953 = arith.addf %946, %952 : vector<1x1x16x16xf32>
    %954 = vector.extract_strided_slice %943 {offsets = [0, 0, 1, 0], sizes = [1, 1, 16, 16], strides = [1, 1, 1, 1]} : vector<1x1x20x16xf32> to vector<1x1x16x16xf32>
    %cst_415 = arith.constant 0.93941307 : f32
    %955 = vector.broadcast %cst_415 : f32 to vector<1x1x16x16xf32>
    %956 = arith.mulf %955, %954 : vector<1x1x16x16xf32>
    %957 = arith.addf %949, %956 : vector<1x1x16x16xf32>
    %958 = vector.extract_strided_slice %940 {offsets = [0, 0, 2, 0], sizes = [1, 1, 16, 16], strides = [1, 1, 1, 1]} : vector<1x1x20x16xf32> to vector<1x1x16x16xf32>
    %cst_416 = arith.constant 1.000000e+00 : f32
    %959 = vector.broadcast %cst_416 : f32 to vector<1x1x16x16xf32>
    %960 = arith.mulf %959, %958 : vector<1x1x16x16xf32>
    %961 = arith.addf %953, %960 : vector<1x1x16x16xf32>
    %962 = vector.extract_strided_slice %943 {offsets = [0, 0, 2, 0], sizes = [1, 1, 16, 16], strides = [1, 1, 1, 1]} : vector<1x1x20x16xf32> to vector<1x1x16x16xf32>
    %cst_417 = arith.constant 1.000000e+00 : f32
    %963 = vector.broadcast %cst_417 : f32 to vector<1x1x16x16xf32>
    %964 = arith.mulf %963, %962 : vector<1x1x16x16xf32>
    %965 = arith.addf %957, %964 : vector<1x1x16x16xf32>
    %966 = vector.extract_strided_slice %940 {offsets = [0, 0, 3, 0], sizes = [1, 1, 16, 16], strides = [1, 1, 1, 1]} : vector<1x1x20x16xf32> to vector<1x1x16x16xf32>
    %cst_418 = arith.constant 0.778800785 : f32
    %967 = vector.broadcast %cst_418 : f32 to vector<1x1x16x16xf32>
    %968 = arith.mulf %967, %966 : vector<1x1x16x16xf32>
    %969 = arith.addf %961, %968 : vector<1x1x16x16xf32>
    %970 = vector.extract_strided_slice %943 {offsets = [0, 0, 3, 0], sizes = [1, 1, 16, 16], strides = [1, 1, 1, 1]} : vector<1x1x20x16xf32> to vector<1x1x16x16xf32>
    %cst_419 = arith.constant 0.93941307 : f32
    %971 = vector.broadcast %cst_419 : f32 to vector<1x1x16x16xf32>
    %972 = arith.mulf %971, %970 : vector<1x1x16x16xf32>
    %973 = arith.addf %965, %972 : vector<1x1x16x16xf32>
    %974 = vector.extract_strided_slice %940 {offsets = [0, 0, 4, 0], sizes = [1, 1, 16, 16], strides = [1, 1, 1, 1]} : vector<1x1x20x16xf32> to vector<1x1x16x16xf32>
    %cst_420 = arith.constant 0.36787945 : f32
    %975 = vector.broadcast %cst_420 : f32 to vector<1x1x16x16xf32>
    %976 = arith.mulf %975, %974 : vector<1x1x16x16xf32>
    %977 = arith.addf %969, %976 : vector<1x1x16x16xf32>
    %978 = vector.extract_strided_slice %943 {offsets = [0, 0, 4, 0], sizes = [1, 1, 16, 16], strides = [1, 1, 1, 1]} : vector<1x1x20x16xf32> to vector<1x1x16x16xf32>
    %cst_421 = arith.constant 0.778800785 : f32
    %979 = vector.broadcast %cst_421 : f32 to vector<1x1x16x16xf32>
    %980 = arith.mulf %979, %978 : vector<1x1x16x16xf32>
    %981 = arith.addf %973, %980 : vector<1x1x16x16xf32>
    %c0_422 = arith.constant 0 : index
    %c14 = arith.constant 14 : index
    %c0_423 = arith.constant 0 : index
    %c0_424 = arith.constant 0 : index
    %982 = vector.load %arg4[%c0_422, %c14, %c0_423, %c0_424] : memref<1x20x16x16xf32, #tpu.memory_space<vmem>>, vector<1x1x16x16xf32>
    tpu.vector_store %arg4[%c0_422, %c14, %c0_423, %c0_424], %977 {strides = array<i32>} : memref<1x20x16x16xf32, #tpu.memory_space<vmem>>, vector<1x1x16x16xf32>,
    %c0_425 = arith.constant 0 : index
    %c14_426 = arith.constant 14 : index
    %c0_427 = arith.constant 0 : index
    %c0_428 = arith.constant 0 : index
    %983 = vector.load %arg5[%c0_425, %c14_426, %c0_427, %c0_428] : memref<1x20x16x16xf32, #tpu.memory_space<vmem>>, vector<1x1x16x16xf32>
    tpu.vector_store %arg5[%c0_425, %c14_426, %c0_427, %c0_428], %981 {strides = array<i32>} : memref<1x20x16x16xf32, #tpu.memory_space<vmem>>, vector<1x1x16x16xf32>,
    %c0_429 = arith.constant 0 : index
    %c13_430 = arith.constant 13 : index
    %c0_431 = arith.constant 0 : index
    %c0_432 = arith.constant 0 : index
    %984 = vector.load %arg3[%c0_429, %c13_430, %c0_431, %c0_432] : memref<1x16x20x20xf32, #tpu.memory_space<vmem>>, vector<1x1x20x20xf32>
    %985 = vector.extract_strided_slice %984 {offsets = [0, 0, 0, 0], sizes = [1, 1, 20, 16], strides = [1, 1, 1, 1]} : vector<1x1x20x20xf32> to vector<1x1x20x16xf32>
    %cst_433 = arith.constant 0.36787945 : f32
    %986 = vector.broadcast %cst_433 : f32 to vector<1x1x20x16xf32>
    %987 = arith.mulf %986, %985 : vector<1x1x20x16xf32>
    %988 = vector.extract_strided_slice %984 {offsets = [0, 0, 0, 0], sizes = [1, 1, 20, 16], strides = [1, 1, 1, 1]} : vector<1x1x20x20xf32> to vector<1x1x20x16xf32>
    %cst_434 = arith.constant 0.778800785 : f32
    %989 = vector.broadcast %cst_434 : f32 to vector<1x1x20x16xf32>
    %990 = arith.mulf %989, %988 : vector<1x1x20x16xf32>
    %991 = vector.extract_strided_slice %984 {offsets = [0, 0, 0, 1], sizes = [1, 1, 20, 16], strides = [1, 1, 1, 1]} : vector<1x1x20x20xf32> to vector<1x1x20x16xf32>
    %cst_435 = arith.constant 0.778800785 : f32
    %992 = vector.broadcast %cst_435 : f32 to vector<1x1x20x16xf32>
    %993 = arith.mulf %992, %991 : vector<1x1x20x16xf32>
    %994 = arith.addf %987, %993 : vector<1x1x20x16xf32>
    %cst_436 = arith.constant 0.93941307 : f32
    %995 = vector.broadcast %cst_436 : f32 to vector<1x1x20x16xf32>
    %996 = arith.mulf %995, %991 : vector<1x1x20x16xf32>
    %997 = arith.addf %990, %996 : vector<1x1x20x16xf32>
    %998 = vector.extract_strided_slice %984 {offsets = [0, 0, 0, 2], sizes = [1, 1, 20, 16], strides = [1, 1, 1, 1]} : vector<1x1x20x20xf32> to vector<1x1x20x16xf32>
    %cst_437 = arith.constant 1.000000e+00 : f32
    %999 = vector.broadcast %cst_437 : f32 to vector<1x1x20x16xf32>
    %1000 = arith.mulf %999, %998 : vector<1x1x20x16xf32>
    %1001 = arith.addf %994, %1000 : vector<1x1x20x16xf32>
    %cst_438 = arith.constant 1.000000e+00 : f32
    %1002 = vector.broadcast %cst_438 : f32 to vector<1x1x20x16xf32>
    %1003 = arith.mulf %1002, %998 : vector<1x1x20x16xf32>
    %1004 = arith.addf %997, %1003 : vector<1x1x20x16xf32>
    %1005 = vector.extract_strided_slice %984 {offsets = [0, 0, 0, 3], sizes = [1, 1, 20, 16], strides = [1, 1, 1, 1]} : vector<1x1x20x20xf32> to vector<1x1x20x16xf32>
    %cst_439 = arith.constant 0.778800785 : f32
    %1006 = vector.broadcast %cst_439 : f32 to vector<1x1x20x16xf32>
    %1007 = arith.mulf %1006, %1005 : vector<1x1x20x16xf32>
    %1008 = arith.addf %1001, %1007 : vector<1x1x20x16xf32>
    %cst_440 = arith.constant 0.93941307 : f32
    %1009 = vector.broadcast %cst_440 : f32 to vector<1x1x20x16xf32>
    %1010 = arith.mulf %1009, %1005 : vector<1x1x20x16xf32>
    %1011 = arith.addf %1004, %1010 : vector<1x1x20x16xf32>
    %1012 = vector.extract_strided_slice %984 {offsets = [0, 0, 0, 4], sizes = [1, 1, 20, 16], strides = [1, 1, 1, 1]} : vector<1x1x20x20xf32> to vector<1x1x20x16xf32>
    %cst_441 = arith.constant 0.36787945 : f32
    %1013 = vector.broadcast %cst_441 : f32 to vector<1x1x20x16xf32>
    %1014 = arith.mulf %1013, %1012 : vector<1x1x20x16xf32>
    %1015 = arith.addf %1008, %1014 : vector<1x1x20x16xf32>
    %cst_442 = arith.constant 0.778800785 : f32
    %1016 = vector.broadcast %cst_442 : f32 to vector<1x1x20x16xf32>
    %1017 = arith.mulf %1016, %1012 : vector<1x1x20x16xf32>
    %1018 = arith.addf %1011, %1017 : vector<1x1x20x16xf32>
    %1019 = vector.extract_strided_slice %1015 {offsets = [0, 0, 0, 0], sizes = [1, 1, 16, 16], strides = [1, 1, 1, 1]} : vector<1x1x20x16xf32> to vector<1x1x16x16xf32>
    %cst_443 = arith.constant 0.36787945 : f32
    %1020 = vector.broadcast %cst_443 : f32 to vector<1x1x16x16xf32>
    %1021 = arith.mulf %1020, %1019 : vector<1x1x16x16xf32>
    %1022 = vector.extract_strided_slice %1018 {offsets = [0, 0, 0, 0], sizes = [1, 1, 16, 16], strides = [1, 1, 1, 1]} : vector<1x1x20x16xf32> to vector<1x1x16x16xf32>
    %cst_444 = arith.constant 0.778800785 : f32
    %1023 = vector.broadcast %cst_444 : f32 to vector<1x1x16x16xf32>
    %1024 = arith.mulf %1023, %1022 : vector<1x1x16x16xf32>
    %1025 = vector.extract_strided_slice %1015 {offsets = [0, 0, 1, 0], sizes = [1, 1, 16, 16], strides = [1, 1, 1, 1]} : vector<1x1x20x16xf32> to vector<1x1x16x16xf32>
    %cst_445 = arith.constant 0.778800785 : f32
    %1026 = vector.broadcast %cst_445 : f32 to vector<1x1x16x16xf32>
    %1027 = arith.mulf %1026, %1025 : vector<1x1x16x16xf32>
    %1028 = arith.addf %1021, %1027 : vector<1x1x16x16xf32>
    %1029 = vector.extract_strided_slice %1018 {offsets = [0, 0, 1, 0], sizes = [1, 1, 16, 16], strides = [1, 1, 1, 1]} : vector<1x1x20x16xf32> to vector<1x1x16x16xf32>
    %cst_446 = arith.constant 0.93941307 : f32
    %1030 = vector.broadcast %cst_446 : f32 to vector<1x1x16x16xf32>
    %1031 = arith.mulf %1030, %1029 : vector<1x1x16x16xf32>
    %1032 = arith.addf %1024, %1031 : vector<1x1x16x16xf32>
    %1033 = vector.extract_strided_slice %1015 {offsets = [0, 0, 2, 0], sizes = [1, 1, 16, 16], strides = [1, 1, 1, 1]} : vector<1x1x20x16xf32> to vector<1x1x16x16xf32>
    %cst_447 = arith.constant 1.000000e+00 : f32
    %1034 = vector.broadcast %cst_447 : f32 to vector<1x1x16x16xf32>
    %1035 = arith.mulf %1034, %1033 : vector<1x1x16x16xf32>
    %1036 = arith.addf %1028, %1035 : vector<1x1x16x16xf32>
    %1037 = vector.extract_strided_slice %1018 {offsets = [0, 0, 2, 0], sizes = [1, 1, 16, 16], strides = [1, 1, 1, 1]} : vector<1x1x20x16xf32> to vector<1x1x16x16xf32>
    %cst_448 = arith.constant 1.000000e+00 : f32
    %1038 = vector.broadcast %cst_448 : f32 to vector<1x1x16x16xf32>
    %1039 = arith.mulf %1038, %1037 : vector<1x1x16x16xf32>
    %1040 = arith.addf %1032, %1039 : vector<1x1x16x16xf32>
    %1041 = vector.extract_strided_slice %1015 {offsets = [0, 0, 3, 0], sizes = [1, 1, 16, 16], strides = [1, 1, 1, 1]} : vector<1x1x20x16xf32> to vector<1x1x16x16xf32>
    %cst_449 = arith.constant 0.778800785 : f32
    %1042 = vector.broadcast %cst_449 : f32 to vector<1x1x16x16xf32>
    %1043 = arith.mulf %1042, %1041 : vector<1x1x16x16xf32>
    %1044 = arith.addf %1036, %1043 : vector<1x1x16x16xf32>
    %1045 = vector.extract_strided_slice %1018 {offsets = [0, 0, 3, 0], sizes = [1, 1, 16, 16], strides = [1, 1, 1, 1]} : vector<1x1x20x16xf32> to vector<1x1x16x16xf32>
    %cst_450 = arith.constant 0.93941307 : f32
    %1046 = vector.broadcast %cst_450 : f32 to vector<1x1x16x16xf32>
    %1047 = arith.mulf %1046, %1045 : vector<1x1x16x16xf32>
    %1048 = arith.addf %1040, %1047 : vector<1x1x16x16xf32>
    %1049 = vector.extract_strided_slice %1015 {offsets = [0, 0, 4, 0], sizes = [1, 1, 16, 16], strides = [1, 1, 1, 1]} : vector<1x1x20x16xf32> to vector<1x1x16x16xf32>
    %cst_451 = arith.constant 0.36787945 : f32
    %1050 = vector.broadcast %cst_451 : f32 to vector<1x1x16x16xf32>
    %1051 = arith.mulf %1050, %1049 : vector<1x1x16x16xf32>
    %1052 = arith.addf %1044, %1051 : vector<1x1x16x16xf32>
    %1053 = vector.extract_strided_slice %1018 {offsets = [0, 0, 4, 0], sizes = [1, 1, 16, 16], strides = [1, 1, 1, 1]} : vector<1x1x20x16xf32> to vector<1x1x16x16xf32>
    %cst_452 = arith.constant 0.778800785 : f32
    %1054 = vector.broadcast %cst_452 : f32 to vector<1x1x16x16xf32>
    %1055 = arith.mulf %1054, %1053 : vector<1x1x16x16xf32>
    %1056 = arith.addf %1048, %1055 : vector<1x1x16x16xf32>
    %c0_453 = arith.constant 0 : index
    %c15 = arith.constant 15 : index
    %c0_454 = arith.constant 0 : index
    %c0_455 = arith.constant 0 : index
    %1057 = vector.load %arg4[%c0_453, %c15, %c0_454, %c0_455] : memref<1x20x16x16xf32, #tpu.memory_space<vmem>>, vector<1x1x16x16xf32>
    tpu.vector_store %arg4[%c0_453, %c15, %c0_454, %c0_455], %1052 {strides = array<i32>} : memref<1x20x16x16xf32, #tpu.memory_space<vmem>>, vector<1x1x16x16xf32>,
    %c0_456 = arith.constant 0 : index
    %c15_457 = arith.constant 15 : index
    %c0_458 = arith.constant 0 : index
    %c0_459 = arith.constant 0 : index
    %1058 = vector.load %arg5[%c0_456, %c15_457, %c0_458, %c0_459] : memref<1x20x16x16xf32, #tpu.memory_space<vmem>>, vector<1x1x16x16xf32>
    tpu.vector_store %arg5[%c0_456, %c15_457, %c0_458, %c0_459], %1056 {strides = array<i32>} : memref<1x20x16x16xf32, #tpu.memory_space<vmem>>, vector<1x1x16x16xf32>,
    %c0_460 = arith.constant 0 : index
    %c14_461 = arith.constant 14 : index
    %c0_462 = arith.constant 0 : index
    %c0_463 = arith.constant 0 : index
    %1059 = vector.load %arg3[%c0_460, %c14_461, %c0_462, %c0_463] : memref<1x16x20x20xf32, #tpu.memory_space<vmem>>, vector<1x1x20x20xf32>
    %1060 = vector.extract_strided_slice %1059 {offsets = [0, 0, 0, 0], sizes = [1, 1, 20, 16], strides = [1, 1, 1, 1]} : vector<1x1x20x20xf32> to vector<1x1x20x16xf32>
    %cst_464 = arith.constant 0.36787945 : f32
    %1061 = vector.broadcast %cst_464 : f32 to vector<1x1x20x16xf32>
    %1062 = arith.mulf %1061, %1060 : vector<1x1x20x16xf32>
    %1063 = vector.extract_strided_slice %1059 {offsets = [0, 0, 0, 0], sizes = [1, 1, 20, 16], strides = [1, 1, 1, 1]} : vector<1x1x20x20xf32> to vector<1x1x20x16xf32>
    %cst_465 = arith.constant 0.778800785 : f32
    %1064 = vector.broadcast %cst_465 : f32 to vector<1x1x20x16xf32>
    %1065 = arith.mulf %1064, %1063 : vector<1x1x20x16xf32>
    %1066 = vector.extract_strided_slice %1059 {offsets = [0, 0, 0, 1], sizes = [1, 1, 20, 16], strides = [1, 1, 1, 1]} : vector<1x1x20x20xf32> to vector<1x1x20x16xf32>
    %cst_466 = arith.constant 0.778800785 : f32
    %1067 = vector.broadcast %cst_466 : f32 to vector<1x1x20x16xf32>
    %1068 = arith.mulf %1067, %1066 : vector<1x1x20x16xf32>
    %1069 = arith.addf %1062, %1068 : vector<1x1x20x16xf32>
    %cst_467 = arith.constant 0.93941307 : f32
    %1070 = vector.broadcast %cst_467 : f32 to vector<1x1x20x16xf32>
    %1071 = arith.mulf %1070, %1066 : vector<1x1x20x16xf32>
    %1072 = arith.addf %1065, %1071 : vector<1x1x20x16xf32>
    %1073 = vector.extract_strided_slice %1059 {offsets = [0, 0, 0, 2], sizes = [1, 1, 20, 16], strides = [1, 1, 1, 1]} : vector<1x1x20x20xf32> to vector<1x1x20x16xf32>
    %cst_468 = arith.constant 1.000000e+00 : f32
    %1074 = vector.broadcast %cst_468 : f32 to vector<1x1x20x16xf32>
    %1075 = arith.mulf %1074, %1073 : vector<1x1x20x16xf32>
    %1076 = arith.addf %1069, %1075 : vector<1x1x20x16xf32>
    %cst_469 = arith.constant 1.000000e+00 : f32
    %1077 = vector.broadcast %cst_469 : f32 to vector<1x1x20x16xf32>
    %1078 = arith.mulf %1077, %1073 : vector<1x1x20x16xf32>
    %1079 = arith.addf %1072, %1078 : vector<1x1x20x16xf32>
    %1080 = vector.extract_strided_slice %1059 {offsets = [0, 0, 0, 3], sizes = [1, 1, 20, 16], strides = [1, 1, 1, 1]} : vector<1x1x20x20xf32> to vector<1x1x20x16xf32>
    %cst_470 = arith.constant 0.778800785 : f32
    %1081 = vector.broadcast %cst_470 : f32 to vector<1x1x20x16xf32>
    %1082 = arith.mulf %1081, %1080 : vector<1x1x20x16xf32>
    %1083 = arith.addf %1076, %1082 : vector<1x1x20x16xf32>
    %cst_471 = arith.constant 0.93941307 : f32
    %1084 = vector.broadcast %cst_471 : f32 to vector<1x1x20x16xf32>
    %1085 = arith.mulf %1084, %1080 : vector<1x1x20x16xf32>
    %1086 = arith.addf %1079, %1085 : vector<1x1x20x16xf32>
    %1087 = vector.extract_strided_slice %1059 {offsets = [0, 0, 0, 4], sizes = [1, 1, 20, 16], strides = [1, 1, 1, 1]} : vector<1x1x20x20xf32> to vector<1x1x20x16xf32>
    %cst_472 = arith.constant 0.36787945 : f32
    %1088 = vector.broadcast %cst_472 : f32 to vector<1x1x20x16xf32>
    %1089 = arith.mulf %1088, %1087 : vector<1x1x20x16xf32>
    %1090 = arith.addf %1083, %1089 : vector<1x1x20x16xf32>
    %cst_473 = arith.constant 0.778800785 : f32
    %1091 = vector.broadcast %cst_473 : f32 to vector<1x1x20x16xf32>
    %1092 = arith.mulf %1091, %1087 : vector<1x1x20x16xf32>
    %1093 = arith.addf %1086, %1092 : vector<1x1x20x16xf32>
    %1094 = vector.extract_strided_slice %1090 {offsets = [0, 0, 0, 0], sizes = [1, 1, 16, 16], strides = [1, 1, 1, 1]} : vector<1x1x20x16xf32> to vector<1x1x16x16xf32>
    %cst_474 = arith.constant 0.36787945 : f32
    %1095 = vector.broadcast %cst_474 : f32 to vector<1x1x16x16xf32>
    %1096 = arith.mulf %1095, %1094 : vector<1x1x16x16xf32>
    %1097 = vector.extract_strided_slice %1093 {offsets = [0, 0, 0, 0], sizes = [1, 1, 16, 16], strides = [1, 1, 1, 1]} : vector<1x1x20x16xf32> to vector<1x1x16x16xf32>
    %cst_475 = arith.constant 0.778800785 : f32
    %1098 = vector.broadcast %cst_475 : f32 to vector<1x1x16x16xf32>
    %1099 = arith.mulf %1098, %1097 : vector<1x1x16x16xf32>
    %1100 = vector.extract_strided_slice %1090 {offsets = [0, 0, 1, 0], sizes = [1, 1, 16, 16], strides = [1, 1, 1, 1]} : vector<1x1x20x16xf32> to vector<1x1x16x16xf32>
    %cst_476 = arith.constant 0.778800785 : f32
    %1101 = vector.broadcast %cst_476 : f32 to vector<1x1x16x16xf32>
    %1102 = arith.mulf %1101, %1100 : vector<1x1x16x16xf32>
    %1103 = arith.addf %1096, %1102 : vector<1x1x16x16xf32>
    %1104 = vector.extract_strided_slice %1093 {offsets = [0, 0, 1, 0], sizes = [1, 1, 16, 16], strides = [1, 1, 1, 1]} : vector<1x1x20x16xf32> to vector<1x1x16x16xf32>
    %cst_477 = arith.constant 0.93941307 : f32
    %1105 = vector.broadcast %cst_477 : f32 to vector<1x1x16x16xf32>
    %1106 = arith.mulf %1105, %1104 : vector<1x1x16x16xf32>
    %1107 = arith.addf %1099, %1106 : vector<1x1x16x16xf32>
    %1108 = vector.extract_strided_slice %1090 {offsets = [0, 0, 2, 0], sizes = [1, 1, 16, 16], strides = [1, 1, 1, 1]} : vector<1x1x20x16xf32> to vector<1x1x16x16xf32>
    %cst_478 = arith.constant 1.000000e+00 : f32
    %1109 = vector.broadcast %cst_478 : f32 to vector<1x1x16x16xf32>
    %1110 = arith.mulf %1109, %1108 : vector<1x1x16x16xf32>
    %1111 = arith.addf %1103, %1110 : vector<1x1x16x16xf32>
    %1112 = vector.extract_strided_slice %1093 {offsets = [0, 0, 2, 0], sizes = [1, 1, 16, 16], strides = [1, 1, 1, 1]} : vector<1x1x20x16xf32> to vector<1x1x16x16xf32>
    %cst_479 = arith.constant 1.000000e+00 : f32
    %1113 = vector.broadcast %cst_479 : f32 to vector<1x1x16x16xf32>
    %1114 = arith.mulf %1113, %1112 : vector<1x1x16x16xf32>
    %1115 = arith.addf %1107, %1114 : vector<1x1x16x16xf32>
    %1116 = vector.extract_strided_slice %1090 {offsets = [0, 0, 3, 0], sizes = [1, 1, 16, 16], strides = [1, 1, 1, 1]} : vector<1x1x20x16xf32> to vector<1x1x16x16xf32>
    %cst_480 = arith.constant 0.778800785 : f32
    %1117 = vector.broadcast %cst_480 : f32 to vector<1x1x16x16xf32>
    %1118 = arith.mulf %1117, %1116 : vector<1x1x16x16xf32>
    %1119 = arith.addf %1111, %1118 : vector<1x1x16x16xf32>
    %1120 = vector.extract_strided_slice %1093 {offsets = [0, 0, 3, 0], sizes = [1, 1, 16, 16], strides = [1, 1, 1, 1]} : vector<1x1x20x16xf32> to vector<1x1x16x16xf32>
    %cst_481 = arith.constant 0.93941307 : f32
    %1121 = vector.broadcast %cst_481 : f32 to vector<1x1x16x16xf32>
    %1122 = arith.mulf %1121, %1120 : vector<1x1x16x16xf32>
    %1123 = arith.addf %1115, %1122 : vector<1x1x16x16xf32>
    %1124 = vector.extract_strided_slice %1090 {offsets = [0, 0, 4, 0], sizes = [1, 1, 16, 16], strides = [1, 1, 1, 1]} : vector<1x1x20x16xf32> to vector<1x1x16x16xf32>
    %cst_482 = arith.constant 0.36787945 : f32
    %1125 = vector.broadcast %cst_482 : f32 to vector<1x1x16x16xf32>
    %1126 = arith.mulf %1125, %1124 : vector<1x1x16x16xf32>
    %1127 = arith.addf %1119, %1126 : vector<1x1x16x16xf32>
    %1128 = vector.extract_strided_slice %1093 {offsets = [0, 0, 4, 0], sizes = [1, 1, 16, 16], strides = [1, 1, 1, 1]} : vector<1x1x20x16xf32> to vector<1x1x16x16xf32>
    %cst_483 = arith.constant 0.778800785 : f32
    %1129 = vector.broadcast %cst_483 : f32 to vector<1x1x16x16xf32>
    %1130 = arith.mulf %1129, %1128 : vector<1x1x16x16xf32>
    %1131 = arith.addf %1123, %1130 : vector<1x1x16x16xf32>
    %c0_484 = arith.constant 0 : index
    %c16 = arith.constant 16 : index
    %c0_485 = arith.constant 0 : index
    %c0_486 = arith.constant 0 : index
    %1132 = vector.load %arg4[%c0_484, %c16, %c0_485, %c0_486] : memref<1x20x16x16xf32, #tpu.memory_space<vmem>>, vector<1x1x16x16xf32>
    tpu.vector_store %arg4[%c0_484, %c16, %c0_485, %c0_486], %1127 {strides = array<i32>} : memref<1x20x16x16xf32, #tpu.memory_space<vmem>>, vector<1x1x16x16xf32>,
    %c0_487 = arith.constant 0 : index
    %c16_488 = arith.constant 16 : index
    %c0_489 = arith.constant 0 : index
    %c0_490 = arith.constant 0 : index
    %1133 = vector.load %arg5[%c0_487, %c16_488, %c0_489, %c0_490] : memref<1x20x16x16xf32, #tpu.memory_space<vmem>>, vector<1x1x16x16xf32>
    tpu.vector_store %arg5[%c0_487, %c16_488, %c0_489, %c0_490], %1131 {strides = array<i32>} : memref<1x20x16x16xf32, #tpu.memory_space<vmem>>, vector<1x1x16x16xf32>,
    %c0_491 = arith.constant 0 : index
    %c15_492 = arith.constant 15 : index
    %c0_493 = arith.constant 0 : index
    %c0_494 = arith.constant 0 : index
    %1134 = vector.load %arg3[%c0_491, %c15_492, %c0_493, %c0_494] : memref<1x16x20x20xf32, #tpu.memory_space<vmem>>, vector<1x1x20x20xf32>
    %1135 = vector.extract_strided_slice %1134 {offsets = [0, 0, 0, 0], sizes = [1, 1, 20, 16], strides = [1, 1, 1, 1]} : vector<1x1x20x20xf32> to vector<1x1x20x16xf32>
    %cst_495 = arith.constant 0.36787945 : f32
    %1136 = vector.broadcast %cst_495 : f32 to vector<1x1x20x16xf32>
    %1137 = arith.mulf %1136, %1135 : vector<1x1x20x16xf32>
    %1138 = vector.extract_strided_slice %1134 {offsets = [0, 0, 0, 0], sizes = [1, 1, 20, 16], strides = [1, 1, 1, 1]} : vector<1x1x20x20xf32> to vector<1x1x20x16xf32>
    %cst_496 = arith.constant 0.778800785 : f32
    %1139 = vector.broadcast %cst_496 : f32 to vector<1x1x20x16xf32>
    %1140 = arith.mulf %1139, %1138 : vector<1x1x20x16xf32>
    %1141 = vector.extract_strided_slice %1134 {offsets = [0, 0, 0, 1], sizes = [1, 1, 20, 16], strides = [1, 1, 1, 1]} : vector<1x1x20x20xf32> to vector<1x1x20x16xf32>
    %cst_497 = arith.constant 0.778800785 : f32
    %1142 = vector.broadcast %cst_497 : f32 to vector<1x1x20x16xf32>
    %1143 = arith.mulf %1142, %1141 : vector<1x1x20x16xf32>
    %1144 = arith.addf %1137, %1143 : vector<1x1x20x16xf32>
    %cst_498 = arith.constant 0.93941307 : f32
    %1145 = vector.broadcast %cst_498 : f32 to vector<1x1x20x16xf32>
    %1146 = arith.mulf %1145, %1141 : vector<1x1x20x16xf32>
    %1147 = arith.addf %1140, %1146 : vector<1x1x20x16xf32>
    %1148 = vector.extract_strided_slice %1134 {offsets = [0, 0, 0, 2], sizes = [1, 1, 20, 16], strides = [1, 1, 1, 1]} : vector<1x1x20x20xf32> to vector<1x1x20x16xf32>
    %cst_499 = arith.constant 1.000000e+00 : f32
    %1149 = vector.broadcast %cst_499 : f32 to vector<1x1x20x16xf32>
    %1150 = arith.mulf %1149, %1148 : vector<1x1x20x16xf32>
    %1151 = arith.addf %1144, %1150 : vector<1x1x20x16xf32>
    %cst_500 = arith.constant 1.000000e+00 : f32
    %1152 = vector.broadcast %cst_500 : f32 to vector<1x1x20x16xf32>
    %1153 = arith.mulf %1152, %1148 : vector<1x1x20x16xf32>
    %1154 = arith.addf %1147, %1153 : vector<1x1x20x16xf32>
    %1155 = vector.extract_strided_slice %1134 {offsets = [0, 0, 0, 3], sizes = [1, 1, 20, 16], strides = [1, 1, 1, 1]} : vector<1x1x20x20xf32> to vector<1x1x20x16xf32>
    %cst_501 = arith.constant 0.778800785 : f32
    %1156 = vector.broadcast %cst_501 : f32 to vector<1x1x20x16xf32>
    %1157 = arith.mulf %1156, %1155 : vector<1x1x20x16xf32>
    %1158 = arith.addf %1151, %1157 : vector<1x1x20x16xf32>
    %cst_502 = arith.constant 0.93941307 : f32
    %1159 = vector.broadcast %cst_502 : f32 to vector<1x1x20x16xf32>
    %1160 = arith.mulf %1159, %1155 : vector<1x1x20x16xf32>
    %1161 = arith.addf %1154, %1160 : vector<1x1x20x16xf32>
    %1162 = vector.extract_strided_slice %1134 {offsets = [0, 0, 0, 4], sizes = [1, 1, 20, 16], strides = [1, 1, 1, 1]} : vector<1x1x20x20xf32> to vector<1x1x20x16xf32>
    %cst_503 = arith.constant 0.36787945 : f32
    %1163 = vector.broadcast %cst_503 : f32 to vector<1x1x20x16xf32>
    %1164 = arith.mulf %1163, %1162 : vector<1x1x20x16xf32>
    %1165 = arith.addf %1158, %1164 : vector<1x1x20x16xf32>
    %cst_504 = arith.constant 0.778800785 : f32
    %1166 = vector.broadcast %cst_504 : f32 to vector<1x1x20x16xf32>
    %1167 = arith.mulf %1166, %1162 : vector<1x1x20x16xf32>
    %1168 = arith.addf %1161, %1167 : vector<1x1x20x16xf32>
    %1169 = vector.extract_strided_slice %1165 {offsets = [0, 0, 0, 0], sizes = [1, 1, 16, 16], strides = [1, 1, 1, 1]} : vector<1x1x20x16xf32> to vector<1x1x16x16xf32>
    %cst_505 = arith.constant 0.36787945 : f32
    %1170 = vector.broadcast %cst_505 : f32 to vector<1x1x16x16xf32>
    %1171 = arith.mulf %1170, %1169 : vector<1x1x16x16xf32>
    %1172 = vector.extract_strided_slice %1168 {offsets = [0, 0, 0, 0], sizes = [1, 1, 16, 16], strides = [1, 1, 1, 1]} : vector<1x1x20x16xf32> to vector<1x1x16x16xf32>
    %cst_506 = arith.constant 0.778800785 : f32
    %1173 = vector.broadcast %cst_506 : f32 to vector<1x1x16x16xf32>
    %1174 = arith.mulf %1173, %1172 : vector<1x1x16x16xf32>
    %1175 = vector.extract_strided_slice %1165 {offsets = [0, 0, 1, 0], sizes = [1, 1, 16, 16], strides = [1, 1, 1, 1]} : vector<1x1x20x16xf32> to vector<1x1x16x16xf32>
    %cst_507 = arith.constant 0.778800785 : f32
    %1176 = vector.broadcast %cst_507 : f32 to vector<1x1x16x16xf32>
    %1177 = arith.mulf %1176, %1175 : vector<1x1x16x16xf32>
    %1178 = arith.addf %1171, %1177 : vector<1x1x16x16xf32>
    %1179 = vector.extract_strided_slice %1168 {offsets = [0, 0, 1, 0], sizes = [1, 1, 16, 16], strides = [1, 1, 1, 1]} : vector<1x1x20x16xf32> to vector<1x1x16x16xf32>
    %cst_508 = arith.constant 0.93941307 : f32
    %1180 = vector.broadcast %cst_508 : f32 to vector<1x1x16x16xf32>
    %1181 = arith.mulf %1180, %1179 : vector<1x1x16x16xf32>
    %1182 = arith.addf %1174, %1181 : vector<1x1x16x16xf32>
    %1183 = vector.extract_strided_slice %1165 {offsets = [0, 0, 2, 0], sizes = [1, 1, 16, 16], strides = [1, 1, 1, 1]} : vector<1x1x20x16xf32> to vector<1x1x16x16xf32>
    %cst_509 = arith.constant 1.000000e+00 : f32
    %1184 = vector.broadcast %cst_509 : f32 to vector<1x1x16x16xf32>
    %1185 = arith.mulf %1184, %1183 : vector<1x1x16x16xf32>
    %1186 = arith.addf %1178, %1185 : vector<1x1x16x16xf32>
    %1187 = vector.extract_strided_slice %1168 {offsets = [0, 0, 2, 0], sizes = [1, 1, 16, 16], strides = [1, 1, 1, 1]} : vector<1x1x20x16xf32> to vector<1x1x16x16xf32>
    %cst_510 = arith.constant 1.000000e+00 : f32
    %1188 = vector.broadcast %cst_510 : f32 to vector<1x1x16x16xf32>
    %1189 = arith.mulf %1188, %1187 : vector<1x1x16x16xf32>
    %1190 = arith.addf %1182, %1189 : vector<1x1x16x16xf32>
    %1191 = vector.extract_strided_slice %1165 {offsets = [0, 0, 3, 0], sizes = [1, 1, 16, 16], strides = [1, 1, 1, 1]} : vector<1x1x20x16xf32> to vector<1x1x16x16xf32>
    %cst_511 = arith.constant 0.778800785 : f32
    %1192 = vector.broadcast %cst_511 : f32 to vector<1x1x16x16xf32>
    %1193 = arith.mulf %1192, %1191 : vector<1x1x16x16xf32>
    %1194 = arith.addf %1186, %1193 : vector<1x1x16x16xf32>
    %1195 = vector.extract_strided_slice %1168 {offsets = [0, 0, 3, 0], sizes = [1, 1, 16, 16], strides = [1, 1, 1, 1]} : vector<1x1x20x16xf32> to vector<1x1x16x16xf32>
    %cst_512 = arith.constant 0.93941307 : f32
    %1196 = vector.broadcast %cst_512 : f32 to vector<1x1x16x16xf32>
    %1197 = arith.mulf %1196, %1195 : vector<1x1x16x16xf32>
    %1198 = arith.addf %1190, %1197 : vector<1x1x16x16xf32>
    %1199 = vector.extract_strided_slice %1165 {offsets = [0, 0, 4, 0], sizes = [1, 1, 16, 16], strides = [1, 1, 1, 1]} : vector<1x1x20x16xf32> to vector<1x1x16x16xf32>
    %cst_513 = arith.constant 0.36787945 : f32
    %1200 = vector.broadcast %cst_513 : f32 to vector<1x1x16x16xf32>
    %1201 = arith.mulf %1200, %1199 : vector<1x1x16x16xf32>
    %1202 = arith.addf %1194, %1201 : vector<1x1x16x16xf32>
    %1203 = vector.extract_strided_slice %1168 {offsets = [0, 0, 4, 0], sizes = [1, 1, 16, 16], strides = [1, 1, 1, 1]} : vector<1x1x20x16xf32> to vector<1x1x16x16xf32>
    %cst_514 = arith.constant 0.778800785 : f32
    %1204 = vector.broadcast %cst_514 : f32 to vector<1x1x16x16xf32>
    %1205 = arith.mulf %1204, %1203 : vector<1x1x16x16xf32>
    %1206 = arith.addf %1198, %1205 : vector<1x1x16x16xf32>
    %c0_515 = arith.constant 0 : index
    %c17 = arith.constant 17 : index
    %c0_516 = arith.constant 0 : index
    %c0_517 = arith.constant 0 : index
    %1207 = vector.load %arg4[%c0_515, %c17, %c0_516, %c0_517] : memref<1x20x16x16xf32, #tpu.memory_space<vmem>>, vector<1x1x16x16xf32>
    tpu.vector_store %arg4[%c0_515, %c17, %c0_516, %c0_517], %1202 {strides = array<i32>} : memref<1x20x16x16xf32, #tpu.memory_space<vmem>>, vector<1x1x16x16xf32>,
    %c0_518 = arith.constant 0 : index
    %c17_519 = arith.constant 17 : index
    %c0_520 = arith.constant 0 : index
    %c0_521 = arith.constant 0 : index
    %1208 = vector.load %arg5[%c0_518, %c17_519, %c0_520, %c0_521] : memref<1x20x16x16xf32, #tpu.memory_space<vmem>>, vector<1x1x16x16xf32>
    tpu.vector_store %arg5[%c0_518, %c17_519, %c0_520, %c0_521], %1206 {strides = array<i32>} : memref<1x20x16x16xf32, #tpu.memory_space<vmem>>, vector<1x1x16x16xf32>,
    %c0_522 = arith.constant 0 : index
    %c0_523 = arith.constant 0 : index
    %c0_524 = arith.constant 0 : index
    %c0_525 = arith.constant 0 : index
    %1209 = vector.load %arg4[%c0_522, %c0_523, %c0_524, %c0_525] : memref<1x20x16x16xf32, #tpu.memory_space<vmem>>, vector<1x1x16x16xf32>
    %cst_526 = arith.constant 0.0209741537 : f32
    %1210 = vector.broadcast %cst_526 : f32 to vector<1x1x16x16xf32>
    %1211 = arith.mulf %1210, %1209 : vector<1x1x16x16xf32>
    %c0_527 = arith.constant 0 : index
    %c0_528 = arith.constant 0 : index
    %c0_529 = arith.constant 0 : index
    %c0_530 = arith.constant 0 : index
    %1212 = vector.load %arg5[%c0_527, %c0_528, %c0_529, %c0_530] : memref<1x20x16x16xf32, #tpu.memory_space<vmem>>, vector<1x1x16x16xf32>
    %cst_531 = arith.constant 0.0222011413 : f32
    %1213 = vector.broadcast %cst_531 : f32 to vector<1x1x16x16xf32>
    %1214 = arith.mulf %1213, %1212 : vector<1x1x16x16xf32>
    %1215 = arith.subf %1211, %1214 : vector<1x1x16x16xf32>
    %c0_532 = arith.constant 0 : index
    %c1_533 = arith.constant 1 : index
    %c0_534 = arith.constant 0 : index
    %c0_535 = arith.constant 0 : index
    %1216 = vector.load %arg4[%c0_532, %c1_533, %c0_534, %c0_535] : memref<1x20x16x16xf32, #tpu.memory_space<vmem>>, vector<1x1x16x16xf32>
    %cst_536 = arith.constant 0.0444022827 : f32
    %1217 = vector.broadcast %cst_536 : f32 to vector<1x1x16x16xf32>
    %1218 = arith.mulf %1217, %1216 : vector<1x1x16x16xf32>
    %1219 = arith.addf %1215, %1218 : vector<1x1x16x16xf32>
    %c0_537 = arith.constant 0 : index
    %c1_538 = arith.constant 1 : index
    %c0_539 = arith.constant 0 : index
    %c0_540 = arith.constant 0 : index
    %1220 = vector.load %arg5[%c0_537, %c1_538, %c0_539, %c0_540] : memref<1x20x16x16xf32, #tpu.memory_space<vmem>>, vector<1x1x16x16xf32>
    %cst_541 = arith.constant 0.0267796889 : f32
    %1221 = vector.broadcast %cst_541 : f32 to vector<1x1x16x16xf32>
    %1222 = arith.mulf %1221, %1220 : vector<1x1x16x16xf32>
    %1223 = arith.subf %1219, %1222 : vector<1x1x16x16xf32>
    %c0_542 = arith.constant 0 : index
    %c2_543 = arith.constant 2 : index
    %c0_544 = arith.constant 0 : index
    %c0_545 = arith.constant 0 : index
    %1224 = vector.load %arg4[%c0_542, %c2_543, %c0_544, %c0_545] : memref<1x20x16x16xf32, #tpu.memory_space<vmem>>, vector<1x1x16x16xf32>
    %cst_546 = arith.constant 0.0570136607 : f32
    %1225 = vector.broadcast %cst_546 : f32 to vector<1x1x16x16xf32>
    %1226 = arith.mulf %1225, %1224 : vector<1x1x16x16xf32>
    %1227 = arith.addf %1223, %1226 : vector<1x1x16x16xf32>
    %c0_547 = arith.constant 0 : index
    %c2_548 = arith.constant 2 : index
    %c0_549 = arith.constant 0 : index
    %c0_550 = arith.constant 0 : index
    %1228 = vector.load %arg5[%c0_547, %c2_548, %c0_549, %c0_550] : memref<1x20x16x16xf32, #tpu.memory_space<vmem>>, vector<1x1x16x16xf32>
    %cst_551 = arith.constant 0.0285068303 : f32
    %1229 = vector.broadcast %cst_551 : f32 to vector<1x1x16x16xf32>
    %1230 = arith.mulf %1229, %1228 : vector<1x1x16x16xf32>
    %1231 = arith.subf %1227, %1230 : vector<1x1x16x16xf32>
    %c0_552 = arith.constant 0 : index
    %c3_553 = arith.constant 3 : index
    %c0_554 = arith.constant 0 : index
    %c0_555 = arith.constant 0 : index
    %1232 = vector.load %arg4[%c0_552, %c3_553, %c0_554, %c0_555] : memref<1x20x16x16xf32, #tpu.memory_space<vmem>>, vector<1x1x16x16xf32>
    %cst_556 = arith.constant 0.0444022827 : f32
    %1233 = vector.broadcast %cst_556 : f32 to vector<1x1x16x16xf32>
    %1234 = arith.mulf %1233, %1232 : vector<1x1x16x16xf32>
    %1235 = arith.addf %1231, %1234 : vector<1x1x16x16xf32>
    %c0_557 = arith.constant 0 : index
    %c3_558 = arith.constant 3 : index
    %c0_559 = arith.constant 0 : index
    %c0_560 = arith.constant 0 : index
    %1236 = vector.load %arg5[%c0_557, %c3_558, %c0_559, %c0_560] : memref<1x20x16x16xf32, #tpu.memory_space<vmem>>, vector<1x1x16x16xf32>
    %cst_561 = arith.constant 0.0267796889 : f32
    %1237 = vector.broadcast %cst_561 : f32 to vector<1x1x16x16xf32>
    %1238 = arith.mulf %1237, %1236 : vector<1x1x16x16xf32>
    %1239 = arith.subf %1235, %1238 : vector<1x1x16x16xf32>
    %c0_562 = arith.constant 0 : index
    %c4_563 = arith.constant 4 : index
    %c0_564 = arith.constant 0 : index
    %c0_565 = arith.constant 0 : index
    %1240 = vector.load %arg4[%c0_562, %c4_563, %c0_564, %c0_565] : memref<1x20x16x16xf32, #tpu.memory_space<vmem>>, vector<1x1x16x16xf32>
    %cst_566 = arith.constant 0.0209741537 : f32
    %1241 = vector.broadcast %cst_566 : f32 to vector<1x1x16x16xf32>
    %1242 = arith.mulf %1241, %1240 : vector<1x1x16x16xf32>
    %1243 = arith.addf %1239, %1242 : vector<1x1x16x16xf32>
    %c0_567 = arith.constant 0 : index
    %c4_568 = arith.constant 4 : index
    %c0_569 = arith.constant 0 : index
    %c0_570 = arith.constant 0 : index
    %1244 = vector.load %arg5[%c0_567, %c4_568, %c0_569, %c0_570] : memref<1x20x16x16xf32, #tpu.memory_space<vmem>>, vector<1x1x16x16xf32>
    %cst_571 = arith.constant 0.0222011413 : f32
    %1245 = vector.broadcast %cst_571 : f32 to vector<1x1x16x16xf32>
    %1246 = arith.mulf %1245, %1244 : vector<1x1x16x16xf32>
    %1247 = arith.subf %1243, %1246 : vector<1x1x16x16xf32>
    %c0_572 = arith.constant 0 : index
    %c0_573 = arith.constant 0 : index
    %c0_574 = arith.constant 0 : index
    %c0_575 = arith.constant 0 : index
    %1248 = vector.load %arg2[%c0_572, %c0_573, %c0_574, %c0_575] : memref<1x16x16x16xf32, #tpu.memory_space<vmem>>, vector<1x1x16x16xf32>
    tpu.vector_store %arg2[%c0_572, %c0_573, %c0_574, %c0_575], %1247 {strides = array<i32>} : memref<1x16x16x16xf32, #tpu.memory_space<vmem>>, vector<1x1x16x16xf32>,
    %c0_576 = arith.constant 0 : index
    %c1_577 = arith.constant 1 : index
    %c0_578 = arith.constant 0 : index
    %c0_579 = arith.constant 0 : index
    %1249 = vector.load %arg4[%c0_576, %c1_577, %c0_578, %c0_579] : memref<1x20x16x16xf32, #tpu.memory_space<vmem>>, vector<1x1x16x16xf32>
    %cst_580 = arith.constant 0.0209741537 : f32
    %1250 = vector.broadcast %cst_580 : f32 to vector<1x1x16x16xf32>
    %1251 = arith.mulf %1250, %1249 : vector<1x1x16x16xf32>
    %c0_581 = arith.constant 0 : index
    %c1_582 = arith.constant 1 : index
    %c0_583 = arith.constant 0 : index
    %c0_584 = arith.constant 0 : index
    %1252 = vector.load %arg5[%c0_581, %c1_582, %c0_583, %c0_584] : memref<1x20x16x16xf32, #tpu.memory_space<vmem>>, vector<1x1x16x16xf32>
    %cst_585 = arith.constant 0.0222011413 : f32
    %1253 = vector.broadcast %cst_585 : f32 to vector<1x1x16x16xf32>
    %1254 = arith.mulf %1253, %1252 : vector<1x1x16x16xf32>
    %1255 = arith.subf %1251, %1254 : vector<1x1x16x16xf32>
    %c0_586 = arith.constant 0 : index
    %c2_587 = arith.constant 2 : index
    %c0_588 = arith.constant 0 : index
    %c0_589 = arith.constant 0 : index
    %1256 = vector.load %arg4[%c0_586, %c2_587, %c0_588, %c0_589] : memref<1x20x16x16xf32, #tpu.memory_space<vmem>>, vector<1x1x16x16xf32>
    %cst_590 = arith.constant 0.0444022827 : f32
    %1257 = vector.broadcast %cst_590 : f32 to vector<1x1x16x16xf32>
    %1258 = arith.mulf %1257, %1256 : vector<1x1x16x16xf32>
    %1259 = arith.addf %1255, %1258 : vector<1x1x16x16xf32>
    %c0_591 = arith.constant 0 : index
    %c2_592 = arith.constant 2 : index
    %c0_593 = arith.constant 0 : index
    %c0_594 = arith.constant 0 : index
    %1260 = vector.load %arg5[%c0_591, %c2_592, %c0_593, %c0_594] : memref<1x20x16x16xf32, #tpu.memory_space<vmem>>, vector<1x1x16x16xf32>
    %cst_595 = arith.constant 0.0267796889 : f32
    %1261 = vector.broadcast %cst_595 : f32 to vector<1x1x16x16xf32>
    %1262 = arith.mulf %1261, %1260 : vector<1x1x16x16xf32>
    %1263 = arith.subf %1259, %1262 : vector<1x1x16x16xf32>
    %c0_596 = arith.constant 0 : index
    %c3_597 = arith.constant 3 : index
    %c0_598 = arith.constant 0 : index
    %c0_599 = arith.constant 0 : index
    %1264 = vector.load %arg4[%c0_596, %c3_597, %c0_598, %c0_599] : memref<1x20x16x16xf32, #tpu.memory_space<vmem>>, vector<1x1x16x16xf32>
    %cst_600 = arith.constant 0.0570136607 : f32
    %1265 = vector.broadcast %cst_600 : f32 to vector<1x1x16x16xf32>
    %1266 = arith.mulf %1265, %1264 : vector<1x1x16x16xf32>
    %1267 = arith.addf %1263, %1266 : vector<1x1x16x16xf32>
    %c0_601 = arith.constant 0 : index
    %c3_602 = arith.constant 3 : index
    %c0_603 = arith.constant 0 : index
    %c0_604 = arith.constant 0 : index
    %1268 = vector.load %arg5[%c0_601, %c3_602, %c0_603, %c0_604] : memref<1x20x16x16xf32, #tpu.memory_space<vmem>>, vector<1x1x16x16xf32>
    %cst_605 = arith.constant 0.0285068303 : f32
    %1269 = vector.broadcast %cst_605 : f32 to vector<1x1x16x16xf32>
    %1270 = arith.mulf %1269, %1268 : vector<1x1x16x16xf32>
    %1271 = arith.subf %1267, %1270 : vector<1x1x16x16xf32>
    %c0_606 = arith.constant 0 : index
    %c4_607 = arith.constant 4 : index
    %c0_608 = arith.constant 0 : index
    %c0_609 = arith.constant 0 : index
    %1272 = vector.load %arg4[%c0_606, %c4_607, %c0_608, %c0_609] : memref<1x20x16x16xf32, #tpu.memory_space<vmem>>, vector<1x1x16x16xf32>
    %cst_610 = arith.constant 0.0444022827 : f32
    %1273 = vector.broadcast %cst_610 : f32 to vector<1x1x16x16xf32>
    %1274 = arith.mulf %1273, %1272 : vector<1x1x16x16xf32>
    %1275 = arith.addf %1271, %1274 : vector<1x1x16x16xf32>
    %c0_611 = arith.constant 0 : index
    %c4_612 = arith.constant 4 : index
    %c0_613 = arith.constant 0 : index
    %c0_614 = arith.constant 0 : index
    %1276 = vector.load %arg5[%c0_611, %c4_612, %c0_613, %c0_614] : memref<1x20x16x16xf32, #tpu.memory_space<vmem>>, vector<1x1x16x16xf32>
    %cst_615 = arith.constant 0.0267796889 : f32
    %1277 = vector.broadcast %cst_615 : f32 to vector<1x1x16x16xf32>
    %1278 = arith.mulf %1277, %1276 : vector<1x1x16x16xf32>
    %1279 = arith.subf %1275, %1278 : vector<1x1x16x16xf32>
    %c0_616 = arith.constant 0 : index
    %c5_617 = arith.constant 5 : index
    %c0_618 = arith.constant 0 : index
    %c0_619 = arith.constant 0 : index
    %1280 = vector.load %arg4[%c0_616, %c5_617, %c0_618, %c0_619] : memref<1x20x16x16xf32, #tpu.memory_space<vmem>>, vector<1x1x16x16xf32>
    %cst_620 = arith.constant 0.0209741537 : f32
    %1281 = vector.broadcast %cst_620 : f32 to vector<1x1x16x16xf32>
    %1282 = arith.mulf %1281, %1280 : vector<1x1x16x16xf32>
    %1283 = arith.addf %1279, %1282 : vector<1x1x16x16xf32>
    %c0_621 = arith.constant 0 : index
    %c5_622 = arith.constant 5 : index
    %c0_623 = arith.constant 0 : index
    %c0_624 = arith.constant 0 : index
    %1284 = vector.load %arg5[%c0_621, %c5_622, %c0_623, %c0_624] : memref<1x20x16x16xf32, #tpu.memory_space<vmem>>, vector<1x1x16x16xf32>
    %cst_625 = arith.constant 0.0222011413 : f32
    %1285 = vector.broadcast %cst_625 : f32 to vector<1x1x16x16xf32>
    %1286 = arith.mulf %1285, %1284 : vector<1x1x16x16xf32>
    %1287 = arith.subf %1283, %1286 : vector<1x1x16x16xf32>
    %c0_626 = arith.constant 0 : index
    %c1_627 = arith.constant 1 : index
    %c0_628 = arith.constant 0 : index
    %c0_629 = arith.constant 0 : index
    %1288 = vector.load %arg2[%c0_626, %c1_627, %c0_628, %c0_629] : memref<1x16x16x16xf32, #tpu.memory_space<vmem>>, vector<1x1x16x16xf32>
    tpu.vector_store %arg2[%c0_626, %c1_627, %c0_628, %c0_629], %1287 {strides = array<i32>} : memref<1x16x16x16xf32, #tpu.memory_space<vmem>>, vector<1x1x16x16xf32>,
    %c0_630 = arith.constant 0 : index
    %c2_631 = arith.constant 2 : index
    %c0_632 = arith.constant 0 : index
    %c0_633 = arith.constant 0 : index
    %1289 = vector.load %arg4[%c0_630, %c2_631, %c0_632, %c0_633] : memref<1x20x16x16xf32, #tpu.memory_space<vmem>>, vector<1x1x16x16xf32>
    %cst_634 = arith.constant 0.0209741537 : f32
    %1290 = vector.broadcast %cst_634 : f32 to vector<1x1x16x16xf32>
    %1291 = arith.mulf %1290, %1289 : vector<1x1x16x16xf32>
    %c0_635 = arith.constant 0 : index
    %c2_636 = arith.constant 2 : index
    %c0_637 = arith.constant 0 : index
    %c0_638 = arith.constant 0 : index
    %1292 = vector.load %arg5[%c0_635, %c2_636, %c0_637, %c0_638] : memref<1x20x16x16xf32, #tpu.memory_space<vmem>>, vector<1x1x16x16xf32>
    %cst_639 = arith.constant 0.0222011413 : f32
    %1293 = vector.broadcast %cst_639 : f32 to vector<1x1x16x16xf32>
    %1294 = arith.mulf %1293, %1292 : vector<1x1x16x16xf32>
    %1295 = arith.subf %1291, %1294 : vector<1x1x16x16xf32>
    %c0_640 = arith.constant 0 : index
    %c3_641 = arith.constant 3 : index
    %c0_642 = arith.constant 0 : index
    %c0_643 = arith.constant 0 : index
    %1296 = vector.load %arg4[%c0_640, %c3_641, %c0_642, %c0_643] : memref<1x20x16x16xf32, #tpu.memory_space<vmem>>, vector<1x1x16x16xf32>
    %cst_644 = arith.constant 0.0444022827 : f32
    %1297 = vector.broadcast %cst_644 : f32 to vector<1x1x16x16xf32>
    %1298 = arith.mulf %1297, %1296 : vector<1x1x16x16xf32>
    %1299 = arith.addf %1295, %1298 : vector<1x1x16x16xf32>
    %c0_645 = arith.constant 0 : index
    %c3_646 = arith.constant 3 : index
    %c0_647 = arith.constant 0 : index
    %c0_648 = arith.constant 0 : index
    %1300 = vector.load %arg5[%c0_645, %c3_646, %c0_647, %c0_648] : memref<1x20x16x16xf32, #tpu.memory_space<vmem>>, vector<1x1x16x16xf32>
    %cst_649 = arith.constant 0.0267796889 : f32
    %1301 = vector.broadcast %cst_649 : f32 to vector<1x1x16x16xf32>
    %1302 = arith.mulf %1301, %1300 : vector<1x1x16x16xf32>
    %1303 = arith.subf %1299, %1302 : vector<1x1x16x16xf32>
    %c0_650 = arith.constant 0 : index
    %c4_651 = arith.constant 4 : index
    %c0_652 = arith.constant 0 : index
    %c0_653 = arith.constant 0 : index
    %1304 = vector.load %arg4[%c0_650, %c4_651, %c0_652, %c0_653] : memref<1x20x16x16xf32, #tpu.memory_space<vmem>>, vector<1x1x16x16xf32>
    %cst_654 = arith.constant 0.0570136607 : f32
    %1305 = vector.broadcast %cst_654 : f32 to vector<1x1x16x16xf32>
    %1306 = arith.mulf %1305, %1304 : vector<1x1x16x16xf32>
    %1307 = arith.addf %1303, %1306 : vector<1x1x16x16xf32>
    %c0_655 = arith.constant 0 : index
    %c4_656 = arith.constant 4 : index
    %c0_657 = arith.constant 0 : index
    %c0_658 = arith.constant 0 : index
    %1308 = vector.load %arg5[%c0_655, %c4_656, %c0_657, %c0_658] : memref<1x20x16x16xf32, #tpu.memory_space<vmem>>, vector<1x1x16x16xf32>
    %cst_659 = arith.constant 0.0285068303 : f32
    %1309 = vector.broadcast %cst_659 : f32 to vector<1x1x16x16xf32>
    %1310 = arith.mulf %1309, %1308 : vector<1x1x16x16xf32>
    %1311 = arith.subf %1307, %1310 : vector<1x1x16x16xf32>
    %c0_660 = arith.constant 0 : index
    %c5_661 = arith.constant 5 : index
    %c0_662 = arith.constant 0 : index
    %c0_663 = arith.constant 0 : index
    %1312 = vector.load %arg4[%c0_660, %c5_661, %c0_662, %c0_663] : memref<1x20x16x16xf32, #tpu.memory_space<vmem>>, vector<1x1x16x16xf32>
    %cst_664 = arith.constant 0.0444022827 : f32
    %1313 = vector.broadcast %cst_664 : f32 to vector<1x1x16x16xf32>
    %1314 = arith.mulf %1313, %1312 : vector<1x1x16x16xf32>
    %1315 = arith.addf %1311, %1314 : vector<1x1x16x16xf32>
    %c0_665 = arith.constant 0 : index
    %c5_666 = arith.constant 5 : index
    %c0_667 = arith.constant 0 : index
    %c0_668 = arith.constant 0 : index
    %1316 = vector.load %arg5[%c0_665, %c5_666, %c0_667, %c0_668] : memref<1x20x16x16xf32, #tpu.memory_space<vmem>>, vector<1x1x16x16xf32>
    %cst_669 = arith.constant 0.0267796889 : f32
    %1317 = vector.broadcast %cst_669 : f32 to vector<1x1x16x16xf32>
    %1318 = arith.mulf %1317, %1316 : vector<1x1x16x16xf32>
    %1319 = arith.subf %1315, %1318 : vector<1x1x16x16xf32>
    %c0_670 = arith.constant 0 : index
    %c6_671 = arith.constant 6 : index
    %c0_672 = arith.constant 0 : index
    %c0_673 = arith.constant 0 : index
    %1320 = vector.load %arg4[%c0_670, %c6_671, %c0_672, %c0_673] : memref<1x20x16x16xf32, #tpu.memory_space<vmem>>, vector<1x1x16x16xf32>
    %cst_674 = arith.constant 0.0209741537 : f32
    %1321 = vector.broadcast %cst_674 : f32 to vector<1x1x16x16xf32>
    %1322 = arith.mulf %1321, %1320 : vector<1x1x16x16xf32>
    %1323 = arith.addf %1319, %1322 : vector<1x1x16x16xf32>
    %c0_675 = arith.constant 0 : index
    %c6_676 = arith.constant 6 : index
    %c0_677 = arith.constant 0 : index
    %c0_678 = arith.constant 0 : index
    %1324 = vector.load %arg5[%c0_675, %c6_676, %c0_677, %c0_678] : memref<1x20x16x16xf32, #tpu.memory_space<vmem>>, vector<1x1x16x16xf32>
    %cst_679 = arith.constant 0.0222011413 : f32
    %1325 = vector.broadcast %cst_679 : f32 to vector<1x1x16x16xf32>
    %1326 = arith.mulf %1325, %1324 : vector<1x1x16x16xf32>
    %1327 = arith.subf %1323, %1326 : vector<1x1x16x16xf32>
    %c0_680 = arith.constant 0 : index
    %c2_681 = arith.constant 2 : index
    %c0_682 = arith.constant 0 : index
    %c0_683 = arith.constant 0 : index
    %1328 = vector.load %arg2[%c0_680, %c2_681, %c0_682, %c0_683] : memref<1x16x16x16xf32, #tpu.memory_space<vmem>>, vector<1x1x16x16xf32>
    tpu.vector_store %arg2[%c0_680, %c2_681, %c0_682, %c0_683], %1327 {strides = array<i32>} : memref<1x16x16x16xf32, #tpu.memory_space<vmem>>, vector<1x1x16x16xf32>,
    %c0_684 = arith.constant 0 : index
    %c3_685 = arith.constant 3 : index
    %c0_686 = arith.constant 0 : index
    %c0_687 = arith.constant 0 : index
    %1329 = vector.load %arg4[%c0_684, %c3_685, %c0_686, %c0_687] : memref<1x20x16x16xf32, #tpu.memory_space<vmem>>, vector<1x1x16x16xf32>
    %cst_688 = arith.constant 0.0209741537 : f32
    %1330 = vector.broadcast %cst_688 : f32 to vector<1x1x16x16xf32>
    %1331 = arith.mulf %1330, %1329 : vector<1x1x16x16xf32>
    %c0_689 = arith.constant 0 : index
    %c3_690 = arith.constant 3 : index
    %c0_691 = arith.constant 0 : index
    %c0_692 = arith.constant 0 : index
    %1332 = vector.load %arg5[%c0_689, %c3_690, %c0_691, %c0_692] : memref<1x20x16x16xf32, #tpu.memory_space<vmem>>, vector<1x1x16x16xf32>
    %cst_693 = arith.constant 0.0222011413 : f32
    %1333 = vector.broadcast %cst_693 : f32 to vector<1x1x16x16xf32>
    %1334 = arith.mulf %1333, %1332 : vector<1x1x16x16xf32>
    %1335 = arith.subf %1331, %1334 : vector<1x1x16x16xf32>
    %c0_694 = arith.constant 0 : index
    %c4_695 = arith.constant 4 : index
    %c0_696 = arith.constant 0 : index
    %c0_697 = arith.constant 0 : index
    %1336 = vector.load %arg4[%c0_694, %c4_695, %c0_696, %c0_697] : memref<1x20x16x16xf32, #tpu.memory_space<vmem>>, vector<1x1x16x16xf32>
    %cst_698 = arith.constant 0.0444022827 : f32
    %1337 = vector.broadcast %cst_698 : f32 to vector<1x1x16x16xf32>
    %1338 = arith.mulf %1337, %1336 : vector<1x1x16x16xf32>
    %1339 = arith.addf %1335, %1338 : vector<1x1x16x16xf32>
    %c0_699 = arith.constant 0 : index
    %c4_700 = arith.constant 4 : index
    %c0_701 = arith.constant 0 : index
    %c0_702 = arith.constant 0 : index
    %1340 = vector.load %arg5[%c0_699, %c4_700, %c0_701, %c0_702] : memref<1x20x16x16xf32, #tpu.memory_space<vmem>>, vector<1x1x16x16xf32>
    %cst_703 = arith.constant 0.0267796889 : f32
    %1341 = vector.broadcast %cst_703 : f32 to vector<1x1x16x16xf32>
    %1342 = arith.mulf %1341, %1340 : vector<1x1x16x16xf32>
    %1343 = arith.subf %1339, %1342 : vector<1x1x16x16xf32>
    %c0_704 = arith.constant 0 : index
    %c5_705 = arith.constant 5 : index
    %c0_706 = arith.constant 0 : index
    %c0_707 = arith.constant 0 : index
    %1344 = vector.load %arg4[%c0_704, %c5_705, %c0_706, %c0_707] : memref<1x20x16x16xf32, #tpu.memory_space<vmem>>, vector<1x1x16x16xf32>
    %cst_708 = arith.constant 0.0570136607 : f32
    %1345 = vector.broadcast %cst_708 : f32 to vector<1x1x16x16xf32>
    %1346 = arith.mulf %1345, %1344 : vector<1x1x16x16xf32>
    %1347 = arith.addf %1343, %1346 : vector<1x1x16x16xf32>
    %c0_709 = arith.constant 0 : index
    %c5_710 = arith.constant 5 : index
    %c0_711 = arith.constant 0 : index
    %c0_712 = arith.constant 0 : index
    %1348 = vector.load %arg5[%c0_709, %c5_710, %c0_711, %c0_712] : memref<1x20x16x16xf32, #tpu.memory_space<vmem>>, vector<1x1x16x16xf32>
    %cst_713 = arith.constant 0.0285068303 : f32
    %1349 = vector.broadcast %cst_713 : f32 to vector<1x1x16x16xf32>
    %1350 = arith.mulf %1349, %1348 : vector<1x1x16x16xf32>
    %1351 = arith.subf %1347, %1350 : vector<1x1x16x16xf32>
    %c0_714 = arith.constant 0 : index
    %c6_715 = arith.constant 6 : index
    %c0_716 = arith.constant 0 : index
    %c0_717 = arith.constant 0 : index
    %1352 = vector.load %arg4[%c0_714, %c6_715, %c0_716, %c0_717] : memref<1x20x16x16xf32, #tpu.memory_space<vmem>>, vector<1x1x16x16xf32>
    %cst_718 = arith.constant 0.0444022827 : f32
    %1353 = vector.broadcast %cst_718 : f32 to vector<1x1x16x16xf32>
    %1354 = arith.mulf %1353, %1352 : vector<1x1x16x16xf32>
    %1355 = arith.addf %1351, %1354 : vector<1x1x16x16xf32>
    %c0_719 = arith.constant 0 : index
    %c6_720 = arith.constant 6 : index
    %c0_721 = arith.constant 0 : index
    %c0_722 = arith.constant 0 : index
    %1356 = vector.load %arg5[%c0_719, %c6_720, %c0_721, %c0_722] : memref<1x20x16x16xf32, #tpu.memory_space<vmem>>, vector<1x1x16x16xf32>
    %cst_723 = arith.constant 0.0267796889 : f32
    %1357 = vector.broadcast %cst_723 : f32 to vector<1x1x16x16xf32>
    %1358 = arith.mulf %1357, %1356 : vector<1x1x16x16xf32>
    %1359 = arith.subf %1355, %1358 : vector<1x1x16x16xf32>
    %c0_724 = arith.constant 0 : index
    %c7_725 = arith.constant 7 : index
    %c0_726 = arith.constant 0 : index
    %c0_727 = arith.constant 0 : index
    %1360 = vector.load %arg4[%c0_724, %c7_725, %c0_726, %c0_727] : memref<1x20x16x16xf32, #tpu.memory_space<vmem>>, vector<1x1x16x16xf32>
    %cst_728 = arith.constant 0.0209741537 : f32
    %1361 = vector.broadcast %cst_728 : f32 to vector<1x1x16x16xf32>
    %1362 = arith.mulf %1361, %1360 : vector<1x1x16x16xf32>
    %1363 = arith.addf %1359, %1362 : vector<1x1x16x16xf32>
    %c0_729 = arith.constant 0 : index
    %c7_730 = arith.constant 7 : index
    %c0_731 = arith.constant 0 : index
    %c0_732 = arith.constant 0 : index
    %1364 = vector.load %arg5[%c0_729, %c7_730, %c0_731, %c0_732] : memref<1x20x16x16xf32, #tpu.memory_space<vmem>>, vector<1x1x16x16xf32>
    %cst_733 = arith.constant 0.0222011413 : f32
    %1365 = vector.broadcast %cst_733 : f32 to vector<1x1x16x16xf32>
    %1366 = arith.mulf %1365, %1364 : vector<1x1x16x16xf32>
    %1367 = arith.subf %1363, %1366 : vector<1x1x16x16xf32>
    %c0_734 = arith.constant 0 : index
    %c3_735 = arith.constant 3 : index
    %c0_736 = arith.constant 0 : index
    %c0_737 = arith.constant 0 : index
    %1368 = vector.load %arg2[%c0_734, %c3_735, %c0_736, %c0_737] : memref<1x16x16x16xf32, #tpu.memory_space<vmem>>, vector<1x1x16x16xf32>
    tpu.vector_store %arg2[%c0_734, %c3_735, %c0_736, %c0_737], %1367 {strides = array<i32>} : memref<1x16x16x16xf32, #tpu.memory_space<vmem>>, vector<1x1x16x16xf32>,
    %c0_738 = arith.constant 0 : index
    %c4_739 = arith.constant 4 : index
    %c0_740 = arith.constant 0 : index
    %c0_741 = arith.constant 0 : index
    %1369 = vector.load %arg4[%c0_738, %c4_739, %c0_740, %c0_741] : memref<1x20x16x16xf32, #tpu.memory_space<vmem>>, vector<1x1x16x16xf32>
    %cst_742 = arith.constant 0.0209741537 : f32
    %1370 = vector.broadcast %cst_742 : f32 to vector<1x1x16x16xf32>
    %1371 = arith.mulf %1370, %1369 : vector<1x1x16x16xf32>
    %c0_743 = arith.constant 0 : index
    %c4_744 = arith.constant 4 : index
    %c0_745 = arith.constant 0 : index
    %c0_746 = arith.constant 0 : index
    %1372 = vector.load %arg5[%c0_743, %c4_744, %c0_745, %c0_746] : memref<1x20x16x16xf32, #tpu.memory_space<vmem>>, vector<1x1x16x16xf32>
    %cst_747 = arith.constant 0.0222011413 : f32
    %1373 = vector.broadcast %cst_747 : f32 to vector<1x1x16x16xf32>
    %1374 = arith.mulf %1373, %1372 : vector<1x1x16x16xf32>
    %1375 = arith.subf %1371, %1374 : vector<1x1x16x16xf32>
    %c0_748 = arith.constant 0 : index
    %c5_749 = arith.constant 5 : index
    %c0_750 = arith.constant 0 : index
    %c0_751 = arith.constant 0 : index
    %1376 = vector.load %arg4[%c0_748, %c5_749, %c0_750, %c0_751] : memref<1x20x16x16xf32, #tpu.memory_space<vmem>>, vector<1x1x16x16xf32>
    %cst_752 = arith.constant 0.0444022827 : f32
    %1377 = vector.broadcast %cst_752 : f32 to vector<1x1x16x16xf32>
    %1378 = arith.mulf %1377, %1376 : vector<1x1x16x16xf32>
    %1379 = arith.addf %1375, %1378 : vector<1x1x16x16xf32>
    %c0_753 = arith.constant 0 : index
    %c5_754 = arith.constant 5 : index
    %c0_755 = arith.constant 0 : index
    %c0_756 = arith.constant 0 : index
    %1380 = vector.load %arg5[%c0_753, %c5_754, %c0_755, %c0_756] : memref<1x20x16x16xf32, #tpu.memory_space<vmem>>, vector<1x1x16x16xf32>
    %cst_757 = arith.constant 0.0267796889 : f32
    %1381 = vector.broadcast %cst_757 : f32 to vector<1x1x16x16xf32>
    %1382 = arith.mulf %1381, %1380 : vector<1x1x16x16xf32>
    %1383 = arith.subf %1379, %1382 : vector<1x1x16x16xf32>
    %c0_758 = arith.constant 0 : index
    %c6_759 = arith.constant 6 : index
    %c0_760 = arith.constant 0 : index
    %c0_761 = arith.constant 0 : index
    %1384 = vector.load %arg4[%c0_758, %c6_759, %c0_760, %c0_761] : memref<1x20x16x16xf32, #tpu.memory_space<vmem>>, vector<1x1x16x16xf32>
    %cst_762 = arith.constant 0.0570136607 : f32
    %1385 = vector.broadcast %cst_762 : f32 to vector<1x1x16x16xf32>
    %1386 = arith.mulf %1385, %1384 : vector<1x1x16x16xf32>
    %1387 = arith.addf %1383, %1386 : vector<1x1x16x16xf32>
    %c0_763 = arith.constant 0 : index
    %c6_764 = arith.constant 6 : index
    %c0_765 = arith.constant 0 : index
    %c0_766 = arith.constant 0 : index
    %1388 = vector.load %arg5[%c0_763, %c6_764, %c0_765, %c0_766] : memref<1x20x16x16xf32, #tpu.memory_space<vmem>>, vector<1x1x16x16xf32>
    %cst_767 = arith.constant 0.0285068303 : f32
    %1389 = vector.broadcast %cst_767 : f32 to vector<1x1x16x16xf32>
    %1390 = arith.mulf %1389, %1388 : vector<1x1x16x16xf32>
    %1391 = arith.subf %1387, %1390 : vector<1x1x16x16xf32>
    %c0_768 = arith.constant 0 : index
    %c7_769 = arith.constant 7 : index
    %c0_770 = arith.constant 0 : index
    %c0_771 = arith.constant 0 : index
    %1392 = vector.load %arg4[%c0_768, %c7_769, %c0_770, %c0_771] : memref<1x20x16x16xf32, #tpu.memory_space<vmem>>, vector<1x1x16x16xf32>
    %cst_772 = arith.constant 0.0444022827 : f32
    %1393 = vector.broadcast %cst_772 : f32 to vector<1x1x16x16xf32>
    %1394 = arith.mulf %1393, %1392 : vector<1x1x16x16xf32>
    %1395 = arith.addf %1391, %1394 : vector<1x1x16x16xf32>
    %c0_773 = arith.constant 0 : index
    %c7_774 = arith.constant 7 : index
    %c0_775 = arith.constant 0 : index
    %c0_776 = arith.constant 0 : index
    %1396 = vector.load %arg5[%c0_773, %c7_774, %c0_775, %c0_776] : memref<1x20x16x16xf32, #tpu.memory_space<vmem>>, vector<1x1x16x16xf32>
    %cst_777 = arith.constant 0.0267796889 : f32
    %1397 = vector.broadcast %cst_777 : f32 to vector<1x1x16x16xf32>
    %1398 = arith.mulf %1397, %1396 : vector<1x1x16x16xf32>
    %1399 = arith.subf %1395, %1398 : vector<1x1x16x16xf32>
    %c0_778 = arith.constant 0 : index
    %c8_779 = arith.constant 8 : index
    %c0_780 = arith.constant 0 : index
    %c0_781 = arith.constant 0 : index
    %1400 = vector.load %arg4[%c0_778, %c8_779, %c0_780, %c0_781] : memref<1x20x16x16xf32, #tpu.memory_space<vmem>>, vector<1x1x16x16xf32>
    %cst_782 = arith.constant 0.0209741537 : f32
    %1401 = vector.broadcast %cst_782 : f32 to vector<1x1x16x16xf32>
    %1402 = arith.mulf %1401, %1400 : vector<1x1x16x16xf32>
    %1403 = arith.addf %1399, %1402 : vector<1x1x16x16xf32>
    %c0_783 = arith.constant 0 : index
    %c8_784 = arith.constant 8 : index
    %c0_785 = arith.constant 0 : index
    %c0_786 = arith.constant 0 : index
    %1404 = vector.load %arg5[%c0_783, %c8_784, %c0_785, %c0_786] : memref<1x20x16x16xf32, #tpu.memory_space<vmem>>, vector<1x1x16x16xf32>
    %cst_787 = arith.constant 0.0222011413 : f32
    %1405 = vector.broadcast %cst_787 : f32 to vector<1x1x16x16xf32>
    %1406 = arith.mulf %1405, %1404 : vector<1x1x16x16xf32>
    %1407 = arith.subf %1403, %1406 : vector<1x1x16x16xf32>
    %c0_788 = arith.constant 0 : index
    %c4_789 = arith.constant 4 : index
    %c0_790 = arith.constant 0 : index
    %c0_791 = arith.constant 0 : index
    %1408 = vector.load %arg2[%c0_788, %c4_789, %c0_790, %c0_791] : memref<1x16x16x16xf32, #tpu.memory_space<vmem>>, vector<1x1x16x16xf32>
    tpu.vector_store %arg2[%c0_788, %c4_789, %c0_790, %c0_791], %1407 {strides = array<i32>} : memref<1x16x16x16xf32, #tpu.memory_space<vmem>>, vector<1x1x16x16xf32>,
    %c0_792 = arith.constant 0 : index
    %c5_793 = arith.constant 5 : index
    %c0_794 = arith.constant 0 : index
    %c0_795 = arith.constant 0 : index
    %1409 = vector.load %arg4[%c0_792, %c5_793, %c0_794, %c0_795] : memref<1x20x16x16xf32, #tpu.memory_space<vmem>>, vector<1x1x16x16xf32>
    %cst_796 = arith.constant 0.0209741537 : f32
    %1410 = vector.broadcast %cst_796 : f32 to vector<1x1x16x16xf32>
    %1411 = arith.mulf %1410, %1409 : vector<1x1x16x16xf32>
    %c0_797 = arith.constant 0 : index
    %c5_798 = arith.constant 5 : index
    %c0_799 = arith.constant 0 : index
    %c0_800 = arith.constant 0 : index
    %1412 = vector.load %arg5[%c0_797, %c5_798, %c0_799, %c0_800] : memref<1x20x16x16xf32, #tpu.memory_space<vmem>>, vector<1x1x16x16xf32>
    %cst_801 = arith.constant 0.0222011413 : f32
    %1413 = vector.broadcast %cst_801 : f32 to vector<1x1x16x16xf32>
    %1414 = arith.mulf %1413, %1412 : vector<1x1x16x16xf32>
    %1415 = arith.subf %1411, %1414 : vector<1x1x16x16xf32>
    %c0_802 = arith.constant 0 : index
    %c6_803 = arith.constant 6 : index
    %c0_804 = arith.constant 0 : index
    %c0_805 = arith.constant 0 : index
    %1416 = vector.load %arg4[%c0_802, %c6_803, %c0_804, %c0_805] : memref<1x20x16x16xf32, #tpu.memory_space<vmem>>, vector<1x1x16x16xf32>
    %cst_806 = arith.constant 0.0444022827 : f32
    %1417 = vector.broadcast %cst_806 : f32 to vector<1x1x16x16xf32>
    %1418 = arith.mulf %1417, %1416 : vector<1x1x16x16xf32>
    %1419 = arith.addf %1415, %1418 : vector<1x1x16x16xf32>
    %c0_807 = arith.constant 0 : index
    %c6_808 = arith.constant 6 : index
    %c0_809 = arith.constant 0 : index
    %c0_810 = arith.constant 0 : index
    %1420 = vector.load %arg5[%c0_807, %c6_808, %c0_809, %c0_810] : memref<1x20x16x16xf32, #tpu.memory_space<vmem>>, vector<1x1x16x16xf32>
    %cst_811 = arith.constant 0.0267796889 : f32
    %1421 = vector.broadcast %cst_811 : f32 to vector<1x1x16x16xf32>
    %1422 = arith.mulf %1421, %1420 : vector<1x1x16x16xf32>
    %1423 = arith.subf %1419, %1422 : vector<1x1x16x16xf32>
    %c0_812 = arith.constant 0 : index
    %c7_813 = arith.constant 7 : index
    %c0_814 = arith.constant 0 : index
    %c0_815 = arith.constant 0 : index
    %1424 = vector.load %arg4[%c0_812, %c7_813, %c0_814, %c0_815] : memref<1x20x16x16xf32, #tpu.memory_space<vmem>>, vector<1x1x16x16xf32>
    %cst_816 = arith.constant 0.0570136607 : f32
    %1425 = vector.broadcast %cst_816 : f32 to vector<1x1x16x16xf32>
    %1426 = arith.mulf %1425, %1424 : vector<1x1x16x16xf32>
    %1427 = arith.addf %1423, %1426 : vector<1x1x16x16xf32>
    %c0_817 = arith.constant 0 : index
    %c7_818 = arith.constant 7 : index
    %c0_819 = arith.constant 0 : index
    %c0_820 = arith.constant 0 : index
    %1428 = vector.load %arg5[%c0_817, %c7_818, %c0_819, %c0_820] : memref<1x20x16x16xf32, #tpu.memory_space<vmem>>, vector<1x1x16x16xf32>
    %cst_821 = arith.constant 0.0285068303 : f32
    %1429 = vector.broadcast %cst_821 : f32 to vector<1x1x16x16xf32>
    %1430 = arith.mulf %1429, %1428 : vector<1x1x16x16xf32>
    %1431 = arith.subf %1427, %1430 : vector<1x1x16x16xf32>
    %c0_822 = arith.constant 0 : index
    %c8_823 = arith.constant 8 : index
    %c0_824 = arith.constant 0 : index
    %c0_825 = arith.constant 0 : index
    %1432 = vector.load %arg4[%c0_822, %c8_823, %c0_824, %c0_825] : memref<1x20x16x16xf32, #tpu.memory_space<vmem>>, vector<1x1x16x16xf32>
    %cst_826 = arith.constant 0.0444022827 : f32
    %1433 = vector.broadcast %cst_826 : f32 to vector<1x1x16x16xf32>
    %1434 = arith.mulf %1433, %1432 : vector<1x1x16x16xf32>
    %1435 = arith.addf %1431, %1434 : vector<1x1x16x16xf32>
    %c0_827 = arith.constant 0 : index
    %c8_828 = arith.constant 8 : index
    %c0_829 = arith.constant 0 : index
    %c0_830 = arith.constant 0 : index
    %1436 = vector.load %arg5[%c0_827, %c8_828, %c0_829, %c0_830] : memref<1x20x16x16xf32, #tpu.memory_space<vmem>>, vector<1x1x16x16xf32>
    %cst_831 = arith.constant 0.0267796889 : f32
    %1437 = vector.broadcast %cst_831 : f32 to vector<1x1x16x16xf32>
    %1438 = arith.mulf %1437, %1436 : vector<1x1x16x16xf32>
    %1439 = arith.subf %1435, %1438 : vector<1x1x16x16xf32>
    %c0_832 = arith.constant 0 : index
    %c9_833 = arith.constant 9 : index
    %c0_834 = arith.constant 0 : index
    %c0_835 = arith.constant 0 : index
    %1440 = vector.load %arg4[%c0_832, %c9_833, %c0_834, %c0_835] : memref<1x20x16x16xf32, #tpu.memory_space<vmem>>, vector<1x1x16x16xf32>
    %cst_836 = arith.constant 0.0209741537 : f32
    %1441 = vector.broadcast %cst_836 : f32 to vector<1x1x16x16xf32>
    %1442 = arith.mulf %1441, %1440 : vector<1x1x16x16xf32>
    %1443 = arith.addf %1439, %1442 : vector<1x1x16x16xf32>
    %c0_837 = arith.constant 0 : index
    %c9_838 = arith.constant 9 : index
    %c0_839 = arith.constant 0 : index
    %c0_840 = arith.constant 0 : index
    %1444 = vector.load %arg5[%c0_837, %c9_838, %c0_839, %c0_840] : memref<1x20x16x16xf32, #tpu.memory_space<vmem>>, vector<1x1x16x16xf32>
    %cst_841 = arith.constant 0.0222011413 : f32
    %1445 = vector.broadcast %cst_841 : f32 to vector<1x1x16x16xf32>
    %1446 = arith.mulf %1445, %1444 : vector<1x1x16x16xf32>
    %1447 = arith.subf %1443, %1446 : vector<1x1x16x16xf32>
    %c0_842 = arith.constant 0 : index
    %c5_843 = arith.constant 5 : index
    %c0_844 = arith.constant 0 : index
    %c0_845 = arith.constant 0 : index
    %1448 = vector.load %arg2[%c0_842, %c5_843, %c0_844, %c0_845] : memref<1x16x16x16xf32, #tpu.memory_space<vmem>>, vector<1x1x16x16xf32>
    tpu.vector_store %arg2[%c0_842, %c5_843, %c0_844, %c0_845], %1447 {strides = array<i32>} : memref<1x16x16x16xf32, #tpu.memory_space<vmem>>, vector<1x1x16x16xf32>,
    %c0_846 = arith.constant 0 : index
    %c6_847 = arith.constant 6 : index
    %c0_848 = arith.constant 0 : index
    %c0_849 = arith.constant 0 : index
    %1449 = vector.load %arg4[%c0_846, %c6_847, %c0_848, %c0_849] : memref<1x20x16x16xf32, #tpu.memory_space<vmem>>, vector<1x1x16x16xf32>
    %cst_850 = arith.constant 0.0209741537 : f32
    %1450 = vector.broadcast %cst_850 : f32 to vector<1x1x16x16xf32>
    %1451 = arith.mulf %1450, %1449 : vector<1x1x16x16xf32>
    %c0_851 = arith.constant 0 : index
    %c6_852 = arith.constant 6 : index
    %c0_853 = arith.constant 0 : index
    %c0_854 = arith.constant 0 : index
    %1452 = vector.load %arg5[%c0_851, %c6_852, %c0_853, %c0_854] : memref<1x20x16x16xf32, #tpu.memory_space<vmem>>, vector<1x1x16x16xf32>
    %cst_855 = arith.constant 0.0222011413 : f32
    %1453 = vector.broadcast %cst_855 : f32 to vector<1x1x16x16xf32>
    %1454 = arith.mulf %1453, %1452 : vector<1x1x16x16xf32>
    %1455 = arith.subf %1451, %1454 : vector<1x1x16x16xf32>
    %c0_856 = arith.constant 0 : index
    %c7_857 = arith.constant 7 : index
    %c0_858 = arith.constant 0 : index
    %c0_859 = arith.constant 0 : index
    %1456 = vector.load %arg4[%c0_856, %c7_857, %c0_858, %c0_859] : memref<1x20x16x16xf32, #tpu.memory_space<vmem>>, vector<1x1x16x16xf32>
    %cst_860 = arith.constant 0.0444022827 : f32
    %1457 = vector.broadcast %cst_860 : f32 to vector<1x1x16x16xf32>
    %1458 = arith.mulf %1457, %1456 : vector<1x1x16x16xf32>
    %1459 = arith.addf %1455, %1458 : vector<1x1x16x16xf32>
    %c0_861 = arith.constant 0 : index
    %c7_862 = arith.constant 7 : index
    %c0_863 = arith.constant 0 : index
    %c0_864 = arith.constant 0 : index
    %1460 = vector.load %arg5[%c0_861, %c7_862, %c0_863, %c0_864] : memref<1x20x16x16xf32, #tpu.memory_space<vmem>>, vector<1x1x16x16xf32>
    %cst_865 = arith.constant 0.0267796889 : f32
    %1461 = vector.broadcast %cst_865 : f32 to vector<1x1x16x16xf32>
    %1462 = arith.mulf %1461, %1460 : vector<1x1x16x16xf32>
    %1463 = arith.subf %1459, %1462 : vector<1x1x16x16xf32>
    %c0_866 = arith.constant 0 : index
    %c8_867 = arith.constant 8 : index
    %c0_868 = arith.constant 0 : index
    %c0_869 = arith.constant 0 : index
    %1464 = vector.load %arg4[%c0_866, %c8_867, %c0_868, %c0_869] : memref<1x20x16x16xf32, #tpu.memory_space<vmem>>, vector<1x1x16x16xf32>
    %cst_870 = arith.constant 0.0570136607 : f32
    %1465 = vector.broadcast %cst_870 : f32 to vector<1x1x16x16xf32>
    %1466 = arith.mulf %1465, %1464 : vector<1x1x16x16xf32>
    %1467 = arith.addf %1463, %1466 : vector<1x1x16x16xf32>
    %c0_871 = arith.constant 0 : index
    %c8_872 = arith.constant 8 : index
    %c0_873 = arith.constant 0 : index
    %c0_874 = arith.constant 0 : index
    %1468 = vector.load %arg5[%c0_871, %c8_872, %c0_873, %c0_874] : memref<1x20x16x16xf32, #tpu.memory_space<vmem>>, vector<1x1x16x16xf32>
    %cst_875 = arith.constant 0.0285068303 : f32
    %1469 = vector.broadcast %cst_875 : f32 to vector<1x1x16x16xf32>
    %1470 = arith.mulf %1469, %1468 : vector<1x1x16x16xf32>
    %1471 = arith.subf %1467, %1470 : vector<1x1x16x16xf32>
    %c0_876 = arith.constant 0 : index
    %c9_877 = arith.constant 9 : index
    %c0_878 = arith.constant 0 : index
    %c0_879 = arith.constant 0 : index
    %1472 = vector.load %arg4[%c0_876, %c9_877, %c0_878, %c0_879] : memref<1x20x16x16xf32, #tpu.memory_space<vmem>>, vector<1x1x16x16xf32>
    %cst_880 = arith.constant 0.0444022827 : f32
    %1473 = vector.broadcast %cst_880 : f32 to vector<1x1x16x16xf32>
    %1474 = arith.mulf %1473, %1472 : vector<1x1x16x16xf32>
    %1475 = arith.addf %1471, %1474 : vector<1x1x16x16xf32>
    %c0_881 = arith.constant 0 : index
    %c9_882 = arith.constant 9 : index
    %c0_883 = arith.constant 0 : index
    %c0_884 = arith.constant 0 : index
    %1476 = vector.load %arg5[%c0_881, %c9_882, %c0_883, %c0_884] : memref<1x20x16x16xf32, #tpu.memory_space<vmem>>, vector<1x1x16x16xf32>
    %cst_885 = arith.constant 0.0267796889 : f32
    %1477 = vector.broadcast %cst_885 : f32 to vector<1x1x16x16xf32>
    %1478 = arith.mulf %1477, %1476 : vector<1x1x16x16xf32>
    %1479 = arith.subf %1475, %1478 : vector<1x1x16x16xf32>
    %c0_886 = arith.constant 0 : index
    %c10_887 = arith.constant 10 : index
    %c0_888 = arith.constant 0 : index
    %c0_889 = arith.constant 0 : index
    %1480 = vector.load %arg4[%c0_886, %c10_887, %c0_888, %c0_889] : memref<1x20x16x16xf32, #tpu.memory_space<vmem>>, vector<1x1x16x16xf32>
    %cst_890 = arith.constant 0.0209741537 : f32
    %1481 = vector.broadcast %cst_890 : f32 to vector<1x1x16x16xf32>
    %1482 = arith.mulf %1481, %1480 : vector<1x1x16x16xf32>
    %1483 = arith.addf %1479, %1482 : vector<1x1x16x16xf32>
    %c0_891 = arith.constant 0 : index
    %c10_892 = arith.constant 10 : index
    %c0_893 = arith.constant 0 : index
    %c0_894 = arith.constant 0 : index
    %1484 = vector.load %arg5[%c0_891, %c10_892, %c0_893, %c0_894] : memref<1x20x16x16xf32, #tpu.memory_space<vmem>>, vector<1x1x16x16xf32>
    %cst_895 = arith.constant 0.0222011413 : f32
    %1485 = vector.broadcast %cst_895 : f32 to vector<1x1x16x16xf32>
    %1486 = arith.mulf %1485, %1484 : vector<1x1x16x16xf32>
    %1487 = arith.subf %1483, %1486 : vector<1x1x16x16xf32>
    %c0_896 = arith.constant 0 : index
    %c6_897 = arith.constant 6 : index
    %c0_898 = arith.constant 0 : index
    %c0_899 = arith.constant 0 : index
    %1488 = vector.load %arg2[%c0_896, %c6_897, %c0_898, %c0_899] : memref<1x16x16x16xf32, #tpu.memory_space<vmem>>, vector<1x1x16x16xf32>
    tpu.vector_store %arg2[%c0_896, %c6_897, %c0_898, %c0_899], %1487 {strides = array<i32>} : memref<1x16x16x16xf32, #tpu.memory_space<vmem>>, vector<1x1x16x16xf32>,
    %c0_900 = arith.constant 0 : index
    %c7_901 = arith.constant 7 : index
    %c0_902 = arith.constant 0 : index
    %c0_903 = arith.constant 0 : index
    %1489 = vector.load %arg4[%c0_900, %c7_901, %c0_902, %c0_903] : memref<1x20x16x16xf32, #tpu.memory_space<vmem>>, vector<1x1x16x16xf32>
    %cst_904 = arith.constant 0.0209741537 : f32
    %1490 = vector.broadcast %cst_904 : f32 to vector<1x1x16x16xf32>
    %1491 = arith.mulf %1490, %1489 : vector<1x1x16x16xf32>
    %c0_905 = arith.constant 0 : index
    %c7_906 = arith.constant 7 : index
    %c0_907 = arith.constant 0 : index
    %c0_908 = arith.constant 0 : index
    %1492 = vector.load %arg5[%c0_905, %c7_906, %c0_907, %c0_908] : memref<1x20x16x16xf32, #tpu.memory_space<vmem>>, vector<1x1x16x16xf32>
    %cst_909 = arith.constant 0.0222011413 : f32
    %1493 = vector.broadcast %cst_909 : f32 to vector<1x1x16x16xf32>
    %1494 = arith.mulf %1493, %1492 : vector<1x1x16x16xf32>
    %1495 = arith.subf %1491, %1494 : vector<1x1x16x16xf32>
    %c0_910 = arith.constant 0 : index
    %c8_911 = arith.constant 8 : index
    %c0_912 = arith.constant 0 : index
    %c0_913 = arith.constant 0 : index
    %1496 = vector.load %arg4[%c0_910, %c8_911, %c0_912, %c0_913] : memref<1x20x16x16xf32, #tpu.memory_space<vmem>>, vector<1x1x16x16xf32>
    %cst_914 = arith.constant 0.0444022827 : f32
    %1497 = vector.broadcast %cst_914 : f32 to vector<1x1x16x16xf32>
    %1498 = arith.mulf %1497, %1496 : vector<1x1x16x16xf32>
    %1499 = arith.addf %1495, %1498 : vector<1x1x16x16xf32>
    %c0_915 = arith.constant 0 : index
    %c8_916 = arith.constant 8 : index
    %c0_917 = arith.constant 0 : index
    %c0_918 = arith.constant 0 : index
    %1500 = vector.load %arg5[%c0_915, %c8_916, %c0_917, %c0_918] : memref<1x20x16x16xf32, #tpu.memory_space<vmem>>, vector<1x1x16x16xf32>
    %cst_919 = arith.constant 0.0267796889 : f32
    %1501 = vector.broadcast %cst_919 : f32 to vector<1x1x16x16xf32>
    %1502 = arith.mulf %1501, %1500 : vector<1x1x16x16xf32>
    %1503 = arith.subf %1499, %1502 : vector<1x1x16x16xf32>
    %c0_920 = arith.constant 0 : index
    %c9_921 = arith.constant 9 : index
    %c0_922 = arith.constant 0 : index
    %c0_923 = arith.constant 0 : index
    %1504 = vector.load %arg4[%c0_920, %c9_921, %c0_922, %c0_923] : memref<1x20x16x16xf32, #tpu.memory_space<vmem>>, vector<1x1x16x16xf32>
    %cst_924 = arith.constant 0.0570136607 : f32
    %1505 = vector.broadcast %cst_924 : f32 to vector<1x1x16x16xf32>
    %1506 = arith.mulf %1505, %1504 : vector<1x1x16x16xf32>
    %1507 = arith.addf %1503, %1506 : vector<1x1x16x16xf32>
    %c0_925 = arith.constant 0 : index
    %c9_926 = arith.constant 9 : index
    %c0_927 = arith.constant 0 : index
    %c0_928 = arith.constant 0 : index
    %1508 = vector.load %arg5[%c0_925, %c9_926, %c0_927, %c0_928] : memref<1x20x16x16xf32, #tpu.memory_space<vmem>>, vector<1x1x16x16xf32>
    %cst_929 = arith.constant 0.0285068303 : f32
    %1509 = vector.broadcast %cst_929 : f32 to vector<1x1x16x16xf32>
    %1510 = arith.mulf %1509, %1508 : vector<1x1x16x16xf32>
    %1511 = arith.subf %1507, %1510 : vector<1x1x16x16xf32>
    %c0_930 = arith.constant 0 : index
    %c10_931 = arith.constant 10 : index
    %c0_932 = arith.constant 0 : index
    %c0_933 = arith.constant 0 : index
    %1512 = vector.load %arg4[%c0_930, %c10_931, %c0_932, %c0_933] : memref<1x20x16x16xf32, #tpu.memory_space<vmem>>, vector<1x1x16x16xf32>
    %cst_934 = arith.constant 0.0444022827 : f32
    %1513 = vector.broadcast %cst_934 : f32 to vector<1x1x16x16xf32>
    %1514 = arith.mulf %1513, %1512 : vector<1x1x16x16xf32>
    %1515 = arith.addf %1511, %1514 : vector<1x1x16x16xf32>
    %c0_935 = arith.constant 0 : index
    %c10_936 = arith.constant 10 : index
    %c0_937 = arith.constant 0 : index
    %c0_938 = arith.constant 0 : index
    %1516 = vector.load %arg5[%c0_935, %c10_936, %c0_937, %c0_938] : memref<1x20x16x16xf32, #tpu.memory_space<vmem>>, vector<1x1x16x16xf32>
    %cst_939 = arith.constant 0.0267796889 : f32
    %1517 = vector.broadcast %cst_939 : f32 to vector<1x1x16x16xf32>
    %1518 = arith.mulf %1517, %1516 : vector<1x1x16x16xf32>
    %1519 = arith.subf %1515, %1518 : vector<1x1x16x16xf32>
    %c0_940 = arith.constant 0 : index
    %c11_941 = arith.constant 11 : index
    %c0_942 = arith.constant 0 : index
    %c0_943 = arith.constant 0 : index
    %1520 = vector.load %arg4[%c0_940, %c11_941, %c0_942, %c0_943] : memref<1x20x16x16xf32, #tpu.memory_space<vmem>>, vector<1x1x16x16xf32>
    %cst_944 = arith.constant 0.0209741537 : f32
    %1521 = vector.broadcast %cst_944 : f32 to vector<1x1x16x16xf32>
    %1522 = arith.mulf %1521, %1520 : vector<1x1x16x16xf32>
    %1523 = arith.addf %1519, %1522 : vector<1x1x16x16xf32>
    %c0_945 = arith.constant 0 : index
    %c11_946 = arith.constant 11 : index
    %c0_947 = arith.constant 0 : index
    %c0_948 = arith.constant 0 : index
    %1524 = vector.load %arg5[%c0_945, %c11_946, %c0_947, %c0_948] : memref<1x20x16x16xf32, #tpu.memory_space<vmem>>, vector<1x1x16x16xf32>
    %cst_949 = arith.constant 0.0222011413 : f32
    %1525 = vector.broadcast %cst_949 : f32 to vector<1x1x16x16xf32>
    %1526 = arith.mulf %1525, %1524 : vector<1x1x16x16xf32>
    %1527 = arith.subf %1523, %1526 : vector<1x1x16x16xf32>
    %c0_950 = arith.constant 0 : index
    %c7_951 = arith.constant 7 : index
    %c0_952 = arith.constant 0 : index
    %c0_953 = arith.constant 0 : index
    %1528 = vector.load %arg2[%c0_950, %c7_951, %c0_952, %c0_953] : memref<1x16x16x16xf32, #tpu.memory_space<vmem>>, vector<1x1x16x16xf32>
    tpu.vector_store %arg2[%c0_950, %c7_951, %c0_952, %c0_953], %1527 {strides = array<i32>} : memref<1x16x16x16xf32, #tpu.memory_space<vmem>>, vector<1x1x16x16xf32>,
    %c0_954 = arith.constant 0 : index
    %c8_955 = arith.constant 8 : index
    %c0_956 = arith.constant 0 : index
    %c0_957 = arith.constant 0 : index
    %1529 = vector.load %arg4[%c0_954, %c8_955, %c0_956, %c0_957] : memref<1x20x16x16xf32, #tpu.memory_space<vmem>>, vector<1x1x16x16xf32>
    %cst_958 = arith.constant 0.0209741537 : f32
    %1530 = vector.broadcast %cst_958 : f32 to vector<1x1x16x16xf32>
    %1531 = arith.mulf %1530, %1529 : vector<1x1x16x16xf32>
    %c0_959 = arith.constant 0 : index
    %c8_960 = arith.constant 8 : index
    %c0_961 = arith.constant 0 : index
    %c0_962 = arith.constant 0 : index
    %1532 = vector.load %arg5[%c0_959, %c8_960, %c0_961, %c0_962] : memref<1x20x16x16xf32, #tpu.memory_space<vmem>>, vector<1x1x16x16xf32>
    %cst_963 = arith.constant 0.0222011413 : f32
    %1533 = vector.broadcast %cst_963 : f32 to vector<1x1x16x16xf32>
    %1534 = arith.mulf %1533, %1532 : vector<1x1x16x16xf32>
    %1535 = arith.subf %1531, %1534 : vector<1x1x16x16xf32>
    %c0_964 = arith.constant 0 : index
    %c9_965 = arith.constant 9 : index
    %c0_966 = arith.constant 0 : index
    %c0_967 = arith.constant 0 : index
    %1536 = vector.load %arg4[%c0_964, %c9_965, %c0_966, %c0_967] : memref<1x20x16x16xf32, #tpu.memory_space<vmem>>, vector<1x1x16x16xf32>
    %cst_968 = arith.constant 0.0444022827 : f32
    %1537 = vector.broadcast %cst_968 : f32 to vector<1x1x16x16xf32>
    %1538 = arith.mulf %1537, %1536 : vector<1x1x16x16xf32>
    %1539 = arith.addf %1535, %1538 : vector<1x1x16x16xf32>
    %c0_969 = arith.constant 0 : index
    %c9_970 = arith.constant 9 : index
    %c0_971 = arith.constant 0 : index
    %c0_972 = arith.constant 0 : index
    %1540 = vector.load %arg5[%c0_969, %c9_970, %c0_971, %c0_972] : memref<1x20x16x16xf32, #tpu.memory_space<vmem>>, vector<1x1x16x16xf32>
    %cst_973 = arith.constant 0.0267796889 : f32
    %1541 = vector.broadcast %cst_973 : f32 to vector<1x1x16x16xf32>
    %1542 = arith.mulf %1541, %1540 : vector<1x1x16x16xf32>
    %1543 = arith.subf %1539, %1542 : vector<1x1x16x16xf32>
    %c0_974 = arith.constant 0 : index
    %c10_975 = arith.constant 10 : index
    %c0_976 = arith.constant 0 : index
    %c0_977 = arith.constant 0 : index
    %1544 = vector.load %arg4[%c0_974, %c10_975, %c0_976, %c0_977] : memref<1x20x16x16xf32, #tpu.memory_space<vmem>>, vector<1x1x16x16xf32>
    %cst_978 = arith.constant 0.0570136607 : f32
    %1545 = vector.broadcast %cst_978 : f32 to vector<1x1x16x16xf32>
    %1546 = arith.mulf %1545, %1544 : vector<1x1x16x16xf32>
    %1547 = arith.addf %1543, %1546 : vector<1x1x16x16xf32>
    %c0_979 = arith.constant 0 : index
    %c10_980 = arith.constant 10 : index
    %c0_981 = arith.constant 0 : index
    %c0_982 = arith.constant 0 : index
    %1548 = vector.load %arg5[%c0_979, %c10_980, %c0_981, %c0_982] : memref<1x20x16x16xf32, #tpu.memory_space<vmem>>, vector<1x1x16x16xf32>
    %cst_983 = arith.constant 0.0285068303 : f32
    %1549 = vector.broadcast %cst_983 : f32 to vector<1x1x16x16xf32>
    %1550 = arith.mulf %1549, %1548 : vector<1x1x16x16xf32>
    %1551 = arith.subf %1547, %1550 : vector<1x1x16x16xf32>
    %c0_984 = arith.constant 0 : index
    %c11_985 = arith.constant 11 : index
    %c0_986 = arith.constant 0 : index
    %c0_987 = arith.constant 0 : index
    %1552 = vector.load %arg4[%c0_984, %c11_985, %c0_986, %c0_987] : memref<1x20x16x16xf32, #tpu.memory_space<vmem>>, vector<1x1x16x16xf32>
    %cst_988 = arith.constant 0.0444022827 : f32
    %1553 = vector.broadcast %cst_988 : f32 to vector<1x1x16x16xf32>
    %1554 = arith.mulf %1553, %1552 : vector<1x1x16x16xf32>
    %1555 = arith.addf %1551, %1554 : vector<1x1x16x16xf32>
    %c0_989 = arith.constant 0 : index
    %c11_990 = arith.constant 11 : index
    %c0_991 = arith.constant 0 : index
    %c0_992 = arith.constant 0 : index
    %1556 = vector.load %arg5[%c0_989, %c11_990, %c0_991, %c0_992] : memref<1x20x16x16xf32, #tpu.memory_space<vmem>>, vector<1x1x16x16xf32>
    %cst_993 = arith.constant 0.0267796889 : f32
    %1557 = vector.broadcast %cst_993 : f32 to vector<1x1x16x16xf32>
    %1558 = arith.mulf %1557, %1556 : vector<1x1x16x16xf32>
    %1559 = arith.subf %1555, %1558 : vector<1x1x16x16xf32>
    %c0_994 = arith.constant 0 : index
    %c12_995 = arith.constant 12 : index
    %c0_996 = arith.constant 0 : index
    %c0_997 = arith.constant 0 : index
    %1560 = vector.load %arg4[%c0_994, %c12_995, %c0_996, %c0_997] : memref<1x20x16x16xf32, #tpu.memory_space<vmem>>, vector<1x1x16x16xf32>
    %cst_998 = arith.constant 0.0209741537 : f32
    %1561 = vector.broadcast %cst_998 : f32 to vector<1x1x16x16xf32>
    %1562 = arith.mulf %1561, %1560 : vector<1x1x16x16xf32>
    %1563 = arith.addf %1559, %1562 : vector<1x1x16x16xf32>
    %c0_999 = arith.constant 0 : index
    %c12_1000 = arith.constant 12 : index
    %c0_1001 = arith.constant 0 : index
    %c0_1002 = arith.constant 0 : index
    %1564 = vector.load %arg5[%c0_999, %c12_1000, %c0_1001, %c0_1002] : memref<1x20x16x16xf32, #tpu.memory_space<vmem>>, vector<1x1x16x16xf32>
    %cst_1003 = arith.constant 0.0222011413 : f32
    %1565 = vector.broadcast %cst_1003 : f32 to vector<1x1x16x16xf32>
    %1566 = arith.mulf %1565, %1564 : vector<1x1x16x16xf32>
    %1567 = arith.subf %1563, %1566 : vector<1x1x16x16xf32>
    %c0_1004 = arith.constant 0 : index
    %c8_1005 = arith.constant 8 : index
    %c0_1006 = arith.constant 0 : index
    %c0_1007 = arith.constant 0 : index
    %1568 = vector.load %arg2[%c0_1004, %c8_1005, %c0_1006, %c0_1007] : memref<1x16x16x16xf32, #tpu.memory_space<vmem>>, vector<1x1x16x16xf32>
    tpu.vector_store %arg2[%c0_1004, %c8_1005, %c0_1006, %c0_1007], %1567 {strides = array<i32>} : memref<1x16x16x16xf32, #tpu.memory_space<vmem>>, vector<1x1x16x16xf32>,
    %c0_1008 = arith.constant 0 : index
    %c9_1009 = arith.constant 9 : index
    %c0_1010 = arith.constant 0 : index
    %c0_1011 = arith.constant 0 : index
    %1569 = vector.load %arg4[%c0_1008, %c9_1009, %c0_1010, %c0_1011] : memref<1x20x16x16xf32, #tpu.memory_space<vmem>>, vector<1x1x16x16xf32>
    %cst_1012 = arith.constant 0.0209741537 : f32
    %1570 = vector.broadcast %cst_1012 : f32 to vector<1x1x16x16xf32>
    %1571 = arith.mulf %1570, %1569 : vector<1x1x16x16xf32>
    %c0_1013 = arith.constant 0 : index
    %c9_1014 = arith.constant 9 : index
    %c0_1015 = arith.constant 0 : index
    %c0_1016 = arith.constant 0 : index
    %1572 = vector.load %arg5[%c0_1013, %c9_1014, %c0_1015, %c0_1016] : memref<1x20x16x16xf32, #tpu.memory_space<vmem>>, vector<1x1x16x16xf32>
    %cst_1017 = arith.constant 0.0222011413 : f32
    %1573 = vector.broadcast %cst_1017 : f32 to vector<1x1x16x16xf32>
    %1574 = arith.mulf %1573, %1572 : vector<1x1x16x16xf32>
    %1575 = arith.subf %1571, %1574 : vector<1x1x16x16xf32>
    %c0_1018 = arith.constant 0 : index
    %c10_1019 = arith.constant 10 : index
    %c0_1020 = arith.constant 0 : index
    %c0_1021 = arith.constant 0 : index
    %1576 = vector.load %arg4[%c0_1018, %c10_1019, %c0_1020, %c0_1021] : memref<1x20x16x16xf32, #tpu.memory_space<vmem>>, vector<1x1x16x16xf32>
    %cst_1022 = arith.constant 0.0444022827 : f32
    %1577 = vector.broadcast %cst_1022 : f32 to vector<1x1x16x16xf32>
    %1578 = arith.mulf %1577, %1576 : vector<1x1x16x16xf32>
    %1579 = arith.addf %1575, %1578 : vector<1x1x16x16xf32>
    %c0_1023 = arith.constant 0 : index
    %c10_1024 = arith.constant 10 : index
    %c0_1025 = arith.constant 0 : index
    %c0_1026 = arith.constant 0 : index
    %1580 = vector.load %arg5[%c0_1023, %c10_1024, %c0_1025, %c0_1026] : memref<1x20x16x16xf32, #tpu.memory_space<vmem>>, vector<1x1x16x16xf32>
    %cst_1027 = arith.constant 0.0267796889 : f32
    %1581 = vector.broadcast %cst_1027 : f32 to vector<1x1x16x16xf32>
    %1582 = arith.mulf %1581, %1580 : vector<1x1x16x16xf32>
    %1583 = arith.subf %1579, %1582 : vector<1x1x16x16xf32>
    %c0_1028 = arith.constant 0 : index
    %c11_1029 = arith.constant 11 : index
    %c0_1030 = arith.constant 0 : index
    %c0_1031 = arith.constant 0 : index
    %1584 = vector.load %arg4[%c0_1028, %c11_1029, %c0_1030, %c0_1031] : memref<1x20x16x16xf32, #tpu.memory_space<vmem>>, vector<1x1x16x16xf32>
    %cst_1032 = arith.constant 0.0570136607 : f32
    %1585 = vector.broadcast %cst_1032 : f32 to vector<1x1x16x16xf32>
    %1586 = arith.mulf %1585, %1584 : vector<1x1x16x16xf32>
    %1587 = arith.addf %1583, %1586 : vector<1x1x16x16xf32>
    %c0_1033 = arith.constant 0 : index
    %c11_1034 = arith.constant 11 : index
    %c0_1035 = arith.constant 0 : index
    %c0_1036 = arith.constant 0 : index
    %1588 = vector.load %arg5[%c0_1033, %c11_1034, %c0_1035, %c0_1036] : memref<1x20x16x16xf32, #tpu.memory_space<vmem>>, vector<1x1x16x16xf32>
    %cst_1037 = arith.constant 0.0285068303 : f32
    %1589 = vector.broadcast %cst_1037 : f32 to vector<1x1x16x16xf32>
    %1590 = arith.mulf %1589, %1588 : vector<1x1x16x16xf32>
    %1591 = arith.subf %1587, %1590 : vector<1x1x16x16xf32>
    %c0_1038 = arith.constant 0 : index
    %c12_1039 = arith.constant 12 : index
    %c0_1040 = arith.constant 0 : index
    %c0_1041 = arith.constant 0 : index
    %1592 = vector.load %arg4[%c0_1038, %c12_1039, %c0_1040, %c0_1041] : memref<1x20x16x16xf32, #tpu.memory_space<vmem>>, vector<1x1x16x16xf32>
    %cst_1042 = arith.constant 0.0444022827 : f32
    %1593 = vector.broadcast %cst_1042 : f32 to vector<1x1x16x16xf32>
    %1594 = arith.mulf %1593, %1592 : vector<1x1x16x16xf32>
    %1595 = arith.addf %1591, %1594 : vector<1x1x16x16xf32>
    %c0_1043 = arith.constant 0 : index
    %c12_1044 = arith.constant 12 : index
    %c0_1045 = arith.constant 0 : index
    %c0_1046 = arith.constant 0 : index
    %1596 = vector.load %arg5[%c0_1043, %c12_1044, %c0_1045, %c0_1046] : memref<1x20x16x16xf32, #tpu.memory_space<vmem>>, vector<1x1x16x16xf32>
    %cst_1047 = arith.constant 0.0267796889 : f32
    %1597 = vector.broadcast %cst_1047 : f32 to vector<1x1x16x16xf32>
    %1598 = arith.mulf %1597, %1596 : vector<1x1x16x16xf32>
    %1599 = arith.subf %1595, %1598 : vector<1x1x16x16xf32>
    %c0_1048 = arith.constant 0 : index
    %c13_1049 = arith.constant 13 : index
    %c0_1050 = arith.constant 0 : index
    %c0_1051 = arith.constant 0 : index
    %1600 = vector.load %arg4[%c0_1048, %c13_1049, %c0_1050, %c0_1051] : memref<1x20x16x16xf32, #tpu.memory_space<vmem>>, vector<1x1x16x16xf32>
    %cst_1052 = arith.constant 0.0209741537 : f32
    %1601 = vector.broadcast %cst_1052 : f32 to vector<1x1x16x16xf32>
    %1602 = arith.mulf %1601, %1600 : vector<1x1x16x16xf32>
    %1603 = arith.addf %1599, %1602 : vector<1x1x16x16xf32>
    %c0_1053 = arith.constant 0 : index
    %c13_1054 = arith.constant 13 : index
    %c0_1055 = arith.constant 0 : index
    %c0_1056 = arith.constant 0 : index
    %1604 = vector.load %arg5[%c0_1053, %c13_1054, %c0_1055, %c0_1056] : memref<1x20x16x16xf32, #tpu.memory_space<vmem>>, vector<1x1x16x16xf32>
    %cst_1057 = arith.constant 0.0222011413 : f32
    %1605 = vector.broadcast %cst_1057 : f32 to vector<1x1x16x16xf32>
    %1606 = arith.mulf %1605, %1604 : vector<1x1x16x16xf32>
    %1607 = arith.subf %1603, %1606 : vector<1x1x16x16xf32>
    %c0_1058 = arith.constant 0 : index
    %c9_1059 = arith.constant 9 : index
    %c0_1060 = arith.constant 0 : index
    %c0_1061 = arith.constant 0 : index
    %1608 = vector.load %arg2[%c0_1058, %c9_1059, %c0_1060, %c0_1061] : memref<1x16x16x16xf32, #tpu.memory_space<vmem>>, vector<1x1x16x16xf32>
    tpu.vector_store %arg2[%c0_1058, %c9_1059, %c0_1060, %c0_1061], %1607 {strides = array<i32>} : memref<1x16x16x16xf32, #tpu.memory_space<vmem>>, vector<1x1x16x16xf32>,
    %c0_1062 = arith.constant 0 : index
    %c10_1063 = arith.constant 10 : index
    %c0_1064 = arith.constant 0 : index
    %c0_1065 = arith.constant 0 : index
    %1609 = vector.load %arg4[%c0_1062, %c10_1063, %c0_1064, %c0_1065] : memref<1x20x16x16xf32, #tpu.memory_space<vmem>>, vector<1x1x16x16xf32>
    %cst_1066 = arith.constant 0.0209741537 : f32
    %1610 = vector.broadcast %cst_1066 : f32 to vector<1x1x16x16xf32>
    %1611 = arith.mulf %1610, %1609 : vector<1x1x16x16xf32>
    %c0_1067 = arith.constant 0 : index
    %c10_1068 = arith.constant 10 : index
    %c0_1069 = arith.constant 0 : index
    %c0_1070 = arith.constant 0 : index
    %1612 = vector.load %arg5[%c0_1067, %c10_1068, %c0_1069, %c0_1070] : memref<1x20x16x16xf32, #tpu.memory_space<vmem>>, vector<1x1x16x16xf32>
    %cst_1071 = arith.constant 0.0222011413 : f32
    %1613 = vector.broadcast %cst_1071 : f32 to vector<1x1x16x16xf32>
    %1614 = arith.mulf %1613, %1612 : vector<1x1x16x16xf32>
    %1615 = arith.subf %1611, %1614 : vector<1x1x16x16xf32>
    %c0_1072 = arith.constant 0 : index
    %c11_1073 = arith.constant 11 : index
    %c0_1074 = arith.constant 0 : index
    %c0_1075 = arith.constant 0 : index
    %1616 = vector.load %arg4[%c0_1072, %c11_1073, %c0_1074, %c0_1075] : memref<1x20x16x16xf32, #tpu.memory_space<vmem>>, vector<1x1x16x16xf32>
    %cst_1076 = arith.constant 0.0444022827 : f32
    %1617 = vector.broadcast %cst_1076 : f32 to vector<1x1x16x16xf32>
    %1618 = arith.mulf %1617, %1616 : vector<1x1x16x16xf32>
    %1619 = arith.addf %1615, %1618 : vector<1x1x16x16xf32>
    %c0_1077 = arith.constant 0 : index
    %c11_1078 = arith.constant 11 : index
    %c0_1079 = arith.constant 0 : index
    %c0_1080 = arith.constant 0 : index
    %1620 = vector.load %arg5[%c0_1077, %c11_1078, %c0_1079, %c0_1080] : memref<1x20x16x16xf32, #tpu.memory_space<vmem>>, vector<1x1x16x16xf32>
    %cst_1081 = arith.constant 0.0267796889 : f32
    %1621 = vector.broadcast %cst_1081 : f32 to vector<1x1x16x16xf32>
    %1622 = arith.mulf %1621, %1620 : vector<1x1x16x16xf32>
    %1623 = arith.subf %1619, %1622 : vector<1x1x16x16xf32>
    %c0_1082 = arith.constant 0 : index
    %c12_1083 = arith.constant 12 : index
    %c0_1084 = arith.constant 0 : index
    %c0_1085 = arith.constant 0 : index
    %1624 = vector.load %arg4[%c0_1082, %c12_1083, %c0_1084, %c0_1085] : memref<1x20x16x16xf32, #tpu.memory_space<vmem>>, vector<1x1x16x16xf32>
    %cst_1086 = arith.constant 0.0570136607 : f32
    %1625 = vector.broadcast %cst_1086 : f32 to vector<1x1x16x16xf32>
    %1626 = arith.mulf %1625, %1624 : vector<1x1x16x16xf32>
    %1627 = arith.addf %1623, %1626 : vector<1x1x16x16xf32>
    %c0_1087 = arith.constant 0 : index
    %c12_1088 = arith.constant 12 : index
    %c0_1089 = arith.constant 0 : index
    %c0_1090 = arith.constant 0 : index
    %1628 = vector.load %arg5[%c0_1087, %c12_1088, %c0_1089, %c0_1090] : memref<1x20x16x16xf32, #tpu.memory_space<vmem>>, vector<1x1x16x16xf32>
    %cst_1091 = arith.constant 0.0285068303 : f32
    %1629 = vector.broadcast %cst_1091 : f32 to vector<1x1x16x16xf32>
    %1630 = arith.mulf %1629, %1628 : vector<1x1x16x16xf32>
    %1631 = arith.subf %1627, %1630 : vector<1x1x16x16xf32>
    %c0_1092 = arith.constant 0 : index
    %c13_1093 = arith.constant 13 : index
    %c0_1094 = arith.constant 0 : index
    %c0_1095 = arith.constant 0 : index
    %1632 = vector.load %arg4[%c0_1092, %c13_1093, %c0_1094, %c0_1095] : memref<1x20x16x16xf32, #tpu.memory_space<vmem>>, vector<1x1x16x16xf32>
    %cst_1096 = arith.constant 0.0444022827 : f32
    %1633 = vector.broadcast %cst_1096 : f32 to vector<1x1x16x16xf32>
    %1634 = arith.mulf %1633, %1632 : vector<1x1x16x16xf32>
    %1635 = arith.addf %1631, %1634 : vector<1x1x16x16xf32>
    %c0_1097 = arith.constant 0 : index
    %c13_1098 = arith.constant 13 : index
    %c0_1099 = arith.constant 0 : index
    %c0_1100 = arith.constant 0 : index
    %1636 = vector.load %arg5[%c0_1097, %c13_1098, %c0_1099, %c0_1100] : memref<1x20x16x16xf32, #tpu.memory_space<vmem>>, vector<1x1x16x16xf32>
    %cst_1101 = arith.constant 0.0267796889 : f32
    %1637 = vector.broadcast %cst_1101 : f32 to vector<1x1x16x16xf32>
    %1638 = arith.mulf %1637, %1636 : vector<1x1x16x16xf32>
    %1639 = arith.subf %1635, %1638 : vector<1x1x16x16xf32>
    %c0_1102 = arith.constant 0 : index
    %c14_1103 = arith.constant 14 : index
    %c0_1104 = arith.constant 0 : index
    %c0_1105 = arith.constant 0 : index
    %1640 = vector.load %arg4[%c0_1102, %c14_1103, %c0_1104, %c0_1105] : memref<1x20x16x16xf32, #tpu.memory_space<vmem>>, vector<1x1x16x16xf32>
    %cst_1106 = arith.constant 0.0209741537 : f32
    %1641 = vector.broadcast %cst_1106 : f32 to vector<1x1x16x16xf32>
    %1642 = arith.mulf %1641, %1640 : vector<1x1x16x16xf32>
    %1643 = arith.addf %1639, %1642 : vector<1x1x16x16xf32>
    %c0_1107 = arith.constant 0 : index
    %c14_1108 = arith.constant 14 : index
    %c0_1109 = arith.constant 0 : index
    %c0_1110 = arith.constant 0 : index
    %1644 = vector.load %arg5[%c0_1107, %c14_1108, %c0_1109, %c0_1110] : memref<1x20x16x16xf32, #tpu.memory_space<vmem>>, vector<1x1x16x16xf32>
    %cst_1111 = arith.constant 0.0222011413 : f32
    %1645 = vector.broadcast %cst_1111 : f32 to vector<1x1x16x16xf32>
    %1646 = arith.mulf %1645, %1644 : vector<1x1x16x16xf32>
    %1647 = arith.subf %1643, %1646 : vector<1x1x16x16xf32>
    %c0_1112 = arith.constant 0 : index
    %c10_1113 = arith.constant 10 : index
    %c0_1114 = arith.constant 0 : index
    %c0_1115 = arith.constant 0 : index
    %1648 = vector.load %arg2[%c0_1112, %c10_1113, %c0_1114, %c0_1115] : memref<1x16x16x16xf32, #tpu.memory_space<vmem>>, vector<1x1x16x16xf32>
    tpu.vector_store %arg2[%c0_1112, %c10_1113, %c0_1114, %c0_1115], %1647 {strides = array<i32>} : memref<1x16x16x16xf32, #tpu.memory_space<vmem>>, vector<1x1x16x16xf32>,
    %c0_1116 = arith.constant 0 : index
    %c11_1117 = arith.constant 11 : index
    %c0_1118 = arith.constant 0 : index
    %c0_1119 = arith.constant 0 : index
    %1649 = vector.load %arg4[%c0_1116, %c11_1117, %c0_1118, %c0_1119] : memref<1x20x16x16xf32, #tpu.memory_space<vmem>>, vector<1x1x16x16xf32>
    %cst_1120 = arith.constant 0.0209741537 : f32
    %1650 = vector.broadcast %cst_1120 : f32 to vector<1x1x16x16xf32>
    %1651 = arith.mulf %1650, %1649 : vector<1x1x16x16xf32>
    %c0_1121 = arith.constant 0 : index
    %c11_1122 = arith.constant 11 : index
    %c0_1123 = arith.constant 0 : index
    %c0_1124 = arith.constant 0 : index
    %1652 = vector.load %arg5[%c0_1121, %c11_1122, %c0_1123, %c0_1124] : memref<1x20x16x16xf32, #tpu.memory_space<vmem>>, vector<1x1x16x16xf32>
    %cst_1125 = arith.constant 0.0222011413 : f32
    %1653 = vector.broadcast %cst_1125 : f32 to vector<1x1x16x16xf32>
    %1654 = arith.mulf %1653, %1652 : vector<1x1x16x16xf32>
    %1655 = arith.subf %1651, %1654 : vector<1x1x16x16xf32>
    %c0_1126 = arith.constant 0 : index
    %c12_1127 = arith.constant 12 : index
    %c0_1128 = arith.constant 0 : index
    %c0_1129 = arith.constant 0 : index
    %1656 = vector.load %arg4[%c0_1126, %c12_1127, %c0_1128, %c0_1129] : memref<1x20x16x16xf32, #tpu.memory_space<vmem>>, vector<1x1x16x16xf32>
    %cst_1130 = arith.constant 0.0444022827 : f32
    %1657 = vector.broadcast %cst_1130 : f32 to vector<1x1x16x16xf32>
    %1658 = arith.mulf %1657, %1656 : vector<1x1x16x16xf32>
    %1659 = arith.addf %1655, %1658 : vector<1x1x16x16xf32>
    %c0_1131 = arith.constant 0 : index
    %c12_1132 = arith.constant 12 : index
    %c0_1133 = arith.constant 0 : index
    %c0_1134 = arith.constant 0 : index
    %1660 = vector.load %arg5[%c0_1131, %c12_1132, %c0_1133, %c0_1134] : memref<1x20x16x16xf32, #tpu.memory_space<vmem>>, vector<1x1x16x16xf32>
    %cst_1135 = arith.constant 0.0267796889 : f32
    %1661 = vector.broadcast %cst_1135 : f32 to vector<1x1x16x16xf32>
    %1662 = arith.mulf %1661, %1660 : vector<1x1x16x16xf32>
    %1663 = arith.subf %1659, %1662 : vector<1x1x16x16xf32>
    %c0_1136 = arith.constant 0 : index
    %c13_1137 = arith.constant 13 : index
    %c0_1138 = arith.constant 0 : index
    %c0_1139 = arith.constant 0 : index
    %1664 = vector.load %arg4[%c0_1136, %c13_1137, %c0_1138, %c0_1139] : memref<1x20x16x16xf32, #tpu.memory_space<vmem>>, vector<1x1x16x16xf32>
    %cst_1140 = arith.constant 0.0570136607 : f32
    %1665 = vector.broadcast %cst_1140 : f32 to vector<1x1x16x16xf32>
    %1666 = arith.mulf %1665, %1664 : vector<1x1x16x16xf32>
    %1667 = arith.addf %1663, %1666 : vector<1x1x16x16xf32>
    %c0_1141 = arith.constant 0 : index
    %c13_1142 = arith.constant 13 : index
    %c0_1143 = arith.constant 0 : index
    %c0_1144 = arith.constant 0 : index
    %1668 = vector.load %arg5[%c0_1141, %c13_1142, %c0_1143, %c0_1144] : memref<1x20x16x16xf32, #tpu.memory_space<vmem>>, vector<1x1x16x16xf32>
    %cst_1145 = arith.constant 0.0285068303 : f32
    %1669 = vector.broadcast %cst_1145 : f32 to vector<1x1x16x16xf32>
    %1670 = arith.mulf %1669, %1668 : vector<1x1x16x16xf32>
    %1671 = arith.subf %1667, %1670 : vector<1x1x16x16xf32>
    %c0_1146 = arith.constant 0 : index
    %c14_1147 = arith.constant 14 : index
    %c0_1148 = arith.constant 0 : index
    %c0_1149 = arith.constant 0 : index
    %1672 = vector.load %arg4[%c0_1146, %c14_1147, %c0_1148, %c0_1149] : memref<1x20x16x16xf32, #tpu.memory_space<vmem>>, vector<1x1x16x16xf32>
    %cst_1150 = arith.constant 0.0444022827 : f32
    %1673 = vector.broadcast %cst_1150 : f32 to vector<1x1x16x16xf32>
    %1674 = arith.mulf %1673, %1672 : vector<1x1x16x16xf32>
    %1675 = arith.addf %1671, %1674 : vector<1x1x16x16xf32>
    %c0_1151 = arith.constant 0 : index
    %c14_1152 = arith.constant 14 : index
    %c0_1153 = arith.constant 0 : index
    %c0_1154 = arith.constant 0 : index
    %1676 = vector.load %arg5[%c0_1151, %c14_1152, %c0_1153, %c0_1154] : memref<1x20x16x16xf32, #tpu.memory_space<vmem>>, vector<1x1x16x16xf32>
    %cst_1155 = arith.constant 0.0267796889 : f32
    %1677 = vector.broadcast %cst_1155 : f32 to vector<1x1x16x16xf32>
    %1678 = arith.mulf %1677, %1676 : vector<1x1x16x16xf32>
    %1679 = arith.subf %1675, %1678 : vector<1x1x16x16xf32>
    %c0_1156 = arith.constant 0 : index
    %c15_1157 = arith.constant 15 : index
    %c0_1158 = arith.constant 0 : index
    %c0_1159 = arith.constant 0 : index
    %1680 = vector.load %arg4[%c0_1156, %c15_1157, %c0_1158, %c0_1159] : memref<1x20x16x16xf32, #tpu.memory_space<vmem>>, vector<1x1x16x16xf32>
    %cst_1160 = arith.constant 0.0209741537 : f32
    %1681 = vector.broadcast %cst_1160 : f32 to vector<1x1x16x16xf32>
    %1682 = arith.mulf %1681, %1680 : vector<1x1x16x16xf32>
    %1683 = arith.addf %1679, %1682 : vector<1x1x16x16xf32>
    %c0_1161 = arith.constant 0 : index
    %c15_1162 = arith.constant 15 : index
    %c0_1163 = arith.constant 0 : index
    %c0_1164 = arith.constant 0 : index
    %1684 = vector.load %arg5[%c0_1161, %c15_1162, %c0_1163, %c0_1164] : memref<1x20x16x16xf32, #tpu.memory_space<vmem>>, vector<1x1x16x16xf32>
    %cst_1165 = arith.constant 0.0222011413 : f32
    %1685 = vector.broadcast %cst_1165 : f32 to vector<1x1x16x16xf32>
    %1686 = arith.mulf %1685, %1684 : vector<1x1x16x16xf32>
    %1687 = arith.subf %1683, %1686 : vector<1x1x16x16xf32>
    %c0_1166 = arith.constant 0 : index
    %c11_1167 = arith.constant 11 : index
    %c0_1168 = arith.constant 0 : index
    %c0_1169 = arith.constant 0 : index
    %1688 = vector.load %arg2[%c0_1166, %c11_1167, %c0_1168, %c0_1169] : memref<1x16x16x16xf32, #tpu.memory_space<vmem>>, vector<1x1x16x16xf32>
    tpu.vector_store %arg2[%c0_1166, %c11_1167, %c0_1168, %c0_1169], %1687 {strides = array<i32>} : memref<1x16x16x16xf32, #tpu.memory_space<vmem>>, vector<1x1x16x16xf32>,
    %c0_1170 = arith.constant 0 : index
    %c12_1171 = arith.constant 12 : index
    %c0_1172 = arith.constant 0 : index
    %c0_1173 = arith.constant 0 : index
    %1689 = vector.load %arg4[%c0_1170, %c12_1171, %c0_1172, %c0_1173] : memref<1x20x16x16xf32, #tpu.memory_space<vmem>>, vector<1x1x16x16xf32>
    %cst_1174 = arith.constant 0.0209741537 : f32
    %1690 = vector.broadcast %cst_1174 : f32 to vector<1x1x16x16xf32>
    %1691 = arith.mulf %1690, %1689 : vector<1x1x16x16xf32>
    %c0_1175 = arith.constant 0 : index
    %c12_1176 = arith.constant 12 : index
    %c0_1177 = arith.constant 0 : index
    %c0_1178 = arith.constant 0 : index
    %1692 = vector.load %arg5[%c0_1175, %c12_1176, %c0_1177, %c0_1178] : memref<1x20x16x16xf32, #tpu.memory_space<vmem>>, vector<1x1x16x16xf32>
    %cst_1179 = arith.constant 0.0222011413 : f32
    %1693 = vector.broadcast %cst_1179 : f32 to vector<1x1x16x16xf32>
    %1694 = arith.mulf %1693, %1692 : vector<1x1x16x16xf32>
    %1695 = arith.subf %1691, %1694 : vector<1x1x16x16xf32>
    %c0_1180 = arith.constant 0 : index
    %c13_1181 = arith.constant 13 : index
    %c0_1182 = arith.constant 0 : index
    %c0_1183 = arith.constant 0 : index
    %1696 = vector.load %arg4[%c0_1180, %c13_1181, %c0_1182, %c0_1183] : memref<1x20x16x16xf32, #tpu.memory_space<vmem>>, vector<1x1x16x16xf32>
    %cst_1184 = arith.constant 0.0444022827 : f32
    %1697 = vector.broadcast %cst_1184 : f32 to vector<1x1x16x16xf32>
    %1698 = arith.mulf %1697, %1696 : vector<1x1x16x16xf32>
    %1699 = arith.addf %1695, %1698 : vector<1x1x16x16xf32>
    %c0_1185 = arith.constant 0 : index
    %c13_1186 = arith.constant 13 : index
    %c0_1187 = arith.constant 0 : index
    %c0_1188 = arith.constant 0 : index
    %1700 = vector.load %arg5[%c0_1185, %c13_1186, %c0_1187, %c0_1188] : memref<1x20x16x16xf32, #tpu.memory_space<vmem>>, vector<1x1x16x16xf32>
    %cst_1189 = arith.constant 0.0267796889 : f32
    %1701 = vector.broadcast %cst_1189 : f32 to vector<1x1x16x16xf32>
    %1702 = arith.mulf %1701, %1700 : vector<1x1x16x16xf32>
    %1703 = arith.subf %1699, %1702 : vector<1x1x16x16xf32>
    %c0_1190 = arith.constant 0 : index
    %c14_1191 = arith.constant 14 : index
    %c0_1192 = arith.constant 0 : index
    %c0_1193 = arith.constant 0 : index
    %1704 = vector.load %arg4[%c0_1190, %c14_1191, %c0_1192, %c0_1193] : memref<1x20x16x16xf32, #tpu.memory_space<vmem>>, vector<1x1x16x16xf32>
    %cst_1194 = arith.constant 0.0570136607 : f32
    %1705 = vector.broadcast %cst_1194 : f32 to vector<1x1x16x16xf32>
    %1706 = arith.mulf %1705, %1704 : vector<1x1x16x16xf32>
    %1707 = arith.addf %1703, %1706 : vector<1x1x16x16xf32>
    %c0_1195 = arith.constant 0 : index
    %c14_1196 = arith.constant 14 : index
    %c0_1197 = arith.constant 0 : index
    %c0_1198 = arith.constant 0 : index
    %1708 = vector.load %arg5[%c0_1195, %c14_1196, %c0_1197, %c0_1198] : memref<1x20x16x16xf32, #tpu.memory_space<vmem>>, vector<1x1x16x16xf32>
    %cst_1199 = arith.constant 0.0285068303 : f32
    %1709 = vector.broadcast %cst_1199 : f32 to vector<1x1x16x16xf32>
    %1710 = arith.mulf %1709, %1708 : vector<1x1x16x16xf32>
    %1711 = arith.subf %1707, %1710 : vector<1x1x16x16xf32>
    %c0_1200 = arith.constant 0 : index
    %c15_1201 = arith.constant 15 : index
    %c0_1202 = arith.constant 0 : index
    %c0_1203 = arith.constant 0 : index
    %1712 = vector.load %arg4[%c0_1200, %c15_1201, %c0_1202, %c0_1203] : memref<1x20x16x16xf32, #tpu.memory_space<vmem>>, vector<1x1x16x16xf32>
    %cst_1204 = arith.constant 0.0444022827 : f32
    %1713 = vector.broadcast %cst_1204 : f32 to vector<1x1x16x16xf32>
    %1714 = arith.mulf %1713, %1712 : vector<1x1x16x16xf32>
    %1715 = arith.addf %1711, %1714 : vector<1x1x16x16xf32>
    %c0_1205 = arith.constant 0 : index
    %c15_1206 = arith.constant 15 : index
    %c0_1207 = arith.constant 0 : index
    %c0_1208 = arith.constant 0 : index
    %1716 = vector.load %arg5[%c0_1205, %c15_1206, %c0_1207, %c0_1208] : memref<1x20x16x16xf32, #tpu.memory_space<vmem>>, vector<1x1x16x16xf32>
    %cst_1209 = arith.constant 0.0267796889 : f32
    %1717 = vector.broadcast %cst_1209 : f32 to vector<1x1x16x16xf32>
    %1718 = arith.mulf %1717, %1716 : vector<1x1x16x16xf32>
    %1719 = arith.subf %1715, %1718 : vector<1x1x16x16xf32>
    %c0_1210 = arith.constant 0 : index
    %c16_1211 = arith.constant 16 : index
    %c0_1212 = arith.constant 0 : index
    %c0_1213 = arith.constant 0 : index
    %1720 = vector.load %arg4[%c0_1210, %c16_1211, %c0_1212, %c0_1213] : memref<1x20x16x16xf32, #tpu.memory_space<vmem>>, vector<1x1x16x16xf32>
    %cst_1214 = arith.constant 0.0209741537 : f32
    %1721 = vector.broadcast %cst_1214 : f32 to vector<1x1x16x16xf32>
    %1722 = arith.mulf %1721, %1720 : vector<1x1x16x16xf32>
    %1723 = arith.addf %1719, %1722 : vector<1x1x16x16xf32>
    %c0_1215 = arith.constant 0 : index
    %c16_1216 = arith.constant 16 : index
    %c0_1217 = arith.constant 0 : index
    %c0_1218 = arith.constant 0 : index
    %1724 = vector.load %arg5[%c0_1215, %c16_1216, %c0_1217, %c0_1218] : memref<1x20x16x16xf32, #tpu.memory_space<vmem>>, vector<1x1x16x16xf32>
    %cst_1219 = arith.constant 0.0222011413 : f32
    %1725 = vector.broadcast %cst_1219 : f32 to vector<1x1x16x16xf32>
    %1726 = arith.mulf %1725, %1724 : vector<1x1x16x16xf32>
    %1727 = arith.subf %1723, %1726 : vector<1x1x16x16xf32>
    %c0_1220 = arith.constant 0 : index
    %c12_1221 = arith.constant 12 : index
    %c0_1222 = arith.constant 0 : index
    %c0_1223 = arith.constant 0 : index
    %1728 = vector.load %arg2[%c0_1220, %c12_1221, %c0_1222, %c0_1223] : memref<1x16x16x16xf32, #tpu.memory_space<vmem>>, vector<1x1x16x16xf32>
    tpu.vector_store %arg2[%c0_1220, %c12_1221, %c0_1222, %c0_1223], %1727 {strides = array<i32>} : memref<1x16x16x16xf32, #tpu.memory_space<vmem>>, vector<1x1x16x16xf32>,
    %c0_1224 = arith.constant 0 : index
    %c13_1225 = arith.constant 13 : index
    %c0_1226 = arith.constant 0 : index
    %c0_1227 = arith.constant 0 : index
    %1729 = vector.load %arg4[%c0_1224, %c13_1225, %c0_1226, %c0_1227] : memref<1x20x16x16xf32, #tpu.memory_space<vmem>>, vector<1x1x16x16xf32>
    %cst_1228 = arith.constant 0.0209741537 : f32
    %1730 = vector.broadcast %cst_1228 : f32 to vector<1x1x16x16xf32>
    %1731 = arith.mulf %1730, %1729 : vector<1x1x16x16xf32>
    %c0_1229 = arith.constant 0 : index
    %c13_1230 = arith.constant 13 : index
    %c0_1231 = arith.constant 0 : index
    %c0_1232 = arith.constant 0 : index
    %1732 = vector.load %arg5[%c0_1229, %c13_1230, %c0_1231, %c0_1232] : memref<1x20x16x16xf32, #tpu.memory_space<vmem>>, vector<1x1x16x16xf32>
    %cst_1233 = arith.constant 0.0222011413 : f32
    %1733 = vector.broadcast %cst_1233 : f32 to vector<1x1x16x16xf32>
    %1734 = arith.mulf %1733, %1732 : vector<1x1x16x16xf32>
    %1735 = arith.subf %1731, %1734 : vector<1x1x16x16xf32>
    %c0_1234 = arith.constant 0 : index
    %c14_1235 = arith.constant 14 : index
    %c0_1236 = arith.constant 0 : index
    %c0_1237 = arith.constant 0 : index
    %1736 = vector.load %arg4[%c0_1234, %c14_1235, %c0_1236, %c0_1237] : memref<1x20x16x16xf32, #tpu.memory_space<vmem>>, vector<1x1x16x16xf32>
    %cst_1238 = arith.constant 0.0444022827 : f32
    %1737 = vector.broadcast %cst_1238 : f32 to vector<1x1x16x16xf32>
    %1738 = arith.mulf %1737, %1736 : vector<1x1x16x16xf32>
    %1739 = arith.addf %1735, %1738 : vector<1x1x16x16xf32>
    %c0_1239 = arith.constant 0 : index
    %c14_1240 = arith.constant 14 : index
    %c0_1241 = arith.constant 0 : index
    %c0_1242 = arith.constant 0 : index
    %1740 = vector.load %arg5[%c0_1239, %c14_1240, %c0_1241, %c0_1242] : memref<1x20x16x16xf32, #tpu.memory_space<vmem>>, vector<1x1x16x16xf32>
    %cst_1243 = arith.constant 0.0267796889 : f32
    %1741 = vector.broadcast %cst_1243 : f32 to vector<1x1x16x16xf32>
    %1742 = arith.mulf %1741, %1740 : vector<1x1x16x16xf32>
    %1743 = arith.subf %1739, %1742 : vector<1x1x16x16xf32>
    %c0_1244 = arith.constant 0 : index
    %c15_1245 = arith.constant 15 : index
    %c0_1246 = arith.constant 0 : index
    %c0_1247 = arith.constant 0 : index
    %1744 = vector.load %arg4[%c0_1244, %c15_1245, %c0_1246, %c0_1247] : memref<1x20x16x16xf32, #tpu.memory_space<vmem>>, vector<1x1x16x16xf32>
    %cst_1248 = arith.constant 0.0570136607 : f32
    %1745 = vector.broadcast %cst_1248 : f32 to vector<1x1x16x16xf32>
    %1746 = arith.mulf %1745, %1744 : vector<1x1x16x16xf32>
    %1747 = arith.addf %1743, %1746 : vector<1x1x16x16xf32>
    %c0_1249 = arith.constant 0 : index
    %c15_1250 = arith.constant 15 : index
    %c0_1251 = arith.constant 0 : index
    %c0_1252 = arith.constant 0 : index
    %1748 = vector.load %arg5[%c0_1249, %c15_1250, %c0_1251, %c0_1252] : memref<1x20x16x16xf32, #tpu.memory_space<vmem>>, vector<1x1x16x16xf32>
    %cst_1253 = arith.constant 0.0285068303 : f32
    %1749 = vector.broadcast %cst_1253 : f32 to vector<1x1x16x16xf32>
    %1750 = arith.mulf %1749, %1748 : vector<1x1x16x16xf32>
    %1751 = arith.subf %1747, %1750 : vector<1x1x16x16xf32>
    %c0_1254 = arith.constant 0 : index
    %c16_1255 = arith.constant 16 : index
    %c0_1256 = arith.constant 0 : index
    %c0_1257 = arith.constant 0 : index
    %1752 = vector.load %arg4[%c0_1254, %c16_1255, %c0_1256, %c0_1257] : memref<1x20x16x16xf32, #tpu.memory_space<vmem>>, vector<1x1x16x16xf32>
    %cst_1258 = arith.constant 0.0444022827 : f32
    %1753 = vector.broadcast %cst_1258 : f32 to vector<1x1x16x16xf32>
    %1754 = arith.mulf %1753, %1752 : vector<1x1x16x16xf32>
    %1755 = arith.addf %1751, %1754 : vector<1x1x16x16xf32>
    %c0_1259 = arith.constant 0 : index
    %c16_1260 = arith.constant 16 : index
    %c0_1261 = arith.constant 0 : index
    %c0_1262 = arith.constant 0 : index
    %1756 = vector.load %arg5[%c0_1259, %c16_1260, %c0_1261, %c0_1262] : memref<1x20x16x16xf32, #tpu.memory_space<vmem>>, vector<1x1x16x16xf32>
    %cst_1263 = arith.constant 0.0267796889 : f32
    %1757 = vector.broadcast %cst_1263 : f32 to vector<1x1x16x16xf32>
    %1758 = arith.mulf %1757, %1756 : vector<1x1x16x16xf32>
    %1759 = arith.subf %1755, %1758 : vector<1x1x16x16xf32>
    %c0_1264 = arith.constant 0 : index
    %c17_1265 = arith.constant 17 : index
    %c0_1266 = arith.constant 0 : index
    %c0_1267 = arith.constant 0 : index
    %1760 = vector.load %arg4[%c0_1264, %c17_1265, %c0_1266, %c0_1267] : memref<1x20x16x16xf32, #tpu.memory_space<vmem>>, vector<1x1x16x16xf32>
    %cst_1268 = arith.constant 0.0209741537 : f32
    %1761 = vector.broadcast %cst_1268 : f32 to vector<1x1x16x16xf32>
    %1762 = arith.mulf %1761, %1760 : vector<1x1x16x16xf32>
    %1763 = arith.addf %1759, %1762 : vector<1x1x16x16xf32>
    %c0_1269 = arith.constant 0 : index
    %c17_1270 = arith.constant 17 : index
    %c0_1271 = arith.constant 0 : index
    %c0_1272 = arith.constant 0 : index
    %1764 = vector.load %arg5[%c0_1269, %c17_1270, %c0_1271, %c0_1272] : memref<1x20x16x16xf32, #tpu.memory_space<vmem>>, vector<1x1x16x16xf32>
    %cst_1273 = arith.constant 0.0222011413 : f32
    %1765 = vector.broadcast %cst_1273 : f32 to vector<1x1x16x16xf32>
    %1766 = arith.mulf %1765, %1764 : vector<1x1x16x16xf32>
    %1767 = arith.subf %1763, %1766 : vector<1x1x16x16xf32>
    %c0_1274 = arith.constant 0 : index
    %c13_1275 = arith.constant 13 : index
    %c0_1276 = arith.constant 0 : index
    %c0_1277 = arith.constant 0 : index
    %1768 = vector.load %arg2[%c0_1274, %c13_1275, %c0_1276, %c0_1277] : memref<1x16x16x16xf32, #tpu.memory_space<vmem>>, vector<1x1x16x16xf32>
    tpu.vector_store %arg2[%c0_1274, %c13_1275, %c0_1276, %c0_1277], %1767 {strides = array<i32>} : memref<1x16x16x16xf32, #tpu.memory_space<vmem>>, vector<1x1x16x16xf32>,
    %c0_1278 = arith.constant 0 : index
    %c14_1279 = arith.constant 14 : index
    %c0_1280 = arith.constant 0 : index
    %c0_1281 = arith.constant 0 : index
    %1769 = vector.load %arg4[%c0_1278, %c14_1279, %c0_1280, %c0_1281] : memref<1x20x16x16xf32, #tpu.memory_space<vmem>>, vector<1x1x16x16xf32>
    %cst_1282 = arith.constant 0.0209741537 : f32
    %1770 = vector.broadcast %cst_1282 : f32 to vector<1x1x16x16xf32>
    %1771 = arith.mulf %1770, %1769 : vector<1x1x16x16xf32>
    %c0_1283 = arith.constant 0 : index
    %c14_1284 = arith.constant 14 : index
    %c0_1285 = arith.constant 0 : index
    %c0_1286 = arith.constant 0 : index
    %1772 = vector.load %arg5[%c0_1283, %c14_1284, %c0_1285, %c0_1286] : memref<1x20x16x16xf32, #tpu.memory_space<vmem>>, vector<1x1x16x16xf32>
    %cst_1287 = arith.constant 0.0222011413 : f32
    %1773 = vector.broadcast %cst_1287 : f32 to vector<1x1x16x16xf32>
    %1774 = arith.mulf %1773, %1772 : vector<1x1x16x16xf32>
    %1775 = arith.subf %1771, %1774 : vector<1x1x16x16xf32>
    %c0_1288 = arith.constant 0 : index
    %c15_1289 = arith.constant 15 : index
    %c0_1290 = arith.constant 0 : index
    %c0_1291 = arith.constant 0 : index
    %1776 = vector.load %arg4[%c0_1288, %c15_1289, %c0_1290, %c0_1291] : memref<1x20x16x16xf32, #tpu.memory_space<vmem>>, vector<1x1x16x16xf32>
    %cst_1292 = arith.constant 0.0444022827 : f32
    %1777 = vector.broadcast %cst_1292 : f32 to vector<1x1x16x16xf32>
    %1778 = arith.mulf %1777, %1776 : vector<1x1x16x16xf32>
    %1779 = arith.addf %1775, %1778 : vector<1x1x16x16xf32>
    %c0_1293 = arith.constant 0 : index
    %c15_1294 = arith.constant 15 : index
    %c0_1295 = arith.constant 0 : index
    %c0_1296 = arith.constant 0 : index
    %1780 = vector.load %arg5[%c0_1293, %c15_1294, %c0_1295, %c0_1296] : memref<1x20x16x16xf32, #tpu.memory_space<vmem>>, vector<1x1x16x16xf32>
    %cst_1297 = arith.constant 0.0267796889 : f32
    %1781 = vector.broadcast %cst_1297 : f32 to vector<1x1x16x16xf32>
    %1782 = arith.mulf %1781, %1780 : vector<1x1x16x16xf32>
    %1783 = arith.subf %1779, %1782 : vector<1x1x16x16xf32>
    %c0_1298 = arith.constant 0 : index
    %c16_1299 = arith.constant 16 : index
    %c0_1300 = arith.constant 0 : index
    %c0_1301 = arith.constant 0 : index
    %1784 = vector.load %arg4[%c0_1298, %c16_1299, %c0_1300, %c0_1301] : memref<1x20x16x16xf32, #tpu.memory_space<vmem>>, vector<1x1x16x16xf32>
    %cst_1302 = arith.constant 0.0570136607 : f32
    %1785 = vector.broadcast %cst_1302 : f32 to vector<1x1x16x16xf32>
    %1786 = arith.mulf %1785, %1784 : vector<1x1x16x16xf32>
    %1787 = arith.addf %1783, %1786 : vector<1x1x16x16xf32>
    %c0_1303 = arith.constant 0 : index
    %c16_1304 = arith.constant 16 : index
    %c0_1305 = arith.constant 0 : index
    %c0_1306 = arith.constant 0 : index
    %1788 = vector.load %arg5[%c0_1303, %c16_1304, %c0_1305, %c0_1306] : memref<1x20x16x16xf32, #tpu.memory_space<vmem>>, vector<1x1x16x16xf32>
    %cst_1307 = arith.constant 0.0285068303 : f32
    %1789 = vector.broadcast %cst_1307 : f32 to vector<1x1x16x16xf32>
    %1790 = arith.mulf %1789, %1788 : vector<1x1x16x16xf32>
    %1791 = arith.subf %1787, %1790 : vector<1x1x16x16xf32>
    %c0_1308 = arith.constant 0 : index
    %c17_1309 = arith.constant 17 : index
    %c0_1310 = arith.constant 0 : index
    %c0_1311 = arith.constant 0 : index
    %1792 = vector.load %arg4[%c0_1308, %c17_1309, %c0_1310, %c0_1311] : memref<1x20x16x16xf32, #tpu.memory_space<vmem>>, vector<1x1x16x16xf32>
    %cst_1312 = arith.constant 0.0444022827 : f32
    %1793 = vector.broadcast %cst_1312 : f32 to vector<1x1x16x16xf32>
    %1794 = arith.mulf %1793, %1792 : vector<1x1x16x16xf32>
    %1795 = arith.addf %1791, %1794 : vector<1x1x16x16xf32>
    %c0_1313 = arith.constant 0 : index
    %c17_1314 = arith.constant 17 : index
    %c0_1315 = arith.constant 0 : index
    %c0_1316 = arith.constant 0 : index
    %1796 = vector.load %arg5[%c0_1313, %c17_1314, %c0_1315, %c0_1316] : memref<1x20x16x16xf32, #tpu.memory_space<vmem>>, vector<1x1x16x16xf32>
    %cst_1317 = arith.constant 0.0267796889 : f32
    %1797 = vector.broadcast %cst_1317 : f32 to vector<1x1x16x16xf32>
    %1798 = arith.mulf %1797, %1796 : vector<1x1x16x16xf32>
    %1799 = arith.subf %1795, %1798 : vector<1x1x16x16xf32>
    %c0_1318 = arith.constant 0 : index
    %c18_1319 = arith.constant 18 : index
    %c0_1320 = arith.constant 0 : index
    %c0_1321 = arith.constant 0 : index
    %1800 = vector.load %arg4[%c0_1318, %c18_1319, %c0_1320, %c0_1321] : memref<1x20x16x16xf32, #tpu.memory_space<vmem>>, vector<1x1x16x16xf32>
    %cst_1322 = arith.constant 0.0209741537 : f32
    %1801 = vector.broadcast %cst_1322 : f32 to vector<1x1x16x16xf32>
    %1802 = arith.mulf %1801, %1800 : vector<1x1x16x16xf32>
    %1803 = arith.addf %1799, %1802 : vector<1x1x16x16xf32>
    %c0_1323 = arith.constant 0 : index
    %c18_1324 = arith.constant 18 : index
    %c0_1325 = arith.constant 0 : index
    %c0_1326 = arith.constant 0 : index
    %1804 = vector.load %arg5[%c0_1323, %c18_1324, %c0_1325, %c0_1326] : memref<1x20x16x16xf32, #tpu.memory_space<vmem>>, vector<1x1x16x16xf32>
    %cst_1327 = arith.constant 0.0222011413 : f32
    %1805 = vector.broadcast %cst_1327 : f32 to vector<1x1x16x16xf32>
    %1806 = arith.mulf %1805, %1804 : vector<1x1x16x16xf32>
    %1807 = arith.subf %1803, %1806 : vector<1x1x16x16xf32>
    %c0_1328 = arith.constant 0 : index
    %c14_1329 = arith.constant 14 : index
    %c0_1330 = arith.constant 0 : index
    %c0_1331 = arith.constant 0 : index
    %1808 = vector.load %arg2[%c0_1328, %c14_1329, %c0_1330, %c0_1331] : memref<1x16x16x16xf32, #tpu.memory_space<vmem>>, vector<1x1x16x16xf32>
    tpu.vector_store %arg2[%c0_1328, %c14_1329, %c0_1330, %c0_1331], %1807 {strides = array<i32>} : memref<1x16x16x16xf32, #tpu.memory_space<vmem>>, vector<1x1x16x16xf32>,
    %c0_1332 = arith.constant 0 : index
    %c15_1333 = arith.constant 15 : index
    %c0_1334 = arith.constant 0 : index
    %c0_1335 = arith.constant 0 : index
    %1809 = vector.load %arg4[%c0_1332, %c15_1333, %c0_1334, %c0_1335] : memref<1x20x16x16xf32, #tpu.memory_space<vmem>>, vector<1x1x16x16xf32>
    %cst_1336 = arith.constant 0.0209741537 : f32
    %1810 = vector.broadcast %cst_1336 : f32 to vector<1x1x16x16xf32>
    %1811 = arith.mulf %1810, %1809 : vector<1x1x16x16xf32>
    %c0_1337 = arith.constant 0 : index
    %c15_1338 = arith.constant 15 : index
    %c0_1339 = arith.constant 0 : index
    %c0_1340 = arith.constant 0 : index
    %1812 = vector.load %arg5[%c0_1337, %c15_1338, %c0_1339, %c0_1340] : memref<1x20x16x16xf32, #tpu.memory_space<vmem>>, vector<1x1x16x16xf32>
    %cst_1341 = arith.constant 0.0222011413 : f32
    %1813 = vector.broadcast %cst_1341 : f32 to vector<1x1x16x16xf32>
    %1814 = arith.mulf %1813, %1812 : vector<1x1x16x16xf32>
    %1815 = arith.subf %1811, %1814 : vector<1x1x16x16xf32>
    %c0_1342 = arith.constant 0 : index
    %c16_1343 = arith.constant 16 : index
    %c0_1344 = arith.constant 0 : index
    %c0_1345 = arith.constant 0 : index
    %1816 = vector.load %arg4[%c0_1342, %c16_1343, %c0_1344, %c0_1345] : memref<1x20x16x16xf32, #tpu.memory_space<vmem>>, vector<1x1x16x16xf32>
    %cst_1346 = arith.constant 0.0444022827 : f32
    %1817 = vector.broadcast %cst_1346 : f32 to vector<1x1x16x16xf32>
    %1818 = arith.mulf %1817, %1816 : vector<1x1x16x16xf32>
    %1819 = arith.addf %1815, %1818 : vector<1x1x16x16xf32>
    %c0_1347 = arith.constant 0 : index
    %c16_1348 = arith.constant 16 : index
    %c0_1349 = arith.constant 0 : index
    %c0_1350 = arith.constant 0 : index
    %1820 = vector.load %arg5[%c0_1347, %c16_1348, %c0_1349, %c0_1350] : memref<1x20x16x16xf32, #tpu.memory_space<vmem>>, vector<1x1x16x16xf32>
    %cst_1351 = arith.constant 0.0267796889 : f32
    %1821 = vector.broadcast %cst_1351 : f32 to vector<1x1x16x16xf32>
    %1822 = arith.mulf %1821, %1820 : vector<1x1x16x16xf32>
    %1823 = arith.subf %1819, %1822 : vector<1x1x16x16xf32>
    %c0_1352 = arith.constant 0 : index
    %c17_1353 = arith.constant 17 : index
    %c0_1354 = arith.constant 0 : index
    %c0_1355 = arith.constant 0 : index
    %1824 = vector.load %arg4[%c0_1352, %c17_1353, %c0_1354, %c0_1355] : memref<1x20x16x16xf32, #tpu.memory_space<vmem>>, vector<1x1x16x16xf32>
    %cst_1356 = arith.constant 0.0570136607 : f32
    %1825 = vector.broadcast %cst_1356 : f32 to vector<1x1x16x16xf32>
    %1826 = arith.mulf %1825, %1824 : vector<1x1x16x16xf32>
    %1827 = arith.addf %1823, %1826 : vector<1x1x16x16xf32>
    %c0_1357 = arith.constant 0 : index
    %c17_1358 = arith.constant 17 : index
    %c0_1359 = arith.constant 0 : index
    %c0_1360 = arith.constant 0 : index
    %1828 = vector.load %arg5[%c0_1357, %c17_1358, %c0_1359, %c0_1360] : memref<1x20x16x16xf32, #tpu.memory_space<vmem>>, vector<1x1x16x16xf32>
    %cst_1361 = arith.constant 0.0285068303 : f32
    %1829 = vector.broadcast %cst_1361 : f32 to vector<1x1x16x16xf32>
    %1830 = arith.mulf %1829, %1828 : vector<1x1x16x16xf32>
    %1831 = arith.subf %1827, %1830 : vector<1x1x16x16xf32>
    %c0_1362 = arith.constant 0 : index
    %c18_1363 = arith.constant 18 : index
    %c0_1364 = arith.constant 0 : index
    %c0_1365 = arith.constant 0 : index
    %1832 = vector.load %arg4[%c0_1362, %c18_1363, %c0_1364, %c0_1365] : memref<1x20x16x16xf32, #tpu.memory_space<vmem>>, vector<1x1x16x16xf32>
    %cst_1366 = arith.constant 0.0444022827 : f32
    %1833 = vector.broadcast %cst_1366 : f32 to vector<1x1x16x16xf32>
    %1834 = arith.mulf %1833, %1832 : vector<1x1x16x16xf32>
    %1835 = arith.addf %1831, %1834 : vector<1x1x16x16xf32>
    %c0_1367 = arith.constant 0 : index
    %c18_1368 = arith.constant 18 : index
    %c0_1369 = arith.constant 0 : index
    %c0_1370 = arith.constant 0 : index
    %1836 = vector.load %arg5[%c0_1367, %c18_1368, %c0_1369, %c0_1370] : memref<1x20x16x16xf32, #tpu.memory_space<vmem>>, vector<1x1x16x16xf32>
    %cst_1371 = arith.constant 0.0267796889 : f32
    %1837 = vector.broadcast %cst_1371 : f32 to vector<1x1x16x16xf32>
    %1838 = arith.mulf %1837, %1836 : vector<1x1x16x16xf32>
    %1839 = arith.subf %1835, %1838 : vector<1x1x16x16xf32>
    %c0_1372 = arith.constant 0 : index
    %c19 = arith.constant 19 : index
    %c0_1373 = arith.constant 0 : index
    %c0_1374 = arith.constant 0 : index
    %1840 = vector.load %arg4[%c0_1372, %c19, %c0_1373, %c0_1374] : memref<1x20x16x16xf32, #tpu.memory_space<vmem>>, vector<1x1x16x16xf32>
    %cst_1375 = arith.constant 0.0209741537 : f32
    %1841 = vector.broadcast %cst_1375 : f32 to vector<1x1x16x16xf32>
    %1842 = arith.mulf %1841, %1840 : vector<1x1x16x16xf32>
    %1843 = arith.addf %1839, %1842 : vector<1x1x16x16xf32>
    %c0_1376 = arith.constant 0 : index
    %c19_1377 = arith.constant 19 : index
    %c0_1378 = arith.constant 0 : index
    %c0_1379 = arith.constant 0 : index
    %1844 = vector.load %arg5[%c0_1376, %c19_1377, %c0_1378, %c0_1379] : memref<1x20x16x16xf32, #tpu.memory_space<vmem>>, vector<1x1x16x16xf32>
    %cst_1380 = arith.constant 0.0222011413 : f32
    %1845 = vector.broadcast %cst_1380 : f32 to vector<1x1x16x16xf32>
    %1846 = arith.mulf %1845, %1844 : vector<1x1x16x16xf32>
    %1847 = arith.subf %1843, %1846 : vector<1x1x16x16xf32>
    %c0_1381 = arith.constant 0 : index
    %c15_1382 = arith.constant 15 : index
    %c0_1383 = arith.constant 0 : index
    %c0_1384 = arith.constant 0 : index
    %1848 = vector.load %arg2[%c0_1381, %c15_1382, %c0_1383, %c0_1384] : memref<1x16x16x16xf32, #tpu.memory_space<vmem>>, vector<1x1x16x16xf32>
    tpu.vector_store %arg2[%c0_1381, %c15_1382, %c0_1383, %c0_1384], %1847 {strides = array<i32>} : memref<1x16x16x16xf32, #tpu.memory_space<vmem>>, vector<1x1x16x16xf32>,
    return
  }
  func.func @transform_0(%arg0: i32) -> (i32, i32, i32, i32) {
    %c0_i32 = arith.constant 0 : i32
    %c0_i32_0 = arith.constant 0 : i32
    %c0_i32_1 = arith.constant 0 : i32
    %c0_i32_2 = arith.constant 0 : i32
    return %arg0, %c0_i32, %c0_i32_0, %c0_i32_1 : i32, i32, i32, i32
  }
  func.func @transform_1(%arg0: i32) -> (i32, i32, i32, i32) {
    %c0_i32 = arith.constant 0 : i32
    %c0_i32_0 = arith.constant 0 : i32
    %c0_i32_1 = arith.constant 0 : i32
    %c0_i32_2 = arith.constant 0 : i32
    return %arg0, %c0_i32, %c0_i32_0, %c0_i32_1 : i32, i32, i32, i32
  }
}

</mosaic_0001>

<bundles_post_ra>
// kernel: tpu_custom_call.1
= control target key start
LH: loop header
LB: loop body
LE: loop exit
PB: predicated region body
PF: predicated region fallthrough
CT: control target
= control target key end

     0   :  { %6 = vsyncpa [#allocation6], 0  ;;  %s8865_s0 = inlined_call_operand.hbm [shape: f32[2,16,16,16], index: 0, kind: input, shape index: {}]   ;;  %s8866_s1 = inlined_call_operand.hbm [shape: f32[2,16,16,16], index: 1, kind: output, shape index: {}]  }
   0x1   :  { %8 = vsyncpa [#allocation6 + $0x1], 0 }
   0x2   :  { %9 = vsyncpa [#allocation7], 0 }
   0x3   :  { %11 = vsyncpa [#allocation7 + $0x1], 0  ;;  %s5214_s6 = smov 0   ;;  %s5216_s7 = smov 0  }
   0x4   :  { %s5218_s8 = smov 0   ;;  %s5220_s9 = smov 0  }
   0x5 LB: > { %s5235_s10 = sadd.s32 4294967295, %s5192_s9   ;;  %s4990_s11 = sadd.s32 4294967294, %s5192_s9   ;;  %s5192_s9 = sphi %s5220_s9, %s9101_s9   ;;  %s5188_s8 = sphi %s5218_s8, %s9100_s8   ;;  %s5184_s7 = sphi %s5216_s7, %s9099_s7   ;;  %s5180_s6 = sphi %s5214_s6, %s9098_s6  }
   0x6   : > { %s5239_s12 = sadd.s32 1, %s5192_s9   ;;  %s24_s13 = sadd.s32 1, %s5188_s8 }
   0x7   : > { %s21_s14 = ssub.s32 %s5192_s9, %s5239_s12  ;;  %p31_p0 = scmp.ne.s32.totalorder %s5188_s8, %s5184_s7 }
   0x8   : > { %p22_p1 = scmp.eq.s32.totalorder %s21_s14, 0  ;;  %p32_p2 = scmp.eq.s32.totalorder %s5192_s9, 0 }
   0x9   : > { %p37_p3 = scmp.ne.s32.totalorder %s5184_s7, %s5180_s6  ;;  %p38_p4 = scmp.eq.s32.totalorder %s5235_s10, 0 }
   0xa   : > { %s5251_s15 = scalar_select %p22_p1, %s5188_s8, %s24_s13  }
   0xb   : > { %p5253_p5 = por %p32_p2, %p31_p0  ;;  %p5257_p6 = por %p38_p4, %p37_p3 }
   0xc   : > { %p61_p7 = scmp.eq.s32.totalorder %s5235_s10, 1  ;;  %p67_p8 = scmp.eq.s32.totalorder %s4990_s11, 1 }
   0xd   : > { %p5048_p10 = scmp.lt.s32.totalorder %s5192_s9, 2  ;;  %s87_s20 = sand.u32 1, %s5188_s8  }
   0xe   : > { %p5264_p11 = por %p61_p7, %p31_p0  ;;  %p5268_p12 = por %p67_p8, %p37_p3 }
   0xf   : > { %s5034_s21 = sshll.u32 %s5192_s9, 8  ;;  %s4993_s22 = sshll.u32 %s87_s20, 8 }
  0x10   : > { %s96_s25 = scalar_lea.hbm %s8865_s0, %s5034_s21  ;;  %s91_s27 = scalar_lea.vmem [#allocation5], %s4993_s22 }
  0x11   : > { %s97_s26 = sshll.u32 %s96_s25, 4  ;;  %s99_s28 = sshll.u32 %s91_s27, 4  ;;  %s98_s26 = int_to_ptr.hbm [resolvable:$true] %s97_s26  ;;  %s100_s28 = int_to_ptr.vmem [resolvable:$true] %s99_s28 }
  0x12   : > { %p5279_p13 = pnand %p5048_p10, %p5253_p5  ;;  %p4996_p0 = scmp.ge.s32.totalorder %s5192_s9, 1 }
  0x13   : > { %p107_p1 = scmp.lt.s32.totalorder %s5192_s9, 3  ;;  %s88_s30 = scalar_lea.sflag [#allocation6], %s87_s20 }
  0x14   : > { %s5096_s2 = sshra.s32 %s98_s26, 4  ;;  %p5100_p3 = pneg %p5279_p13  ;;  %s5097_s2 = int_to_ptr.hbm [resolvable:$true] %s5096_s2 }
  0x15   : > { %s5098_s3 = scalar_lea.hbm %s5097_s2, 256  ;;  %s5103_s11 = scalar_lea.hbm %s8865_s0, 512 }
  0x16   : > { %p5099_p2 = scmp.ne.s32.totalorder %s5097_s2, %s5098_s3  ;;  %p5104_p5 = scmp.lt.s32.totalorder %s5097_s2, %s8865_s0 }
  0x17   : > { %p5105_p8 = scmp.lt.s32.totalorder %s5103_s11, %s5098_s3 }
  0x18   : > { %p5101_p4 = pnand %p5100_p3, %p5099_p2 }
  0x19   : > { %p5106_p10 = por %p5105_p8, %p5104_p5 }
  0x1a   : > { %p5102_p7 = pneg %p5101_p4 }
  0x1c   : > { %p5107_p9 = pnand %p5106_p10, %p5102_p7 }
  0x1e   : > { %5110 = shalt.err (!%p5107_p9)
}
  0x1f   : > { %s5194_s16 = smov 128   ;;  %s5195_s20 = smov 8  }
  0x20   : > { %5043 = dma.hbm_to_vmem [thread:$0]  (!%p5279_p13), %s98_s26, 4096, %s100_s28, %s88_s30, %s5194_s16, %s5194_s16, %s5195_s20  }
  0x21   : > { %p108_p2 = pnand %p4996_p0, %p107_p1 }
  0x23   : > { %111 = sbr.rel (%p108_p2) target bundleno = 1221 (0x4c5), region = 24 }
  0x28   : > { %s5300_s21 = sand.u32 1, %s5184_s7  }
  0x29   : > { %s4997_s22 = sshll.u32 %s5300_s21, 8  ;;  %s114_s23 = scalar_lea.sflag [#allocation6], %s5300_s21 }
  0x2a   : > { %s5306_s24 = scalar_lea.vmem [#allocation5], %s4997_s22 }
  0x2b   : > { %5171 = dma.done.wait (%p5257_p6), %s114_s23, 4096  }
  0x2c   : > { %5173 = vsyncadd (%p5257_p6), %s114_s23, 4294963200  ;;  %v187_v0 = vld [vmem:[%s5306_s24] sm:$0xff]  ;;  %v189_v1 = vld [vmem:[%s5306_s24 + $0x10] sm:$0xff]  ;;  %s5196_s25 = smov 2   ;;  %vm137_vm0 = vcmask 162816   ;;  %v5197_v15 = vmov 0.0  }
  0x2d   : > { %251 = vrot.lane.b32.xlu0 %v187_v0, %s5196_s25  ;;  %255 = vrot.lane.b32.xlu1 %v189_v1, %s5196_s25  ;;  %v191_v2 = vld [vmem:[%s5306_s24 + $0x20] sm:$0xff]  ;;  %v188_v3 = vld [vmem:[%s5306_s24 + $0x8] sm:$0xff]  ;;  %138 = vst.msk [vmem:[#allocation2] sm:$0xff] %vm137_vm0, %v5197_v15  ;;  %vm140_vm1 = vcmask 158720   ;;  %vm347_vm2 = vcmask 146448   ;;  %s5198_s17 = smov 126  }
  0x2e   : > { %259 = vrot.lane.b32.xlu2 %v191_v2, %s5196_s25  ;;  %v190_v4 = vld [vmem:[%s5306_s24 + $0x18] sm:$0xff]  ;;  %v192_v5 = vld [vmem:[%s5306_s24 + $0x28] sm:$0xff]  ;;  %v193_v7 = vld [vmem:[%s5306_s24 + $0x30] sm:$0xff]  ;;  %139 = vst.msk [vmem:[#allocation2 + $0x8] sm:$0xff] %vm137_vm0, %v5197_v15  ;;  %s5199_s26 = smov 127   ;;  %s5200_s27 = smov 125  }
  0x2f   : > { %v194_v6 = vld [vmem:[%s5306_s24 + $0x38] sm:$0xff]  ;;  %v195_v8 = vld [vmem:[%s5306_s24 + $0x40] sm:$0xff]  ;;  %v197_v9 = vld [vmem:[%s5306_s24 + $0x50] sm:$0xff]  ;;  %142 = vst.msk [vmem:[#allocation2 + $0x18] sm:$0xff] %vm137_vm0, %v5197_v15  ;;  %s5201_s28 = smov 124   ;;  %vm380_vm3 = vcmask 130048  }
  0x30   : > { %v196_v10 = vld [vmem:[%s5306_s24 + $0x48] sm:$0xff]  ;;  %v198_v11 = vld [vmem:[%s5306_s24 + $0x58] sm:$0xff]  ;;  %v199_v13 = vld [vmem:[%s5306_s24 + $0x60] sm:$0xff]  ;;  %143 = vst.msk [vmem:[#allocation2 + $0x20] sm:$0xff] %vm137_vm0, %v5197_v15  ;;  %vm520_vm4 = vcmask 1046528   ;;  %vm548_vm5 = vcmask 1045504  }
  0x31   : > { %v200_v12 = vld [vmem:[%s5306_s24 + $0x68] sm:$0xff]  ;;  %v201_v14 = vld [vmem:[%s5306_s24 + $0x70] sm:$0xff]  ;;  %v203_v16 = vld [vmem:[%s5306_s24 + $0x80] sm:$0xff]  ;;  %145 = vst.msk [vmem:[#allocation2 + $0x30] sm:$0xff] %vm137_vm0, %v5197_v15  ;;  %vm570_vm6 = vcmask 1044480   ;;  %vm593_vm7 = vcmask 1043456  }
  0x32   : > { %v202_v17 = vld [vmem:[%s5306_s24 + $0x78] sm:$0xff]  ;;  %v204_v18 = vld [vmem:[%s5306_s24 + $0x88] sm:$0xff]  ;;  %146 = vst.msk [vmem:[#allocation2 + $0x38] sm:$0xff] %vm137_vm0, %v5197_v15  ;;  %v205_v20 = vld [vmem:[%s5306_s24 + $0x90] sm:$0xff]  ;;  %s6256_s29 = scalar_lea.vmem [#allocation8], %s4997_s22  ;;  %s5035_s30 = sshll.u32 %s5235_s10, 8 }
  0x33   : > { %148 = vst.msk [vmem:[#allocation2 + $0x48] sm:$0xff] %vm137_vm0, %v5197_v15  ;;  %v206_v19 = vld [vmem:[%s5306_s24 + $0x98] sm:$0xff]  ;;  %v207_v21 = vld [vmem:[%s5306_s24 + $0xa0] sm:$0xff]  ;;  %v209_v22 = vld [vmem:[%s5306_s24 + $0xb0] sm:$0xff]  ;;  %s4913_s3 = scalar_lea.hbm %s8866_s1, %s5035_s30  ;;  %s4914_s4 = sshll.u32 %s6256_s29, 4  ;;  %s4915_s4 = int_to_ptr.vmem [resolvable:$true] %s4914_s4 }
  0x34   : > { %149 = vst.msk [vmem:[#allocation2 + $0x50] sm:$0xff] %vm137_vm0, %v5197_v15  ;;  %v208_v23 = vld [vmem:[%s5306_s24 + $0xa8] sm:$0xff]  ;;  %v210_v24 = vld [vmem:[%s5306_s24 + $0xb8] sm:$0xff]  ;;  %v211_v26 = vld [vmem:[%s5306_s24 + $0xc0] sm:$0xff]  ;;  %s4916_s5 = sshll.u32 %s4913_s3, 4  ;;  %s4902_s11 = scalar_lea.sflag [#allocation7], %s5300_s21  ;;  %s4917_s5 = int_to_ptr.hbm [resolvable:$true] %s4916_s5 }
  0x35   : > { %253 = vrot.lane.b32.xlu0 %v188_v3, %s5196_s25  ;;  %257 = vrot.lane.b32.xlu1 %v190_v4, %s5196_s25  ;;  %151 = vst.msk [vmem:[#allocation2 + $0x60] sm:$0xff] %vm137_vm0, %v5197_v15  ;;  %v212_v25 = vld [vmem:[%s5306_s24 + $0xc8] sm:$0xff]  ;;  %v213_v27 = vld [vmem:[%s5306_s24 + $0xd0] sm:$0xff]  ;;  %s5140_s13 = sshra.s32 %s4917_s5, 4  ;;  %s5146_s22 = scalar_lea.hbm %s8866_s1, 512  ;;  %s5141_s13 = int_to_ptr.hbm [resolvable:$true] %s5140_s13 }
  0x36   : > { %261 = vrot.lane.b32.xlu2 %v192_v5, %s5196_s25  ;;  %152 = vst.msk [vmem:[#allocation2 + $0x68] sm:$0xff] %vm137_vm0, %v5197_v15  ;;  %v216_v28 = vld [vmem:[%s5306_s24 + $0xe8] sm:$0xff]  ;;  %v215_v29 = vld [vmem:[%s5306_s24 + $0xe0] sm:$0xff]  ;;  %v214_v30 = vld [vmem:[%s5306_s24 + $0xd8] sm:$0xff]  ;;  %s5142_s14 = scalar_lea.hbm %s5141_s13, 256  ;;  %p5147_p0 = scmp.lt.s32.totalorder %s5141_s13, %s8866_s1 }
  0x37   : > { %154 = vst.msk [vmem:[#allocation2 + $0x78] sm:$0xff] %vm137_vm0, %v5197_v15  ;;  %v218_v31 = vld [vmem:[%s5306_s24 + $0xf8] sm:$0xff]  ;;  %v217_v32 = vld [vmem:[%s5306_s24 + $0xf0] sm:$0xff]  ;;  %p5143_p6 = scmp.ne.s32.totalorder %s5141_s13, %s5142_s14  ;;  %p5148_p1 = scmp.lt.s32.totalorder %s5146_s22, %s5142_s14 }
  0x38   : > { %155 = vst.msk [vmem:[#allocation2 + $0x80] sm:$0xff] %vm137_vm0, %v5197_v15 }
  0x39   : > { %157 = vst.msk [vmem:[#allocation2 + $0x90] sm:$0xff] %vm137_vm0, %v5197_v15  ;;  %p5144_p9 = pnand %p5143_p6, %p5264_p11  ;;  %p5149_p3 = por %p5148_p1, %p5147_p0 }
  0x3a   : > { %158 = vst.msk [vmem:[#allocation2 + $0x98] sm:$0xff] %vm137_vm0, %v5197_v15 }
  0x3b   : > { %160 = vst.msk [vmem:[#allocation2 + $0xa8] sm:$0xff] %vm137_vm0, %v5197_v15  ;;  %p5145_p13 = pneg %p5144_p9 }
  0x3c   : > { %161 = vst.msk [vmem:[#allocation2 + $0xb0] sm:$0xff] %vm137_vm0, %v5197_v15 }
  0x3d   : > { %265 = vrot.lane.b32.xlu1 %v194_v6, %s5196_s25  ;;  %263 = vrot.lane.b32.xlu0 %v193_v7, %s5196_s25  ;;  %163 = vst.msk [vmem:[#allocation2 + $0xc0] sm:$0xff] %vm137_vm0, %v5197_v15  ;;  %p5150_p4 = pnand %p5149_p3, %p5145_p13 }
  0x3e   : > { %267 = vrot.lane.b32.xlu2 %v195_v8, %s5196_s25  ;;  %164 = vst.msk [vmem:[#allocation2 + $0xc8] sm:$0xff] %vm137_vm0, %v5197_v15 }
  0x3f   : > { %166 = vst.msk [vmem:[#allocation2 + $0xd8] sm:$0xff] %vm137_vm0, %v5197_v15 }
  0x40   : > { %167 = vst.msk [vmem:[#allocation2 + $0xe0] sm:$0xff] %vm137_vm0, %v5197_v15 }
  0x41   : > { %169 = vst.msk [vmem:[#allocation2 + $0xf0] sm:$0xff] %vm137_vm0, %v5197_v15 }
  0x42   : > { %170 = vst.msk [vmem:[#allocation2 + $0xf8] sm:$0xff] %vm137_vm0, %v5197_v15 }
  0x43   : > { %172 = vst.msk [vmem:[#allocation2 + $0x108] sm:$0xff] %vm137_vm0, %v5197_v15 }
  0x44   : > { %173 = vst.msk [vmem:[#allocation2 + $0x110] sm:$0xff] %vm137_vm0, %v5197_v15 }
  0x45   : > { %271 = vrot.lane.b32.xlu1 %v197_v9, %s5196_s25  ;;  %269 = vrot.lane.b32.xlu0 %v196_v10, %s5196_s25  ;;  %175 = vst.msk [vmem:[#allocation2 + $0x120] sm:$0xff] %vm137_vm0, %v5197_v15 }
  0x46   : > { %273 = vrot.lane.b32.xlu2 %v198_v11, %s5196_s25  ;;  %176 = vst.msk [vmem:[#allocation2 + $0x128] sm:$0xff] %vm137_vm0, %v5197_v15 }
  0x47   : > { %178 = vst.msk [vmem:[#allocation2 + $0x138] sm:$0xff] %vm137_vm0, %v5197_v15 }
  0x48   : > { %179 = vst.msk [vmem:[#allocation2 + $0x140] sm:$0xff] %vm137_vm0, %v5197_v15 }
  0x49   : > { %181 = vst.msk [vmem:[#allocation2 + $0x150] sm:$0xff] %vm137_vm0, %v5197_v15 }
  0x4a   : > { %182 = vst.msk [vmem:[#allocation2 + $0x158] sm:$0xff] %vm137_vm0, %v5197_v15 }
  0x4b   : > { %184 = vst.msk [vmem:[#allocation2 + $0x168] sm:$0xff] %vm137_vm0, %v5197_v15 }
  0x4c   : > { %185 = vst.msk [vmem:[#allocation2 + $0x170] sm:$0xff] %vm137_vm0, %v5197_v15 }
  0x4d   : > { %277 = vrot.lane.b32.xlu1 %v200_v12, %s5196_s25  ;;  %275 = vrot.lane.b32.xlu0 %v199_v13, %s5196_s25  ;;  %141 = vst.msk [vmem:[#allocation2 + $0x10] sm:$0xf] %vm140_vm1, %v5197_v15 }
  0x4e   : > { %279 = vrot.lane.b32.xlu2 %v201_v14, %s5196_s25  ;;  %144 = vst.msk [vmem:[#allocation2 + $0x28] sm:$0xf] %vm140_vm1, %v5197_v15 }
  0x4f   : > { %147 = vst.msk [vmem:[#allocation2 + $0x40] sm:$0xf] %vm140_vm1, %v5197_v15 }
  0x50   : > { %150 = vst.msk [vmem:[#allocation2 + $0x58] sm:$0xf] %vm140_vm1, %v5197_v15 }
  0x51   : > { %153 = vst.msk [vmem:[#allocation2 + $0x70] sm:$0xf] %vm140_vm1, %v5197_v15 }
  0x52   : > { %156 = vst.msk [vmem:[#allocation2 + $0x88] sm:$0xf] %vm140_vm1, %v5197_v15 }
  0x53   : > { %159 = vst.msk [vmem:[#allocation2 + $0xa0] sm:$0xf] %vm140_vm1, %v5197_v15 }
  0x54   : > { %162 = vst.msk [vmem:[#allocation2 + $0xb8] sm:$0xf] %vm140_vm1, %v5197_v15 }
  0x55   : > { %283 = vrot.lane.b32.xlu1 %v203_v16, %s5196_s25  ;;  %281 = vrot.lane.b32.xlu0 %v202_v17, %s5196_s25  ;;  %165 = vst.msk [vmem:[#allocation2 + $0xd0] sm:$0xf] %vm140_vm1, %v5197_v15 }
  0x56   : > { %285 = vrot.lane.b32.xlu2 %v204_v18, %s5196_s25  ;;  %168 = vst.msk [vmem:[#allocation2 + $0xe8] sm:$0xf] %vm140_vm1, %v5197_v15 }
  0x57   : > { %171 = vst.msk [vmem:[#allocation2 + $0x100] sm:$0xf] %vm140_vm1, %v5197_v15 }
  0x58   : > { %174 = vst.msk [vmem:[#allocation2 + $0x118] sm:$0xf] %vm140_vm1, %v5197_v15 }
  0x59   : > { %177 = vst.msk [vmem:[#allocation2 + $0x130] sm:$0xf] %vm140_vm1, %v5197_v15 }
  0x5a   : > { %180 = vst.msk [vmem:[#allocation2 + $0x148] sm:$0xf] %vm140_vm1, %v5197_v15 }
  0x5b   : > { %183 = vst.msk [vmem:[#allocation2 + $0x160] sm:$0xf] %vm140_vm1, %v5197_v15 }
  0x5c   : > { %186 = vst.msk [vmem:[#allocation2 + $0x178] sm:$0xf] %vm140_vm1, %v5197_v15 }
  0x5d   : > { %289 = vrot.lane.b32.xlu1 %v206_v19, %s5196_s25  ;;  %287 = vrot.lane.b32.xlu0 %v205_v20, %s5196_s25  ;;  %381 = vst.msk [vmem:[#allocation3] sm:$0xff] %vm380_vm3, %v5197_v15 }
  0x5e   : > { %291 = vrot.lane.b32.xlu2 %v207_v21, %s5196_s25  ;;  %382 = vst.msk [vmem:[#allocation3 + $0x8] sm:$0xff] %vm380_vm3, %v5197_v15 }
  0x5f   : > { %383 = vst.msk [vmem:[#allocation3 + $0x10] sm:$0xff] %vm380_vm3, %v5197_v15 }
  0x60   : > { %384 = vst.msk [vmem:[#allocation3 + $0x18] sm:$0xff] %vm380_vm3, %v5197_v15 }
  0x61   : > { %390 = vst.msk [vmem:[#allocation4] sm:$0xff] %vm380_vm3, %v5197_v15 }
  0x62   : > { %391 = vst.msk [vmem:[#allocation4 + $0x8] sm:$0xff] %vm380_vm3, %v5197_v15 }
  0x63   : > { %392 = vst.msk [vmem:[#allocation4 + $0x10] sm:$0xff] %vm380_vm3, %v5197_v15 }
  0x64   : > { %393 = vst.msk [vmem:[#allocation4 + $0x18] sm:$0xff] %vm380_vm3, %v5197_v15 }
  0x65   : > { %295 = vrot.lane.b32.xlu1 %v209_v22, %s5196_s25  ;;  %293 = vrot.lane.b32.xlu0 %v208_v23, %s5196_s25  ;;  %386 = vst.msk [vmem:[#allocation3 + $0x120] sm:$0xff] %vm380_vm3, %v5197_v15 }
  0x66   : > { %297 = vrot.lane.b32.xlu2 %v210_v24, %s5196_s25  ;;  %387 = vst.msk [vmem:[#allocation3 + $0x128] sm:$0xff] %vm380_vm3, %v5197_v15 }
  0x67   : > { %388 = vst.msk [vmem:[#allocation3 + $0x130] sm:$0xff] %vm380_vm3, %v5197_v15 }
  0x68   : > { %389 = vst.msk [vmem:[#allocation3 + $0x138] sm:$0xff] %vm380_vm3, %v5197_v15 }
  0x69   : > { %395 = vst.msk [vmem:[#allocation4 + $0x120] sm:$0xff] %vm380_vm3, %v5197_v15 }
  0x6a   : > { %396 = vst.msk [vmem:[#allocation4 + $0x128] sm:$0xff] %vm380_vm3, %v5197_v15 }
  0x6b   : > { %397 = vst.msk [vmem:[#allocation4 + $0x130] sm:$0xff] %vm380_vm3, %v5197_v15 }
  0x6c   : > { %398 = vst.msk [vmem:[#allocation4 + $0x138] sm:$0xff] %vm380_vm3, %v5197_v15 }
  0x6d   : > { %301 = vrot.lane.b32.xlu1 %v212_v25, %s5196_s25  ;;  %299 = vrot.lane.b32.xlu0 %v211_v26, %s5196_s25 }
  0x6e   : > { %303 = vrot.lane.b32.xlu2 %v213_v27, %s5196_s25 }
  0x75   : > { %307 = vrot.lane.b32.xlu1 %v215_v29, %s5196_s25  ;;  %305 = vrot.lane.b32.xlu0 %v214_v30, %s5196_s25 }
  0x76   : > { %309 = vrot.lane.b32.xlu2 %v216_v28, %s5196_s25 }
  0x7d   : > { %313 = vrot.lane.b32.xlu1 %v218_v31, %s5196_s25  ;;  %311 = vrot.lane.b32.xlu0 %v217_v32, %s5196_s25 }
  0x88   : > { %v260_v33 = vpop.permute.xlu2 %259 }
  0x89   : > { %352 = vst.msk [vmem:[#allocation2 + $0x32] sm:$0xff] %vm347_vm2, %v260_v33 }
  0x90   : > { %v262_v34 = vpop.permute.xlu2 %261  ;;  %v843_v29 = vld [vmem:[#allocation2 + $0x30] sm:$0xff] }
  0x91   : > { %353 = vst.msk [vmem:[#allocation2 + $0x3a] sm:$0xff] %vm347_vm2, %v262_v34  ;;  %v5594_v30 = vmul.f32 0.7788008, %v843_v29 }
  0x98   : > { %v268_v36 = vpop.permute.xlu2 %267  ;;  %v845_v32 = vld [vmem:[#allocation2 + $0x40] sm:$0xf]  ;;  %v844_v33 = vld [vmem:[#allocation2 + $0x38] sm:$0xff] }
  0x99   : > { %356 = vst.msk [vmem:[#allocation2 + $0x62] sm:$0xff] %vm347_vm2, %v268_v36  ;;  %v5602_v34 = vmul.f32 0.7788008, %v845_v32  ;;  %v867_v36 = vmul.f32 0.9394131, %v843_v29 }
  0x9a   : > { %v5679_v15 = vmul.f32 0.36787945, %v845_v32 }
  0x9f   : > { %v252_v35 = vpop.permute.xlu0 %251  ;;  %v256_v37 = vpop.permute.xlu1 %255 }
  0xa0   : > { %348 = vst.msk [vmem:[#allocation2 + $0x2] sm:$0xff] %vm347_vm2, %v252_v35  ;;  %v274_v40 = vpop.permute.xlu2 %273  ;;  %v5604_v35 = vmul.f32 0.7788008, %v844_v33 }
  0xa1   : > { %350 = vst.msk [vmem:[#allocation2 + $0x1a] sm:$0xff] %vm347_vm2, %v256_v37 }
  0xa2   : > { %359 = vst.msk [vmem:[#allocation2 + $0x82] sm:$0xff] %vm347_vm2, %v274_v40  ;;  %v869_v40 = vmul.f32 0.9394131, %v845_v32 }
  0xa7   : > { %v254_v38 = vpop.permute.xlu0 %253  ;;  %v399_v39 = vld [vmem:[#allocation2] sm:$0xff]  ;;  %v258_v41 = vpop.permute.xlu1 %257 }
  0xa8   : > { %349 = vst.msk [vmem:[#allocation2 + $0xa] sm:$0xff] %vm347_vm2, %v254_v38  ;;  %444 = vrot.lane.b32.xlu2 %v399_v39, %s5198_s17  ;;  %v5481_v44 = vmul.f32 0.7788008, %v399_v39  ;;  %v280_v45 = vpop.permute.xlu2 %279  ;;  %v423_v48 = vmul.f32 0.9394131, %v399_v39  ;;  %v623_v5 = vld [vmem:[#allocation2 + $0x18] sm:$0xff] }
  0xa9   : > { %351 = vst.msk [vmem:[#allocation2 + $0x22] sm:$0xff] %vm347_vm2, %v258_v41  ;;  %v5515_v60 = vmul.f32 0.36787945, %v399_v39  ;;  %v5537_v6 = vmul.f32 0.7788008, %v623_v5 }
  0xaa   : > { %362 = vst.msk [vmem:[#allocation2 + $0xaa] sm:$0xff] %vm347_vm2, %v280_v45  ;;  %v647_v13 = vmul.f32 0.9394131, %v623_v5  ;;  %v5576_v24 = vmul.f32 0.36787945, %v623_v5 }
  0xab   : > { %v868_v41 = vmul.f32 0.9394131, %v844_v33 }
  0xaf   : > { %v401_v42 = vld [vmem:[#allocation2 + $0x10] sm:$0xf]  ;;  %v400_v43 = vld [vmem:[#allocation2 + $0x8] sm:$0xff]  ;;  %v266_v50 = vpop.permute.xlu1 %265  ;;  %v264_v51 = vpop.permute.xlu0 %263 }
  0xb0   : > { %448 = vrot.lane.b32.xlu1 %v401_v42, %s5198_s17  ;;  %446 = vrot.lane.b32.xlu0 %v400_v43, %s5198_s17  ;;  %v5488_v46 = vmul.f32 0.7788008, %v401_v42  ;;  %v5490_v47 = vmul.f32 0.7788008, %v400_v43  ;;  %v286_v49 = vpop.permute.xlu2 %285  ;;  %355 = vst.msk [vmem:[#allocation2 + $0x52] sm:$0xff] %vm347_vm2, %v266_v50  ;;  %v624_v10 = vld [vmem:[#allocation2 + $0x20] sm:$0xff] }
  0xb1   : > { %411 = vrot.lane.b32.xlu2 %v5481_v44, %s5199_s26  ;;  %365 = vst.msk [vmem:[#allocation2 + $0xca] sm:$0xff] %vm347_vm2, %v286_v49  ;;  %v425_v52 = vmul.f32 0.9394131, %v401_v42  ;;  %v424_v53 = vmul.f32 0.9394131, %v400_v43 }
  0xb2   : > { %354 = vst.msk [vmem:[#allocation2 + $0x4a] sm:$0xff] %vm347_vm2, %v264_v51  ;;  %v5524_v0 = vmul.f32 0.36787945, %v401_v42  ;;  %v5526_v1 = vmul.f32 0.36787945, %v400_v43 }
  0xb3   : > { %v625_v9 = vld [vmem:[#allocation2 + $0x28] sm:$0xf]  ;;  %v5549_v12 = vmul.f32 0.7788008, %v624_v10  ;;  %v648_v18 = vmul.f32 0.9394131, %v624_v10 }
  0xb4   : > { %v5547_v11 = vmul.f32 0.7788008, %v625_v9  ;;  %v649_v17 = vmul.f32 0.9394131, %v625_v9  ;;  %v5582_v26 = vmul.f32 0.36787945, %v625_v9 }
  0xb5   : > { %v5584_v27 = vmul.f32 0.36787945, %v624_v10 }
  0xb7   : > { %v272_v55 = vpop.permute.xlu1 %271  ;;  %v270_v56 = vpop.permute.xlu0 %269 }
  0xb8   : > { %415 = vrot.lane.b32.xlu1 %v5488_v46, %s5199_s26  ;;  %413 = vrot.lane.b32.xlu0 %v5490_v47, %s5199_s26  ;;  %v292_v54 = vpop.permute.xlu2 %291  ;;  %358 = vst.msk [vmem:[#allocation2 + $0x7a] sm:$0xff] %vm347_vm2, %v272_v55  ;;  %v5660_v55 = vmul.f32 0.36787945, %v843_v29 }
  0xb9   : > { %429 = vrot.lane.b32.xlu2 %v423_v48, %s5199_s26  ;;  %368 = vst.msk [vmem:[#allocation2 + $0xf2] sm:$0xff] %vm347_vm2, %v292_v54 }
  0xba   : > { %357 = vst.msk [vmem:[#allocation2 + $0x6a] sm:$0xff] %vm347_vm2, %v270_v56 }
  0xbf   : > { %v278_v58 = vpop.permute.xlu1 %277  ;;  %v276_v59 = vpop.permute.xlu0 %275 }
  0xc0   : > { %433 = vrot.lane.b32.xlu1 %v425_v52, %s5199_s26  ;;  %431 = vrot.lane.b32.xlu0 %v424_v53, %s5199_s26  ;;  %v298_v57 = vpop.permute.xlu2 %297  ;;  %361 = vst.msk [vmem:[#allocation2 + $0x9a] sm:$0xff] %vm347_vm2, %v278_v58 }
  0xc1   : > { %459 = vrot.lane.b32.xlu2 %v5481_v44, %s5200_s27  ;;  %371 = vst.msk [vmem:[#allocation2 + $0x112] sm:$0xff] %vm347_vm2, %v298_v57 }
  0xc2   : > { %360 = vst.msk [vmem:[#allocation2 + $0x92] sm:$0xff] %vm347_vm2, %v276_v59 }
  0xc7   : > { %v284_v62 = vpop.permute.xlu1 %283  ;;  %v282_v63 = vpop.permute.xlu0 %281 }
  0xc8   : > { %463 = vrot.lane.b32.xlu1 %v5488_v46, %s5200_s27  ;;  %461 = vrot.lane.b32.xlu0 %v5490_v47, %s5200_s27  ;;  %v304_v61 = vpop.permute.xlu2 %303  ;;  %364 = vst.msk [vmem:[#allocation2 + $0xc2] sm:$0xff] %vm347_vm2, %v284_v62 }
  0xc9   : > { %471 = vrot.lane.b32.xlu2 %v423_v48, %s5200_s27  ;;  %374 = vst.msk [vmem:[#allocation2 + $0x13a] sm:$0xff] %vm347_vm2, %v304_v61 }
  0xca   : > { %363 = vst.msk [vmem:[#allocation2 + $0xb2] sm:$0xff] %vm347_vm2, %v282_v63 }
  0xcf   : > { %v290_v2 = vpop.permute.xlu1 %289  ;;  %v288_v4 = vpop.permute.xlu0 %287 }
  0xd0   : > { %475 = vrot.lane.b32.xlu1 %v425_v52, %s5200_s27  ;;  %473 = vrot.lane.b32.xlu0 %v424_v53, %s5200_s27  ;;  %v310_v3 = vpop.permute.xlu2 %309  ;;  %367 = vst.msk [vmem:[#allocation2 + $0xe2] sm:$0xff] %vm347_vm2, %v290_v2 }
  0xd1   : > { %486 = vrot.lane.b32.xlu2 %v5515_v60, %s5201_s28  ;;  %377 = vst.msk [vmem:[#allocation2 + $0x15a] sm:$0xff] %vm347_vm2, %v310_v3  ;;  %v5681_v3 = vmul.f32 0.36787945, %v844_v33 }
  0xd2   : > { %366 = vst.msk [vmem:[#allocation2 + $0xda] sm:$0xff] %vm347_vm2, %v288_v4 }
  0xd7   : > { %v296_v7 = vpop.permute.xlu1 %295  ;;  %v294_v8 = vpop.permute.xlu0 %293 }
  0xd8   : > { %490 = vrot.lane.b32.xlu1 %v5524_v0, %s5201_s28  ;;  %488 = vrot.lane.b32.xlu0 %v5526_v1, %s5201_s28  ;;  %370 = vst.msk [vmem:[#allocation2 + $0x10a] sm:$0xff] %vm347_vm2, %v296_v7  ;;  %v5685_v7 = vld [vmem:[#allocation2 + $0x48] sm:$0xff] }
  0xd9   : > { %498 = vrot.lane.b32.xlu2 %v5481_v44, %s5201_s28  ;;  %369 = vst.msk [vmem:[#allocation2 + $0xfa] sm:$0xff] %vm347_vm2, %v294_v8 }
  0xdf   : > { %v302_v14 = vpop.permute.xlu1 %301  ;;  %v300_v16 = vpop.permute.xlu0 %299 }
  0xe0   : > { %502 = vrot.lane.b32.xlu1 %v5488_v46, %s5201_s28  ;;  %500 = vrot.lane.b32.xlu0 %v5490_v47, %s5201_s28  ;;  %373 = vst.msk [vmem:[#allocation2 + $0x12a] sm:$0xff] %vm347_vm2, %v302_v14 }
  0xe1   : > { %635 = vrot.lane.b32.xlu2 %v5537_v6, %s5199_s26  ;;  %372 = vst.msk [vmem:[#allocation2 + $0x122] sm:$0xff] %vm347_vm2, %v300_v16 }
  0xe7   : > { %v308_v19 = vpop.permute.xlu1 %307  ;;  %v306_v20 = vpop.permute.xlu0 %305 }
  0xe8   : > { %639 = vrot.lane.b32.xlu1 %v5547_v11, %s5199_s26  ;;  %637 = vrot.lane.b32.xlu0 %v5549_v12, %s5199_s26  ;;  %376 = vst.msk [vmem:[#allocation2 + $0x152] sm:$0xff] %vm347_vm2, %v308_v19 }
  0xe9   : > { %653 = vrot.lane.b32.xlu2 %v647_v13, %s5199_s26  ;;  %375 = vst.msk [vmem:[#allocation2 + $0x142] sm:$0xff] %vm347_vm2, %v306_v20 }
  0xef   : > { %v314_v21 = vpop.permute.xlu1 %313  ;;  %v312_v22 = vpop.permute.xlu0 %311 }
  0xf0   : > { %657 = vrot.lane.b32.xlu1 %v649_v17, %s5199_s26  ;;  %655 = vrot.lane.b32.xlu0 %v648_v18, %s5199_s26  ;;  %379 = vst.msk [vmem:[#allocation2 + $0x172] sm:$0xff] %vm347_vm2, %v314_v21 }
  0xf1   : > { %668 = vrot.lane.b32.xlu2 %v623_v5, %s5198_s17  ;;  %378 = vst.msk [vmem:[#allocation2 + $0x16a] sm:$0xff] %vm347_vm2, %v312_v22 }
  0xf8   : > { %672 = vrot.lane.b32.xlu1 %v625_v9, %s5198_s17  ;;  %670 = vrot.lane.b32.xlu0 %v624_v10, %s5198_s17  ;;  %v5696_v9 = vld [vmem:[#allocation2 + $0x50] sm:$0xff] }
  0xf9   : > { %683 = vrot.lane.b32.xlu2 %v5537_v6, %s5200_s27 }
 0x100   : > { %687 = vrot.lane.b32.xlu1 %v5547_v11, %s5200_s27  ;;  %685 = vrot.lane.b32.xlu0 %v5549_v12, %s5200_s27 }
 0x101   : > { %695 = vrot.lane.b32.xlu2 %v647_v13, %s5200_s27 }
 0x102   : > { %v5574_v23 = vpop.permute.xlu2 %444 }
 0x108   : > { %699 = vrot.lane.b32.xlu1 %v649_v17, %s5200_s27  ;;  %697 = vrot.lane.b32.xlu0 %v648_v18, %s5200_s27  ;;  %v5701_v17 = vmul.f32 0.7788008, %v5685_v7 }
 0x109   : > { %710 = vrot.lane.b32.xlu2 %v5576_v24, %s5201_s28 }
 0x10a   : > { %8921 = vst [vmem:[#allocation11_spill] sm:$0xff] %v5701_v17 }
 0x10b   : > { %v412_v25 = vpop.permute.xlu2 %411 }
 0x10c   : > { %v420_v54 = vadd.f32 %v412_v25, %v5515_v60 }
 0x10e   : > { %v453_v56 = vadd.f32 %v5574_v23, %v420_v54 }
 0x110   : > { %714 = vrot.lane.b32.xlu1 %v5582_v26, %s5201_s28  ;;  %712 = vrot.lane.b32.xlu0 %v5584_v27, %s5201_s28 }
 0x111   : > { %722 = vrot.lane.b32.xlu2 %v5537_v6, %s5201_s28 }
 0x113   : > { %v5592_v28 = vpop.permute.xlu2 %429 }
 0x114   : > { %v438_v62 = vadd.f32 %v5592_v28, %v5481_v44 }
 0x118   : > { %726 = vrot.lane.b32.xlu1 %v5547_v11, %s5201_s28  ;;  %724 = vrot.lane.b32.xlu0 %v5549_v12, %s5201_s28 }
 0x119   : > { %855 = vrot.lane.b32.xlu2 %v5594_v30, %s5199_s26 }
 0x11b   : > { %v460_v31 = vpop.permute.xlu2 %459 }
 0x11c   : > { %v468_v63 = vadd.f32 %v460_v31, %v453_v56 }
 0x120   : > { %859 = vrot.lane.b32.xlu1 %v5602_v34, %s5199_s26  ;;  %857 = vrot.lane.b32.xlu0 %v5604_v35, %s5199_s26 }
 0x121   : > { %873 = vrot.lane.b32.xlu2 %v867_v36, %s5199_s26 }
 0x122   : > { %v5611_v37 = vpop.permute.xlu1 %448  ;;  %v5613_v38 = vpop.permute.xlu0 %446 }
 0x123   : > { %v5615_v39 = vpop.permute.xlu2 %471 }
 0x128   : > { %877 = vrot.lane.b32.xlu1 %v869_v40, %s5199_s26  ;;  %875 = vrot.lane.b32.xlu0 %v868_v41, %s5199_s26 }
 0x129   : > { %888 = vrot.lane.b32.xlu2 %v843_v29, %s5198_s17  ;;  %v5713_v29 = vmul.f32 0.7788008, %v5696_v9 }
 0x12a   : > { %v416_v42 = vpop.permute.xlu1 %415  ;;  %v414_v43 = vpop.permute.xlu0 %413 }
 0x12b   : > { %v487_v45 = vpop.permute.xlu2 %486  ;;  %v422_v59 = vadd.f32 %v416_v42, %v5524_v0  ;;  %v421_v60 = vadd.f32 %v414_v43, %v5526_v1  ;;  %v5687_v0 = vld [vmem:[#allocation2 + $0x58] sm:$0xf]  ;;  %v456_v1 = vadd.f32 %v5574_v23, %v438_v62  ;;  %8923 = vst [vmem:[#allocation13_spill] sm:$0xff] %v5713_v29 }
 0x12c   : > { %v5677_v2 = vadd.f32 %v487_v45, %v468_v63  ;;  %v5704_v18 = vmul.f32 0.7788008, %v5687_v0 }
 0x12d   : > { %v455_v4 = vadd.f32 %v5611_v37, %v422_v59  ;;  %v454_v5 = vadd.f32 %v5613_v38, %v421_v60  ;;  %v480_v10 = vadd.f32 %v5615_v39, %v456_v1 }
 0x12e   : > { %v514_v13 = vmul.f32 0.7788008, %v5677_v2  ;;  %8922 = vst [vmem:[#allocation12_spill] sm:$0xff] %v5704_v18  ;;  %v510_v25 = vmul.f32 0.36787945, %v5677_v2  ;;  %v549_v28 = vrot.slane %v5677_v2, 2 }
 0x130   : > { %892 = vrot.lane.b32.xlu1 %v845_v32, %s5198_s17  ;;  %890 = vrot.lane.b32.xlu0 %v844_v33, %s5198_s17  ;;  %v571_v33 = vrot.slane %v514_v13, 3  ;;  %v594_v43 = vrot.slane %v510_v25, 4 }
 0x131   : > { %903 = vrot.lane.b32.xlu2 %v5594_v30, %s5200_s27 }
 0x132   : > { %v434_v48 = vpop.permute.xlu1 %433  ;;  %v432_v49 = vpop.permute.xlu0 %431 }
 0x133   : > { %v499_v50 = vpop.permute.xlu2 %498  ;;  %v440_v19 = vadd.f32 %v434_v48, %v5488_v46  ;;  %v439_v20 = vadd.f32 %v432_v49, %v5490_v47  ;;  %v521_v46 = vrot.slane %v514_v13, 1 }
 0x134   : > { %v5715_v31 = vadd.f32 %v499_v50, %v480_v10 }
 0x135   : > { %v458_v39 = vadd.f32 %v5611_v37, %v440_v19 }
 0x136   : > { %v5724_v50 = vmul.f32 0.9394131, %v5715_v31 }
 0x138   : > { %907 = vrot.lane.b32.xlu1 %v5602_v34, %s5200_s27  ;;  %905 = vrot.lane.b32.xlu0 %v5604_v35, %s5200_s27 }
 0x139   : > { %915 = vrot.lane.b32.xlu2 %v867_v36, %s5200_s27 }
 0x13a   : > { %v464_v51 = vpop.permute.xlu1 %463  ;;  %v462_v52 = vpop.permute.xlu0 %461 }
 0x13b   : > { %v5649_v53 = vpop.permute.xlu2 %635  ;;  %v470_v44 = vadd.f32 %v464_v51, %v455_v4  ;;  %v469_v8 = vadd.f32 %v462_v52, %v454_v5 }
 0x140   : > { %919 = vrot.lane.b32.xlu1 %v869_v40, %s5200_s27  ;;  %917 = vrot.lane.b32.xlu0 %v868_v41, %s5200_s27  ;;  %v457_v40 = vadd.f32 %v5613_v38, %v439_v20 }
 0x141   : > { %930 = vrot.lane.b32.xlu2 %v5660_v55, %s5201_s28 }
 0x142   : > { %v476_v57 = vpop.permute.xlu1 %475  ;;  %v474_v58 = vpop.permute.xlu0 %473 }
 0x143   : > { %v5673_v61 = vpop.permute.xlu2 %653  ;;  %v482_v51 = vadd.f32 %v476_v57, %v458_v39  ;;  %v481_v52 = vadd.f32 %v474_v58, %v457_v40 }
 0x148   : > { %934 = vrot.lane.b32.xlu1 %v5679_v15, %s5201_s28  ;;  %932 = vrot.lane.b32.xlu0 %v5681_v3, %s5201_s28 }
 0x149   : > { %942 = vrot.lane.b32.xlu2 %v5594_v30, %s5201_s28 }
 0x14a   : > { %v491_v14 = vpop.permute.xlu1 %490  ;;  %v489_v16 = vpop.permute.xlu0 %488 }
 0x14b   : > { %v497_v21 = vadd.f32 %v491_v14, %v470_v44  ;;  %v496_v22 = vadd.f32 %v489_v16, %v469_v8  ;;  %v5708_v23 = vpop.permute.xlu2 %668  ;;  %v536_v8 = vrot.slane %v5724_v50, 1  ;;  %v5736_v14 = vmul.f32 0.9394131, %v5685_v7 }
 0x14d   : > { %v516_v32 = vmul.f32 0.7788008, %v497_v21  ;;  %v511_v47 = vmul.f32 0.36787945, %v496_v22  ;;  %v515_v36 = vmul.f32 0.7788008, %v496_v22 }
 0x14e   : > { %v589_v42 = vmul.f32 0.36787945, %v497_v21  ;;  %v552_v45 = vrot.slane %v497_v21, 2  ;;  %v550_v49 = vrot.slane %v496_v22, 2 }
 0x14f   : > { %v524_v41 = vrot.slane %v516_v32, 1  ;;  %v522_v48 = vrot.slane %v515_v36, 1  ;;  %v574_v37 = vrot.slane %v516_v32, 3  ;;  %v572_v56 = vrot.slane %v515_v36, 3 }
 0x150   : > { %946 = vrot.lane.b32.xlu1 %v5602_v34, %s5201_s28  ;;  %944 = vrot.lane.b32.xlu0 %v5604_v35, %s5201_s28  ;;  %v595_v59 = vrot.slane %v511_v47, 4  ;;  %v597_v63 = vrot.slane %v589_v42, 4  ;;  %v551_v57 = vsel %vm548_vm5, %v549_v28, %v550_v49  ;;  %v553_v58 = vsel %vm548_vm5, %v550_v49, %v552_v45 }
 0x151   : > { %1075 = vrot.lane.b32.xlu2 %v5701_v17, %s5199_s26  ;;  %v523_v38 = vsel %vm520_vm4, %v521_v46, %v522_v48  ;;  %v525_v54 = vsel %vm520_vm4, %v522_v48, %v524_v41  ;;  %v573_v16 = vsel %vm570_vm6, %v571_v33, %v572_v56  ;;  %v575_v19 = vsel %vm570_vm6, %v572_v56, %v574_v37 }
 0x152   : > { %v503_v60 = vpop.permute.xlu1 %502  ;;  %v501_v62 = vpop.permute.xlu0 %500  ;;  %v528_v2 = vadd.f32 %v523_v38, %v510_v25  ;;  %v529_v4 = vadd.f32 %v525_v54, %v511_v47  ;;  %v596_v20 = vsel %vm593_vm7, %v594_v43, %v595_v59  ;;  %v598_v28 = vsel %vm593_vm7, %v595_v59, %v597_v63 }
 0x153   : > { %v5730_v5 = vpop.permute.xlu2 %683  ;;  %v509_v1 = vadd.f32 %v503_v60, %v482_v51  ;;  %v508_v44 = vadd.f32 %v501_v62, %v481_v52  ;;  %v512_v43 = vmul.f32 0.7788008, %v5715_v31  ;;  %v561_v45 = vrot.slane %v5715_v31, 2 }
 0x154   : > { %v556_v10 = vadd.f32 %v551_v57, %v528_v2  ;;  %v557_v13 = vadd.f32 %v553_v58, %v529_v4  ;;  %v580_v56 = vrot.slane %v5724_v50, 3  ;;  %v1089_v58 = vmul.f32 0.9394131, %v5687_v0 }
 0x155   : > { %v532_v21 = vmul.f32 0.9394131, %v509_v1  ;;  %v531_v32 = vmul.f32 0.9394131, %v508_v44  ;;  %v564_v47 = vrot.slane %v509_v1, 2  ;;  %v562_v39 = vrot.slane %v508_v44, 2 }
 0x156   : > { %v578_v22 = vadd.f32 %v573_v16, %v556_v10  ;;  %v579_v25 = vadd.f32 %v575_v19, %v557_v13  ;;  %v603_v36 = vmul.f32 0.7788008, %v509_v1  ;;  %v513_v41 = vmul.f32 0.7788008, %v508_v44 }
 0x157   : > { %v539_v46 = vrot.slane %v532_v21, 1  ;;  %v537_v42 = vrot.slane %v531_v32, 1  ;;  %v583_v51 = vrot.slane %v532_v21, 3  ;;  %v581_v38 = vrot.slane %v531_v32, 3 }
 0x158   : > { %1079 = vrot.lane.b32.xlu1 %v5704_v18, %s5199_s26  ;;  %1077 = vrot.lane.b32.xlu0 %v5713_v29, %s5199_s26  ;;  %v601_v33 = vadd.f32 %v596_v20, %v578_v22  ;;  %v602_v40 = vadd.f32 %v598_v28, %v579_v25  ;;  %v610_v60 = vrot.slane %v603_v36, 4  ;;  %v563_v62 = vsel %vm548_vm5, %v561_v45, %v562_v39 }
 0x159   : > { %1093 = vrot.lane.b32.xlu2 %v5736_v14, %s5199_s26  ;;  %v538_v52 = vsel %vm520_vm4, %v536_v8, %v537_v42  ;;  %v540_v37 = vsel %vm520_vm4, %v537_v42, %v539_v46  ;;  %v565_v63 = vsel %vm548_vm5, %v562_v39, %v564_v47  ;;  %v608_v2 = vrot.slane %v513_v41, 4 }
 0x15a   : > { %v5750_v48 = vpop.permute.xlu1 %639  ;;  %v5752_v49 = vpop.permute.xlu0 %637  ;;  %617 = vst.msk [vmem:[#allocation3 + $0x20] sm:$0xff] %vm380_vm3, %v601_v33  ;;  %v543_v59 = vadd.f32 %v538_v52, %v512_v43  ;;  %v544_v31 = vadd.f32 %v540_v37, %v513_v41  ;;  %v1088_v1 = vmul.f32 0.9394131, %v5696_v9  ;;  %v607_v44 = vrot.slane %v512_v43, 4 }
 0x15b   : > { %v5757_v54 = vpop.permute.xlu2 %695  ;;  %618 = vst.msk [vmem:[#allocation3 + $0x28] sm:$0xff] %vm380_vm3, %v602_v40  ;;  %v582_v8 = vsel %vm570_vm6, %v580_v56, %v581_v38  ;;  %v584_v50 = vsel %vm570_vm6, %v581_v38, %v583_v51  ;;  %v611_v19 = vsel %vm593_vm7, %v608_v2, %v610_v60 }
 0x15c   : > { %v568_v4 = vadd.f32 %v563_v62, %v543_v59  ;;  %v569_v57 = vadd.f32 %v565_v63, %v544_v31  ;;  %v609_v16 = vsel %vm593_vm7, %v607_v44, %v608_v2  ;;  %v5820_v59 = vmul.f32 0.36787945, %v5685_v7 }
 0x15d   : > { %v644_v31 = vadd.f32 %v5649_v53, %v5576_v24  ;;  %v645_v24 = vadd.f32 %v5752_v49, %v5584_v27 }
 0x15e   : > { %v587_v10 = vadd.f32 %v582_v8, %v568_v4  ;;  %v588_v13 = vadd.f32 %v584_v50, %v569_v57  ;;  %v5837_v4 = vmul.f32 0.36787945, %v5687_v0  ;;  %v5840_v57 = vmul.f32 0.36787945, %v5696_v9 }
 0x15f   : > { %v677_v60 = vadd.f32 %v5708_v23, %v644_v31 }
 0x160   : > { %1097 = vrot.lane.b32.xlu1 %v1089_v58, %s5199_s26  ;;  %1095 = vrot.lane.b32.xlu0 %v1088_v1, %s5199_s26  ;;  %v614_v20 = vadd.f32 %v609_v16, %v587_v10  ;;  %v615_v21 = vadd.f32 %v611_v19, %v588_v13  ;;  %8924 = vst [vmem:[#allocation14_spill] sm:$0xff] %v5840_v57 }
 0x161   : > { %1108 = vrot.lane.b32.xlu2 %v5685_v7, %s5198_s17  ;;  %v5787_v47 = vld [vmem:[#allocation3 + $0x20] sm:$0xff]  ;;  %v692_v2 = vadd.f32 %v5730_v5, %v677_v60  ;;  %v646_v7 = vadd.f32 %v5750_v48, %v5582_v26 }
 0x162   : > { %v658_v22 = vpop.permute.xlu1 %657  ;;  %v5773_v25 = vpop.permute.xlu0 %655  ;;  %620 = vst.msk [vmem:[#allocation4 + $0x20] sm:$0xff] %vm380_vm3, %v614_v20  ;;  %v5789_v39 = vld [vmem:[#allocation3 + $0x28] sm:$0xff]  ;;  %v5796_v41 = vmul.f32 0.020974154, %v5787_v47 }
 0x163   : > { %v711_v28 = vpop.permute.xlu2 %710  ;;  %621 = vst.msk [vmem:[#allocation4 + $0x28] sm:$0xff] %vm380_vm3, %v615_v21  ;;  %v5802_v43 = vmul.f32 0.020974154, %v5789_v39  ;;  %v663_v21 = vadd.f32 %v5773_v25, %v5549_v12 }
 0x164   : > { %v719_v53 = vadd.f32 %v711_v28, %v692_v2 }
 0x166   : > { %v738_v48 = vmul.f32 0.7788008, %v719_v53  ;;  %v734_v28 = vmul.f32 0.36787945, %v719_v53  ;;  %v771_v31 = vrot.slane %v719_v53, 2 }
 0x168   : > { %1112 = vrot.lane.b32.xlu1 %v5687_v0, %s5198_s17  ;;  %1110 = vrot.lane.b32.xlu0 %v5696_v9, %s5198_s17  ;;  %v5853_v9 = vld [vmem:[#allocation2 + $0x60] sm:$0xff] }
 0x169   : > { %1123 = vrot.lane.b32.xlu2 %v5701_v17, %s5200_s27  ;;  %v5791_v33 = vld [vmem:[#allocation4 + $0x20] sm:$0xff]  ;;  %v5864_v16 = vmul.f32 0.7788008, %v5853_v9 }
 0x16a   : > { %v5783_v32 = vpop.permute.xlu1 %672  ;;  %v5785_v46 = vpop.permute.xlu0 %670  ;;  %v5793_v40 = vld [vmem:[#allocation4 + $0x28] sm:$0xff]  ;;  %v5799_v42 = vmul.f32 0.022201141, %v5791_v33 }
 0x16b   : > { %v723_v36 = vpop.permute.xlu2 %722  ;;  %v5805_v45 = vmul.f32 0.022201141, %v5793_v40  ;;  %v678_v5 = vadd.f32 %v5785_v46, %v645_v24  ;;  %8925 = vst [vmem:[#allocation15_spill] sm:$0xff] %v5864_v16  ;;  %v681_v2 = vadd.f32 %v5785_v46, %v663_v21 }
 0x16c   : > { %v4053_v51 = vsub.f32 %v5796_v41, %v5799_v42 }
 0x16d   : > { %v4054_v52 = vsub.f32 %v5802_v43, %v5805_v45 }
 0x170   : > { %1127 = vrot.lane.b32.xlu1 %v5704_v18, %s5200_s27  ;;  %1125 = vrot.lane.b32.xlu0 %v5713_v29, %s5200_s27 }
 0x171   : > { %1135 = vrot.lane.b32.xlu2 %v5736_v14, %s5200_s27 }
 0x172   : > { %v688_v37 = vpop.permute.xlu1 %687  ;;  %v686_v38 = vpop.permute.xlu0 %685 }
 0x173   : > { %v5817_v56 = vpop.permute.xlu2 %855  ;;  %v693_v0 = vadd.f32 %v686_v38, %v678_v5  ;;  %v744_v38 = vrot.slane %v738_v48, 1 }
 0x178   : > { %1139 = vrot.lane.b32.xlu1 %v1089_v58, %s5200_s27  ;;  %1137 = vrot.lane.b32.xlu0 %v1088_v1, %s5200_s27  ;;  %v662_v58 = vadd.f32 %v5673_v61, %v5537_v6  ;;  %v679_v1 = vadd.f32 %v5783_v32, %v646_v7  ;;  %v5855_v6 = vld [vmem:[#allocation2 + $0x70] sm:$0xf]  ;;  %v5857_v61 = vld [vmem:[#allocation2 + $0x68] sm:$0xff] }
 0x179   : > { %1150 = vrot.lane.b32.xlu2 %v5820_v59, %s5201_s28  ;;  %v5867_v19 = vmul.f32 0.7788008, %v5855_v6  ;;  %v5870_v20 = vmul.f32 0.7788008, %v5857_v61 }
 0x17a   : > { %v700_v14 = vpop.permute.xlu1 %699  ;;  %v698_v62 = vpop.permute.xlu0 %697  ;;  %v680_v26 = vadd.f32 %v5708_v23, %v662_v58  ;;  %v694_v27 = vadd.f32 %v688_v37, %v679_v1  ;;  %v664_v23 = vadd.f32 %v658_v22, %v5547_v11  ;;  %v792_v58 = vrot.slane %v738_v48, 3 }
 0x17b   : > { %v5829_v63 = vpop.permute.xlu2 %873  ;;  %8926 = vst [vmem:[#allocation16_spill] sm:$0xff] %v5867_v19 }
 0x17c   : > { %v704_v8 = vadd.f32 %v5757_v54, %v680_v26  ;;  %8927 = vst [vmem:[#allocation17_spill] sm:$0xff] %v5870_v20  ;;  %v682_v22 = vadd.f32 %v5783_v32, %v664_v23 }
 0x17e   : > { %v5874_v54 = vadd.f32 %v723_v36, %v704_v8  ;;  %v706_v25 = vadd.f32 %v700_v14, %v682_v22  ;;  %v705_v36 = vadd.f32 %v698_v62, %v681_v2 }
 0x180   : > { %1154 = vrot.lane.b32.xlu1 %v5837_v4, %s5201_s28  ;;  %1152 = vrot.lane.b32.xlu0 %v5840_v57, %s5201_s28  ;;  %v5883_v12 = vmul.f32 0.9394131, %v5874_v54 }
 0x181   : > { %1162 = vrot.lane.b32.xlu2 %v5701_v17, %s5201_s28 }
 0x182   : > { %v715_v49 = vpop.permute.xlu1 %714  ;;  %v713_v44 = vpop.permute.xlu0 %712 }
 0x183   : > { %v721_v50 = vadd.f32 %v715_v49, %v694_v27  ;;  %v720_v10 = vadd.f32 %v713_v44, %v693_v0  ;;  %v5860_v13 = vpop.permute.xlu2 %888  ;;  %v814_v44 = vrot.slane %v734_v28, 4 }
 0x185   : > { %v740_v37 = vmul.f32 0.7788008, %v721_v50  ;;  %v735_v60 = vmul.f32 0.36787945, %v720_v10  ;;  %v739_v11 = vmul.f32 0.7788008, %v720_v10 }
 0x186   : > { %v810_v24 = vmul.f32 0.36787945, %v721_v50  ;;  %v774_v1 = vrot.slane %v721_v50, 2  ;;  %v772_v26 = vrot.slane %v720_v10, 2 }
 0x187   : > { %v747_v7 = vrot.slane %v740_v37, 1  ;;  %v745_v5 = vrot.slane %v739_v11, 1  ;;  %v795_v32 = vrot.slane %v740_v37, 3  ;;  %v793_v27 = vrot.slane %v739_v11, 3 }
 0x188   : > { %1166 = vrot.lane.b32.xlu1 %v5704_v18, %s5201_s28  ;;  %1164 = vrot.lane.b32.xlu0 %v5713_v29, %s5201_s28  ;;  %v815_v0 = vrot.slane %v735_v60, 4  ;;  %v817_v8 = vrot.slane %v810_v24, 4  ;;  %v773_v14 = vsel %vm548_vm5, %v771_v31, %v772_v26  ;;  %v775_v62 = vsel %vm548_vm5, %v772_v26, %v774_v1 }
 0x189   : > { %1295 = vrot.lane.b32.xlu2 %v5864_v16, %s5199_s26  ;;  %v746_v46 = vsel %vm520_vm4, %v744_v38, %v745_v5  ;;  %v748_v53 = vsel %vm520_vm4, %v745_v5, %v747_v7  ;;  %v759_v38 = vrot.slane %v5883_v12, 1  ;;  %v5895_v11 = vmul.f32 0.9394131, %v5853_v9 }
 0x18a   : > { %v727_v48 = vpop.permute.xlu1 %726  ;;  %v725_v49 = vpop.permute.xlu0 %724  ;;  %v751_v50 = vadd.f32 %v746_v46, %v734_v28  ;;  %v752_v10 = vadd.f32 %v748_v53, %v735_v60  ;;  %v794_v7 = vsel %vm570_vm6, %v792_v58, %v793_v27  ;;  %v796_v28 = vsel %vm570_vm6, %v793_v27, %v795_v32 }
 0x18b   : > { %v5889_v23 = vpop.permute.xlu2 %903  ;;  %v733_v21 = vadd.f32 %v727_v48, %v706_v25  ;;  %v732_v37 = vadd.f32 %v725_v49, %v705_v36  ;;  %v816_v60 = vsel %vm593_vm7, %v814_v44, %v815_v0  ;;  %v818_v1 = vsel %vm593_vm7, %v815_v0, %v817_v8 }
 0x18c   : > { %v778_v22 = vadd.f32 %v773_v14, %v751_v50  ;;  %v779_v2 = vadd.f32 %v775_v62, %v752_v10  ;;  %v736_v0 = vmul.f32 0.7788008, %v5874_v54  ;;  %v783_v49 = vrot.slane %v5874_v54, 2 }
 0x18d   : > { %v755_v24 = vmul.f32 0.9394131, %v733_v21  ;;  %v754_v26 = vmul.f32 0.9394131, %v732_v37  ;;  %v786_v36 = vrot.slane %v733_v21, 2  ;;  %v784_v53 = vrot.slane %v732_v37, 2 }
 0x18e   : > { %v799_v5 = vadd.f32 %v794_v7, %v778_v22  ;;  %v800_v31 = vadd.f32 %v796_v28, %v779_v2  ;;  %v823_v46 = vmul.f32 0.7788008, %v733_v21  ;;  %v737_v27 = vmul.f32 0.7788008, %v732_v37 }
 0x18f   : > { %v762_v25 = vrot.slane %v755_v24, 1  ;;  %v760_v48 = vrot.slane %v754_v26, 1  ;;  %v804_v50 = vrot.slane %v755_v24, 3  ;;  %v802_v62 = vrot.slane %v754_v26, 3 }
 0x190   : > { %1299 = vrot.lane.b32.xlu1 %v5867_v19, %s5199_s26  ;;  %1297 = vrot.lane.b32.xlu0 %v5870_v20, %s5199_s26  ;;  %v821_v58 = vadd.f32 %v816_v60, %v799_v5  ;;  %v822_v32 = vadd.f32 %v818_v1, %v800_v31  ;;  %v801_v37 = vrot.slane %v5883_v12, 3  ;;  %v830_v2 = vrot.slane %v823_v46, 4 }
 0x191   : > { %1313 = vrot.lane.b32.xlu2 %v5895_v11, %s5199_s26  ;;  %v761_v10 = vsel %vm520_vm4, %v759_v38, %v760_v48  ;;  %v763_v14 = vsel %vm520_vm4, %v760_v48, %v762_v25  ;;  %v785_v7 = vsel %vm548_vm5, %v783_v49, %v784_v53  ;;  %v787_v28 = vsel %vm548_vm5, %v784_v53, %v786_v36 }
 0x192   : > { %v5909_v44 = vpop.permute.xlu1 %859  ;;  %v5911_v8 = vpop.permute.xlu0 %857  ;;  %837 = vst.msk [vmem:[#allocation3 + $0x30] sm:$0xff] %vm380_vm3, %v821_v58  ;;  %v766_v22 = vadd.f32 %v761_v10, %v736_v0  ;;  %v767_v54 = vadd.f32 %v763_v14, %v737_v27  ;;  %v828_v60 = vrot.slane %v737_v27, 4  ;;  %v1309_v38 = vmul.f32 0.9394131, %v5855_v6 }
 0x193   : > { %v5916_v21 = vpop.permute.xlu2 %915  ;;  %838 = vst.msk [vmem:[#allocation3 + $0x38] sm:$0xff] %vm380_vm3, %v822_v32  ;;  %v1308_v31 = vmul.f32 0.9394131, %v5857_v61  ;;  %v827_v1 = vrot.slane %v736_v0, 4  ;;  %v803_v26 = vsel %vm570_vm6, %v801_v37, %v802_v62  ;;  %v805_v12 = vsel %vm570_vm6, %v802_v62, %v804_v50 }
 0x194   : > { %v790_v24 = vadd.f32 %v785_v7, %v766_v22  ;;  %v791_v5 = vadd.f32 %v787_v28, %v767_v54  ;;  %v831_v46 = vsel %vm593_vm7, %v828_v60, %v830_v2  ;;  %v3922_v28 = vld [vmem:[#allocation3] sm:$0xff] }
 0x195   : > { %v829_v36 = vsel %vm593_vm7, %v827_v1, %v828_v60  ;;  %v6041_v1 = vld [vmem:[#allocation2 + $0x88] sm:$0xf] }
 0x196   : > { %v808_v25 = vadd.f32 %v803_v26, %v790_v24  ;;  %v809_v58 = vadd.f32 %v805_v12, %v791_v5  ;;  %v6028_v24 = vld [vmem:[#allocation2 + $0x80] sm:$0xff] }
 0x198   : > { %1317 = vrot.lane.b32.xlu1 %v1309_v38, %s5199_s26  ;;  %1315 = vrot.lane.b32.xlu0 %v1308_v31, %s5199_s26  ;;  %v834_v32 = vadd.f32 %v829_v36, %v808_v25  ;;  %v835_v27 = vadd.f32 %v831_v46, %v809_v58  ;;  %v6011_v58 = vmul.f32 0.36787945, %v5853_v9  ;;  %v864_v36 = vadd.f32 %v5817_v56, %v5660_v55 }
 0x199   : > { %1328 = vrot.lane.b32.xlu2 %v5853_v9, %s5198_s17  ;;  %v5932_v53 = vld [vmem:[#allocation3 + $0x30] sm:$0xff]  ;;  %v6026_v9 = vld [vmem:[#allocation2 + $0x78] sm:$0xff]  ;;  %v866_v56 = vadd.f32 %v5909_v44, %v5679_v15  ;;  %v3923_v15 = vld [vmem:[#allocation3 + $0x8] sm:$0xff] }
 0x19a   : > { %8928 = vst [vmem:[#allocation18_spill] sm:$0xff] %v5932_v53  ;;  %v5934_v48 = vpop.permute.xlu1 %877  ;;  %v5936_v0 = vpop.permute.xlu0 %875  ;;  %v5938_v49 = vld [vmem:[#allocation3 + $0x38] sm:$0xff]  ;;  %v5941_v50 = vmul.f32 0.044402283, %v5932_v53  ;;  %v5980_v22 = vmul.f32 0.020974154, %v5932_v53  ;;  %v897_v46 = vadd.f32 %v5860_v13, %v864_v36 }
 0x19b   : > { %8929 = vst [vmem:[#allocation19_spill] sm:$0xff] %v5938_v49  ;;  %v931_v10 = vpop.permute.xlu2 %930  ;;  %v5944_v14 = vmul.f32 0.044402283, %v5938_v49  ;;  %v5989_v7 = vmul.f32 0.020974154, %v5938_v49  ;;  %v6051_v44 = vld [vmem:[#allocation3 + $0x10] sm:$0xff] }
 0x19c   : > { %v5950_v62 = vadd.f32 %v4053_v51, %v5941_v50  ;;  %840 = vst.msk [vmem:[#allocation4 + $0x30] sm:$0xff] %vm380_vm3, %v834_v32  ;;  %v912_v55 = vadd.f32 %v5889_v23, %v897_v46  ;;  %v6039_v36 = vmul.f32 0.36787945, %v5857_v61  ;;  %v6049_v23 = vmul.f32 0.7788008, %v6028_v24 }
 0x19d   : > { %v5957_v37 = vadd.f32 %v4054_v52, %v5944_v14  ;;  %841 = vst.msk [vmem:[#allocation4 + $0x38] sm:$0xff] %vm380_vm3, %v835_v27  ;;  %v6065_v46 = vmul.f32 0.7788008, %v6041_v1  ;;  %v6080_v49 = vmul.f32 0.044402283, %v6051_v44 }
 0x19e   : > { %8932 = vst [vmem:[#allocation22_spill] sm:$0xff] %v6011_v58  ;;  %v6043_v5 = vadd.f32 %v931_v10, %v912_v55  ;;  %v6060_v10 = vld [vmem:[#allocation3 + $0x18] sm:$0xff]  ;;  %v6068_v55 = vmul.f32 0.9394131, %v6041_v1 }
 0x19f   : > { %8935 = vst [vmem:[#allocation25_spill] sm:$0xff] %v6039_v36  ;;  %v6084_v18 = vmul.f32 0.044402283, %v6060_v10 }
 0x1a0   : > { %1332 = vrot.lane.b32.xlu1 %v5855_v6, %s5198_s17  ;;  %1330 = vrot.lane.b32.xlu0 %v5857_v61, %s5198_s17  ;;  %8937 = vst [vmem:[#allocation27_spill] sm:$0xff] %v6049_v23 }
 0x1a1   : > { %1343 = vrot.lane.b32.xlu2 %v5864_v16, %s5200_s27  ;;  %8938 = vst [vmem:[#allocation28_spill] sm:$0xff] %v6051_v44 }
 0x1a2   : > { %v5966_v41 = vpop.permute.xlu1 %892  ;;  %v5968_v42 = vpop.permute.xlu0 %890  ;;  %8939 = vst [vmem:[#allocation29_spill] sm:$0xff] %v6060_v10 }
 0x1a3   : > { %v5970_v51 = vpop.permute.xlu2 %942  ;;  %v5972_v43 = vld [vmem:[#allocation4 + $0x30] sm:$0xff]  ;;  %8940 = vst [vmem:[#allocation30_spill] sm:$0xff] %v6065_v46 }
 0x1a4   : > { %8930 = vst [vmem:[#allocation20_spill] sm:$0xff] %v5972_v43  ;;  %v5974_v45 = vld [vmem:[#allocation4 + $0x38] sm:$0xff]  ;;  %v5977_v52 = vmul.f32 0.026779689, %v5972_v43  ;;  %v5986_v2 = vmul.f32 0.022201141, %v5972_v43 }
 0x1a5   : > { %8931 = vst [vmem:[#allocation21_spill] sm:$0xff] %v5974_v45  ;;  %v5983_v54 = vmul.f32 0.026779689, %v5974_v45  ;;  %v5994_v60 = vmul.f32 0.022201141, %v5974_v45 }
 0x1a6   : > { %v6070_v45 = vmul.f32 0.020974154, %v3922_v28  ;;  %v954_v28 = vmul.f32 0.36787945, %v6043_v5 }
 0x1a8   : > { %1347 = vrot.lane.b32.xlu1 %v5867_v19, %s5200_s27  ;;  %1345 = vrot.lane.b32.xlu0 %v5870_v20, %s5200_s27 }
 0x1a9   : > { %1355 = vrot.lane.b32.xlu2 %v5895_v11, %s5200_s27 }
 0x1aa   : > { %v908_v26 = vpop.permute.xlu1 %907  ;;  %v906_v12 = vpop.permute.xlu0 %905 }
 0x1ab   : > { %v6008_v25 = vpop.permute.xlu2 %1075 }
 0x1b0   : > { %1359 = vrot.lane.b32.xlu1 %v1309_v38, %s5200_s27  ;;  %1357 = vrot.lane.b32.xlu0 %v1308_v31, %s5200_s27  ;;  %v865_v38 = vadd.f32 %v5911_v8, %v5681_v3  ;;  %v6036_v31 = vmul.f32 0.36787945, %v5855_v6  ;;  %v882_v3 = vadd.f32 %v5829_v63, %v5594_v30  ;;  %v899_v6 = vadd.f32 %v5966_v41, %v866_v56  ;;  %v3926_v30 = vld [vmem:[#allocation4] sm:$0xff]  ;;  %v3927_v63 = vld [vmem:[#allocation4 + $0x8] sm:$0xff] }
 0x1b1   : > { %1370 = vrot.lane.b32.xlu2 %v6011_v58, %s5201_s28  ;;  %v6046_v58 = vmul.f32 0.7788008, %v6026_v9  ;;  %v6058_v8 = vmul.f32 0.9394131, %v6026_v9 }
 0x1b2   : > { %v6020_v11 = vpop.permute.xlu1 %919  ;;  %v6022_v32 = vpop.permute.xlu0 %917  ;;  %8934 = vst [vmem:[#allocation24_spill] sm:$0xff] %v6036_v31  ;;  %v898_v61 = vadd.f32 %v5968_v42, %v865_v38  ;;  %v900_v56 = vadd.f32 %v5860_v13, %v882_v3  ;;  %v914_v38 = vadd.f32 %v908_v26, %v899_v6  ;;  %v6089_v6 = vmul.f32 0.022201141, %v3926_v30 }
 0x1b3   : > { %v6024_v27 = vpop.permute.xlu2 %1093  ;;  %8936 = vst [vmem:[#allocation26_spill] sm:$0xff] %v6046_v58 }
 0x1b4   : > { %8933 = vst [vmem:[#allocation23_spill] sm:$0xff] %v6024_v27  ;;  %v913_v43 = vadd.f32 %v906_v12, %v898_v61  ;;  %v924_v13 = vadd.f32 %v5916_v21, %v900_v56  ;;  %v958_v61 = vmul.f32 0.7788008, %v6043_v5 }
 0x1b6   : > { %v6099_v10 = vadd.f32 %v5970_v51, %v924_v13  ;;  %v964_v27 = vrot.slane %v958_v61, 1 }
 0x1b8   : > { %1374 = vrot.lane.b32.xlu1 %v6036_v31, %s5201_s28  ;;  %1372 = vrot.lane.b32.xlu0 %v6039_v36, %s5201_s28  ;;  %v6077_v31 = vmul.f32 0.020974154, %v3923_v15  ;;  %v6091_v15 = vmul.f32 0.022201141, %v3927_v63  ;;  %v883_v36 = vadd.f32 %v5936_v0, %v5604_v35  ;;  %v6107_v35 = vmul.f32 0.9394131, %v6099_v10 }
 0x1b9   : > { %1382 = vrot.lane.b32.xlu2 %v5864_v16, %s5201_s28  ;;  %v884_v16 = vadd.f32 %v5934_v48, %v5602_v34 }
 0x1ba   : > { %v935_v53 = vpop.permute.xlu1 %934  ;;  %v933_v29 = vpop.permute.xlu0 %932  ;;  %v901_v56 = vadd.f32 %v5968_v42, %v883_v36 }
 0x1bb   : > { %v941_v26 = vadd.f32 %v935_v53, %v914_v38  ;;  %v940_v12 = vadd.f32 %v933_v29, %v913_v43  ;;  %v6087_v3 = vpop.permute.xlu2 %1108  ;;  %v991_v29 = vrot.slane %v6043_v5, 2  ;;  %v1034_v53 = vrot.slane %v954_v28, 4 }
 0x1bc   : > { %v902_v63 = vadd.f32 %v5966_v41, %v884_v16  ;;  %v925_v51 = vadd.f32 %v6022_v32, %v901_v56 }
 0x1bd   : > { %v960_v21 = vmul.f32 0.7788008, %v941_v26  ;;  %v955_v43 = vmul.f32 0.36787945, %v940_v12  ;;  %v959_v30 = vmul.f32 0.7788008, %v940_v12 }
 0x1be   : > { %v1030_v44 = vmul.f32 0.36787945, %v941_v26  ;;  %v994_v34 = vrot.slane %v941_v26, 2  ;;  %v992_v17 = vrot.slane %v940_v12, 2  ;;  %v926_v0 = vadd.f32 %v6020_v11, %v902_v63 }
 0x1bf   : > { %v967_v38 = vrot.slane %v960_v21, 1  ;;  %v965_v48 = vrot.slane %v959_v30, 1  ;;  %v1015_v5 = vrot.slane %v960_v21, 3  ;;  %v1013_v42 = vrot.slane %v959_v30, 3 }
 0x1c0   : > { %1386 = vrot.lane.b32.xlu1 %v5867_v19, %s5201_s28  ;;  %1384 = vrot.lane.b32.xlu0 %v5870_v20, %s5201_s28  ;;  %v1035_v36 = vrot.slane %v955_v43, 4  ;;  %v1012_v12 = vrot.slane %v958_v61, 3  ;;  %v1037_v19 = vrot.slane %v1030_v44, 4  ;;  %v993_v21 = vsel %vm548_vm5, %v991_v29, %v992_v17 }
 0x1c1   : > { %1515 = vrot.lane.b32.xlu2 %v6046_v58, %s5199_s26  ;;  %v966_v16 = vsel %vm520_vm4, %v964_v27, %v965_v48  ;;  %v968_v41 = vsel %vm520_vm4, %v965_v48, %v967_v38  ;;  %v995_v56 = vsel %vm548_vm5, %v992_v17, %v994_v34  ;;  %v3930_v27 = vsub.f32 %v6070_v45, %v6089_v6 }
 0x1c2   : > { %v947_v13 = vpop.permute.xlu1 %946  ;;  %v945_v26 = vpop.permute.xlu0 %944  ;;  %v971_v11 = vadd.f32 %v966_v16, %v954_v28  ;;  %v972_v63 = vadd.f32 %v968_v41, %v955_v43  ;;  %v979_v30 = vrot.slane %v6107_v35, 1  ;;  %v1014_v61 = vsel %vm570_vm6, %v1012_v12, %v1013_v42  ;;  %v6127_v16 = vld [vmem:[#allocation4 + $0x10] sm:$0xff] }
 0x1c3   : > { %v6117_v32 = vpop.permute.xlu2 %1123  ;;  %v953_v20 = vadd.f32 %v947_v13, %v926_v0  ;;  %v952_v57 = vadd.f32 %v945_v26, %v925_v51  ;;  %v1016_v44 = vsel %vm570_vm6, %v1013_v42, %v1015_v5  ;;  %v1036_v28 = vsel %vm593_vm7, %v1034_v53, %v1035_v36 }
 0x1c4   : > { %v998_v38 = vadd.f32 %v993_v21, %v971_v11  ;;  %v999_v48 = vadd.f32 %v995_v56, %v972_v63  ;;  %v1038_v34 = vsel %vm593_vm7, %v1035_v36, %v1037_v19  ;;  %v3931_v19 = vsub.f32 %v6077_v31, %v6091_v15 }
 0x1c5   : > { %v975_v43 = vmul.f32 0.9394131, %v953_v20  ;;  %v974_v0 = vmul.f32 0.9394131, %v952_v57  ;;  %v1006_v45 = vrot.slane %v953_v20, 2  ;;  %v1004_v41 = vrot.slane %v952_v57, 2 }
 0x1c6   : > { %v1019_v29 = vadd.f32 %v1014_v61, %v998_v38  ;;  %v1020_v17 = vadd.f32 %v1016_v44, %v999_v48  ;;  %v1043_v6 = vmul.f32 0.7788008, %v953_v20  ;;  %v957_v5 = vmul.f32 0.7788008, %v952_v57  ;;  %v6145_v57 = vld [vmem:[#allocation4 + $0x18] sm:$0xff] }
 0x1c7   : > { %v982_v51 = vrot.slane %v975_v43, 1  ;;  %v980_v42 = vrot.slane %v974_v0, 1  ;;  %v3942_v53 = vmul.f32 0.026779689, %v6127_v16  ;;  %v956_v20 = vmul.f32 0.7788008, %v6099_v10 }
 0x1c8   : > { %1519 = vrot.lane.b32.xlu1 %v6065_v46, %s5199_s26  ;;  %v1041_v13 = vadd.f32 %v1036_v28, %v1019_v29  ;;  %v1042_v26 = vadd.f32 %v1038_v34, %v1020_v17  ;;  %1517 = vrot.lane.b32.xlu0 %v6049_v23, %s5199_s26  ;;  %v1003_v36 = vrot.slane %v6099_v10, 2  ;;  %v1024_v63 = vrot.slane %v975_v43, 3 }
 0x1c9   : > { %1533 = vrot.lane.b32.xlu2 %v6058_v8, %s5199_s26  ;;  %v981_v21 = vsel %vm520_vm4, %v979_v30, %v980_v42  ;;  %v983_v56 = vsel %vm520_vm4, %v980_v42, %v982_v51  ;;  %v1022_v31 = vrot.slane %v974_v0, 3  ;;  %v3937_v38 = vadd.f32 %v6080_v49, %v3930_v27 }
 0x1ca   : > { %v6141_v12 = vpop.permute.xlu1 %1079  ;;  %v6143_v11 = vpop.permute.xlu0 %1077  ;;  %1057 = vst.msk [vmem:[#allocation3 + $0x40] sm:$0xff] %vm380_vm3, %v1041_v13  ;;  %v1021_v10 = vrot.slane %v6107_v35, 3  ;;  %v986_v48 = vadd.f32 %v981_v21, %v956_v20  ;;  %v987_v61 = vadd.f32 %v983_v56, %v957_v5  ;;  %v1050_v44 = vrot.slane %v1043_v6, 4 }
 0x1cb   : > { %v6150_v15 = vpop.permute.xlu2 %1135  ;;  %1058 = vst.msk [vmem:[#allocation3 + $0x48] sm:$0xff] %vm380_vm3, %v1042_v26  ;;  %v1005_v28 = vsel %vm548_vm5, %v1003_v36, %v1004_v41  ;;  %v1007_v43 = vsel %vm548_vm5, %v1004_v41, %v1006_v45  ;;  %v1048_v29 = vrot.slane %v957_v5, 4  ;;  %v3938_v30 = vadd.f32 %v6084_v18, %v3931_v19 }
 0x1cc   : > { %v3943_v17 = vmul.f32 0.026779689, %v6145_v57  ;;  %v1010_v34 = vadd.f32 %v1005_v28, %v986_v48  ;;  %v1011_v0 = vadd.f32 %v1007_v43, %v987_v61  ;;  %v1047_v51 = vrot.slane %v956_v20, 4 }
 0x1cd   : > { %v1023_v49 = vsel %vm570_vm6, %v1021_v10, %v1022_v31  ;;  %v1025_v35 = vsel %vm570_vm6, %v1022_v31, %v1024_v63  ;;  %v6162_v27 = vmul.f32 0.9394131, %v6028_v24  ;;  %v3944_v45 = vsub.f32 %v3937_v38, %v3942_v53 }
 0x1ce   : > { %v1028_v6 = vadd.f32 %v1023_v49, %v1010_v34  ;;  %v1029_v13 = vadd.f32 %v1025_v35, %v1011_v0  ;;  %v3948_v18 = vmul.f32 0.05701366, %v5787_v47  ;;  %v1049_v41 = vsel %vm593_vm7, %v1047_v51, %v1048_v29 }
 0x1cf   : > { %v1051_v26 = vsel %vm593_vm7, %v1048_v29, %v1050_v44  ;;  %v3945_v5 = vsub.f32 %v3938_v30, %v3943_v17  ;;  %v3949_v42 = vmul.f32 0.05701366, %v5789_v39  ;;  %v3954_v47 = vmul.f32 0.02850683, %v5791_v33 }
 0x1d0   : > { %1537 = vrot.lane.b32.xlu1 %v6068_v55, %s5199_s26  ;;  %1535 = vrot.lane.b32.xlu0 %v6162_v27, %s5199_s26  ;;  %v1054_v20 = vadd.f32 %v1049_v41, %v1028_v6  ;;  %v1055_v36 = vadd.f32 %v1051_v26, %v1029_v13  ;;  %v3955_v38 = vmul.f32 0.02850683, %v5793_v40  ;;  %v3950_v39 = vadd.f32 %v3948_v18, %v3944_v45 }
 0x1d1   : > { %1548 = vrot.lane.b32.xlu2 %v6026_v9, %s5198_s17  ;;  %v3970_v19 = vld [vmem:[#allocation3 + $0x40] sm:$0xff]  ;;  %v8941_v44 = vsub.f32 %v5980_v22, %v5986_v2  ;;  %v3951_v33 = vadd.f32 %v3949_v42, %v3945_v5  ;;  %v8942_v43 = vsub.f32 %v5950_v62, %v5977_v52  ;;  %v8943_v40 = vsub.f32 %v5989_v7, %v5994_v60 }
 0x1d2   : > { %v6174_v63 = vpop.permute.xlu1 %1097  ;;  %v6176_v53 = vpop.permute.xlu0 %1095  ;;  %v3971_v21 = vld [vmem:[#allocation3 + $0x48] sm:$0xff]  ;;  %v6179_v56 = vmul.f32 0.044402283, %v3970_v19  ;;  %v4069_v48 = vmul.f32 0.05701366, %v3970_v19  ;;  %1060 = vst.msk [vmem:[#allocation4 + $0x40] sm:$0xff] %vm380_vm3, %v1054_v20  ;;  %v3956_v17 = vsub.f32 %v3950_v39, %v3954_v47  ;;  %v8944_v22 = vsub.f32 %v5957_v37, %v5983_v54 }
 0x1d3   : > { %v6181_v31 = vpop.permute.xlu2 %1150  ;;  %v6184_v10 = vmul.f32 0.044402283, %v3971_v21  ;;  %v4070_v61 = vmul.f32 0.05701366, %v3971_v21  ;;  %1061 = vst.msk [vmem:[#allocation4 + $0x48] sm:$0xff] %vm380_vm3, %v1055_v36  ;;  %v3957_v34 = vsub.f32 %v3951_v33, %v3955_v38  ;;  %v1084_v33 = vadd.f32 %v6008_v25, %v5820_v59 }
 0x1d4   : > { %v6190_v28 = vadd.f32 %v8941_v44, %v6179_v56  ;;  %v6196_v29 = vadd.f32 %v4069_v48, %v8942_v43  ;;  %v3962_v62 = vadd.f32 %v5941_v50, %v3956_v17  ;;  %v6213_v0 = vmul.f32 0.020974154, %v3970_v19 }
 0x1d5   : > { %v6202_v30 = vadd.f32 %v8943_v40, %v6184_v10  ;;  %v6208_v2 = vadd.f32 %v4070_v61, %v8944_v22  ;;  %v3963_v7 = vadd.f32 %v5944_v14, %v3957_v34  ;;  %v6220_v60 = vmul.f32 0.020974154, %v3971_v21  ;;  %v6293_v34 = vld [vmem:[#allocation2 + $0x90] sm:$0xff] }
 0x1d6   : > { %v3968_v49 = vsub.f32 %v3962_v62, %v5977_v52  ;;  %v6279_v43 = vmul.f32 0.36787945, %v6026_v9  ;;  %v1117_v40 = vadd.f32 %v6087_v3, %v1084_v33  ;;  %v1086_v25 = vadd.f32 %v6141_v12, %v5837_v4 }
 0x1d7   : > { %v3969_v50 = vsub.f32 %v3963_v7, %v5983_v54  ;;  %v6299_v62 = vmul.f32 0.36787945, %v6041_v1  ;;  %v6301_v7 = vld [vmem:[#allocation2 + $0xa0] sm:$0xf]  ;;  %v6308_v12 = vmul.f32 0.36787945, %v6028_v24 }
 0x1d8   : > { %1552 = vrot.lane.b32.xlu1 %v6041_v1, %s5198_s17  ;;  %1550 = vrot.lane.b32.xlu0 %v6028_v24, %s5198_s17  ;;  %v3974_v13 = vadd.f32 %v6213_v0, %v3968_v49  ;;  %v1132_v59 = vadd.f32 %v6117_v32, %v1117_v40  ;;  %v8946_v49 = vld [vmem:[#allocation11_spill] sm:$0xff]  ;;  %v6315_v1 = vmul.f32 0.7788008, %v6293_v34 }
 0x1d9   : > { %1563 = vrot.lane.b32.xlu2 %v6046_v58, %s5200_s27  ;;  %v3976_v6 = vld [vmem:[#allocation4 + $0x40] sm:$0xff]  ;;  %v3975_v41 = vadd.f32 %v6220_v60, %v3969_v50 }
 0x1da   : > { %v6222_v37 = vpop.permute.xlu1 %1112  ;;  %v6224_v51 = vpop.permute.xlu0 %1110  ;;  %v3977_v45 = vld [vmem:[#allocation4 + $0x48] sm:$0xff]  ;;  %v6231_v18 = vmul.f32 0.022201141, %v3976_v6  ;;  %v6233_v14 = vmul.f32 0.026779689, %v3976_v6  ;;  %v8947_v50 = vld [vmem:[#allocation23_spill] sm:$0xff] }
 0x1db   : > { %v6227_v35 = vpop.permute.xlu2 %1162  ;;  %v6236_v26 = vmul.f32 0.022201141, %v3977_v45  ;;  %v6238_v5 = vmul.f32 0.026779689, %v3977_v45  ;;  %v6240_v52 = vmul.f32 0.02850683, %v3976_v6  ;;  %v1102_v6 = vadd.f32 %v8947_v50, %v8946_v49 }
 0x1dc   : > { %v3980_v42 = vsub.f32 %v3974_v13, %v6231_v18  ;;  %v6243_v54 = vmul.f32 0.02850683, %v3977_v45  ;;  %v1119_v32 = vadd.f32 %v6222_v37, %v1086_v25  ;;  %v6336_v25 = vmul.f32 0.9394131, %v6301_v7  ;;  %v8952_v49 = vld [vmem:[#allocation29_spill] sm:$0xff] }
 0x1dd   : > { %v3981_v20 = vsub.f32 %v3975_v41, %v6236_v26  ;;  %v6321_v41 = vmul.f32 0.7788008, %v6301_v7  ;;  %v6342_v50 = vmul.f32 0.020974154, %v8952_v49 }
 0x1de   : > { %3982 = vst.msk [vmem:[%s6256_s29] sm:$0xff] %vm380_vm3, %v3980_v42 }
 0x1df   : > { %3983 = vst.msk [vmem:[%s6256_s29 + $0x8] sm:$0xff] %vm380_vm3, %v3981_v20 }
 0x1e0   : > { %1567 = vrot.lane.b32.xlu1 %v6065_v46, %s5200_s27  ;;  %1565 = vrot.lane.b32.xlu0 %v6049_v23, %s5200_s27  ;;  %8949 = vst [vmem:[#allocation11_spill] sm:$0xff] %v6321_v41 }
 0x1e1   : > { %1575 = vrot.lane.b32.xlu2 %v6058_v8, %s5200_s27 }
 0x1e2   : > { %v1128_v39 = vpop.permute.xlu1 %1127  ;;  %v1126_v61 = vpop.permute.xlu0 %1125 }
 0x1e3   : > { %v6272_v44 = vpop.permute.xlu2 %1295  ;;  %v1134_v13 = vadd.f32 %v1128_v39, %v1119_v32 }
 0x1e8   : > { %1579 = vrot.lane.b32.xlu1 %v6068_v55, %s5200_s27  ;;  %1577 = vrot.lane.b32.xlu0 %v6162_v27, %s5200_s27  ;;  %v8945_v55 = vld [vmem:[#allocation14_spill] sm:$0xff]  ;;  %v6296_v27 = vadd.f32 %v6181_v31, %v1132_v59  ;;  %v1120_v31 = vadd.f32 %v6087_v3, %v1102_v6  ;;  %v6330_v3 = vmul.f32 0.9394131, %v6293_v34  ;;  %v8953_v6 = vld [vmem:[#allocation12_spill] sm:$0xff] }
 0x1e9   : > { %1590 = vrot.lane.b32.xlu2 %v6279_v43, %s5201_s28  ;;  %v1085_v9 = vadd.f32 %v6143_v11, %v8945_v55  ;;  %8948 = vst [vmem:[#allocation14_spill] sm:$0xff] %v6308_v12  ;;  %v6310_v11 = vld [vmem:[#allocation2 + $0x98] sm:$0xff]  ;;  %v8951_v55 = vld [vmem:[#allocation28_spill] sm:$0xff]  ;;  %v1104_v32 = vadd.f32 %v6174_v63, %v8953_v6 }
 0x1ea   : > { %v1140_v8 = vpop.permute.xlu1 %1139  ;;  %v1138_v17 = vpop.permute.xlu0 %1137  ;;  %v1178_v24 = vmul.f32 0.7788008, %v6296_v27  ;;  %v6327_v33 = vmul.f32 0.7788008, %v6310_v11  ;;  %v1144_v39 = vadd.f32 %v6150_v15, %v1120_v31  ;;  %v8954_v15 = vld [vmem:[#allocation13_spill] sm:$0xff] }
 0x1eb   : > { %v6286_v22 = vpop.permute.xlu2 %1313  ;;  %v1118_v4 = vadd.f32 %v6224_v51, %v1085_v9  ;;  %v6339_v9 = vmul.f32 0.020974154, %v8951_v55  ;;  %v1103_v31 = vadd.f32 %v6176_v53, %v8954_v15  ;;  %v1211_v55 = vrot.slane %v6296_v27, 2 }
 0x1ec   : > { %8950 = vst [vmem:[#allocation23_spill] sm:$0xff] %v6327_v33  ;;  %v1122_v36 = vadd.f32 %v6222_v37, %v1104_v32  ;;  %v1232_v48 = vrot.slane %v1178_v24, 3 }
 0x1ed   : > { %v1133_v45 = vadd.f32 %v1126_v61, %v1118_v4  ;;  %v6347_v4 = vmul.f32 0.9394131, %v6310_v11  ;;  %v1121_v63 = vadd.f32 %v6224_v51, %v1103_v31 }
 0x1f0   : > { %1594 = vrot.lane.b32.xlu1 %v6299_v62, %s5201_s28  ;;  %1592 = vrot.lane.b32.xlu0 %v6308_v12, %s5201_s28 }
 0x1f1   : > { %1602 = vrot.lane.b32.xlu2 %v6046_v58, %s5201_s28 }
 0x1f2   : > { %v1155_v42 = vpop.permute.xlu1 %1154  ;;  %v1153_v20 = vpop.permute.xlu0 %1152 }
 0x1f3   : > { %v1161_v61 = vadd.f32 %v1155_v42, %v1134_v13  ;;  %v1160_v40 = vadd.f32 %v1153_v20, %v1133_v45  ;;  %v6333_v59 = vpop.permute.xlu2 %1328  ;;  %v1174_v13 = vmul.f32 0.36787945, %v6296_v27  ;;  %v6353_v45 = vadd.f32 %v6227_v35, %v1144_v39 }
 0x1f4   : > { %v1184_v20 = vrot.slane %v1178_v24, 1  ;;  %v1146_v39 = vadd.f32 %v1140_v8, %v1122_v36  ;;  %v1145_v27 = vadd.f32 %v1138_v17, %v1121_v63 }
 0x1f5   : > { %v1180_v42 = vmul.f32 0.7788008, %v1161_v61  ;;  %v1175_v49 = vmul.f32 0.36787945, %v1160_v40  ;;  %v1179_v21 = vmul.f32 0.7788008, %v1160_v40 }
 0x1f6   : > { %v1250_v47 = vmul.f32 0.36787945, %v1161_v61  ;;  %v1214_v19 = vrot.slane %v1161_v61, 2  ;;  %v1212_v15 = vrot.slane %v1160_v40, 2  ;;  %v6361_v35 = vmul.f32 0.9394131, %v6353_v45 }
 0x1f7   : > { %v1187_v6 = vrot.slane %v1180_v42, 1  ;;  %v1185_v53 = vrot.slane %v1179_v21, 1  ;;  %v1235_v38 = vrot.slane %v1180_v42, 3  ;;  %v1233_v24 = vrot.slane %v1179_v21, 3 }
 0x1f8   : > { %1606 = vrot.lane.b32.xlu1 %v6065_v46, %s5201_s28  ;;  %1604 = vrot.lane.b32.xlu0 %v6049_v23, %s5201_s28  ;;  %v1255_v61 = vrot.slane %v1175_v49, 4  ;;  %v1254_v31 = vrot.slane %v1174_v13, 4  ;;  %v1257_v46 = vrot.slane %v1250_v47, 4  ;;  %v1213_v17 = vsel %vm548_vm5, %v1211_v55, %v1212_v15 }
 0x1f9   : > { %v1186_v37 = vsel %vm520_vm4, %v1184_v20, %v1185_v53  ;;  %v1188_v51 = vsel %vm520_vm4, %v1185_v53, %v1187_v6  ;;  %1735 = vrot.lane.b32.xlu2 %v6315_v1, %s5199_s26  ;;  %v1215_v42 = vsel %vm548_vm5, %v1212_v15, %v1214_v19  ;;  %v3990_v21 = vmul.f32 0.022201141, %v6127_v16 }
 0x1fa   : > { %v1167_v40 = vpop.permute.xlu1 %1166  ;;  %v1165_v32 = vpop.permute.xlu0 %1164  ;;  %v1191_v58 = vadd.f32 %v1186_v37, %v1174_v13  ;;  %v1192_v36 = vadd.f32 %v1188_v51, %v1175_v49  ;;  %v1199_v6 = vrot.slane %v6361_v35, 1  ;;  %v1234_v12 = vsel %vm570_vm6, %v1232_v48, %v1233_v24 }
 0x1fb   : > { %v6369_v8 = vpop.permute.xlu2 %1343  ;;  %v1173_v20 = vadd.f32 %v1167_v40, %v1146_v39  ;;  %v1172_v63 = vadd.f32 %v1165_v32, %v1145_v27  ;;  %v1236_v47 = vsel %vm570_vm6, %v1233_v24, %v1235_v38  ;;  %v1256_v13 = vsel %vm593_vm7, %v1254_v31, %v1255_v61 }
 0x1fc   : > { %v1218_v53 = vadd.f32 %v1213_v17, %v1191_v58  ;;  %v1219_v23 = vadd.f32 %v1215_v42, %v1192_v36  ;;  %v1258_v55 = vsel %vm593_vm7, %v1255_v61, %v1257_v46  ;;  %v3991_v38 = vmul.f32 0.022201141, %v6145_v57  ;;  %v5092_v42 = vld [vmem:[#allocation3 + $0x20] sm:$0xff] }
 0x1fd   : > { %v1195_v49 = vmul.f32 0.9394131, %v1173_v20  ;;  %v1194_v19 = vmul.f32 0.9394131, %v1172_v63  ;;  %v1226_v39 = vrot.slane %v1173_v20, 2  ;;  %v1224_v16 = vrot.slane %v1172_v63, 2 }
 0x1fe   : > { %v1239_v37 = vadd.f32 %v1234_v12, %v1218_v53  ;;  %v1240_v51 = vadd.f32 %v1236_v47, %v1219_v23  ;;  %v1263_v27 = vmul.f32 0.7788008, %v1173_v20  ;;  %v1177_v48 = vmul.f32 0.7788008, %v1172_v63 }
 0x1ff   : > { %v1202_v15 = vrot.slane %v1195_v49, 1  ;;  %v1200_v32 = vrot.slane %v1194_v19, 1  ;;  %v3992_v23 = vsub.f32 %v6339_v9, %v3990_v21  ;;  %v1176_v46 = vmul.f32 0.7788008, %v6353_v45 }
 0x200   : > { %1739 = vrot.lane.b32.xlu1 %v6321_v41, %s5199_s26  ;;  %v1261_v58 = vadd.f32 %v1256_v13, %v1239_v37  ;;  %v1262_v40 = vadd.f32 %v1258_v55, %v1240_v51  ;;  %1737 = vrot.lane.b32.xlu0 %v6327_v33, %s5199_s26  ;;  %v1223_v12 = vrot.slane %v6353_v45, 2  ;;  %v1244_v31 = vrot.slane %v1195_v49, 3  ;;  %v5093_v37 = vld [vmem:[#allocation3 + $0x28] sm:$0xff] }
 0x201   : > { %1753 = vrot.lane.b32.xlu2 %v6330_v3, %s5199_s26  ;;  %v1201_v36 = vsel %vm520_vm4, %v1199_v6, %v1200_v32  ;;  %v1203_v57 = vsel %vm520_vm4, %v1200_v32, %v1202_v15  ;;  %v1242_v17 = vrot.slane %v1194_v19, 3  ;;  %v3996_v20 = vmul.f32 0.044402283, %v5092_v42  ;;  %v5094_v15 = vld [vmem:[#allocation4 + $0x20] sm:$0xff] }
 0x202   : > { %v6389_v24 = vpop.permute.xlu1 %1299  ;;  %v6391_v61 = vpop.permute.xlu0 %1297  ;;  %1277 = vst.msk [vmem:[#allocation3 + $0x50] sm:$0xff] %vm380_vm3, %v1261_v58  ;;  %v1241_v45 = vrot.slane %v6361_v35, 3  ;;  %v1206_v63 = vadd.f32 %v1201_v36, %v1176_v46  ;;  %v1207_v21 = vadd.f32 %v1203_v57, %v1177_v48  ;;  %v1270_v53 = vrot.slane %v1263_v27, 4  ;;  %v5095_v36 = vld [vmem:[#allocation4 + $0x28] sm:$0xff]  ;;  %v8956_v42 = vld [vmem:[#allocation19_spill] sm:$0xff] }
 0x203   : > { %v6396_v9 = vpop.permute.xlu2 %1355  ;;  %1278 = vst.msk [vmem:[#allocation3 + $0x58] sm:$0xff] %vm380_vm3, %v1262_v40  ;;  %v1225_v47 = vsel %vm548_vm5, %v1223_v12, %v1224_v16  ;;  %v1227_v13 = vsel %vm548_vm5, %v1224_v16, %v1226_v39  ;;  %v1268_v49 = vrot.slane %v1177_v48, 4  ;;  %v3993_v6 = vsub.f32 %v6342_v50, %v3991_v38  ;;  %v8955_v50 = vld [vmem:[#allocation18_spill] sm:$0xff] }
 0x204   : > { %v3997_v51 = vmul.f32 0.044402283, %v5093_v37  ;;  %v1230_v55 = vadd.f32 %v1225_v47, %v1206_v63  ;;  %v1231_v19 = vadd.f32 %v1227_v13, %v1207_v21  ;;  %v4002_v58 = vmul.f32 0.026779689, %v5094_v15  ;;  %v8957_v47 = vld [vmem:[#allocation20_spill] sm:$0xff] }
 0x205   : > { %v1267_v32 = vrot.slane %v1176_v46, 4  ;;  %v1243_v35 = vsel %vm570_vm6, %v1241_v45, %v1242_v17  ;;  %v1245_v40 = vsel %vm570_vm6, %v1242_v17, %v1244_v31  ;;  %v4003_v27 = vmul.f32 0.026779689, %v5095_v36 }
 0x206   : > { %v1248_v57 = vadd.f32 %v1243_v35, %v1230_v55  ;;  %v1249_v12 = vadd.f32 %v1245_v40, %v1231_v19  ;;  %v3998_v39 = vadd.f32 %v3996_v20, %v3992_v23  ;;  %v4008_v16 = vmul.f32 0.05701366, %v8955_v50 }
 0x207   : > { %v1269_v48 = vsel %vm593_vm7, %v1267_v32, %v1268_v49  ;;  %v1271_v38 = vsel %vm593_vm7, %v1268_v49, %v1270_v53  ;;  %v3999_v46 = vadd.f32 %v3997_v51, %v3993_v6  ;;  %v4009_v31 = vmul.f32 0.05701366, %v8956_v42  ;;  %v8958_v51 = vld [vmem:[#allocation21_spill] sm:$0xff] }
 0x208   : > { %1757 = vrot.lane.b32.xlu1 %v6336_v25, %s5199_s26  ;;  %1755 = vrot.lane.b32.xlu0 %v6347_v4, %s5199_s26  ;;  %v1274_v45 = vadd.f32 %v1269_v48, %v1248_v57  ;;  %v1275_v63 = vadd.f32 %v1271_v38, %v1249_v12  ;;  %v4004_v20 = vsub.f32 %v3998_v39, %v4002_v58  ;;  %v4014_v13 = vmul.f32 0.02850683, %v8957_v47 }
 0x209   : > { %v4030_v17 = vld [vmem:[#allocation3 + $0x50] sm:$0xff]  ;;  %1768 = vrot.lane.b32.xlu2 %v6293_v34, %s5198_s17  ;;  %v4005_v6 = vsub.f32 %v3999_v46, %v4003_v27  ;;  %v4015_v55 = vmul.f32 0.02850683, %v8958_v51  ;;  %v8959_v40 = vsub.f32 %v6213_v0, %v6231_v18  ;;  %v8960_v57 = vsub.f32 %v6190_v28, %v6233_v14 }
 0x20a   : > { %v6415_v21 = vpop.permute.xlu1 %1317  ;;  %v6417_v23 = vpop.permute.xlu0 %1315  ;;  %v4031_v53 = vld [vmem:[#allocation3 + $0x58] sm:$0xff]  ;;  %v6420_v49 = vmul.f32 0.044402283, %v4030_v17  ;;  %v4130_v15 = vmul.f32 0.05701366, %v4030_v17  ;;  %v4010_v32 = vadd.f32 %v4008_v16, %v4004_v20  ;;  %1280 = vst.msk [vmem:[#allocation4 + $0x50] sm:$0xff] %vm380_vm3, %v1274_v45  ;;  %v8961_v12 = vsub.f32 %v6220_v60, %v6236_v26 }
 0x20b   : > { %v6422_v37 = vpop.permute.xlu2 %1370  ;;  %v6425_v19 = vmul.f32 0.044402283, %v4031_v53  ;;  %v4131_v35 = vmul.f32 0.05701366, %v4031_v53  ;;  %v4011_v36 = vadd.f32 %v4009_v31, %v4005_v6  ;;  %1281 = vst.msk [vmem:[#allocation4 + $0x58] sm:$0xff] %vm380_vm3, %v1275_v63  ;;  %v8962_v0 = vsub.f32 %v6202_v30, %v6238_v5 }
 0x20c   : > { %v6431_v58 = vadd.f32 %v8959_v40, %v6420_v49  ;;  %v6437_v27 = vadd.f32 %v4130_v15, %v8960_v57  ;;  %v4016_v50 = vsub.f32 %v4010_v32, %v4014_v13  ;;  %v6454_v48 = vmul.f32 0.020974154, %v4030_v17 }
 0x20d   : > { %v6443_v39 = vadd.f32 %v8961_v12, %v6425_v19  ;;  %v6449_v18 = vadd.f32 %v4131_v35, %v8962_v0  ;;  %v4017_v16 = vsub.f32 %v4011_v36, %v4015_v55  ;;  %v6459_v26 = vmul.f32 0.020974154, %v4031_v53 }
 0x20e   : > { %v4022_v28 = vadd.f32 %v6179_v56, %v4016_v50  ;;  %v8963_v50 = vld [vmem:[#allocation22_spill] sm:$0xff] }
 0x20f   : > { %v4023_v60 = vadd.f32 %v6184_v10, %v4017_v16  ;;  %v1304_v0 = vadd.f32 %v6272_v44, %v8963_v50  ;;  %v6516_v16 = vmul.f32 0.36787945, %v6293_v34 }
 0x210   : > { %1772 = vrot.lane.b32.xlu1 %v6301_v7, %s5198_s17  ;;  %1770 = vrot.lane.b32.xlu0 %v6310_v11, %s5198_s17  ;;  %v4028_v46 = vsub.f32 %v4022_v28, %v6233_v14 }
 0x211   : > { %1783 = vrot.lane.b32.xlu2 %v6315_v1, %s5200_s27  ;;  %v4029_v56 = vsub.f32 %v4023_v60, %v6238_v5  ;;  %v4036_v31 = vld [vmem:[#allocation4 + $0x50] sm:$0xff]  ;;  %v1337_v28 = vadd.f32 %v6333_v59, %v1304_v0 }
 0x212   : > { %v6463_v30 = vpop.permute.xlu1 %1332  ;;  %v6465_v38 = vpop.permute.xlu0 %1330  ;;  %v4034_v17 = vadd.f32 %v6454_v48, %v4028_v46  ;;  %v4037_v10 = vld [vmem:[#allocation4 + $0x58] sm:$0xff]  ;;  %v6472_v45 = vmul.f32 0.022201141, %v4036_v31  ;;  %v6474_v63 = vmul.f32 0.026779689, %v4036_v31 }
 0x213   : > { %v6468_v42 = vpop.permute.xlu2 %1382  ;;  %v4035_v20 = vadd.f32 %v6459_v26, %v4029_v56  ;;  %v6477_v47 = vmul.f32 0.022201141, %v4037_v10  ;;  %v6479_v13 = vmul.f32 0.026779689, %v4037_v10  ;;  %v6481_v14 = vmul.f32 0.02850683, %v4036_v31 }
 0x214   : > { %v4040_v5 = vsub.f32 %v4034_v17, %v6472_v45  ;;  %v6484_v53 = vmul.f32 0.02850683, %v4037_v10  ;;  %v1352_v44 = vadd.f32 %v6369_v8, %v1337_v28  ;;  %v8964_v56 = vld [vmem:[#allocation24_spill] sm:$0xff]  ;;  %v8965_v31 = vld [vmem:[#allocation25_spill] sm:$0xff]  ;;  %v8966_v10 = vld [vmem:[#allocation15_spill] sm:$0xff] }
 0x215   : > { %v4041_v51 = vsub.f32 %v4035_v20, %v6477_v47  ;;  %v1305_v34 = vadd.f32 %v6391_v61, %v8965_v31  ;;  %v1322_v20 = vadd.f32 %v6286_v22, %v8966_v10  ;;  %v6550_v22 = vld [vmem:[#allocation2 + $0xb0] sm:$0xff] }
 0x216   : > { %4999 = vst.msk [vmem:[%s6256_s29 + $0x10] sm:$0xff] %vm380_vm3, %v4040_v5  ;;  %v1379_v17 = vadd.f32 %v6422_v37, %v1352_v44 }
 0x217   : > { %5000 = vst.msk [vmem:[%s6256_s29 + $0x18] sm:$0xff] %vm380_vm3, %v4041_v51  ;;  %v6538_v51 = vmul.f32 0.36787945, %v6310_v11  ;;  %v1338_v8 = vadd.f32 %v6465_v38, %v1305_v34  ;;  %v1340_v61 = vadd.f32 %v6333_v59, %v1322_v20  ;;  %v8971_v20 = vld [vmem:[#allocation17_spill] sm:$0xff] }
 0x218   : > { %1787 = vrot.lane.b32.xlu1 %v6321_v41, %s5200_s27  ;;  %1785 = vrot.lane.b32.xlu0 %v6327_v33, %s5200_s27  ;;  %v1398_v50 = vmul.f32 0.7788008, %v1379_v17 }
 0x219   : > { %1795 = vrot.lane.b32.xlu2 %v6330_v3, %s5200_s27  ;;  %v1364_v28 = vadd.f32 %v6396_v9, %v1340_v61  ;;  %v1323_v9 = vadd.f32 %v6417_v23, %v8971_v20 }
 0x21a   : > { %v1348_v36 = vpop.permute.xlu1 %1347  ;;  %v1346_v57 = vpop.permute.xlu0 %1345  ;;  %v1452_v15 = vrot.slane %v1398_v50, 3 }
 0x21b   : > { %v6509_v12 = vpop.permute.xlu2 %1515  ;;  %v1353_v11 = vadd.f32 %v1346_v57, %v1338_v8  ;;  %v6566_v57 = vmul.f32 0.7788008, %v6550_v22  ;;  %v6571_v8 = vadd.f32 %v6468_v42, %v1364_v28 }
 0x21d   : > { %8970 = vst [vmem:[#allocation12_spill] sm:$0xff] %v6566_v57  ;;  %v6578_v23 = vmul.f32 0.9394131, %v6571_v8 }
 0x220   : > { %1799 = vrot.lane.b32.xlu1 %v6336_v25, %s5200_s27  ;;  %1797 = vrot.lane.b32.xlu0 %v6347_v4, %s5200_s27  ;;  %v1306_v25 = vadd.f32 %v6389_v24, %v8964_v56  ;;  %v6532_v4 = vmul.f32 0.36787945, %v6301_v7  ;;  %v6543_v24 = vld [vmem:[#allocation2 + $0xa8] sm:$0xff]  ;;  %v6548_v7 = vld [vmem:[#allocation2 + $0xb8] sm:$0xf] }
 0x221   : > { %1810 = vrot.lane.b32.xlu2 %v6516_v16, %s5201_s28  ;;  %v6558_v59 = vmul.f32 0.7788008, %v6543_v24  ;;  %v6563_v10 = vmul.f32 0.7788008, %v6548_v7 }
 0x222   : > { %v1360_v3 = vpop.permute.xlu1 %1359  ;;  %v1358_v60 = vpop.permute.xlu0 %1357  ;;  %v1339_v5 = vadd.f32 %v6463_v30, %v1306_v25 }
 0x223   : > { %v6523_v46 = vpop.permute.xlu2 %1533  ;;  %8967 = vst [vmem:[#allocation28_spill] sm:$0xff] %v6558_v59 }
 0x224   : > { %v1354_v37 = vadd.f32 %v1348_v36, %v1339_v5  ;;  %v8968_v36 = vld [vmem:[#allocation16_spill] sm:$0xff]  ;;  %8969 = vst [vmem:[#allocation29_spill] sm:$0xff] %v6563_v10  ;;  %v1394_v5 = vmul.f32 0.36787945, %v1379_v17 }
 0x225   : > { %v1324_v31 = vadd.f32 %v6415_v21, %v8968_v36 }
 0x227   : > { %v1342_v21 = vadd.f32 %v6463_v30, %v1324_v31 }
 0x228   : > { %1814 = vrot.lane.b32.xlu1 %v6532_v4, %s5201_s28  ;;  %1812 = vrot.lane.b32.xlu0 %v6538_v51, %s5201_s28 }
 0x229   : > { %1822 = vrot.lane.b32.xlu2 %v6315_v1, %s5201_s28  ;;  %v1366_v42 = vadd.f32 %v1360_v3, %v1342_v21 }
 0x22a   : > { %v1375_v0 = vpop.permute.xlu1 %1374  ;;  %v1373_v56 = vpop.permute.xlu0 %1372 }
 0x22b   : > { %v1381_v44 = vadd.f32 %v1375_v0, %v1354_v37  ;;  %v6555_v25 = vpop.permute.xlu2 %1548  ;;  %v1380_v34 = vadd.f32 %v1373_v56, %v1353_v11  ;;  %v1404_v37 = vrot.slane %v1398_v50, 1  ;;  %v1431_v0 = vrot.slane %v1379_v17, 2 }
 0x22c   : > { %v1341_v11 = vadd.f32 %v6465_v38, %v1323_v9 }
 0x22d   : > { %v1400_v61 = vmul.f32 0.7788008, %v1381_v44  ;;  %v1395_v32 = vmul.f32 0.36787945, %v1380_v34  ;;  %v1399_v55 = vmul.f32 0.7788008, %v1380_v34 }
 0x22e   : > { %v1470_v36 = vmul.f32 0.36787945, %v1381_v44  ;;  %v1434_v40 = vrot.slane %v1381_v44, 2  ;;  %v1432_v35 = vrot.slane %v1380_v34, 2  ;;  %v1365_v17 = vadd.f32 %v1358_v60, %v1341_v11 }
 0x22f   : > { %v1407_v56 = vrot.slane %v1400_v61, 1  ;;  %v1405_v6 = vrot.slane %v1399_v55, 1  ;;  %v1455_v28 = vrot.slane %v1400_v61, 3  ;;  %v1453_v50 = vrot.slane %v1399_v55, 3 }
 0x230   : > { %1826 = vrot.lane.b32.xlu1 %v6321_v41, %s5201_s28  ;;  %1824 = vrot.lane.b32.xlu0 %v6327_v33, %s5201_s28  ;;  %v1475_v44 = vrot.slane %v1395_v32, 4  ;;  %v1474_v34 = vrot.slane %v1394_v5, 4  ;;  %v1477_v20 = vrot.slane %v1470_v36, 4  ;;  %v1433_v61 = vsel %vm548_vm5, %v1431_v0, %v1432_v35 }
 0x231   : > { %v1406_v30 = vsel %vm520_vm4, %v1404_v37, %v1405_v6  ;;  %v1408_v38 = vsel %vm520_vm4, %v1405_v6, %v1407_v56  ;;  %1955 = vrot.lane.b32.xlu2 %v6558_v59, %s5199_s26  ;;  %v1435_v21 = vsel %vm548_vm5, %v1432_v35, %v1434_v40  ;;  %v1419_v6 = vrot.slane %v6578_v23, 1 }
 0x232   : > { %v1387_v31 = vpop.permute.xlu1 %1386  ;;  %v1411_v9 = vadd.f32 %v1406_v30, %v1394_v5  ;;  %v1412_v41 = vadd.f32 %v1408_v38, %v1395_v32  ;;  %v1385_v3 = vpop.permute.xlu0 %1384  ;;  %v6592_v33 = vmul.f32 0.9394131, %v6543_v24  ;;  %v1454_v36 = vsel %vm570_vm6, %v1452_v15, %v1453_v50 }
 0x233   : > { %v6586_v60 = vpop.permute.xlu2 %1563  ;;  %v1393_v37 = vadd.f32 %v1387_v31, %v1366_v42  ;;  %v1392_v11 = vadd.f32 %v1385_v3, %v1365_v17  ;;  %v1456_v32 = vsel %vm570_vm6, %v1453_v50, %v1455_v28  ;;  %v1476_v5 = vsel %vm593_vm7, %v1474_v34, %v1475_v44 }
 0x234   : > { %v1438_v55 = vadd.f32 %v1433_v61, %v1411_v9  ;;  %v1439_v56 = vadd.f32 %v1435_v21, %v1412_v41  ;;  %v1478_v35 = vsel %vm593_vm7, %v1475_v44, %v1477_v20  ;;  %v1396_v28 = vmul.f32 0.7788008, %v6571_v8 }
 0x235   : > { %v1415_v30 = vmul.f32 0.9394131, %v1393_v37  ;;  %v1414_v40 = vmul.f32 0.9394131, %v1392_v11  ;;  %v1446_v17 = vrot.slane %v1393_v37, 2  ;;  %v1444_v9 = vrot.slane %v1392_v11, 2 }
 0x236   : > { %v1459_v38 = vadd.f32 %v1454_v36, %v1438_v55  ;;  %v1460_v0 = vadd.f32 %v1456_v32, %v1439_v56  ;;  %v1483_v31 = vmul.f32 0.7788008, %v1393_v37  ;;  %v1397_v15 = vmul.f32 0.7788008, %v1392_v11 }
 0x237   : > { %v1422_v42 = vrot.slane %v1415_v30, 1  ;;  %v1420_v61 = vrot.slane %v1414_v40, 1  ;;  %v1443_v50 = vrot.slane %v6571_v8, 2  ;;  %v1464_v34 = vrot.slane %v1415_v30, 3 }
 0x238   : > { %1959 = vrot.lane.b32.xlu1 %v6563_v10, %s5199_s26  ;;  %v1481_v41 = vadd.f32 %v1476_v5, %v1459_v38  ;;  %v1482_v3 = vadd.f32 %v1478_v35, %v1460_v0  ;;  %1957 = vrot.lane.b32.xlu0 %v6566_v57, %s5199_s26  ;;  %v1462_v37 = vrot.slane %v1414_v40, 3  ;;  %v1461_v55 = vrot.slane %v6578_v23, 3 }
 0x239   : > { %1973 = vrot.lane.b32.xlu2 %v6592_v33, %s5199_s26  ;;  %v1421_v20 = vsel %vm520_vm4, %v1419_v6, %v1420_v61  ;;  %v1423_v21 = vsel %vm520_vm4, %v1420_v61, %v1422_v42  ;;  %v1490_v32 = vrot.slane %v1483_v31, 4  ;;  %v1445_v5 = vsel %vm548_vm5, %v1443_v50, %v1444_v9 }
 0x23a   : > { %v6606_v44 = vpop.permute.xlu1 %1519  ;;  %1497 = vst.msk [vmem:[#allocation3 + $0x60] sm:$0xff] %vm380_vm3, %v1481_v41  ;;  %v6611_v11 = vpop.permute.xlu0 %1517  ;;  %v1426_v8 = vadd.f32 %v1421_v20, %v1396_v28  ;;  %v1427_v56 = vadd.f32 %v1423_v21, %v1397_v15  ;;  %v1447_v30 = vsel %vm548_vm5, %v1444_v9, %v1446_v17  ;;  %v1488_v38 = vrot.slane %v1397_v15, 4 }
 0x23b   : > { %1498 = vst.msk [vmem:[#allocation3 + $0x68] sm:$0xff] %vm380_vm3, %v1482_v3  ;;  %v6615_v36 = vpop.permute.xlu2 %1575  ;;  %v6620_v35 = vmul.f32 0.9394131, %v6548_v7  ;;  %v1487_v40 = vrot.slane %v1396_v28, 4  ;;  %v1463_v23 = vsel %vm570_vm6, %v1461_v55, %v1462_v37  ;;  %v1465_v42 = vsel %vm570_vm6, %v1462_v37, %v1464_v34 }
 0x23c   : > { %v1450_v6 = vadd.f32 %v1445_v5, %v1426_v8  ;;  %v1451_v0 = vadd.f32 %v1447_v30, %v1427_v56  ;;  %v6625_v41 = vmul.f32 0.9394131, %v6550_v22  ;;  %v1491_v9 = vsel %vm593_vm7, %v1488_v38, %v1490_v32 }
 0x23d   : > { %v1489_v17 = vsel %vm593_vm7, %v1487_v40, %v1488_v38  ;;  %v8972_v32 = vsub.f32 %v6454_v48, %v6472_v45  ;;  %v8973_v30 = vsub.f32 %v6431_v58, %v6474_v63  ;;  %v8975_v48 = vsub.f32 %v6443_v39, %v6479_v13 }
 0x23e   : > { %v1468_v3 = vadd.f32 %v1463_v23, %v1450_v6  ;;  %v1469_v31 = vadd.f32 %v1465_v42, %v1451_v0  ;;  %v8974_v6 = vsub.f32 %v6459_v26, %v6477_v47  ;;  %v8976_v58 = vsub.f32 %v6196_v29, %v6240_v52 }
 0x23f   : > { %v8977_v26 = vsub.f32 %v6208_v2, %v6243_v54 }
 0x240   : > { %1977 = vrot.lane.b32.xlu1 %v6620_v35, %s5199_s26  ;;  %1975 = vrot.lane.b32.xlu0 %v6625_v41, %s5199_s26  ;;  %v1494_v61 = vadd.f32 %v1489_v17, %v1468_v3  ;;  %v1495_v28 = vadd.f32 %v1491_v9, %v1469_v31  ;;  %v4083_v40 = vadd.f32 %v6420_v49, %v8976_v58 }
 0x241   : > { %v4091_v15 = vld [vmem:[#allocation3 + $0x60] sm:$0xff]  ;;  %1988 = vrot.lane.b32.xlu2 %v6543_v24, %s5198_s17  ;;  %v4084_v39 = vadd.f32 %v6425_v19, %v8977_v26 }
 0x242   : > { %v6635_v50 = vpop.permute.xlu1 %1537  ;;  %v4092_v34 = vld [vmem:[#allocation3 + $0x68] sm:$0xff]  ;;  %v6637_v20 = vmul.f32 0.044402283, %v4091_v15  ;;  %v6639_v21 = vpop.permute.xlu0 %1535  ;;  %v4191_v55 = vmul.f32 0.05701366, %v4091_v15  ;;  %1500 = vst.msk [vmem:[#allocation4 + $0x60] sm:$0xff] %vm380_vm3, %v1494_v61  ;;  %v4089_v29 = vsub.f32 %v4083_v40, %v6474_v63 }
 0x243   : > { %v6641_v37 = vmul.f32 0.044402283, %v4092_v34  ;;  %v1591_v8 = vpop.permute.xlu2 %1590  ;;  %v4192_v56 = vmul.f32 0.05701366, %v4092_v34  ;;  %1501 = vst.msk [vmem:[#allocation4 + $0x68] sm:$0xff] %vm380_vm3, %v1495_v28  ;;  %v4090_v49 = vsub.f32 %v4084_v39, %v6479_v13  ;;  %v1524_v39 = vadd.f32 %v6509_v12, %v6279_v43  ;;  %v8978_v12 = vld [vmem:[#allocation14_spill] sm:$0xff] }
 0x244   : > { %v6647_v5 = vadd.f32 %v8972_v32, %v6637_v20  ;;  %v6653_v38 = vadd.f32 %v4191_v55, %v8973_v30  ;;  %v6673_v23 = vmul.f32 0.020974154, %v4091_v15  ;;  %v6681_v47 = vmul.f32 0.020974154, %v4092_v34 }
 0x245   : > { %v6659_v0 = vadd.f32 %v8974_v6, %v6641_v37  ;;  %v6665_v45 = vadd.f32 %v4192_v56, %v8975_v48  ;;  %v1526_v43 = vadd.f32 %v6606_v44, %v6299_v62  ;;  %v6764_v62 = vld [vmem:[#allocation2 + $0xc0] sm:$0xff] }
 0x246   : > { %v4095_v2 = vadd.f32 %v6673_v23, %v4089_v29  ;;  %v4096_v9 = vadd.f32 %v6681_v47, %v4090_v49  ;;  %v6738_v29 = vmul.f32 0.36787945, %v6543_v24  ;;  %v1557_v49 = vadd.f32 %v6555_v25, %v1524_v39 }
 0x247   : > { %v1525_v24 = vadd.f32 %v6611_v11, %v8978_v12  ;;  %v6759_v39 = vmul.f32 0.36787945, %v6550_v22  ;;  %v6775_v12 = vmul.f32 0.7788008, %v6764_v62 }
 0x248   : > { %1992 = vrot.lane.b32.xlu1 %v6548_v7, %s5198_s17  ;;  %1990 = vrot.lane.b32.xlu0 %v6550_v22, %s5198_s17 }
 0x249   : > { %2003 = vrot.lane.b32.xlu2 %v6558_v59, %s5200_s27  ;;  %v4097_v3 = vld [vmem:[#allocation4 + $0x60] sm:$0xff]  ;;  %8980 = vst [vmem:[#allocation13_spill] sm:$0xff] %v6759_v39 }
 0x24a   : > { %v6685_v42 = vpop.permute.xlu1 %1552  ;;  %v6688_v52 = vpop.permute.xlu0 %1550  ;;  %v4098_v54 = vld [vmem:[#allocation4 + $0x68] sm:$0xff]  ;;  %v6694_v19 = vmul.f32 0.022201141, %v4097_v3  ;;  %v6696_v17 = vmul.f32 0.026779689, %v4097_v3 }
 0x24b   : > { %v6691_v31 = vpop.permute.xlu2 %1602  ;;  %v6699_v15 = vmul.f32 0.022201141, %v4098_v54  ;;  %v6701_v63 = vmul.f32 0.026779689, %v4098_v54  ;;  %v6703_v61 = vmul.f32 0.02850683, %v4097_v3 }
 0x24c   : > { %v4101_v13 = vsub.f32 %v4095_v2, %v6694_v19  ;;  %v6706_v28 = vmul.f32 0.02850683, %v4098_v54  ;;  %v1572_v2 = vadd.f32 %v6586_v60, %v1557_v49  ;;  %v1558_v60 = vadd.f32 %v6688_v52, %v1525_v24 }
 0x24d   : > { %v4102_v55 = vsub.f32 %v4096_v9, %v6699_v15  ;;  %v8979_v9 = vld [vmem:[#allocation26_spill] sm:$0xff] }
 0x24e   : > { %5001 = vst.msk [vmem:[%s6256_s29 + $0x20] sm:$0xff] %vm380_vm3, %v4101_v13  ;;  %v1542_v13 = vadd.f32 %v6523_v46, %v8979_v9 }
 0x24f   : > { %5002 = vst.msk [vmem:[%s6256_s29 + $0x28] sm:$0xff] %vm380_vm3, %v4102_v55  ;;  %v1559_v55 = vadd.f32 %v6685_v42, %v1526_v43 }
 0x250   : > { %2007 = vrot.lane.b32.xlu1 %v6563_v10, %s5200_s27  ;;  %2005 = vrot.lane.b32.xlu0 %v6566_v57, %s5200_s27  ;;  %v1560_v44 = vadd.f32 %v6555_v25, %v1542_v13  ;;  %v8981_v25 = vld [vmem:[#allocation30_spill] sm:$0xff] }
 0x251   : > { %2015 = vrot.lane.b32.xlu2 %v6592_v33, %s5200_s27 }
 0x252   : > { %v1568_v58 = vpop.permute.xlu1 %1567  ;;  %v1566_v40 = vpop.permute.xlu0 %1565  ;;  %v1584_v49 = vadd.f32 %v6615_v36, %v1560_v44 }
 0x253   : > { %v6731_v26 = vpop.permute.xlu2 %1735  ;;  %v1574_v11 = vadd.f32 %v1568_v58, %v1559_v55  ;;  %v1544_v58 = vadd.f32 %v6635_v50, %v8981_v25  ;;  %v8983_v55 = vld [vmem:[#allocation27_spill] sm:$0xff] }
 0x254   : > { %v1543_v36 = vadd.f32 %v6639_v21, %v8983_v55  ;;  %v6790_v44 = vadd.f32 %v6691_v31, %v1584_v49 }
 0x256   : > { %v1561_v25 = vadd.f32 %v6688_v52, %v1543_v36  ;;  %v6797_v21 = vmul.f32 0.9394131, %v6790_v44 }
 0x258   : > { %2019 = vrot.lane.b32.xlu1 %v6620_v35, %s5200_s27  ;;  %2017 = vrot.lane.b32.xlu0 %v6625_v41, %s5200_s27  ;;  %v1599_v35 = vadd.f32 %v1591_v8, %v1572_v2  ;;  %v6753_v41 = vmul.f32 0.36787945, %v6548_v7  ;;  %v6769_v7 = vld [vmem:[#allocation2 + $0xc8] sm:$0xff]  ;;  %v1573_v8 = vadd.f32 %v1566_v40, %v1558_v60  ;;  %v6785_v40 = vmul.f32 0.9394131, %v6764_v62 }
 0x259   : > { %2030 = vrot.lane.b32.xlu2 %v6738_v29, %s5201_s28  ;;  %v6782_v13 = vmul.f32 0.7788008, %v6769_v7 }
 0x25a   : > { %v1580_v33 = vpop.permute.xlu1 %1579  ;;  %v1578_v3 = vpop.permute.xlu0 %1577  ;;  %v1618_v46 = vmul.f32 0.7788008, %v1599_v35  ;;  %v1614_v60 = vmul.f32 0.36787945, %v1599_v35  ;;  %v1651_v30 = vrot.slane %v1599_v35, 2 }
 0x25b   : > { %v6746_v54 = vpop.permute.xlu2 %1753  ;;  %8982 = vst [vmem:[#allocation18_spill] sm:$0xff] %v6782_v13  ;;  %v1585_v35 = vadd.f32 %v1578_v3, %v1561_v25 }
 0x25c   : > { %v1672_v48 = vrot.slane %v1618_v46, 3  ;;  %v1694_v55 = vrot.slane %v1614_v60, 4 }
 0x260   : > { %2034 = vrot.lane.b32.xlu1 %v6753_v41, %s5201_s28  ;;  %2032 = vrot.lane.b32.xlu0 %v6759_v39, %s5201_s28 }
 0x261   : > { %2042 = vrot.lane.b32.xlu2 %v6558_v59, %s5201_s28 }
 0x262   : > { %v1595_v22 = vpop.permute.xlu1 %1594  ;;  %v1593_v43 = vpop.permute.xlu0 %1592 }
 0x263   : > { %v1601_v2 = vadd.f32 %v1595_v22, %v1574_v11  ;;  %v1600_v24 = vadd.f32 %v1593_v43, %v1573_v8  ;;  %v6779_v9 = vpop.permute.xlu2 %1768  ;;  %v1624_v22 = vrot.slane %v1618_v46, 1  ;;  %v1562_v43 = vadd.f32 %v6685_v42, %v1544_v58 }
 0x265   : > { %v1620_v11 = vmul.f32 0.7788008, %v1601_v2  ;;  %v1615_v50 = vmul.f32 0.36787945, %v1600_v24  ;;  %v1619_v8 = vmul.f32 0.7788008, %v1600_v24  ;;  %v1586_v31 = vadd.f32 %v1580_v33, %v1562_v43 }
 0x266   : > { %v1690_v32 = vmul.f32 0.36787945, %v1601_v2  ;;  %v1654_v34 = vrot.slane %v1601_v2, 2  ;;  %v1652_v59 = vrot.slane %v1600_v24, 2  ;;  %v6805_v24 = vld [vmem:[#allocation2 + $0xd0] sm:$0xf] }
 0x267   : > { %v1627_v56 = vrot.slane %v1620_v11, 1  ;;  %v1625_v6 = vrot.slane %v1619_v8, 1  ;;  %v1675_v49 = vrot.slane %v1620_v11, 3  ;;  %v1673_v46 = vrot.slane %v1619_v8, 3 }
 0x268   : > { %2046 = vrot.lane.b32.xlu1 %v6563_v10, %s5201_s28  ;;  %2044 = vrot.lane.b32.xlu0 %v6566_v57, %s5201_s28  ;;  %v1695_v2 = vrot.slane %v1615_v50, 4  ;;  %v1697_v36 = vrot.slane %v1690_v32, 4  ;;  %v1653_v43 = vsel %vm548_vm5, %v1651_v30, %v1652_v59  ;;  %v1655_v25 = vsel %vm548_vm5, %v1652_v59, %v1654_v34 }
 0x269   : > { %v1626_v42 = vsel %vm520_vm4, %v1624_v22, %v1625_v6  ;;  %v1628_v52 = vsel %vm520_vm4, %v1625_v6, %v1627_v56  ;;  %2175 = vrot.lane.b32.xlu2 %v6775_v12, %s5199_s26  ;;  %v1639_v6 = vrot.slane %v6797_v21, 1  ;;  %v6813_v39 = vmul.f32 0.7788008, %v6805_v24 }
 0x26a   : > { %v1607_v58 = vpop.permute.xlu1 %1606  ;;  %v1631_v33 = vadd.f32 %v1626_v42, %v1614_v60  ;;  %v1632_v3 = vadd.f32 %v1628_v52, %v1615_v50  ;;  %v1605_v11 = vpop.permute.xlu0 %1604  ;;  %v1674_v32 = vsel %vm570_vm6, %v1672_v48, %v1673_v46  ;;  %v1676_v60 = vsel %vm570_vm6, %v1673_v46, %v1675_v49 }
 0x26b   : > { %v1613_v22 = vadd.f32 %v1607_v58, %v1586_v31  ;;  %v1612_v57 = vadd.f32 %v1605_v11, %v1585_v35  ;;  %v6809_v56 = vpop.permute.xlu2 %1783  ;;  %8984 = vst [vmem:[#allocation19_spill] sm:$0xff] %v6813_v39  ;;  %v1696_v50 = vsel %vm593_vm7, %v1694_v55, %v1695_v2  ;;  %v1698_v34 = vsel %vm593_vm7, %v1695_v2, %v1697_v36 }
 0x26c   : > { %v1658_v8 = vadd.f32 %v1653_v43, %v1631_v33  ;;  %v1659_v10 = vadd.f32 %v1655_v25, %v1632_v3  ;;  %v1616_v49 = vmul.f32 0.7788008, %v6790_v44 }
 0x26d   : > { %v1635_v30 = vmul.f32 0.9394131, %v1613_v22  ;;  %v1634_v31 = vmul.f32 0.9394131, %v1612_v57  ;;  %v1666_v52 = vrot.slane %v1613_v22, 2  ;;  %v1664_v33 = vrot.slane %v1612_v57, 2 }
 0x26e   : > { %v1679_v42 = vadd.f32 %v1674_v32, %v1658_v8  ;;  %v1680_v59 = vadd.f32 %v1676_v60, %v1659_v10  ;;  %v1703_v58 = vmul.f32 0.7788008, %v1613_v22  ;;  %v1617_v48 = vmul.f32 0.7788008, %v1612_v57 }
 0x26f   : > { %v1642_v35 = vrot.slane %v1635_v30, 1  ;;  %v1640_v43 = vrot.slane %v1634_v31, 1  ;;  %v1663_v10 = vrot.slane %v6790_v44, 2  ;;  %v1684_v2 = vrot.slane %v1635_v30, 3 }
 0x270   : > { %2179 = vrot.lane.b32.xlu1 %v6813_v39, %s5199_s26  ;;  %v1701_v3 = vadd.f32 %v1696_v50, %v1679_v42  ;;  %v1702_v11 = vadd.f32 %v1698_v34, %v1680_v59  ;;  %2177 = vrot.lane.b32.xlu0 %v6782_v13, %s5199_s26  ;;  %v1682_v36 = vrot.slane %v1634_v31, 3  ;;  %v1681_v22 = vrot.slane %v6797_v21, 3 }
 0x271   : > { %2193 = vrot.lane.b32.xlu2 %v6785_v40, %s5199_s26  ;;  %v1641_v55 = vsel %vm520_vm4, %v1639_v6, %v1640_v43  ;;  %v1643_v57 = vsel %vm520_vm4, %v1640_v43, %v1642_v35  ;;  %v1710_v60 = vrot.slane %v1703_v58, 4  ;;  %v1665_v50 = vsel %vm548_vm5, %v1663_v10, %v1664_v33 }
 0x272   : > { %v6827_v46 = vpop.permute.xlu1 %1739  ;;  %1717 = vst.msk [vmem:[#allocation3 + $0x70] sm:$0xff] %vm380_vm3, %v1701_v3  ;;  %v6832_v25 = vpop.permute.xlu0 %1737  ;;  %v1646_v44 = vadd.f32 %v1641_v55, %v1616_v49  ;;  %v1647_v8 = vadd.f32 %v1643_v57, %v1617_v48  ;;  %v1667_v30 = vsel %vm548_vm5, %v1664_v33, %v1666_v52  ;;  %v1708_v42 = vrot.slane %v1617_v48, 4 }
 0x273   : > { %1718 = vst.msk [vmem:[#allocation3 + $0x78] sm:$0xff] %vm380_vm3, %v1702_v11  ;;  %v6836_v32 = vpop.permute.xlu2 %1795  ;;  %v6841_v34 = vmul.f32 0.9394131, %v6805_v24  ;;  %v1707_v31 = vrot.slane %v1616_v49, 4  ;;  %v1683_v21 = vsel %vm570_vm6, %v1681_v22, %v1682_v36  ;;  %v1685_v35 = vsel %vm570_vm6, %v1682_v36, %v1684_v2 }
 0x274   : > { %v1670_v6 = vadd.f32 %v1665_v50, %v1646_v44  ;;  %v1671_v59 = vadd.f32 %v1667_v30, %v1647_v8  ;;  %v6846_v3 = vmul.f32 0.9394131, %v6769_v7  ;;  %v1711_v33 = vsel %vm593_vm7, %v1708_v42, %v1710_v60 }
 0x275   : > { %v1709_v52 = vsel %vm593_vm7, %v1707_v31, %v1708_v42  ;;  %v8985_v60 = vsub.f32 %v6673_v23, %v6694_v19  ;;  %v8986_v30 = vsub.f32 %v6647_v5, %v6696_v17  ;;  %v8988_v23 = vsub.f32 %v6659_v0, %v6701_v63 }
 0x276   : > { %v1688_v11 = vadd.f32 %v1683_v21, %v1670_v6  ;;  %v1689_v58 = vadd.f32 %v1685_v35, %v1671_v59  ;;  %v8987_v6 = vsub.f32 %v6681_v47, %v6699_v15  ;;  %v8989_v5 = vsub.f32 %v6437_v27, %v6481_v14 }
 0x277   : > { %v8990_v47 = vsub.f32 %v6449_v18, %v6484_v53 }
 0x278   : > { %2197 = vrot.lane.b32.xlu1 %v6841_v34, %s5199_s26  ;;  %2195 = vrot.lane.b32.xlu0 %v6846_v3, %s5199_s26  ;;  %v1714_v43 = vadd.f32 %v1709_v52, %v1688_v11  ;;  %v1715_v49 = vadd.f32 %v1711_v33, %v1689_v58  ;;  %v4144_v31 = vadd.f32 %v6637_v20, %v8989_v5 }
 0x279   : > { %v4152_v48 = vld [vmem:[#allocation3 + $0x70] sm:$0xff]  ;;  %2208 = vrot.lane.b32.xlu2 %v6764_v62, %s5198_s17  ;;  %v4145_v0 = vadd.f32 %v6641_v37, %v8990_v47 }
 0x27a   : > { %v6856_v10 = vpop.permute.xlu1 %1757  ;;  %v4153_v2 = vld [vmem:[#allocation3 + $0x78] sm:$0xff]  ;;  %v6858_v55 = vmul.f32 0.044402283, %v4152_v48  ;;  %v6860_v57 = vpop.permute.xlu0 %1755  ;;  %v4252_v22 = vmul.f32 0.05701366, %v4152_v48  ;;  %1720 = vst.msk [vmem:[#allocation4 + $0x70] sm:$0xff] %vm380_vm3, %v1714_v43  ;;  %v4150_v27 = vsub.f32 %v4144_v31, %v6696_v17 }
 0x27b   : > { %v6862_v36 = vmul.f32 0.044402283, %v4153_v2  ;;  %v1811_v44 = vpop.permute.xlu2 %1810  ;;  %v4253_v8 = vmul.f32 0.05701366, %v4153_v2  ;;  %1721 = vst.msk [vmem:[#allocation4 + $0x78] sm:$0xff] %vm380_vm3, %v1715_v49  ;;  %v4151_v20 = vsub.f32 %v4145_v0, %v6701_v63  ;;  %v1744_v0 = vadd.f32 %v6731_v26, %v6516_v16 }
 0x27c   : > { %v6868_v50 = vadd.f32 %v8985_v60, %v6858_v55  ;;  %v6874_v42 = vadd.f32 %v4252_v22, %v8986_v30  ;;  %v6894_v21 = vmul.f32 0.020974154, %v4152_v48  ;;  %v6902_v15 = vmul.f32 0.020974154, %v4153_v2 }
 0x27d   : > { %v6880_v59 = vadd.f32 %v8987_v6, %v6862_v36  ;;  %v6886_v19 = vadd.f32 %v4253_v8, %v8988_v23  ;;  %v1746_v16 = vadd.f32 %v6827_v46, %v6532_v4  ;;  %v1745_v26 = vadd.f32 %v6832_v25, %v6538_v51  ;;  %v6985_v4 = vld [vmem:[#allocation2 + $0xd8] sm:$0xff] }
 0x27e   : > { %v4156_v18 = vadd.f32 %v6894_v21, %v4150_v27  ;;  %v4157_v33 = vadd.f32 %v6902_v15, %v4151_v20  ;;  %v6959_v27 = vmul.f32 0.36787945, %v6764_v62  ;;  %v1777_v20 = vadd.f32 %v6779_v9, %v1744_v0 }
 0x280   : > { %2212 = vrot.lane.b32.xlu1 %v6805_v24, %s5198_s17  ;;  %2210 = vrot.lane.b32.xlu0 %v6769_v7, %s5198_s17 }
 0x281   : > { %2223 = vrot.lane.b32.xlu2 %v6775_v12, %s5200_s27  ;;  %v4158_v11 = vld [vmem:[#allocation4 + $0x70] sm:$0xff] }
 0x282   : > { %v6906_v35 = vpop.permute.xlu1 %1772  ;;  %v6909_v14 = vpop.permute.xlu0 %1770  ;;  %v4159_v53 = vld [vmem:[#allocation4 + $0x78] sm:$0xff]  ;;  %v6915_v37 = vmul.f32 0.022201141, %v4158_v11  ;;  %v6917_v52 = vmul.f32 0.026779689, %v4158_v11 }
 0x283   : > { %v6912_v58 = vpop.permute.xlu2 %1822  ;;  %v6920_v48 = vmul.f32 0.022201141, %v4159_v53  ;;  %v6922_v17 = vmul.f32 0.026779689, %v4159_v53  ;;  %v6924_v43 = vmul.f32 0.02850683, %v4158_v11 }
 0x284   : > { %v4162_v63 = vsub.f32 %v4156_v18, %v6915_v37  ;;  %v6927_v49 = vmul.f32 0.02850683, %v4159_v53  ;;  %v1792_v18 = vadd.f32 %v6809_v56, %v1777_v20  ;;  %v1778_v56 = vadd.f32 %v6909_v14, %v1745_v26 }
 0x285   : > { %v4163_v22 = vsub.f32 %v4157_v33, %v6920_v48  ;;  %v1779_v33 = vadd.f32 %v6906_v35, %v1746_v16 }
 0x286   : > { %5003 = vst.msk [vmem:[%s6256_s29 + $0x30] sm:$0xff] %vm380_vm3, %v4162_v63  ;;  %v1819_v62 = vadd.f32 %v1811_v44, %v1792_v18  ;;  %v6980_v63 = vmul.f32 0.36787945, %v6769_v7 }
 0x287   : > { %5004 = vst.msk [vmem:[%s6256_s29 + $0x38] sm:$0xff] %vm380_vm3, %v4163_v22 }
 0x288   : > { %2227 = vrot.lane.b32.xlu1 %v6813_v39, %s5200_s27  ;;  %2225 = vrot.lane.b32.xlu0 %v6782_v13, %s5200_s27 }
 0x289   : > { %2235 = vrot.lane.b32.xlu2 %v6785_v40, %s5200_s27 }
 0x28a   : > { %v1788_v5 = vpop.permute.xlu1 %1787  ;;  %v1786_v31 = vpop.permute.xlu0 %1785 }
 0x28b   : > { %v6952_v47 = vpop.permute.xlu2 %1955  ;;  %v1794_v46 = vadd.f32 %v1788_v5, %v1779_v33  ;;  %v1793_v7 = vadd.f32 %v1786_v31, %v1778_v56  ;;  %v8992_v5 = vld [vmem:[#allocation11_spill] sm:$0xff]  ;;  %v1834_v33 = vmul.f32 0.36787945, %v1819_v62 }
 0x28c   : > { %v1764_v20 = vadd.f32 %v6856_v10, %v8992_v5 }
 0x290   : > { %2239 = vrot.lane.b32.xlu1 %v6841_v34, %s5200_s27  ;;  %2237 = vrot.lane.b32.xlu0 %v6846_v3, %s5200_s27  ;;  %v6974_v34 = vmul.f32 0.36787945, %v6805_v24  ;;  %v1762_v3 = vadd.f32 %v6746_v54, %v6315_v1  ;;  %v6990_v24 = vld [vmem:[#allocation2 + $0xe8] sm:$0xf]  ;;  %v6992_v1 = vld [vmem:[#allocation2 + $0xe0] sm:$0xff] }
 0x291   : > { %2250 = vrot.lane.b32.xlu2 %v6959_v27, %s5201_s28  ;;  %v1838_v54 = vmul.f32 0.7788008, %v1819_v62  ;;  %v7005_v26 = vmul.f32 0.7788008, %v6990_v24  ;;  %v7008_v31 = vmul.f32 0.7788008, %v6992_v1 }
 0x292   : > { %v1800_v40 = vpop.permute.xlu1 %1799  ;;  %v1798_v11 = vpop.permute.xlu0 %1797  ;;  %v1780_v51 = vadd.f32 %v6779_v9, %v1762_v3  ;;  %v6998_v9 = vmul.f32 0.7788008, %v6985_v4  ;;  %v8995_v3 = vld [vmem:[#allocation23_spill] sm:$0xff] }
 0x293   : > { %v6967_v53 = vpop.permute.xlu2 %1973  ;;  %8993 = vst [vmem:[#allocation21_spill] sm:$0xff] %v7005_v26  ;;  %v1892_v60 = vrot.slane %v1838_v54, 3 }
 0x294   : > { %v1804_v44 = vadd.f32 %v6836_v32, %v1780_v51  ;;  %8991 = vst [vmem:[#allocation20_spill] sm:$0xff] %v6998_v9  ;;  %v1763_v32 = vadd.f32 %v6860_v57, %v8995_v3 }
 0x295   : > { %8994 = vst [vmem:[#allocation22_spill] sm:$0xff] %v7008_v31 }
 0x296   : > { %v7013_v56 = vadd.f32 %v6912_v58, %v1804_v44  ;;  %v1781_v5 = vadd.f32 %v6909_v14, %v1763_v32 }
 0x298   : > { %2254 = vrot.lane.b32.xlu1 %v6974_v34, %s5201_s28  ;;  %2252 = vrot.lane.b32.xlu0 %v6980_v63, %s5201_s28  ;;  %v7020_v57 = vmul.f32 0.9394131, %v7013_v56 }
 0x299   : > { %2262 = vrot.lane.b32.xlu2 %v6775_v12, %s5201_s28 }
 0x29a   : > { %v1815_v25 = vpop.permute.xlu1 %1814  ;;  %v1813_v0 = vpop.permute.xlu0 %1812 }
 0x29b   : > { %v1821_v22 = vadd.f32 %v1815_v25, %v1794_v46  ;;  %v1820_v18 = vadd.f32 %v1813_v0, %v1793_v7  ;;  %v7002_v16 = vpop.permute.xlu2 %1988  ;;  %v1844_v46 = vrot.slane %v1838_v54, 1  ;;  %v1871_v25 = vrot.slane %v1819_v62, 2 }
 0x29c   : > { %v1782_v0 = vadd.f32 %v6906_v35, %v1764_v20  ;;  %v1805_v62 = vadd.f32 %v1798_v11, %v1781_v5 }
 0x29d   : > { %v1840_v51 = vmul.f32 0.7788008, %v1821_v22  ;;  %v1835_v10 = vmul.f32 0.36787945, %v1820_v18  ;;  %v1839_v7 = vmul.f32 0.7788008, %v1820_v18 }
 0x29e   : > { %v1910_v8 = vmul.f32 0.36787945, %v1821_v22  ;;  %v1874_v23 = vrot.slane %v1821_v22, 2  ;;  %v1872_v6 = vrot.slane %v1820_v18, 2  ;;  %v1806_v58 = vadd.f32 %v1800_v40, %v1782_v0 }
 0x29f   : > { %v1847_v30 = vrot.slane %v1840_v51, 1  ;;  %v1845_v2 = vrot.slane %v1839_v7, 1  ;;  %v1895_v44 = vrot.slane %v1840_v51, 3  ;;  %v1893_v54 = vrot.slane %v1839_v7, 3 }
 0x2a0   : > { %2266 = vrot.lane.b32.xlu1 %v6813_v39, %s5201_s28  ;;  %2264 = vrot.lane.b32.xlu0 %v6782_v13, %s5201_s28  ;;  %v1915_v22 = vrot.slane %v1835_v10, 4  ;;  %v1914_v18 = vrot.slane %v1834_v33, 4  ;;  %v1917_v3 = vrot.slane %v1910_v8, 4  ;;  %v1873_v11 = vsel %vm548_vm5, %v1871_v25, %v1872_v6 }
 0x2a1   : > { %v1846_v35 = vsel %vm520_vm4, %v1844_v46, %v1845_v2  ;;  %v1848_v14 = vsel %vm520_vm4, %v1845_v2, %v1847_v30  ;;  %2395 = vrot.lane.b32.xlu2 %v6998_v9, %s5199_s26  ;;  %v1875_v51 = vsel %vm548_vm5, %v1872_v6, %v1874_v23  ;;  %v1859_v2 = vrot.slane %v7020_v57, 1 }
 0x2a2   : > { %v1827_v20 = vpop.permute.xlu1 %1826  ;;  %v1851_v32 = vadd.f32 %v1846_v35, %v1834_v33  ;;  %v1852_v39 = vadd.f32 %v1848_v14, %v1835_v10  ;;  %v1825_v40 = vpop.permute.xlu0 %1824  ;;  %v7034_v13 = vmul.f32 0.9394131, %v6985_v4  ;;  %v1894_v8 = vsel %vm570_vm6, %v1892_v60, %v1893_v54 }
 0x2a3   : > { %v1833_v0 = vadd.f32 %v1827_v20, %v1806_v58  ;;  %v1832_v5 = vadd.f32 %v1825_v40, %v1805_v62  ;;  %v7030_v46 = vpop.permute.xlu2 %2003  ;;  %v1896_v33 = vsel %vm570_vm6, %v1893_v54, %v1895_v44  ;;  %v1916_v10 = vsel %vm593_vm7, %v1914_v18, %v1915_v22 }
 0x2a4   : > { %v1878_v30 = vadd.f32 %v1873_v11, %v1851_v32  ;;  %v1879_v7 = vadd.f32 %v1875_v51, %v1852_v39  ;;  %v1918_v23 = vsel %vm593_vm7, %v1915_v22, %v1917_v3  ;;  %v1836_v44 = vmul.f32 0.7788008, %v7013_v56 }
 0x2a5   : > { %v1855_v25 = vmul.f32 0.9394131, %v1833_v0  ;;  %v1854_v58 = vmul.f32 0.9394131, %v1832_v5  ;;  %v1886_v14 = vrot.slane %v1833_v0, 2  ;;  %v1884_v32 = vrot.slane %v1832_v5, 2 }
 0x2a6   : > { %v1899_v35 = vadd.f32 %v1894_v8, %v1878_v30  ;;  %v1900_v6 = vadd.f32 %v1896_v33, %v1879_v7  ;;  %v1923_v20 = vmul.f32 0.7788008, %v1833_v0  ;;  %v1837_v60 = vmul.f32 0.7788008, %v1832_v5 }
 0x2a7   : > { %v1862_v62 = vrot.slane %v1855_v25, 1  ;;  %v1860_v11 = vrot.slane %v1854_v58, 1  ;;  %v1883_v54 = vrot.slane %v7013_v56, 2  ;;  %v1904_v18 = vrot.slane %v1855_v25, 3 }
 0x2a8   : > { %2399 = vrot.lane.b32.xlu1 %v7005_v26, %s5199_s26  ;;  %v1921_v39 = vadd.f32 %v1916_v10, %v1899_v35  ;;  %v1922_v40 = vadd.f32 %v1918_v23, %v1900_v6  ;;  %2397 = vrot.lane.b32.xlu0 %v7008_v31, %s5199_s26  ;;  %v1902_v0 = vrot.slane %v1854_v58, 3  ;;  %v1901_v30 = vrot.slane %v7020_v57, 3 }
 0x2a9   : > { %2413 = vrot.lane.b32.xlu2 %v7034_v13, %s5199_s26  ;;  %v1861_v3 = vsel %vm520_vm4, %v1859_v2, %v1860_v11  ;;  %v1863_v51 = vsel %vm520_vm4, %v1860_v11, %v1862_v62  ;;  %v1930_v33 = vrot.slane %v1923_v20, 4  ;;  %v1885_v10 = vsel %vm548_vm5, %v1883_v54, %v1884_v32 }
 0x2aa   : > { %v7048_v22 = vpop.permute.xlu1 %1959  ;;  %1937 = vst.msk [vmem:[#allocation3 + $0x80] sm:$0xff] %vm380_vm3, %v1921_v39  ;;  %v7053_v5 = vpop.permute.xlu0 %1957  ;;  %v1866_v56 = vadd.f32 %v1861_v3, %v1836_v44  ;;  %v1867_v7 = vadd.f32 %v1863_v51, %v1837_v60  ;;  %v1887_v25 = vsel %vm548_vm5, %v1884_v32, %v1886_v14  ;;  %v1928_v35 = vrot.slane %v1837_v60, 4 }
 0x2ab   : > { %1938 = vst.msk [vmem:[#allocation3 + $0x88] sm:$0xff] %vm380_vm3, %v1922_v40  ;;  %v7057_v8 = vpop.permute.xlu2 %2015  ;;  %v7062_v23 = vmul.f32 0.9394131, %v6990_v24  ;;  %v1927_v58 = vrot.slane %v1836_v44, 4  ;;  %v1903_v57 = vsel %vm570_vm6, %v1901_v30, %v1902_v0  ;;  %v1905_v62 = vsel %vm570_vm6, %v1902_v0, %v1904_v18 }
 0x2ac   : > { %v1890_v2 = vadd.f32 %v1885_v10, %v1866_v56  ;;  %v1891_v6 = vadd.f32 %v1887_v25, %v1867_v7  ;;  %v7067_v39 = vmul.f32 0.9394131, %v6992_v1  ;;  %v1931_v32 = vsel %vm593_vm7, %v1928_v35, %v1930_v33 }
 0x2ad   : > { %v1929_v14 = vsel %vm593_vm7, %v1927_v58, %v1928_v35  ;;  %v8996_v33 = vsub.f32 %v6894_v21, %v6915_v37  ;;  %v8997_v25 = vsub.f32 %v6868_v50, %v6917_v52  ;;  %v8999_v21 = vsub.f32 %v6880_v59, %v6922_v17 }
 0x2ae   : > { %v1908_v40 = vadd.f32 %v1903_v57, %v1890_v2  ;;  %v1909_v20 = vadd.f32 %v1905_v62, %v1891_v6  ;;  %v8998_v2 = vsub.f32 %v6902_v15, %v6920_v48  ;;  %v9000_v50 = vsub.f32 %v6653_v38, %v6703_v61 }
 0x2af   : > { %v9001_v15 = vsub.f32 %v6665_v45, %v6706_v28 }
 0x2b0   : > { %2417 = vrot.lane.b32.xlu1 %v7062_v23, %s5199_s26  ;;  %2415 = vrot.lane.b32.xlu0 %v7067_v39, %s5199_s26  ;;  %v1934_v11 = vadd.f32 %v1929_v14, %v1908_v40  ;;  %v1935_v44 = vadd.f32 %v1931_v32, %v1909_v20  ;;  %v4205_v58 = vadd.f32 %v6858_v55, %v9000_v50 }
 0x2b1   : > { %v4213_v60 = vld [vmem:[#allocation3 + $0x80] sm:$0xff]  ;;  %2428 = vrot.lane.b32.xlu2 %v6985_v4, %s5198_s17  ;;  %v4206_v59 = vadd.f32 %v6862_v36, %v9001_v15 }
 0x2b2   : > { %v7077_v54 = vpop.permute.xlu1 %1977  ;;  %v4214_v18 = vld [vmem:[#allocation3 + $0x88] sm:$0xff]  ;;  %v7079_v3 = vmul.f32 0.044402283, %v4213_v60  ;;  %v7081_v51 = vpop.permute.xlu0 %1975  ;;  %v4313_v30 = vmul.f32 0.05701366, %v4213_v60  ;;  %1940 = vst.msk [vmem:[#allocation4 + $0x80] sm:$0xff] %vm380_vm3, %v1934_v11  ;;  %v4211_v38 = vsub.f32 %v4205_v58, %v6917_v52 }
 0x2b3   : > { %v7083_v0 = vmul.f32 0.044402283, %v4214_v18  ;;  %v2031_v56 = vpop.permute.xlu2 %2030  ;;  %v4314_v7 = vmul.f32 0.05701366, %v4214_v18  ;;  %1941 = vst.msk [vmem:[#allocation4 + $0x88] sm:$0xff] %vm380_vm3, %v1935_v44  ;;  %v4212_v55 = vsub.f32 %v4206_v59, %v6922_v17  ;;  %v1964_v59 = vadd.f32 %v6952_v47, %v6738_v29  ;;  %v9002_v47 = vld [vmem:[#allocation13_spill] sm:$0xff] }
 0x2b4   : > { %v7089_v10 = vadd.f32 %v8996_v33, %v7079_v3  ;;  %v7095_v35 = vadd.f32 %v4313_v30, %v8997_v25  ;;  %v7115_v57 = vmul.f32 0.020974154, %v4213_v60  ;;  %v7123_v48 = vmul.f32 0.020974154, %v4214_v18 }
 0x2b5   : > { %v7101_v6 = vadd.f32 %v8998_v2, %v7083_v0  ;;  %v7107_v37 = vadd.f32 %v4314_v7, %v8999_v21  ;;  %v1966_v29 = vadd.f32 %v7048_v22, %v6753_v41  ;;  %v7206_v41 = vld [vmem:[#allocation2 + $0xf0] sm:$0xff] }
 0x2b6   : > { %v4217_v45 = vadd.f32 %v7115_v57, %v4211_v38  ;;  %v4218_v32 = vadd.f32 %v7123_v48, %v4212_v55  ;;  %v7180_v38 = vmul.f32 0.36787945, %v6985_v4  ;;  %v1997_v55 = vadd.f32 %v7002_v16, %v1964_v59 }
 0x2b7   : > { %v1965_v4 = vadd.f32 %v7053_v5, %v9002_v47  ;;  %v7201_v59 = vmul.f32 0.36787945, %v6992_v1 }
 0x2b8   : > { %2432 = vrot.lane.b32.xlu1 %v6990_v24, %s5198_s17  ;;  %2430 = vrot.lane.b32.xlu0 %v6992_v1, %s5198_s17 }
 0x2b9   : > { %2443 = vrot.lane.b32.xlu2 %v6998_v9, %s5200_s27  ;;  %v4219_v40 = vld [vmem:[#allocation4 + $0x80] sm:$0xff]  ;;  %9004 = vst [vmem:[#allocation24_spill] sm:$0xff] %v7201_v59 }
 0x2ba   : > { %v7127_v62 = vpop.permute.xlu1 %1992  ;;  %v7130_v61 = vpop.permute.xlu0 %1990  ;;  %v4220_v28 = vld [vmem:[#allocation4 + $0x88] sm:$0xff]  ;;  %v7136_v36 = vmul.f32 0.022201141, %v4219_v40  ;;  %v7138_v14 = vmul.f32 0.026779689, %v4219_v40 }
 0x2bb   : > { %v7133_v20 = vpop.permute.xlu2 %2042  ;;  %v7141_v60 = vmul.f32 0.022201141, %v4220_v28  ;;  %v7143_v52 = vmul.f32 0.026779689, %v4220_v28  ;;  %v7145_v11 = vmul.f32 0.02850683, %v4219_v40 }
 0x2bc   : > { %v4223_v17 = vsub.f32 %v4217_v45, %v7136_v36  ;;  %v7148_v44 = vmul.f32 0.02850683, %v4220_v28  ;;  %v2012_v45 = vadd.f32 %v7030_v46, %v1997_v55  ;;  %v1998_v46 = vadd.f32 %v7130_v61, %v1965_v4 }
 0x2bd   : > { %v4224_v30 = vsub.f32 %v4218_v32, %v7141_v60  ;;  %v9003_v32 = vld [vmem:[#allocation28_spill] sm:$0xff] }
 0x2be   : > { %5005 = vst.msk [vmem:[%s6256_s29 + $0x40] sm:$0xff] %vm380_vm3, %v4223_v17  ;;  %v1982_v17 = vadd.f32 %v6967_v53, %v9003_v32  ;;  %v7213_v53 = vld [vmem:[#allocation2 + $0xf8] sm:$0xff] }
 0x2bf   : > { %5006 = vst.msk [vmem:[%s6256_s29 + $0x48] sm:$0xff] %vm380_vm3, %v4224_v30  ;;  %v1999_v30 = vadd.f32 %v7127_v62, %v1966_v29 }
 0x2c0   : > { %2447 = vrot.lane.b32.xlu1 %v7005_v26, %s5200_s27  ;;  %2445 = vrot.lane.b32.xlu0 %v7008_v31, %s5200_s27  ;;  %v2000_v22 = vadd.f32 %v7002_v16, %v1982_v17  ;;  %v7219_v16 = vmul.f32 0.7788008, %v7206_v41 }
 0x2c1   : > { %2455 = vrot.lane.b32.xlu2 %v7034_v13, %s5200_s27 }
 0x2c2   : > { %v2008_v50 = vpop.permute.xlu1 %2007  ;;  %v2006_v58 = vpop.permute.xlu0 %2005 }
 0x2c3   : > { %v7173_v15 = vpop.permute.xlu2 %2175  ;;  %v2014_v5 = vadd.f32 %v2008_v50, %v1999_v30  ;;  %v2013_v1 = vadd.f32 %v2006_v58, %v1998_v46  ;;  %v9005_v50 = vld [vmem:[#allocation29_spill] sm:$0xff]  ;;  %v7229_v58 = vmul.f32 0.7788008, %v7213_v53  ;;  %v9008_v46 = vld [vmem:[#allocation12_spill] sm:$0xff] }
 0x2c4   : > { %v1984_v4 = vadd.f32 %v7077_v54, %v9005_v50 }
 0x2c5   : > { %9007 = vst [vmem:[#allocation15_spill] sm:$0xff] %v7229_v58 }
 0x2c8   : > { %2459 = vrot.lane.b32.xlu1 %v7062_v23, %s5200_s27  ;;  %2457 = vrot.lane.b32.xlu0 %v7067_v39, %s5200_s27  ;;  %v2039_v23 = vadd.f32 %v2031_v56, %v2012_v45  ;;  %v7195_v39 = vmul.f32 0.36787945, %v6990_v24  ;;  %v7211_v24 = vld [vmem:[#allocation2 + $0x100] sm:$0xf]  ;;  %v2024_v45 = vadd.f32 %v7057_v8, %v2000_v22  ;;  %v1983_v8 = vadd.f32 %v7081_v51, %v9008_v46 }
 0x2c9   : > { %2470 = vrot.lane.b32.xlu2 %v7180_v38, %s5201_s28  ;;  %v7226_v30 = vmul.f32 0.7788008, %v7211_v24 }
 0x2ca   : > { %v2020_v13 = vpop.permute.xlu1 %2019  ;;  %v2018_v40 = vpop.permute.xlu0 %2017  ;;  %v2058_v56 = vmul.f32 0.7788008, %v2039_v23  ;;  %v2054_v22 = vmul.f32 0.36787945, %v2039_v23  ;;  %v2091_v7 = vrot.slane %v2039_v23, 2  ;;  %v2001_v50 = vadd.f32 %v7130_v61, %v1983_v8 }
 0x2cb   : > { %v7188_v28 = vpop.permute.xlu2 %2193  ;;  %9006 = vst [vmem:[#allocation25_spill] sm:$0xff] %v7226_v30 }
 0x2cc   : > { %v2064_v25 = vrot.slane %v2058_v56, 1  ;;  %v2112_v18 = vrot.slane %v2058_v56, 3  ;;  %v2025_v23 = vadd.f32 %v2018_v40, %v2001_v50 }
 0x2d0   : > { %2474 = vrot.lane.b32.xlu1 %v7195_v39, %s5201_s28  ;;  %2472 = vrot.lane.b32.xlu0 %v7201_v59, %s5201_s28 }
 0x2d1   : > { %2482 = vrot.lane.b32.xlu2 %v6998_v9, %s5201_s28 }
 0x2d2   : > { %v2035_v55 = vpop.permute.xlu1 %2034  ;;  %v2033_v47 = vpop.permute.xlu0 %2032 }
 0x2d3   : > { %v2041_v29 = vadd.f32 %v2035_v55, %v2014_v5  ;;  %v2040_v32 = vadd.f32 %v2033_v47, %v2013_v1  ;;  %v7223_v17 = vpop.permute.xlu2 %2208  ;;  %v7234_v5 = vadd.f32 %v7133_v20, %v2024_v45  ;;  %v2002_v47 = vadd.f32 %v7127_v62, %v1984_v4 }
 0x2d5   : > { %v2060_v55 = vmul.f32 0.7788008, %v2041_v29  ;;  %v2055_v54 = vmul.f32 0.36787945, %v2040_v32  ;;  %v2059_v1 = vmul.f32 0.7788008, %v2040_v32  ;;  %v2026_v20 = vadd.f32 %v2020_v13, %v2002_v47 }
 0x2d6   : > { %v2130_v21 = vmul.f32 0.36787945, %v2041_v29  ;;  %v2094_v2 = vrot.slane %v2041_v29, 2  ;;  %v2092_v59 = vrot.slane %v2040_v32, 2  ;;  %v7241_v51 = vmul.f32 0.9394131, %v7234_v5 }
 0x2d7   : > { %v2067_v33 = vrot.slane %v2060_v55, 1  ;;  %v2065_v9 = vrot.slane %v2059_v1, 1  ;;  %v2115_v45 = vrot.slane %v2060_v55, 3  ;;  %v2113_v56 = vrot.slane %v2059_v1, 3 }
 0x2d8   : > { %2486 = vrot.lane.b32.xlu1 %v7005_v26, %s5201_s28  ;;  %2484 = vrot.lane.b32.xlu0 %v7008_v31, %s5201_s28  ;;  %v2135_v29 = vrot.slane %v2055_v54, 4  ;;  %v2134_v32 = vrot.slane %v2054_v22, 4  ;;  %v2137_v46 = vrot.slane %v2130_v21, 4  ;;  %v2093_v40 = vsel %vm548_vm5, %v2091_v7, %v2092_v59 }
 0x2d9   : > { %v2066_v62 = vsel %vm520_vm4, %v2064_v25, %v2065_v9  ;;  %v2068_v61 = vsel %vm520_vm4, %v2065_v9, %v2067_v33  ;;  %2615 = vrot.lane.b32.xlu2 %v7219_v16, %s5199_s26  ;;  %v2095_v55 = vsel %vm548_vm5, %v2092_v59, %v2094_v2  ;;  %v2079_v9 = vrot.slane %v7241_v51, 1 }
 0x2da   : > { %v2047_v4 = vpop.permute.xlu1 %2046  ;;  %v2071_v8 = vadd.f32 %v2066_v62, %v2054_v22  ;;  %v2072_v26 = vadd.f32 %v2068_v61, %v2055_v54  ;;  %v2045_v13 = vpop.permute.xlu0 %2044  ;;  %v7255_v31 = vmul.f32 0.9394131, %v7206_v41  ;;  %v2114_v21 = vsel %vm570_vm6, %v2112_v18, %v2113_v56 }
 0x2db   : > { %v2053_v47 = vadd.f32 %v2047_v4, %v2026_v20  ;;  %v2052_v50 = vadd.f32 %v2045_v13, %v2025_v23  ;;  %v7251_v25 = vpop.permute.xlu2 %2223  ;;  %v2116_v22 = vsel %vm570_vm6, %v2113_v56, %v2115_v45  ;;  %v2136_v54 = vsel %vm593_vm7, %v2134_v32, %v2135_v29 }
 0x2dc   : > { %v2098_v33 = vadd.f32 %v2093_v40, %v2071_v8  ;;  %v2099_v1 = vadd.f32 %v2095_v55, %v2072_v26  ;;  %v2138_v59 = vsel %vm593_vm7, %v2135_v29, %v2137_v46  ;;  %v2056_v45 = vmul.f32 0.7788008, %v7234_v5 }
 0x2dd   : > { %v2075_v7 = vmul.f32 0.9394131, %v2053_v47  ;;  %v2074_v20 = vmul.f32 0.9394131, %v2052_v50  ;;  %v2106_v61 = vrot.slane %v2053_v47, 2  ;;  %v2104_v8 = vrot.slane %v2052_v50, 2 }
 0x2de   : > { %v2119_v62 = vadd.f32 %v2114_v21, %v2098_v33  ;;  %v2120_v2 = vadd.f32 %v2116_v22, %v2099_v1  ;;  %v2143_v4 = vmul.f32 0.7788008, %v2053_v47  ;;  %v2057_v18 = vmul.f32 0.7788008, %v2052_v50 }
 0x2df   : > { %v2082_v23 = vrot.slane %v2075_v7, 1  ;;  %v2080_v40 = vrot.slane %v2074_v20, 1  ;;  %v2103_v56 = vrot.slane %v7234_v5, 2  ;;  %v2124_v32 = vrot.slane %v2075_v7, 3 }
 0x2e0   : > { %2619 = vrot.lane.b32.xlu1 %v7226_v30, %s5199_s26  ;;  %v2141_v26 = vadd.f32 %v2136_v54, %v2119_v62  ;;  %v2142_v13 = vadd.f32 %v2138_v59, %v2120_v2  ;;  %2617 = vrot.lane.b32.xlu0 %v7229_v58, %s5199_s26  ;;  %v2122_v47 = vrot.slane %v2074_v20, 3  ;;  %v2121_v33 = vrot.slane %v7241_v51, 3 }
 0x2e1   : > { %2633 = vrot.lane.b32.xlu2 %v7255_v31, %s5199_s26  ;;  %v2081_v46 = vsel %vm520_vm4, %v2079_v9, %v2080_v40  ;;  %v2083_v55 = vsel %vm520_vm4, %v2080_v40, %v2082_v23  ;;  %v2150_v22 = vrot.slane %v2143_v4, 4  ;;  %v2105_v54 = vsel %vm548_vm5, %v2103_v56, %v2104_v8 }
 0x2e2   : > { %v7269_v29 = vpop.permute.xlu1 %2179  ;;  %2157 = vst.msk [vmem:[#allocation3 + $0x90] sm:$0xff] %vm380_vm3, %v2141_v26  ;;  %v7274_v50 = vpop.permute.xlu0 %2177  ;;  %v2086_v5 = vadd.f32 %v2081_v46, %v2056_v45  ;;  %v2087_v1 = vadd.f32 %v2083_v55, %v2057_v18  ;;  %v2107_v7 = vsel %vm548_vm5, %v2104_v8, %v2106_v61  ;;  %v2148_v62 = vrot.slane %v2057_v18, 4 }
 0x2e3   : > { %2158 = vst.msk [vmem:[#allocation3 + $0x98] sm:$0xff] %vm380_vm3, %v2142_v13  ;;  %v7278_v21 = vpop.permute.xlu2 %2235  ;;  %v7283_v59 = vmul.f32 0.9394131, %v7211_v24  ;;  %v2147_v20 = vrot.slane %v2056_v45, 4  ;;  %v2123_v51 = vsel %vm570_vm6, %v2121_v33, %v2122_v47  ;;  %v2125_v23 = vsel %vm570_vm6, %v2122_v47, %v2124_v32 }
 0x2e4   : > { %v2110_v9 = vadd.f32 %v2105_v54, %v2086_v5  ;;  %v2111_v2 = vadd.f32 %v2107_v7, %v2087_v1  ;;  %v7288_v26 = vmul.f32 0.9394131, %v7213_v53  ;;  %v2151_v8 = vsel %vm593_vm7, %v2148_v62, %v2150_v22 }
 0x2e5   : > { %v2149_v61 = vsel %vm593_vm7, %v2147_v20, %v2148_v62  ;;  %v9009_v22 = vsub.f32 %v7115_v57, %v7136_v36  ;;  %v9010_v7 = vsub.f32 %v7089_v10, %v7138_v14  ;;  %v9012_v57 = vsub.f32 %v7101_v6, %v7143_v52 }
 0x2e6   : > { %v2128_v13 = vadd.f32 %v2123_v51, %v2110_v9  ;;  %v2129_v4 = vadd.f32 %v2125_v23, %v2111_v2  ;;  %v9011_v9 = vsub.f32 %v7123_v48, %v7141_v60  ;;  %v9013_v10 = vsub.f32 %v6874_v42, %v6924_v43 }
 0x2e7   : > { %v9014_v48 = vsub.f32 %v6886_v19, %v6927_v49 }
 0x2e8   : > { %2637 = vrot.lane.b32.xlu1 %v7283_v59, %s5199_s26  ;;  %2635 = vrot.lane.b32.xlu0 %v7288_v26, %s5199_s26  ;;  %v2154_v40 = vadd.f32 %v2149_v61, %v2128_v13  ;;  %v2155_v45 = vadd.f32 %v2151_v8, %v2129_v4  ;;  %v4266_v20 = vadd.f32 %v7079_v3, %v9013_v10 }
 0x2e9   : > { %v4274_v18 = vld [vmem:[#allocation3 + $0x90] sm:$0xff]  ;;  %2648 = vrot.lane.b32.xlu2 %v7206_v41, %s5198_s17  ;;  %v4267_v6 = vadd.f32 %v7083_v0, %v9014_v48 }
 0x2ea   : > { %v7298_v56 = vpop.permute.xlu1 %2197  ;;  %v4275_v32 = vld [vmem:[#allocation3 + $0x98] sm:$0xff]  ;;  %v7300_v46 = vmul.f32 0.044402283, %v4274_v18  ;;  %v7302_v55 = vpop.permute.xlu0 %2195  ;;  %v4374_v33 = vmul.f32 0.05701366, %v4274_v18  ;;  %2160 = vst.msk [vmem:[#allocation4 + $0x90] sm:$0xff] %vm380_vm3, %v2154_v40  ;;  %v4272_v42 = vsub.f32 %v4266_v20, %v7138_v14 }
 0x2eb   : > { %v7304_v47 = vmul.f32 0.044402283, %v4275_v32  ;;  %v2251_v5 = vpop.permute.xlu2 %2250  ;;  %v4375_v1 = vmul.f32 0.05701366, %v4275_v32  ;;  %2161 = vst.msk [vmem:[#allocation4 + $0x98] sm:$0xff] %vm380_vm3, %v2155_v45  ;;  %v4273_v3 = vsub.f32 %v4267_v6, %v7143_v52  ;;  %v2184_v6 = vadd.f32 %v7173_v15, %v6959_v27 }
 0x2ec   : > { %v7310_v54 = vadd.f32 %v9009_v22, %v7300_v46  ;;  %v7316_v62 = vadd.f32 %v4374_v33, %v9010_v7  ;;  %v7336_v51 = vmul.f32 0.020974154, %v4274_v18  ;;  %v7344_v60 = vmul.f32 0.020974154, %v4275_v32 }
 0x2ed   : > { %v7322_v2 = vadd.f32 %v9011_v9, %v7304_v47  ;;  %v7328_v36 = vadd.f32 %v4375_v1, %v9012_v57  ;;  %v2186_v27 = vadd.f32 %v7269_v29, %v6974_v34  ;;  %v2185_v15 = vadd.f32 %v7274_v50, %v6980_v63  ;;  %v7427_v34 = vld [vmem:[#allocation2 + $0x108] sm:$0xff] }
 0x2ee   : > { %v4278_v19 = vadd.f32 %v7336_v51, %v4272_v42  ;;  %v4279_v8 = vadd.f32 %v7344_v60, %v4273_v3  ;;  %v7401_v42 = vmul.f32 0.36787945, %v7206_v41  ;;  %v2217_v3 = vadd.f32 %v7223_v17, %v2184_v6 }
 0x2ef   : > { %v7438_v6 = vmul.f32 0.7788008, %v7427_v34 }
 0x2f0   : > { %2652 = vrot.lane.b32.xlu1 %v7211_v24, %s5198_s17  ;;  %2650 = vrot.lane.b32.xlu0 %v7213_v53, %s5198_s17 }
 0x2f1   : > { %2663 = vrot.lane.b32.xlu2 %v7219_v16, %s5200_s27  ;;  %v4280_v13 = vld [vmem:[#allocation4 + $0x90] sm:$0xff]  ;;  %9015 = vst [vmem:[#allocation16_spill] sm:$0xff] %v7438_v6 }
 0x2f2   : > { %v7348_v23 = vpop.permute.xlu1 %2212  ;;  %v7351_v43 = vpop.permute.xlu0 %2210  ;;  %v4281_v49 = vld [vmem:[#allocation4 + $0x98] sm:$0xff]  ;;  %v7357_v0 = vmul.f32 0.022201141, %v4280_v13  ;;  %v7359_v61 = vmul.f32 0.026779689, %v4280_v13 }
 0x2f3   : > { %v7354_v4 = vpop.permute.xlu2 %2262  ;;  %v7362_v18 = vmul.f32 0.022201141, %v4281_v49  ;;  %v7364_v14 = vmul.f32 0.026779689, %v4281_v49  ;;  %v7366_v40 = vmul.f32 0.02850683, %v4280_v13 }
 0x2f4   : > { %v4284_v52 = vsub.f32 %v4278_v19, %v7357_v0  ;;  %v7369_v45 = vmul.f32 0.02850683, %v4281_v49  ;;  %v2232_v19 = vadd.f32 %v7251_v25, %v2217_v3  ;;  %v2218_v25 = vadd.f32 %v7351_v43, %v2185_v15  ;;  %v9018_v15 = vld [vmem:[#allocation18_spill] sm:$0xff] }
 0x2f5   : > { %v4285_v33 = vsub.f32 %v4279_v8, %v7362_v18  ;;  %v2219_v8 = vadd.f32 %v7348_v23, %v2186_v27 }
 0x2f6   : > { %5007 = vst.msk [vmem:[%s6256_s29 + $0x50] sm:$0xff] %vm380_vm3, %v4284_v52  ;;  %v2259_v41 = vadd.f32 %v2251_v5, %v2232_v19  ;;  %v7422_v52 = vmul.f32 0.36787945, %v7213_v53 }
 0x2f7   : > { %5008 = vst.msk [vmem:[%s6256_s29 + $0x58] sm:$0xff] %vm380_vm3, %v4285_v33 }
 0x2f8   : > { %2667 = vrot.lane.b32.xlu1 %v7226_v30, %s5200_s27  ;;  %2665 = vrot.lane.b32.xlu0 %v7229_v58, %s5200_s27 }
 0x2f9   : > { %2675 = vrot.lane.b32.xlu2 %v7255_v31, %s5200_s27 }
 0x2fa   : > { %v2228_v10 = vpop.permute.xlu1 %2227  ;;  %v2226_v20 = vpop.permute.xlu0 %2225 }
 0x2fb   : > { %v7394_v48 = vpop.permute.xlu2 %2395  ;;  %v2234_v29 = vadd.f32 %v2228_v10, %v2219_v8 }
 0x300   : > { %2679 = vrot.lane.b32.xlu1 %v7283_v59, %s5200_s27  ;;  %2677 = vrot.lane.b32.xlu0 %v7288_v26, %s5200_s27  ;;  %v7416_v59 = vmul.f32 0.36787945, %v7211_v24  ;;  %v2202_v26 = vadd.f32 %v7188_v28, %v6775_v12  ;;  %v7432_v24 = vld [vmem:[#allocation2 + $0x110] sm:$0xff]  ;;  %v2278_v12 = vmul.f32 0.7788008, %v2259_v41  ;;  %v2233_v28 = vadd.f32 %v2226_v20, %v2218_v25 }
 0x301   : > { %2690 = vrot.lane.b32.xlu2 %v7401_v42, %s5201_s28  ;;  %v7445_v27 = vmul.f32 0.7788008, %v7432_v24  ;;  %v7448_v20 = vmul.f32 0.9394131, %v7427_v34 }
 0x302   : > { %v2240_v31 = vpop.permute.xlu1 %2239  ;;  %v2238_v13 = vpop.permute.xlu0 %2237  ;;  %v2220_v63 = vadd.f32 %v7223_v17, %v2202_v26  ;;  %v9016_v17 = vld [vmem:[#allocation19_spill] sm:$0xff]  ;;  %v2274_v26 = vmul.f32 0.36787945, %v2259_v41  ;;  %v2332_v1 = vrot.slane %v2278_v12, 3 }
 0x303   : > { %v7409_v49 = vpop.permute.xlu2 %2413  ;;  %v2204_v10 = vadd.f32 %v7298_v56, %v9016_v17  ;;  %9017 = vst [vmem:[#allocation17_spill] sm:$0xff] %v7445_v27 }
 0x304   : > { %v2244_v50 = vadd.f32 %v7278_v21, %v2220_v63  ;;  %v2203_v21 = vadd.f32 %v7302_v55, %v9018_v15  ;;  %v2284_v63 = vrot.slane %v2278_v12, 1  ;;  %v2354_v15 = vrot.slane %v2274_v26, 4 }
 0x306   : > { %v7453_v8 = vadd.f32 %v7354_v4, %v2244_v50 }
 0x308   : > { %2694 = vrot.lane.b32.xlu1 %v7416_v59, %s5201_s28  ;;  %2692 = vrot.lane.b32.xlu0 %v7422_v52, %s5201_s28  ;;  %v7460_v55 = vmul.f32 0.9394131, %v7453_v8 }
 0x309   : > { %2702 = vrot.lane.b32.xlu2 %v7219_v16, %s5201_s28 }
 0x30a   : > { %v2255_v53 = vpop.permute.xlu1 %2254  ;;  %v2253_v33 = vpop.permute.xlu0 %2252 }
 0x30b   : > { %v2261_v5 = vadd.f32 %v2255_v53, %v2234_v29  ;;  %v2260_v3 = vadd.f32 %v2253_v33, %v2233_v28  ;;  %v7442_v19 = vpop.permute.xlu2 %2428  ;;  %v2311_v29 = vrot.slane %v2259_v41, 2  ;;  %v2222_v53 = vadd.f32 %v7348_v23, %v2204_v10 }
 0x30c   : > { %v2221_v33 = vadd.f32 %v7351_v43, %v2203_v21 }
 0x30d   : > { %v2280_v25 = vmul.f32 0.7788008, %v2261_v5  ;;  %v2275_v56 = vmul.f32 0.36787945, %v2260_v3  ;;  %v2279_v28 = vmul.f32 0.7788008, %v2260_v3  ;;  %v2246_v4 = vadd.f32 %v2240_v31, %v2222_v53 }
 0x30e   : > { %v2350_v7 = vmul.f32 0.36787945, %v2261_v5  ;;  %v2314_v22 = vrot.slane %v2261_v5, 2  ;;  %v2312_v32 = vrot.slane %v2260_v3, 2  ;;  %v2245_v41 = vadd.f32 %v2238_v13, %v2221_v33  ;;  %v7468_v3 = vld [vmem:[#allocation2 + $0x118] sm:$0xf] }
 0x30f   : > { %v2287_v17 = vrot.slane %v2280_v25, 1  ;;  %v2285_v57 = vrot.slane %v2279_v28, 1  ;;  %v2335_v50 = vrot.slane %v2280_v25, 3  ;;  %v2333_v12 = vrot.slane %v2279_v28, 3 }
 0x310   : > { %2706 = vrot.lane.b32.xlu1 %v7226_v30, %s5201_s28  ;;  %2704 = vrot.lane.b32.xlu0 %v7229_v58, %s5201_s28  ;;  %v2355_v5 = vrot.slane %v2275_v56, 4  ;;  %v2357_v21 = vrot.slane %v2350_v7, 4  ;;  %v2313_v53 = vsel %vm548_vm5, %v2311_v29, %v2312_v32  ;;  %v2315_v33 = vsel %vm548_vm5, %v2312_v32, %v2314_v22 }
 0x311   : > { %v2286_v23 = vsel %vm520_vm4, %v2284_v63, %v2285_v57  ;;  %v2288_v43 = vsel %vm520_vm4, %v2285_v57, %v2287_v17  ;;  %2835 = vrot.lane.b32.xlu2 %v7438_v6, %s5199_s26  ;;  %v2299_v28 = vrot.slane %v7460_v55, 1  ;;  %v7476_v30 = vmul.f32 0.7788008, %v7468_v3 }
 0x312   : > { %v2267_v10 = vpop.permute.xlu1 %2266  ;;  %v2291_v31 = vadd.f32 %v2286_v23, %v2274_v26  ;;  %v2292_v13 = vadd.f32 %v2288_v43, %v2275_v56  ;;  %v2265_v25 = vpop.permute.xlu0 %2264  ;;  %v2334_v7 = vsel %vm570_vm6, %v2332_v1, %v2333_v12  ;;  %v2336_v26 = vsel %vm570_vm6, %v2333_v12, %v2335_v50 }
 0x313   : > { %v2273_v63 = vadd.f32 %v2267_v10, %v2246_v4  ;;  %v2272_v9 = vadd.f32 %v2265_v25, %v2245_v41  ;;  %v7472_v57 = vpop.permute.xlu2 %2443  ;;  %9019 = vst [vmem:[#allocation14_spill] sm:$0xff] %v7476_v30  ;;  %v2356_v56 = vsel %vm593_vm7, %v2354_v15, %v2355_v5  ;;  %v2358_v22 = vsel %vm593_vm7, %v2355_v5, %v2357_v21 }
 0x314   : > { %v2318_v17 = vadd.f32 %v2313_v53, %v2291_v31  ;;  %v2319_v58 = vadd.f32 %v2315_v33, %v2292_v13  ;;  %v2276_v50 = vmul.f32 0.7788008, %v7453_v8 }
 0x315   : > { %v2295_v29 = vmul.f32 0.9394131, %v2273_v63  ;;  %v2294_v4 = vmul.f32 0.9394131, %v2272_v9  ;;  %v2326_v43 = vrot.slane %v2273_v63, 2  ;;  %v2324_v31 = vrot.slane %v2272_v9, 2 }
 0x316   : > { %v2339_v23 = vadd.f32 %v2334_v7, %v2318_v17  ;;  %v2340_v32 = vadd.f32 %v2336_v26, %v2319_v58  ;;  %v2363_v10 = vmul.f32 0.7788008, %v2273_v63  ;;  %v2277_v1 = vmul.f32 0.7788008, %v2272_v9 }
 0x317   : > { %v2302_v41 = vrot.slane %v2295_v29, 1  ;;  %v2300_v53 = vrot.slane %v2294_v4, 1  ;;  %v2323_v58 = vrot.slane %v7453_v8, 2  ;;  %v2344_v5 = vrot.slane %v2295_v29, 3 }
 0x318   : > { %2839 = vrot.lane.b32.xlu1 %v7476_v30, %s5199_s26  ;;  %v2361_v13 = vadd.f32 %v2356_v56, %v2339_v23  ;;  %v2362_v25 = vadd.f32 %v2358_v22, %v2340_v32  ;;  %2837 = vrot.lane.b32.xlu0 %v7445_v27, %s5199_s26  ;;  %v2342_v21 = vrot.slane %v2294_v4, 3  ;;  %v2341_v63 = vrot.slane %v7460_v55, 3 }
 0x319   : > { %2853 = vrot.lane.b32.xlu2 %v7448_v20, %s5199_s26  ;;  %v2301_v15 = vsel %vm520_vm4, %v2299_v28, %v2300_v53  ;;  %v2303_v9 = vsel %vm520_vm4, %v2300_v53, %v2302_v41  ;;  %v2370_v26 = vrot.slane %v2363_v10, 4  ;;  %v2325_v56 = vsel %vm548_vm5, %v2323_v58, %v2324_v31 }
 0x31a   : > { %v7490_v12 = vpop.permute.xlu1 %2399  ;;  %2377 = vst.msk [vmem:[#allocation3 + $0xa0] sm:$0xff] %vm380_vm3, %v2361_v13  ;;  %v7495_v33 = vpop.permute.xlu0 %2397  ;;  %v2306_v8 = vadd.f32 %v2301_v15, %v2276_v50  ;;  %v2307_v17 = vadd.f32 %v2303_v9, %v2277_v1  ;;  %v2327_v29 = vsel %vm548_vm5, %v2324_v31, %v2326_v43  ;;  %v2368_v23 = vrot.slane %v2277_v1, 4 }
 0x31b   : > { %2378 = vst.msk [vmem:[#allocation3 + $0xa8] sm:$0xff] %vm380_vm3, %v2362_v25  ;;  %v7499_v7 = vpop.permute.xlu2 %2455  ;;  %v7504_v22 = vmul.f32 0.9394131, %v7468_v3  ;;  %v2367_v4 = vrot.slane %v2276_v50, 4  ;;  %v2343_v55 = vsel %vm570_vm6, %v2341_v63, %v2342_v21  ;;  %v2345_v41 = vsel %vm570_vm6, %v2342_v21, %v2344_v5 }
 0x31c   : > { %v2330_v28 = vadd.f32 %v2325_v56, %v2306_v8  ;;  %v2331_v32 = vadd.f32 %v2327_v29, %v2307_v17  ;;  %v7509_v13 = vmul.f32 0.9394131, %v7432_v24  ;;  %v2371_v31 = vsel %vm593_vm7, %v2368_v23, %v2370_v26 }
 0x31d   : > { %v2369_v43 = vsel %vm593_vm7, %v2367_v4, %v2368_v23  ;;  %v9020_v26 = vsub.f32 %v7336_v51, %v7357_v0  ;;  %v9021_v29 = vsub.f32 %v7310_v54, %v7359_v61  ;;  %v9023_v51 = vsub.f32 %v7322_v2, %v7364_v14 }
 0x31e   : > { %v2348_v25 = vadd.f32 %v2343_v55, %v2330_v28  ;;  %v2349_v10 = vadd.f32 %v2345_v41, %v2331_v32  ;;  %v9022_v28 = vsub.f32 %v7344_v60, %v7362_v18  ;;  %v9024_v54 = vsub.f32 %v7095_v35, %v7145_v11 }
 0x31f   : > { %v9025_v60 = vsub.f32 %v7107_v37, %v7148_v44 }
 0x320   : > { %2857 = vrot.lane.b32.xlu1 %v7504_v22, %s5199_s26  ;;  %2855 = vrot.lane.b32.xlu0 %v7509_v13, %s5199_s26  ;;  %v2374_v53 = vadd.f32 %v2369_v43, %v2348_v25  ;;  %v2375_v50 = vadd.f32 %v2371_v31, %v2349_v10  ;;  %v4327_v4 = vadd.f32 %v7300_v46, %v9024_v54 }
 0x321   : > { %v4335_v1 = vld [vmem:[#allocation3 + $0xa0] sm:$0xff]  ;;  %2868 = vrot.lane.b32.xlu2 %v7427_v34, %s5198_s17  ;;  %v4328_v2 = vadd.f32 %v7304_v47, %v9025_v60 }
 0x322   : > { %v7519_v58 = vpop.permute.xlu1 %2417  ;;  %v4336_v5 = vld [vmem:[#allocation3 + $0xa8] sm:$0xff]  ;;  %v7521_v15 = vmul.f32 0.044402283, %v4335_v1  ;;  %v7523_v9 = vpop.permute.xlu0 %2415  ;;  %v4435_v63 = vmul.f32 0.05701366, %v4335_v1  ;;  %2380 = vst.msk [vmem:[#allocation4 + $0xa0] sm:$0xff] %vm380_vm3, %v2374_v53  ;;  %v4333_v35 = vsub.f32 %v4327_v4, %v7359_v61 }
 0x323   : > { %v7525_v21 = vmul.f32 0.044402283, %v4336_v5  ;;  %v2471_v8 = vpop.permute.xlu2 %2470  ;;  %v4436_v17 = vmul.f32 0.05701366, %v4336_v5  ;;  %2381 = vst.msk [vmem:[#allocation4 + $0xa8] sm:$0xff] %vm380_vm3, %v2375_v50  ;;  %v4334_v46 = vsub.f32 %v4328_v2, %v7364_v14  ;;  %v2404_v2 = vadd.f32 %v7394_v48, %v7180_v38  ;;  %v9026_v48 = vld [vmem:[#allocation24_spill] sm:$0xff] }
 0x324   : > { %v7531_v56 = vadd.f32 %v9020_v26, %v7521_v15  ;;  %v7537_v23 = vadd.f32 %v4435_v63, %v9021_v29  ;;  %v7557_v55 = vmul.f32 0.020974154, %v4335_v1  ;;  %v7565_v18 = vmul.f32 0.020974154, %v4336_v5 }
 0x325   : > { %v7543_v32 = vadd.f32 %v9022_v28, %v7525_v21  ;;  %v7549_v0 = vadd.f32 %v4436_v17, %v9023_v51  ;;  %v2406_v38 = vadd.f32 %v7490_v12, %v7195_v39  ;;  %v7648_v39 = vld [vmem:[#allocation2 + $0x120] sm:$0xff] }
 0x326   : > { %v4339_v37 = vadd.f32 %v7557_v55, %v4333_v35  ;;  %v4340_v31 = vadd.f32 %v7565_v18, %v4334_v46  ;;  %v7622_v35 = vmul.f32 0.36787945, %v7427_v34  ;;  %v2437_v46 = vadd.f32 %v7442_v19, %v2404_v2 }
 0x327   : > { %v2405_v34 = vadd.f32 %v7495_v33, %v9026_v48  ;;  %v7643_v2 = vmul.f32 0.36787945, %v7432_v24 }
 0x328   : > { %2872 = vrot.lane.b32.xlu1 %v7468_v3, %s5198_s17  ;;  %2870 = vrot.lane.b32.xlu0 %v7432_v24, %s5198_s17 }
 0x329   : > { %2883 = vrot.lane.b32.xlu2 %v7438_v6, %s5200_s27  ;;  %v4341_v25 = vld [vmem:[#allocation4 + $0xa0] sm:$0xff]  ;;  %9028 = vst [vmem:[#allocation26_spill] sm:$0xff] %v7643_v2 }
 0x32a   : > { %v7569_v41 = vpop.permute.xlu1 %2432  ;;  %v7572_v11 = vpop.permute.xlu0 %2430  ;;  %v4342_v44 = vld [vmem:[#allocation4 + $0xa8] sm:$0xff]  ;;  %v7578_v47 = vmul.f32 0.022201141, %v4341_v25  ;;  %v7580_v43 = vmul.f32 0.026779689, %v4341_v25 }
 0x32b   : > { %v7575_v10 = vpop.permute.xlu2 %2482  ;;  %v7583_v1 = vmul.f32 0.022201141, %v4342_v44  ;;  %v7585_v61 = vmul.f32 0.026779689, %v4342_v44  ;;  %v7587_v53 = vmul.f32 0.02850683, %v4341_v25 }
 0x32c   : > { %v4345_v14 = vsub.f32 %v4339_v37, %v7578_v47  ;;  %v7590_v50 = vmul.f32 0.02850683, %v4342_v44  ;;  %v2452_v37 = vadd.f32 %v7472_v57, %v2437_v46  ;;  %v2438_v57 = vadd.f32 %v7572_v11, %v2405_v34 }
 0x32d   : > { %v4346_v63 = vsub.f32 %v4340_v31, %v7583_v1  ;;  %v9027_v31 = vld [vmem:[#allocation20_spill] sm:$0xff] }
 0x32e   : > { %5009 = vst.msk [vmem:[%s6256_s29 + $0x60] sm:$0xff] %vm380_vm3, %v4345_v14  ;;  %v2422_v14 = vadd.f32 %v7409_v49, %v9027_v31  ;;  %v7655_v49 = vld [vmem:[#allocation2 + $0x128] sm:$0xff] }
 0x32f   : > { %5010 = vst.msk [vmem:[%s6256_s29 + $0x68] sm:$0xff] %vm380_vm3, %v4346_v63  ;;  %v2439_v63 = vadd.f32 %v7569_v41, %v2406_v38 }
 0x330   : > { %2887 = vrot.lane.b32.xlu1 %v7476_v30, %s5200_s27  ;;  %2885 = vrot.lane.b32.xlu0 %v7445_v27, %s5200_s27  ;;  %v2440_v12 = vadd.f32 %v7442_v19, %v2422_v14  ;;  %v7661_v19 = vmul.f32 0.7788008, %v7648_v39 }
 0x331   : > { %2895 = vrot.lane.b32.xlu2 %v7448_v20, %s5200_s27 }
 0x332   : > { %v2448_v54 = vpop.permute.xlu1 %2447  ;;  %v2446_v4 = vpop.permute.xlu0 %2445 }
 0x333   : > { %v7615_v60 = vpop.permute.xlu2 %2615  ;;  %v2454_v33 = vadd.f32 %v2448_v54, %v2439_v63  ;;  %v2453_v24 = vadd.f32 %v2446_v4, %v2438_v57  ;;  %v9029_v54 = vld [vmem:[#allocation21_spill] sm:$0xff]  ;;  %v7671_v4 = vmul.f32 0.7788008, %v7655_v49  ;;  %v9032_v57 = vld [vmem:[#allocation22_spill] sm:$0xff] }
 0x334   : > { %v2424_v34 = vadd.f32 %v7519_v58, %v9029_v54 }
 0x335   : > { %9031 = vst [vmem:[#allocation27_spill] sm:$0xff] %v7671_v4 }
 0x338   : > { %2899 = vrot.lane.b32.xlu1 %v7504_v22, %s5200_s27  ;;  %2897 = vrot.lane.b32.xlu0 %v7509_v13, %s5200_s27  ;;  %v2479_v22 = vadd.f32 %v2471_v8, %v2452_v37  ;;  %v7637_v13 = vmul.f32 0.36787945, %v7468_v3  ;;  %v7653_v3 = vld [vmem:[#allocation2 + $0x130] sm:$0xf]  ;;  %v2464_v37 = vadd.f32 %v7499_v7, %v2440_v12  ;;  %v2423_v7 = vadd.f32 %v7523_v9, %v9032_v57 }
 0x339   : > { %2910 = vrot.lane.b32.xlu2 %v7622_v35, %s5201_s28  ;;  %v7668_v63 = vmul.f32 0.7788008, %v7653_v3 }
 0x33a   : > { %v2460_v20 = vpop.permute.xlu1 %2459  ;;  %v2458_v25 = vpop.permute.xlu0 %2457  ;;  %v2498_v8 = vmul.f32 0.7788008, %v2479_v22  ;;  %v2494_v12 = vmul.f32 0.36787945, %v2479_v22  ;;  %v2531_v17 = vrot.slane %v2479_v22, 2  ;;  %v2441_v54 = vadd.f32 %v7572_v11, %v2423_v7 }
 0x33b   : > { %v7630_v44 = vpop.permute.xlu2 %2633  ;;  %9030 = vst [vmem:[#allocation30_spill] sm:$0xff] %v7668_v63 }
 0x33c   : > { %v2504_v29 = vrot.slane %v2498_v8, 1  ;;  %v2552_v5 = vrot.slane %v2498_v8, 3  ;;  %v2465_v22 = vadd.f32 %v2458_v25, %v2441_v54 }
 0x340   : > { %2914 = vrot.lane.b32.xlu1 %v7637_v13, %s5201_s28  ;;  %2912 = vrot.lane.b32.xlu0 %v7643_v2, %s5201_s28 }
 0x341   : > { %2922 = vrot.lane.b32.xlu2 %v7438_v6, %s5201_s28 }
 0x342   : > { %v2475_v46 = vpop.permute.xlu1 %2474  ;;  %v2473_v48 = vpop.permute.xlu0 %2472 }
 0x343   : > { %v2481_v38 = vadd.f32 %v2475_v46, %v2454_v33  ;;  %v2480_v31 = vadd.f32 %v2473_v48, %v2453_v24  ;;  %v7665_v14 = vpop.permute.xlu2 %2648  ;;  %v7676_v33 = vadd.f32 %v7575_v10, %v2464_v37  ;;  %v2442_v48 = vadd.f32 %v7569_v41, %v2424_v34 }
 0x345   : > { %v2500_v46 = vmul.f32 0.7788008, %v2481_v38  ;;  %v2495_v58 = vmul.f32 0.36787945, %v2480_v31  ;;  %v2499_v24 = vmul.f32 0.7788008, %v2480_v31  ;;  %v2466_v10 = vadd.f32 %v2460_v20, %v2442_v48 }
 0x346   : > { %v2570_v51 = vmul.f32 0.36787945, %v2481_v38  ;;  %v2534_v28 = vrot.slane %v2481_v38, 2  ;;  %v2532_v2 = vrot.slane %v2480_v31, 2  ;;  %v7683_v9 = vmul.f32 0.9394131, %v7676_v33 }
 0x347   : > { %v2507_v26 = vrot.slane %v2500_v46, 1  ;;  %v2505_v6 = vrot.slane %v2499_v24, 1  ;;  %v2555_v37 = vrot.slane %v2500_v46, 3  ;;  %v2553_v8 = vrot.slane %v2499_v24, 3 }
 0x348   : > { %2926 = vrot.lane.b32.xlu1 %v7476_v30, %s5201_s28  ;;  %2924 = vrot.lane.b32.xlu0 %v7445_v27, %s5201_s28  ;;  %v2575_v38 = vrot.slane %v2495_v58, 4  ;;  %v2574_v31 = vrot.slane %v2494_v12, 4  ;;  %v2577_v57 = vrot.slane %v2570_v51, 4  ;;  %v2533_v25 = vsel %vm548_vm5, %v2531_v17, %v2532_v2 }
 0x349   : > { %v2506_v41 = vsel %vm520_vm4, %v2504_v29, %v2505_v6  ;;  %v2508_v11 = vsel %vm520_vm4, %v2505_v6, %v2507_v26  ;;  %3055 = vrot.lane.b32.xlu2 %v7661_v19, %s5199_s26  ;;  %v2535_v46 = vsel %vm548_vm5, %v2532_v2, %v2534_v28  ;;  %v2519_v6 = vrot.slane %v7683_v9, 1 }
 0x34a   : > { %v2487_v34 = vpop.permute.xlu1 %2486  ;;  %v2511_v7 = vadd.f32 %v2506_v41, %v2494_v12  ;;  %v2512_v30 = vadd.f32 %v2508_v11, %v2495_v58  ;;  %v2485_v20 = vpop.permute.xlu0 %2484  ;;  %v7697_v27 = vmul.f32 0.9394131, %v7648_v39  ;;  %v2554_v51 = vsel %vm570_vm6, %v2552_v5, %v2553_v8 }
 0x34b   : > { %v2493_v48 = vadd.f32 %v2487_v34, %v2466_v10  ;;  %v2492_v54 = vadd.f32 %v2485_v20, %v2465_v22  ;;  %v7693_v29 = vpop.permute.xlu2 %2663  ;;  %v2556_v12 = vsel %vm570_vm6, %v2553_v8, %v2555_v37  ;;  %v2576_v58 = vsel %vm593_vm7, %v2574_v31, %v2575_v38 }
 0x34c   : > { %v2538_v26 = vadd.f32 %v2533_v25, %v2511_v7  ;;  %v2539_v24 = vadd.f32 %v2535_v46, %v2512_v30  ;;  %v2578_v2 = vsel %vm593_vm7, %v2575_v38, %v2577_v57  ;;  %v2496_v37 = vmul.f32 0.7788008, %v7676_v33 }
 0x34d   : > { %v2515_v17 = vmul.f32 0.9394131, %v2493_v48  ;;  %v2514_v10 = vmul.f32 0.9394131, %v2492_v54  ;;  %v2546_v11 = vrot.slane %v2493_v48, 2  ;;  %v2544_v7 = vrot.slane %v2492_v54, 2 }
 0x34e   : > { %v2559_v41 = vadd.f32 %v2554_v51, %v2538_v26  ;;  %v2560_v28 = vadd.f32 %v2556_v12, %v2539_v24  ;;  %v2583_v34 = vmul.f32 0.7788008, %v2493_v48  ;;  %v2497_v5 = vmul.f32 0.7788008, %v2492_v54 }
 0x34f   : > { %v2522_v22 = vrot.slane %v2515_v17, 1  ;;  %v2520_v25 = vrot.slane %v2514_v10, 1  ;;  %v2543_v8 = vrot.slane %v7676_v33, 2  ;;  %v2564_v31 = vrot.slane %v2515_v17, 3 }
 0x350   : > { %3059 = vrot.lane.b32.xlu1 %v7668_v63, %s5199_s26  ;;  %v2581_v30 = vadd.f32 %v2576_v58, %v2559_v41  ;;  %v2582_v20 = vadd.f32 %v2578_v2, %v2560_v28  ;;  %3057 = vrot.lane.b32.xlu0 %v7671_v4, %s5199_s26  ;;  %v2562_v48 = vrot.slane %v2514_v10, 3  ;;  %v2561_v26 = vrot.slane %v7683_v9, 3 }
 0x351   : > { %3073 = vrot.lane.b32.xlu2 %v7697_v27, %s5199_s26  ;;  %v2521_v57 = vsel %vm520_vm4, %v2519_v6, %v2520_v25  ;;  %v2523_v46 = vsel %vm520_vm4, %v2520_v25, %v2522_v22  ;;  %v2590_v12 = vrot.slane %v2583_v34, 4  ;;  %v2545_v58 = vsel %vm548_vm5, %v2543_v8, %v2544_v7 }
 0x352   : > { %v7711_v38 = vpop.permute.xlu1 %2619  ;;  %2597 = vst.msk [vmem:[#allocation3 + $0xb0] sm:$0xff] %vm380_vm3, %v2581_v30  ;;  %v7716_v54 = vpop.permute.xlu0 %2617  ;;  %v2526_v33 = vadd.f32 %v2521_v57, %v2496_v37  ;;  %v2527_v24 = vadd.f32 %v2523_v46, %v2497_v5  ;;  %v2547_v17 = vsel %vm548_vm5, %v2544_v7, %v2546_v11  ;;  %v2588_v41 = vrot.slane %v2497_v5, 4 }
 0x353   : > { %2598 = vst.msk [vmem:[#allocation3 + $0xb8] sm:$0xff] %vm380_vm3, %v2582_v20  ;;  %v7720_v51 = vpop.permute.xlu2 %2675  ;;  %v7725_v2 = vmul.f32 0.9394131, %v7653_v3  ;;  %v2587_v10 = vrot.slane %v2496_v37, 4  ;;  %v2563_v9 = vsel %vm570_vm6, %v2561_v26, %v2562_v48  ;;  %v2565_v22 = vsel %vm570_vm6, %v2562_v48, %v2564_v31 }
 0x354   : > { %v2550_v6 = vadd.f32 %v2545_v58, %v2526_v33  ;;  %v2551_v28 = vadd.f32 %v2547_v17, %v2527_v24  ;;  %v7730_v30 = vmul.f32 0.9394131, %v7655_v49  ;;  %v2591_v7 = vsel %vm593_vm7, %v2588_v41, %v2590_v12 }
 0x355   : > { %v2589_v11 = vsel %vm593_vm7, %v2587_v10, %v2588_v41  ;;  %v9033_v12 = vsub.f32 %v7557_v55, %v7578_v47  ;;  %v9034_v17 = vsub.f32 %v7531_v56, %v7580_v43  ;;  %v9036_v55 = vsub.f32 %v7543_v32, %v7585_v61 }
 0x356   : > { %v2568_v20 = vadd.f32 %v2563_v9, %v2550_v6  ;;  %v2569_v34 = vadd.f32 %v2565_v22, %v2551_v28  ;;  %v9035_v6 = vsub.f32 %v7565_v18, %v7583_v1  ;;  %v9037_v56 = vsub.f32 %v7316_v62, %v7366_v40 }
 0x357   : > { %v9038_v18 = vsub.f32 %v7328_v36, %v7369_v45 }
 0x358   : > { %3077 = vrot.lane.b32.xlu1 %v7725_v2, %s5199_s26  ;;  %3075 = vrot.lane.b32.xlu0 %v7730_v30, %s5199_s26  ;;  %v2594_v25 = vadd.f32 %v2589_v11, %v2568_v20  ;;  %v2595_v37 = vadd.f32 %v2591_v7, %v2569_v34  ;;  %v4388_v10 = vadd.f32 %v7521_v15, %v9037_v56 }
 0x359   : > { %v4396_v5 = vld [vmem:[#allocation3 + $0xb0] sm:$0xff]  ;;  %3088 = vrot.lane.b32.xlu2 %v7648_v39, %s5198_s17  ;;  %v4389_v32 = vadd.f32 %v7525_v21, %v9038_v18 }
 0x35a   : > { %v7740_v8 = vpop.permute.xlu1 %2637  ;;  %v4397_v31 = vld [vmem:[#allocation3 + $0xb8] sm:$0xff]  ;;  %v7742_v57 = vmul.f32 0.044402283, %v4396_v5  ;;  %v7744_v46 = vpop.permute.xlu0 %2635  ;;  %v4496_v26 = vmul.f32 0.05701366, %v4396_v5  ;;  %2600 = vst.msk [vmem:[#allocation4 + $0xb0] sm:$0xff] %vm380_vm3, %v2594_v25  ;;  %v4394_v62 = vsub.f32 %v4388_v10, %v7580_v43 }
 0x35b   : > { %v7746_v48 = vmul.f32 0.044402283, %v4397_v31  ;;  %v2691_v33 = vpop.permute.xlu2 %2690  ;;  %v4497_v24 = vmul.f32 0.05701366, %v4397_v31  ;;  %2601 = vst.msk [vmem:[#allocation4 + $0xb8] sm:$0xff] %vm380_vm3, %v2595_v37  ;;  %v4395_v15 = vsub.f32 %v4389_v32, %v7585_v61  ;;  %v2624_v32 = vadd.f32 %v7615_v60, %v7401_v42 }
 0x35c   : > { %v7752_v58 = vadd.f32 %v9033_v12, %v7742_v57  ;;  %v7758_v41 = vadd.f32 %v4496_v26, %v9034_v17  ;;  %v7778_v9 = vmul.f32 0.020974154, %v4396_v5  ;;  %v7786_v1 = vmul.f32 0.020974154, %v4397_v31 }
 0x35d   : > { %v7764_v28 = vadd.f32 %v9035_v6, %v7746_v48  ;;  %v7770_v47 = vadd.f32 %v4497_v24, %v9036_v55  ;;  %v2626_v42 = vadd.f32 %v7711_v38, %v7416_v59  ;;  %v2625_v60 = vadd.f32 %v7716_v54, %v7422_v52  ;;  %v7869_v59 = vld [vmem:[#allocation2 + $0x138] sm:$0xff] }
 0x35e   : > { %v4400_v36 = vadd.f32 %v7778_v9, %v4394_v62  ;;  %v4401_v7 = vadd.f32 %v7786_v1, %v4395_v15  ;;  %v7843_v62 = vmul.f32 0.36787945, %v7648_v39  ;;  %v2657_v15 = vadd.f32 %v7665_v14, %v2624_v32 }
 0x360   : > { %3092 = vrot.lane.b32.xlu1 %v7653_v3, %s5198_s17  ;;  %3090 = vrot.lane.b32.xlu0 %v7655_v49, %s5198_s17 }
 0x361   : > { %3103 = vrot.lane.b32.xlu2 %v7661_v19, %s5200_s27  ;;  %v4402_v20 = vld [vmem:[#allocation4 + $0xb0] sm:$0xff] }
 0x362   : > { %v7790_v22 = vpop.permute.xlu1 %2652  ;;  %v7793_v40 = vpop.permute.xlu0 %2650  ;;  %v4403_v45 = vld [vmem:[#allocation4 + $0xb8] sm:$0xff]  ;;  %v7799_v21 = vmul.f32 0.022201141, %v4402_v20  ;;  %v7801_v11 = vmul.f32 0.026779689, %v4402_v20 }
 0x363   : > { %v7796_v34 = vpop.permute.xlu2 %2702  ;;  %v7804_v5 = vmul.f32 0.022201141, %v4403_v45  ;;  %v7806_v43 = vmul.f32 0.026779689, %v4403_v45  ;;  %v7808_v25 = vmul.f32 0.02850683, %v4402_v20 }
 0x364   : > { %v4406_v61 = vsub.f32 %v4400_v36, %v7799_v21  ;;  %v7811_v37 = vmul.f32 0.02850683, %v4403_v45  ;;  %v2672_v36 = vadd.f32 %v7693_v29, %v2657_v15  ;;  %v2658_v29 = vadd.f32 %v7793_v40, %v2625_v60 }
 0x365   : > { %v4407_v26 = vsub.f32 %v4401_v7, %v7804_v5  ;;  %v2659_v7 = vadd.f32 %v7790_v22, %v2626_v42 }
 0x366   : > { %5011 = vst.msk [vmem:[%s6256_s29 + $0x70] sm:$0xff] %vm380_vm3, %v4406_v61  ;;  %v2699_v39 = vadd.f32 %v2691_v33, %v2672_v36  ;;  %v7864_v61 = vmul.f32 0.36787945, %v7655_v49 }
 0x367   : > { %5012 = vst.msk [vmem:[%s6256_s29 + $0x78] sm:$0xff] %vm380_vm3, %v4407_v26 }
 0x368   : > { %3107 = vrot.lane.b32.xlu1 %v7668_v63, %s5200_s27  ;;  %3105 = vrot.lane.b32.xlu0 %v7671_v4, %s5200_s27 }
 0x369   : > { %3115 = vrot.lane.b32.xlu2 %v7697_v27, %s5200_s27 }
 0x36a   : > { %v2668_v56 = vpop.permute.xlu1 %2667  ;;  %v2666_v10 = vpop.permute.xlu0 %2665 }
 0x36b   : > { %v7836_v18 = vpop.permute.xlu2 %2835  ;;  %v2674_v38 = vadd.f32 %v2668_v56, %v2659_v7  ;;  %v2673_v49 = vadd.f32 %v2666_v10, %v2658_v29  ;;  %v9040_v56 = vld [vmem:[#allocation25_spill] sm:$0xff]  ;;  %v2714_v7 = vmul.f32 0.36787945, %v2699_v39 }
 0x36c   : > { %v2644_v15 = vadd.f32 %v7740_v8, %v9040_v56 }
 0x370   : > { %3119 = vrot.lane.b32.xlu1 %v7725_v2, %s5200_s27  ;;  %3117 = vrot.lane.b32.xlu0 %v7730_v30, %s5200_s27  ;;  %v7858_v2 = vmul.f32 0.36787945, %v7653_v3  ;;  %v2642_v30 = vadd.f32 %v7630_v44, %v7219_v16  ;;  %v7874_v3 = vld [vmem:[#allocation2 + $0x148] sm:$0xf]  ;;  %v7876_v16 = vld [vmem:[#allocation2 + $0x140] sm:$0xff] }
 0x371   : > { %3130 = vrot.lane.b32.xlu2 %v7843_v62, %s5201_s28  ;;  %v2718_v44 = vmul.f32 0.7788008, %v2699_v39  ;;  %v7889_v60 = vmul.f32 0.7788008, %v7874_v3  ;;  %v7892_v10 = vmul.f32 0.7788008, %v7876_v16 }
 0x372   : > { %v2680_v27 = vpop.permute.xlu1 %2679  ;;  %v2678_v20 = vpop.permute.xlu0 %2677  ;;  %v2660_v52 = vadd.f32 %v7665_v14, %v2642_v30  ;;  %v7882_v14 = vmul.f32 0.7788008, %v7869_v59  ;;  %v9043_v30 = vld [vmem:[#allocation15_spill] sm:$0xff] }
 0x373   : > { %v7851_v45 = vpop.permute.xlu2 %2853  ;;  %9041 = vst [vmem:[#allocation23_spill] sm:$0xff] %v7889_v60  ;;  %v2772_v12 = vrot.slane %v2718_v44, 3 }
 0x374   : > { %v2684_v33 = vadd.f32 %v7720_v51, %v2660_v52  ;;  %9039 = vst [vmem:[#allocation11_spill] sm:$0xff] %v7882_v14  ;;  %v2643_v51 = vadd.f32 %v7744_v46, %v9043_v30 }
 0x375   : > { %9042 = vst [vmem:[#allocation13_spill] sm:$0xff] %v7892_v10 }
 0x376   : > { %v7897_v29 = vadd.f32 %v7796_v34, %v2684_v33  ;;  %v2661_v56 = vadd.f32 %v7793_v40, %v2643_v51 }
 0x378   : > { %3134 = vrot.lane.b32.xlu1 %v7858_v2, %s5201_s28  ;;  %3132 = vrot.lane.b32.xlu0 %v7864_v61, %s5201_s28  ;;  %v7904_v46 = vmul.f32 0.9394131, %v7897_v29 }
 0x379   : > { %3142 = vrot.lane.b32.xlu2 %v7661_v19, %s5201_s28 }
 0x37a   : > { %v2695_v54 = vpop.permute.xlu1 %2694  ;;  %v2693_v32 = vpop.permute.xlu0 %2692 }
 0x37b   : > { %v2701_v26 = vadd.f32 %v2695_v54, %v2674_v38  ;;  %v2700_v36 = vadd.f32 %v2693_v32, %v2673_v49  ;;  %v7886_v42 = vpop.permute.xlu2 %2868  ;;  %v2724_v38 = vrot.slane %v2718_v44, 1  ;;  %v2751_v54 = vrot.slane %v2699_v39, 2 }
 0x37c   : > { %v2662_v32 = vadd.f32 %v7790_v22, %v2644_v15  ;;  %v2685_v39 = vadd.f32 %v2678_v20, %v2661_v56 }
 0x37d   : > { %v2720_v52 = vmul.f32 0.7788008, %v2701_v26  ;;  %v2715_v8 = vmul.f32 0.36787945, %v2700_v36  ;;  %v2719_v49 = vmul.f32 0.7788008, %v2700_v36 }
 0x37e   : > { %v2790_v24 = vmul.f32 0.36787945, %v2701_v26  ;;  %v2754_v55 = vrot.slane %v2701_v26, 2  ;;  %v2752_v6 = vrot.slane %v2700_v36, 2  ;;  %v2686_v34 = vadd.f32 %v2680_v27, %v2662_v32 }
 0x37f   : > { %v2727_v17 = vrot.slane %v2720_v52, 1  ;;  %v2725_v31 = vrot.slane %v2719_v49, 1  ;;  %v2775_v33 = vrot.slane %v2720_v52, 3  ;;  %v2773_v44 = vrot.slane %v2719_v49, 3 }
 0x380   : > { %3146 = vrot.lane.b32.xlu1 %v7668_v63, %s5201_s28  ;;  %3144 = vrot.lane.b32.xlu0 %v7671_v4, %s5201_s28  ;;  %v2795_v26 = vrot.slane %v2715_v8, 4  ;;  %v2794_v36 = vrot.slane %v2714_v7, 4  ;;  %v2797_v30 = vrot.slane %v2790_v24, 4  ;;  %v2753_v20 = vsel %vm548_vm5, %v2751_v54, %v2752_v6 }
 0x381   : > { %v2726_v22 = vsel %vm520_vm4, %v2724_v38, %v2725_v31  ;;  %v2728_v40 = vsel %vm520_vm4, %v2725_v31, %v2727_v17  ;;  %3275 = vrot.lane.b32.xlu2 %v7882_v14, %s5199_s26  ;;  %v2755_v52 = vsel %vm548_vm5, %v2752_v6, %v2754_v55  ;;  %v2739_v31 = vrot.slane %v7904_v46, 1 }
 0x382   : > { %v2707_v15 = vpop.permute.xlu1 %2706  ;;  %v2731_v51 = vadd.f32 %v2726_v22, %v2714_v7  ;;  %v2732_v63 = vadd.f32 %v2728_v40, %v2715_v8  ;;  %v2705_v27 = vpop.permute.xlu0 %2704  ;;  %v7918_v4 = vmul.f32 0.9394131, %v7869_v59  ;;  %v2774_v24 = vsel %vm570_vm6, %v2772_v12, %v2773_v44 }
 0x383   : > { %v2713_v32 = vadd.f32 %v2707_v15, %v2686_v34  ;;  %v2712_v56 = vadd.f32 %v2705_v27, %v2685_v39  ;;  %v7914_v38 = vpop.permute.xlu2 %2883  ;;  %v2776_v7 = vsel %vm570_vm6, %v2773_v44, %v2775_v33  ;;  %v2796_v8 = vsel %vm593_vm7, %v2794_v36, %v2795_v26 }
 0x384   : > { %v2758_v17 = vadd.f32 %v2753_v20, %v2731_v51  ;;  %v2759_v49 = vadd.f32 %v2755_v52, %v2732_v63  ;;  %v2798_v55 = vsel %vm593_vm7, %v2795_v26, %v2797_v30  ;;  %v2716_v33 = vmul.f32 0.7788008, %v7897_v29 }
 0x385   : > { %v2735_v54 = vmul.f32 0.9394131, %v2713_v32  ;;  %v2734_v34 = vmul.f32 0.9394131, %v2712_v56  ;;  %v2766_v40 = vrot.slane %v2713_v32, 2  ;;  %v2764_v51 = vrot.slane %v2712_v56, 2 }
 0x386   : > { %v2779_v22 = vadd.f32 %v2774_v24, %v2758_v17  ;;  %v2780_v6 = vadd.f32 %v2776_v7, %v2759_v49  ;;  %v2803_v15 = vmul.f32 0.7788008, %v2713_v32  ;;  %v2717_v12 = vmul.f32 0.7788008, %v2712_v56 }
 0x387   : > { %v2742_v39 = vrot.slane %v2735_v54, 1  ;;  %v2740_v20 = vrot.slane %v2734_v34, 1  ;;  %v2763_v44 = vrot.slane %v7897_v29, 2  ;;  %v2784_v36 = vrot.slane %v2735_v54, 3 }
 0x388   : > { %3279 = vrot.lane.b32.xlu1 %v7889_v60, %s5199_s26  ;;  %v2801_v63 = vadd.f32 %v2796_v8, %v2779_v22  ;;  %v2802_v27 = vadd.f32 %v2798_v55, %v2780_v6  ;;  %3277 = vrot.lane.b32.xlu0 %v7892_v10, %s5199_s26  ;;  %v2782_v32 = vrot.slane %v2734_v34, 3  ;;  %v2781_v17 = vrot.slane %v7904_v46, 3 }
 0x389   : > { %3293 = vrot.lane.b32.xlu2 %v7918_v4, %s5199_s26  ;;  %v2741_v30 = vsel %vm520_vm4, %v2739_v31, %v2740_v20  ;;  %v2743_v52 = vsel %vm520_vm4, %v2740_v20, %v2742_v39  ;;  %v2810_v7 = vrot.slane %v2803_v15, 4  ;;  %v2765_v8 = vsel %vm548_vm5, %v2763_v44, %v2764_v51 }
 0x38a   : > { %v7932_v26 = vpop.permute.xlu1 %2839  ;;  %2817 = vst.msk [vmem:[#allocation3 + $0xc0] sm:$0xff] %vm380_vm3, %v2801_v63  ;;  %v7937_v56 = vpop.permute.xlu0 %2837  ;;  %v2746_v29 = vadd.f32 %v2741_v30, %v2716_v33  ;;  %v2747_v49 = vadd.f32 %v2743_v52, %v2717_v12  ;;  %v2767_v54 = vsel %vm548_vm5, %v2764_v51, %v2766_v40  ;;  %v2808_v22 = vrot.slane %v2717_v12, 4 }
 0x38b   : > { %2818 = vst.msk [vmem:[#allocation3 + $0xc8] sm:$0xff] %vm380_vm3, %v2802_v27  ;;  %v7941_v24 = vpop.permute.xlu2 %2895  ;;  %v7946_v55 = vmul.f32 0.9394131, %v7874_v3  ;;  %v2807_v34 = vrot.slane %v2716_v33, 4  ;;  %v2783_v46 = vsel %vm570_vm6, %v2781_v17, %v2782_v32  ;;  %v2785_v39 = vsel %vm570_vm6, %v2782_v32, %v2784_v36 }
 0x38c   : > { %v2770_v31 = vadd.f32 %v2765_v8, %v2746_v29  ;;  %v2771_v6 = vadd.f32 %v2767_v54, %v2747_v49  ;;  %v7951_v63 = vmul.f32 0.9394131, %v7876_v16  ;;  %v2811_v51 = vsel %vm593_vm7, %v2808_v22, %v2810_v7 }
 0x38d   : > { %v2809_v40 = vsel %vm593_vm7, %v2807_v34, %v2808_v22  ;;  %v9044_v7 = vsub.f32 %v7778_v9, %v7799_v21  ;;  %v9045_v54 = vsub.f32 %v7752_v58, %v7801_v11  ;;  %v9047_v9 = vsub.f32 %v7764_v28, %v7806_v43 }
 0x38e   : > { %v2788_v27 = vadd.f32 %v2783_v46, %v2770_v31  ;;  %v2789_v15 = vadd.f32 %v2785_v39, %v2771_v6  ;;  %v9046_v31 = vsub.f32 %v7786_v1, %v7804_v5  ;;  %v9048_v58 = vsub.f32 %v7537_v23, %v7587_v53 }
 0x38f   : > { %v9049_v1 = vsub.f32 %v7549_v0, %v7590_v50 }
 0x390   : > { %3297 = vrot.lane.b32.xlu1 %v7946_v55, %s5199_s26  ;;  %3295 = vrot.lane.b32.xlu0 %v7951_v63, %s5199_s26  ;;  %v2814_v20 = vadd.f32 %v2809_v40, %v2788_v27  ;;  %v2815_v33 = vadd.f32 %v2811_v51, %v2789_v15  ;;  %v4449_v34 = vadd.f32 %v7742_v57, %v9048_v58 }
 0x391   : > { %v4457_v12 = vld [vmem:[#allocation3 + $0xc0] sm:$0xff]  ;;  %3308 = vrot.lane.b32.xlu2 %v7869_v59, %s5198_s17  ;;  %v4450_v28 = vadd.f32 %v7746_v48, %v9049_v1 }
 0x392   : > { %v7961_v44 = vpop.permute.xlu1 %2857  ;;  %v4458_v36 = vld [vmem:[#allocation3 + $0xc8] sm:$0xff]  ;;  %v7963_v30 = vmul.f32 0.044402283, %v4457_v12  ;;  %v7965_v52 = vpop.permute.xlu0 %2855  ;;  %v4557_v17 = vmul.f32 0.05701366, %v4457_v12  ;;  %2820 = vst.msk [vmem:[#allocation4 + $0xc0] sm:$0xff] %vm380_vm3, %v2814_v20  ;;  %v4455_v23 = vsub.f32 %v4449_v34, %v7801_v11 }
 0x393   : > { %v7967_v32 = vmul.f32 0.044402283, %v4458_v36  ;;  %v2911_v29 = vpop.permute.xlu2 %2910  ;;  %v4558_v49 = vmul.f32 0.05701366, %v4458_v36  ;;  %2821 = vst.msk [vmem:[#allocation4 + $0xc8] sm:$0xff] %vm380_vm3, %v2815_v33  ;;  %v4456_v57 = vsub.f32 %v4450_v28, %v7806_v43  ;;  %v2844_v28 = vadd.f32 %v7836_v18, %v7622_v35  ;;  %v9050_v18 = vld [vmem:[#allocation26_spill] sm:$0xff] }
 0x394   : > { %v7973_v8 = vadd.f32 %v9044_v7, %v7963_v30  ;;  %v7979_v22 = vadd.f32 %v4557_v17, %v9045_v54  ;;  %v7999_v46 = vmul.f32 0.020974154, %v4457_v12  ;;  %v8007_v5 = vmul.f32 0.020974154, %v4458_v36 }
 0x395   : > { %v7985_v6 = vadd.f32 %v9046_v31, %v7967_v32  ;;  %v7991_v21 = vadd.f32 %v4558_v49, %v9047_v9  ;;  %v2846_v35 = vadd.f32 %v7932_v26, %v7637_v13  ;;  %v8090_v13 = vld [vmem:[#allocation2 + $0x150] sm:$0xff] }
 0x396   : > { %v4461_v0 = vadd.f32 %v7999_v46, %v4455_v23  ;;  %v4462_v51 = vadd.f32 %v8007_v5, %v4456_v57  ;;  %v8064_v23 = vmul.f32 0.36787945, %v7869_v59  ;;  %v2877_v57 = vadd.f32 %v7886_v42, %v2844_v28 }
 0x397   : > { %v2845_v59 = vadd.f32 %v7937_v56, %v9050_v18  ;;  %v8085_v28 = vmul.f32 0.36787945, %v7876_v16  ;;  %v8101_v18 = vmul.f32 0.7788008, %v8090_v13 }
 0x398   : > { %3312 = vrot.lane.b32.xlu1 %v7874_v3, %s5198_s17  ;;  %3310 = vrot.lane.b32.xlu0 %v7876_v16, %s5198_s17 }
 0x399   : > { %3323 = vrot.lane.b32.xlu2 %v7882_v14, %s5200_s27  ;;  %v4463_v27 = vld [vmem:[#allocation4 + $0xc0] sm:$0xff]  ;;  %9052 = vst [vmem:[#allocation28_spill] sm:$0xff] %v8085_v28 }
 0x39a   : > { %v8011_v39 = vpop.permute.xlu1 %2872  ;;  %v8014_v53 = vpop.permute.xlu0 %2870  ;;  %v4464_v50 = vld [vmem:[#allocation4 + $0xc8] sm:$0xff]  ;;  %v8020_v48 = vmul.f32 0.022201141, %v4463_v27  ;;  %v8022_v40 = vmul.f32 0.026779689, %v4463_v27 }
 0x39b   : > { %v8017_v15 = vpop.permute.xlu2 %2922  ;;  %v8025_v12 = vmul.f32 0.022201141, %v4464_v50  ;;  %v8027_v11 = vmul.f32 0.026779689, %v4464_v50  ;;  %v8029_v20 = vmul.f32 0.02850683, %v4463_v27 }
 0x39c   : > { %v4467_v43 = vsub.f32 %v4461_v0, %v8020_v48  ;;  %v8032_v33 = vmul.f32 0.02850683, %v4464_v50  ;;  %v2892_v0 = vadd.f32 %v7914_v38, %v2877_v57  ;;  %v2878_v38 = vadd.f32 %v8014_v53, %v2845_v59 }
 0x39d   : > { %v4468_v17 = vsub.f32 %v4462_v51, %v8025_v12  ;;  %v9051_v51 = vld [vmem:[#allocation16_spill] sm:$0xff] }
 0x39e   : > { %5013 = vst.msk [vmem:[%s6256_s29 + $0x80] sm:$0xff] %vm380_vm3, %v4467_v43  ;;  %v2862_v43 = vadd.f32 %v7851_v45, %v9051_v51 }
 0x39f   : > { %5014 = vst.msk [vmem:[%s6256_s29 + $0x88] sm:$0xff] %vm380_vm3, %v4468_v17  ;;  %v2879_v17 = vadd.f32 %v8011_v39, %v2846_v35 }
 0x3a0   : > { %3327 = vrot.lane.b32.xlu1 %v7889_v60, %s5200_s27  ;;  %3325 = vrot.lane.b32.xlu0 %v7892_v10, %s5200_s27  ;;  %v2880_v26 = vadd.f32 %v7886_v42, %v2862_v43  ;;  %v9053_v42 = vld [vmem:[#allocation14_spill] sm:$0xff] }
 0x3a1   : > { %3335 = vrot.lane.b32.xlu2 %v7918_v4, %s5200_s27 }
 0x3a2   : > { %v2888_v58 = vpop.permute.xlu1 %2887  ;;  %v2886_v34 = vpop.permute.xlu0 %2885  ;;  %v2904_v57 = vadd.f32 %v7941_v24, %v2880_v26 }
 0x3a3   : > { %v8057_v1 = vpop.permute.xlu2 %3055  ;;  %v2894_v56 = vadd.f32 %v2888_v58, %v2879_v17  ;;  %v2864_v58 = vadd.f32 %v7961_v44, %v9053_v42  ;;  %v9054_v17 = vld [vmem:[#allocation17_spill] sm:$0xff] }
 0x3a4   : > { %v2863_v24 = vadd.f32 %v7965_v52, %v9054_v17  ;;  %v8116_v26 = vadd.f32 %v8017_v15, %v2904_v57 }
 0x3a6   : > { %v2881_v42 = vadd.f32 %v8014_v53, %v2863_v24  ;;  %v8123_v52 = vmul.f32 0.9394131, %v8116_v26 }
 0x3a8   : > { %3339 = vrot.lane.b32.xlu1 %v7946_v55, %s5200_s27  ;;  %3337 = vrot.lane.b32.xlu0 %v7951_v63, %s5200_s27  ;;  %v2919_v55 = vadd.f32 %v2911_v29, %v2892_v0  ;;  %v8079_v63 = vmul.f32 0.36787945, %v7874_v3  ;;  %v8095_v3 = vld [vmem:[#allocation2 + $0x158] sm:$0xff]  ;;  %v2893_v29 = vadd.f32 %v2886_v34, %v2878_v38  ;;  %v8111_v34 = vmul.f32 0.9394131, %v8090_v13 }
 0x3a9   : > { %3350 = vrot.lane.b32.xlu2 %v8064_v23, %s5201_s28  ;;  %v8108_v43 = vmul.f32 0.7788008, %v8095_v3 }
 0x3aa   : > { %v2900_v4 = vpop.permute.xlu1 %2899  ;;  %v2898_v27 = vpop.permute.xlu0 %2897  ;;  %v2938_v45 = vmul.f32 0.7788008, %v2919_v55  ;;  %v2934_v38 = vmul.f32 0.36787945, %v2919_v55  ;;  %v2971_v54 = vrot.slane %v2919_v55, 2 }
 0x3ab   : > { %v8072_v50 = vpop.permute.xlu2 %3073  ;;  %v2905_v55 = vadd.f32 %v2898_v27, %v2881_v42 }
 0x3ac   : > { %v2992_v9 = vrot.slane %v2938_v45, 3  ;;  %v3014_v17 = vrot.slane %v2934_v38, 4 }
 0x3b0   : > { %3354 = vrot.lane.b32.xlu1 %v8079_v63, %s5201_s28  ;;  %3352 = vrot.lane.b32.xlu0 %v8085_v28, %s5201_s28 }
 0x3b1   : > { %3362 = vrot.lane.b32.xlu2 %v7882_v14, %s5201_s28 }
 0x3b2   : > { %v2915_v16 = vpop.permute.xlu1 %2914  ;;  %v2913_v35 = vpop.permute.xlu0 %2912 }
 0x3b3   : > { %v2921_v0 = vadd.f32 %v2915_v16, %v2894_v56  ;;  %v2920_v59 = vadd.f32 %v2913_v35, %v2893_v29  ;;  %v8105_v51 = vpop.permute.xlu2 %3088  ;;  %v2944_v16 = vrot.slane %v2938_v45, 1  ;;  %v2882_v35 = vadd.f32 %v8011_v39, %v2864_v58 }
 0x3b5   : > { %v2940_v56 = vmul.f32 0.7788008, %v2921_v0  ;;  %v2935_v44 = vmul.f32 0.36787945, %v2920_v59  ;;  %v2939_v29 = vmul.f32 0.7788008, %v2920_v59  ;;  %v2906_v15 = vadd.f32 %v2900_v4, %v2882_v35 }
 0x3b6   : > { %v3010_v7 = vmul.f32 0.36787945, %v2921_v0  ;;  %v2974_v36 = vrot.slane %v2921_v0, 2  ;;  %v2972_v14 = vrot.slane %v2920_v59, 2  ;;  %v8131_v59 = vld [vmem:[#allocation2 + $0x160] sm:$0xf] }
 0x3b7   : > { %v2947_v49 = vrot.slane %v2940_v56, 1  ;;  %v2945_v31 = vrot.slane %v2939_v29, 1  ;;  %v2995_v57 = vrot.slane %v2940_v56, 3  ;;  %v2993_v45 = vrot.slane %v2939_v29, 3 }
 0x3b8   : > { %3366 = vrot.lane.b32.xlu1 %v7889_v60, %s5201_s28  ;;  %3364 = vrot.lane.b32.xlu0 %v7892_v10, %s5201_s28  ;;  %v3015_v0 = vrot.slane %v2935_v44, 4  ;;  %v3017_v24 = vrot.slane %v3010_v7, 4  ;;  %v2973_v35 = vsel %vm548_vm5, %v2971_v54, %v2972_v14  ;;  %v2975_v42 = vsel %vm548_vm5, %v2972_v14, %v2974_v36 }
 0x3b9   : > { %v2946_v39 = vsel %vm520_vm4, %v2944_v16, %v2945_v31  ;;  %v2948_v53 = vsel %vm520_vm4, %v2945_v31, %v2947_v49  ;;  %3495 = vrot.lane.b32.xlu2 %v8101_v18, %s5199_s26  ;;  %v2959_v31 = vrot.slane %v8123_v52, 1  ;;  %v8139_v28 = vmul.f32 0.7788008, %v8131_v59 }
 0x3ba   : > { %v2927_v58 = vpop.permute.xlu1 %2926  ;;  %v2951_v4 = vadd.f32 %v2946_v39, %v2934_v38  ;;  %v2952_v27 = vadd.f32 %v2948_v53, %v2935_v44  ;;  %v2925_v56 = vpop.permute.xlu0 %2924  ;;  %v2994_v7 = vsel %vm570_vm6, %v2992_v9, %v2993_v45  ;;  %v2996_v38 = vsel %vm570_vm6, %v2993_v45, %v2995_v57 }
 0x3bb   : > { %v2933_v16 = vadd.f32 %v2927_v58, %v2906_v15  ;;  %v2932_v10 = vadd.f32 %v2925_v56, %v2905_v55  ;;  %v8135_v49 = vpop.permute.xlu2 %3103  ;;  %v3016_v44 = vsel %vm593_vm7, %v3014_v17, %v3015_v0  ;;  %v3018_v36 = vsel %vm593_vm7, %v3015_v0, %v3017_v24 }
 0x3bc   : > { %v2978_v29 = vadd.f32 %v2973_v35, %v2951_v4  ;;  %v2979_v60 = vadd.f32 %v2975_v42, %v2952_v27  ;;  %v2936_v57 = vmul.f32 0.7788008, %v8116_v26 }
 0x3bd   : > { %v2955_v54 = vmul.f32 0.9394131, %v2933_v16  ;;  %v2954_v15 = vmul.f32 0.9394131, %v2932_v10  ;;  %v2986_v53 = vrot.slane %v2933_v16, 2  ;;  %v2984_v4 = vrot.slane %v2932_v10, 2 }
 0x3be   : > { %v2999_v39 = vadd.f32 %v2994_v7, %v2978_v29  ;;  %v3000_v14 = vadd.f32 %v2996_v38, %v2979_v60  ;;  %v3023_v58 = vmul.f32 0.7788008, %v2933_v16  ;;  %v2937_v9 = vmul.f32 0.7788008, %v2932_v10 }
 0x3bf   : > { %v2962_v55 = vrot.slane %v2955_v54, 1  ;;  %v2960_v35 = vrot.slane %v2954_v15, 1  ;;  %v2983_v60 = vrot.slane %v8116_v26, 2  ;;  %v3004_v0 = vrot.slane %v2955_v54, 3 }
 0x3c0   : > { %3499 = vrot.lane.b32.xlu1 %v8139_v28, %s5199_s26  ;;  %v3021_v27 = vadd.f32 %v3016_v44, %v2999_v39  ;;  %v3022_v56 = vadd.f32 %v3018_v36, %v3000_v14  ;;  %3497 = vrot.lane.b32.xlu0 %v8108_v43, %s5199_s26  ;;  %v3002_v24 = vrot.slane %v2954_v15, 3  ;;  %v3001_v16 = vrot.slane %v8123_v52, 3 }
 0x3c1   : > { %3513 = vrot.lane.b32.xlu2 %v8111_v34, %s5199_s26  ;;  %v2961_v17 = vsel %vm520_vm4, %v2959_v31, %v2960_v35  ;;  %v2963_v10 = vsel %vm520_vm4, %v2960_v35, %v2962_v55  ;;  %v3030_v38 = vrot.slane %v3023_v58, 4  ;;  %v2985_v44 = vsel %vm548_vm5, %v2983_v60, %v2984_v4 }
 0x3c2   : > { %v8153_v45 = vpop.permute.xlu1 %3059  ;;  %3037 = vst.msk [vmem:[#allocation3 + $0xd0] sm:$0xff] %vm380_vm3, %v3021_v27  ;;  %v8158_v42 = vpop.permute.xlu0 %3057  ;;  %v2966_v26 = vadd.f32 %v2961_v17, %v2936_v57  ;;  %v2967_v29 = vadd.f32 %v2963_v10, %v2937_v9  ;;  %v2987_v54 = vsel %vm548_vm5, %v2984_v4, %v2986_v53  ;;  %v3028_v39 = vrot.slane %v2937_v9, 4 }
 0x3c3   : > { %3038 = vst.msk [vmem:[#allocation3 + $0xd8] sm:$0xff] %vm380_vm3, %v3022_v56  ;;  %v8162_v7 = vpop.permute.xlu2 %3115  ;;  %v8167_v36 = vmul.f32 0.9394131, %v8131_v59  ;;  %v3027_v15 = vrot.slane %v2936_v57, 4  ;;  %v3003_v52 = vsel %vm570_vm6, %v3001_v16, %v3002_v24  ;;  %v3005_v55 = vsel %vm570_vm6, %v3002_v24, %v3004_v0 }
 0x3c4   : > { %v2990_v31 = vadd.f32 %v2985_v44, %v2966_v26  ;;  %v2991_v14 = vadd.f32 %v2987_v54, %v2967_v29  ;;  %v8172_v27 = vmul.f32 0.9394131, %v8095_v3  ;;  %v3031_v4 = vsel %vm593_vm7, %v3028_v39, %v3030_v38 }
 0x3c5   : > { %v3029_v53 = vsel %vm593_vm7, %v3027_v15, %v3028_v39  ;;  %v9055_v38 = vsub.f32 %v7999_v46, %v8020_v48  ;;  %v9056_v54 = vsub.f32 %v7973_v8, %v8022_v40  ;;  %v9058_v46 = vsub.f32 %v7985_v6, %v8027_v11 }
 0x3c6   : > { %v3008_v56 = vadd.f32 %v3003_v52, %v2990_v31  ;;  %v3009_v58 = vadd.f32 %v3005_v55, %v2991_v14  ;;  %v9057_v31 = vsub.f32 %v8007_v5, %v8025_v12  ;;  %v9059_v8 = vsub.f32 %v7758_v41, %v7808_v25 }
 0x3c7   : > { %v9060_v5 = vsub.f32 %v7770_v47, %v7811_v37 }
 0x3c8   : > { %3517 = vrot.lane.b32.xlu1 %v8167_v36, %s5199_s26  ;;  %3515 = vrot.lane.b32.xlu0 %v8172_v27, %s5199_s26  ;;  %v3034_v35 = vadd.f32 %v3029_v53, %v3008_v56  ;;  %v3035_v57 = vadd.f32 %v3031_v4, %v3009_v58  ;;  %v4510_v15 = vadd.f32 %v7963_v30, %v9059_v8 }
 0x3c9   : > { %v4518_v9 = vld [vmem:[#allocation3 + $0xd0] sm:$0xff]  ;;  %3528 = vrot.lane.b32.xlu2 %v8090_v13, %s5198_s17  ;;  %v4511_v6 = vadd.f32 %v7967_v32, %v9060_v5 }
 0x3ca   : > { %v8182_v60 = vpop.permute.xlu1 %3077  ;;  %v4519_v0 = vld [vmem:[#allocation3 + $0xd8] sm:$0xff]  ;;  %v8184_v17 = vmul.f32 0.044402283, %v4518_v9  ;;  %v8186_v10 = vpop.permute.xlu0 %3075  ;;  %v4618_v16 = vmul.f32 0.05701366, %v4518_v9  ;;  %3040 = vst.msk [vmem:[#allocation4 + $0xd0] sm:$0xff] %vm380_vm3, %v3034_v35  ;;  %v4516_v41 = vsub.f32 %v4510_v15, %v8022_v40 }
 0x3cb   : > { %v8188_v24 = vmul.f32 0.044402283, %v4519_v0  ;;  %v3131_v26 = vpop.permute.xlu2 %3130  ;;  %v4619_v29 = vmul.f32 0.05701366, %v4519_v0  ;;  %3041 = vst.msk [vmem:[#allocation4 + $0xd8] sm:$0xff] %vm380_vm3, %v3035_v57  ;;  %v4517_v30 = vsub.f32 %v4511_v6, %v8027_v11  ;;  %v8280_v6 = vld [vmem:[#allocation2 + $0x168] sm:$0xff] }
 0x3cc   : > { %v8194_v44 = vadd.f32 %v9055_v38, %v8184_v17  ;;  %v8200_v39 = vadd.f32 %v4618_v16, %v9056_v54  ;;  %v8220_v52 = vmul.f32 0.020974154, %v4518_v9  ;;  %v8228_v12 = vmul.f32 0.020974154, %v4519_v0 }
 0x3cd   : > { %v8206_v14 = vadd.f32 %v9057_v31, %v8188_v24  ;;  %v8212_v48 = vadd.f32 %v4619_v29, %v9058_v46 }
 0x3ce   : > { %v4522_v47 = vadd.f32 %v8220_v52, %v4516_v41  ;;  %v4523_v4 = vadd.f32 %v8228_v12, %v4517_v30  ;;  %v3064_v41 = vadd.f32 %v8057_v1, %v7843_v62  ;;  %v8287_v30 = vmul.f32 0.7788008, %v8280_v6 }
 0x3d0   : > { %3532 = vrot.lane.b32.xlu1 %v8131_v59, %s5198_s17  ;;  %3530 = vrot.lane.b32.xlu0 %v8095_v3, %s5198_s17 }
 0x3d1   : > { %3543 = vrot.lane.b32.xlu2 %v8101_v18, %s5200_s27  ;;  %v4524_v56 = vld [vmem:[#allocation4 + $0xd0] sm:$0xff] }
 0x3d2   : > { %v8232_v55 = vpop.permute.xlu1 %3092  ;;  %v8235_v25 = vpop.permute.xlu0 %3090  ;;  %v4525_v37 = vld [vmem:[#allocation4 + $0xd8] sm:$0xff]  ;;  %v8241_v32 = vmul.f32 0.022201141, %v4524_v56  ;;  %v8243_v53 = vmul.f32 0.026779689, %v4524_v56 }
 0x3d3   : > { %v8238_v58 = vpop.permute.xlu2 %3142  ;;  %v8246_v9 = vmul.f32 0.022201141, %v4525_v37  ;;  %v8248_v40 = vmul.f32 0.026779689, %v4525_v37  ;;  %v8250_v35 = vmul.f32 0.02850683, %v4524_v56 }
 0x3d4   : > { %v4528_v11 = vsub.f32 %v4522_v47, %v8241_v32  ;;  %v8253_v57 = vmul.f32 0.02850683, %v4525_v37  ;;  %v8294_v37 = vld [vmem:[#allocation2 + $0x178] sm:$0xf] }
 0x3d5   : > { %v4529_v16 = vsub.f32 %v4523_v4, %v8246_v9  ;;  %v3066_v4 = vadd.f32 %v8153_v45, %v7858_v2  ;;  %v8318_v2 = vmul.f32 0.36787945, %v8090_v13  ;;  %v8330_v13 = vmul.f32 0.36787945, %v8095_v3 }
 0x3d6   : > { %9061 = vst [vmem:[#allocation29_spill] sm:$0xff] %v8253_v57 }
 0x3d7   : > { %5015 = vst.msk [vmem:[%s6256_s29 + $0x90] sm:$0xff] %vm380_vm3, %v4528_v11  ;;  %v3099_v54 = vadd.f32 %v8232_v55, %v3066_v4 }
 0x3d8   : > { %3547 = vrot.lane.b32.xlu1 %v8139_v28, %s5200_s27  ;;  %3545 = vrot.lane.b32.xlu0 %v8108_v43, %s5200_s27  ;;  %5016 = vst.msk [vmem:[%s6256_s29 + $0x98] sm:$0xff] %vm380_vm3, %v4529_v16  ;;  %v8306_v16 = vmul.f32 0.7788008, %v8294_v37 }
 0x3d9   : > { %3555 = vrot.lane.b32.xlu2 %v8111_v34, %s5200_s27  ;;  %v3097_v34 = vadd.f32 %v8105_v51, %v3064_v41  ;;  %v3082_v41 = vadd.f32 %v8072_v50, %v7661_v19  ;;  %9062 = vst [vmem:[#allocation12_spill] sm:$0xff] %v8318_v2 }
 0x3da   : > { %v3108_v8 = vpop.permute.xlu1 %3107  ;;  %v3106_v15 = vpop.permute.xlu0 %3105  ;;  %9064 = vst [vmem:[#allocation18_spill] sm:$0xff] %v8330_v13 }
 0x3db   : > { %v8278_v5 = vpop.permute.xlu2 %3275  ;;  %v3112_v62 = vadd.f32 %v8135_v49, %v3097_v34  ;;  %v3114_v45 = vadd.f32 %v3108_v8, %v3099_v54 }
 0x3dd   : > { %v3139_v11 = vadd.f32 %v3131_v26, %v3112_v62 }
 0x3df   : > { %v3158_v19 = vmul.f32 0.7788008, %v3139_v11  ;;  %v3191_v29 = vrot.slane %v3139_v11, 2 }
 0x3e0   : > { %3559 = vrot.lane.b32.xlu1 %v8167_v36, %s5200_s27  ;;  %3557 = vrot.lane.b32.xlu0 %v8172_v27, %s5200_s27  ;;  %v8299_v36 = vld [vmem:[#allocation2 + $0x170] sm:$0xff]  ;;  %v3065_v27 = vadd.f32 %v8158_v42, %v7864_v61  ;;  %v3100_v61 = vadd.f32 %v8105_v51, %v3082_v41  ;;  %v9065_v51 = vld [vmem:[#allocation30_spill] sm:$0xff] }
 0x3e1   : > { %3715 = vrot.lane.b32.xlu2 %v8287_v30, %s5199_s26  ;;  %v8312_v49 = vmul.f32 0.7788008, %v8299_v36  ;;  %v3084_v54 = vadd.f32 %v8182_v60, %v9065_v51  ;;  %v3212_v0 = vrot.slane %v3158_v19, 3 }
 0x3e2   : > { %v3120_v56 = vpop.permute.xlu1 %3119  ;;  %v3118_v47 = vpop.permute.xlu0 %3117  ;;  %v3098_v34 = vadd.f32 %v8235_v25, %v3065_v27  ;;  %v3124_v26 = vadd.f32 %v8162_v7, %v3100_v61  ;;  %v8327_v27 = vmul.f32 0.36787945, %v8131_v59  ;;  %v9066_v7 = vld [vmem:[#allocation27_spill] sm:$0xff]  ;;  %v3154_v59 = vmul.f32 0.36787945, %v3139_v11 }
 0x3e3   : > { %v8297_v1 = vpop.permute.xlu2 %3293  ;;  %v3083_v61 = vadd.f32 %v8186_v10, %v9066_v7 }
 0x3e4   : > { %v3113_v50 = vadd.f32 %v3106_v15, %v3098_v34  ;;  %9063 = vst [vmem:[#allocation19_spill] sm:$0xff] %v8327_v27  ;;  %v8337_v15 = vmul.f32 0.9394131, %v8280_v6  ;;  %v8340_v34 = vmul.f32 0.9394131, %v8294_v37 }
 0x3e5   : > { %v3101_v51 = vadd.f32 %v8235_v25, %v3083_v61 }
 0x3e7   : > { %v3125_v11 = vadd.f32 %v3118_v47, %v3101_v51 }
 0x3e8   : > { %3719 = vrot.lane.b32.xlu1 %v8306_v16, %s5199_s26  ;;  %3717 = vrot.lane.b32.xlu0 %v8312_v49, %s5199_s26 }
 0x3e9   : > { %3570 = vrot.lane.b32.xlu2 %v8318_v2, %s5201_s28 }
 0x3ea   : > { %v3135_v42 = vpop.permute.xlu1 %3134  ;;  %v3133_v4 = vpop.permute.xlu0 %3132 }
 0x3eb   : > { %v3141_v62 = vadd.f32 %v3135_v42, %v3114_v45  ;;  %v3140_v8 = vadd.f32 %v3133_v4, %v3113_v50  ;;  %v8334_v41 = vpop.permute.xlu2 %3308  ;;  %v8345_v45 = vadd.f32 %v8238_v58, %v3124_v26  ;;  %v3164_v42 = vrot.slane %v3158_v19, 1 }
 0x3ec   : > { %v3102_v4 = vadd.f32 %v8232_v55, %v3084_v54 }
 0x3ed   : > { %v3160_v3 = vmul.f32 0.7788008, %v3141_v62  ;;  %v3155_v60 = vmul.f32 0.36787945, %v3140_v8  ;;  %v3159_v50 = vmul.f32 0.7788008, %v3140_v8 }
 0x3ee   : > { %v3230_v46 = vmul.f32 0.36787945, %v3141_v62  ;;  %v3194_v31 = vrot.slane %v3141_v62, 2  ;;  %v3192_v57 = vrot.slane %v3140_v8, 2  ;;  %v8352_v10 = vmul.f32 0.9394131, %v8345_v45 }
 0x3ef   : > { %v3167_v38 = vrot.slane %v3160_v3, 1  ;;  %v3165_v2 = vrot.slane %v3159_v50, 1  ;;  %v3126_v58 = vadd.f32 %v3120_v56, %v3102_v4  ;;  %v3215_v26 = vrot.slane %v3160_v3, 3 }
 0x3f0   : > { %3574 = vrot.lane.b32.xlu1 %v8327_v27, %s5201_s28  ;;  %3572 = vrot.lane.b32.xlu0 %v8330_v13, %s5201_s28  ;;  %v3213_v19 = vrot.slane %v3159_v50, 3  ;;  %v3235_v62 = vrot.slane %v3155_v60, 4  ;;  %v3234_v8 = vrot.slane %v3154_v59, 4  ;;  %v3237_v7 = vrot.slane %v3230_v46, 4 }
 0x3f1   : > { %v3166_v55 = vsel %vm520_vm4, %v3164_v42, %v3165_v2  ;;  %v3168_v25 = vsel %vm520_vm4, %v3165_v2, %v3167_v38  ;;  %3733 = vrot.lane.b32.xlu2 %v8337_v15, %s5199_s26  ;;  %v3193_v47 = vsel %vm548_vm5, %v3191_v29, %v3192_v57  ;;  %v3195_v3 = vsel %vm548_vm5, %v3192_v57, %v3194_v31 }
 0x3f2   : > { %v3147_v54 = vpop.permute.xlu1 %3146  ;;  %v3171_v61 = vadd.f32 %v3166_v55, %v3154_v59  ;;  %v3172_v27 = vadd.f32 %v3168_v25, %v3155_v60  ;;  %v3145_v56 = vpop.permute.xlu0 %3144  ;;  %v3179_v38 = vrot.slane %v8352_v10, 1  ;;  %v8366_v13 = vmul.f32 0.9394131, %v8299_v36 }
 0x3f3   : > { %v3153_v4 = vadd.f32 %v3147_v54, %v3126_v58  ;;  %v3152_v51 = vadd.f32 %v3145_v56, %v3125_v11  ;;  %v8362_v42 = vpop.permute.xlu2 %3323  ;;  %v3214_v46 = vsel %vm570_vm6, %v3212_v0, %v3213_v19  ;;  %v3216_v59 = vsel %vm570_vm6, %v3213_v19, %v3215_v26 }
 0x3f4   : > { %v3198_v2 = vadd.f32 %v3193_v47, %v3171_v61  ;;  %v3199_v50 = vadd.f32 %v3195_v3, %v3172_v27  ;;  %v3236_v60 = vsel %vm593_vm7, %v3234_v8, %v3235_v62  ;;  %v3238_v31 = vsel %vm593_vm7, %v3235_v62, %v3237_v7 }
 0x3f5   : > { %v3175_v29 = vmul.f32 0.9394131, %v3153_v4  ;;  %v3174_v58 = vmul.f32 0.9394131, %v3152_v51  ;;  %v3206_v25 = vrot.slane %v3153_v4, 2  ;;  %v3204_v61 = vrot.slane %v3152_v51, 2 }
 0x3f6   : > { %v3219_v55 = vadd.f32 %v3214_v46, %v3198_v2  ;;  %v3220_v57 = vadd.f32 %v3216_v59, %v3199_v50  ;;  %v3243_v54 = vmul.f32 0.7788008, %v3153_v4  ;;  %v3157_v0 = vmul.f32 0.7788008, %v3152_v51 }
 0x3f7   : > { %v3182_v11 = vrot.slane %v3175_v29, 1  ;;  %v3180_v47 = vrot.slane %v3174_v58, 1  ;;  %v3156_v26 = vmul.f32 0.7788008, %v8345_v45  ;;  %v3203_v19 = vrot.slane %v8345_v45, 2 }
 0x3f8   : > { %3737 = vrot.lane.b32.xlu1 %v8340_v34, %s5199_s26  ;;  %v3241_v27 = vadd.f32 %v3236_v60, %v3219_v55  ;;  %v3242_v56 = vadd.f32 %v3238_v31, %v3220_v57  ;;  %3735 = vrot.lane.b32.xlu0 %v8366_v13, %s5199_s26  ;;  %v3224_v8 = vrot.slane %v3175_v29, 3  ;;  %v3222_v4 = vrot.slane %v3174_v58, 3 }
 0x3f9   : > { %3748 = vrot.lane.b32.xlu2 %v8280_v6, %s5198_s17  ;;  %v3181_v7 = vsel %vm520_vm4, %v3179_v38, %v3180_v47  ;;  %v3183_v3 = vsel %vm520_vm4, %v3180_v47, %v3182_v11  ;;  %v3221_v2 = vrot.slane %v8352_v10, 3  ;;  %v3250_v59 = vrot.slane %v3243_v54, 4 }
 0x3fa   : > { %v8380_v62 = vpop.permute.xlu1 %3279  ;;  %3257 = vst.msk [vmem:[#allocation3 + $0xe0] sm:$0xff] %vm380_vm3, %v3241_v27  ;;  %v8385_v51 = vpop.permute.xlu0 %3277  ;;  %v3186_v45 = vadd.f32 %v3181_v7, %v3156_v26  ;;  %v3187_v50 = vadd.f32 %v3183_v3, %v3157_v0  ;;  %v3205_v60 = vsel %vm548_vm5, %v3203_v19, %v3204_v61  ;;  %v3207_v29 = vsel %vm548_vm5, %v3204_v61, %v3206_v25 }
 0x3fb   : > { %3258 = vst.msk [vmem:[#allocation3 + $0xe8] sm:$0xff] %vm380_vm3, %v3242_v56  ;;  %v8389_v46 = vpop.permute.xlu2 %3335  ;;  %v3248_v55 = vrot.slane %v3157_v0, 4  ;;  %v3247_v31 = vrot.slane %v3156_v26, 4  ;;  %v3223_v58 = vsel %vm570_vm6, %v3221_v2, %v3222_v4  ;;  %v3225_v11 = vsel %vm570_vm6, %v3222_v4, %v3224_v8 }
 0x3fc   : > { %v3210_v38 = vadd.f32 %v3205_v60, %v3186_v45  ;;  %v3211_v57 = vadd.f32 %v3207_v29, %v3187_v50  ;;  %v9067_v45 = vsub.f32 %v8220_v52, %v8241_v32  ;;  %v9069_v29 = vsub.f32 %v8228_v12, %v8246_v9 }
 0x3fd   : > { %v3249_v56 = vsel %vm593_vm7, %v3247_v31, %v3248_v55  ;;  %v3251_v54 = vsel %vm593_vm7, %v3248_v55, %v3250_v59  ;;  %v9068_v59 = vsub.f32 %v8194_v44, %v8243_v53  ;;  %v9070_v52 = vsub.f32 %v8206_v14, %v8248_v40 }
 0x3fe   : > { %v3228_v10 = vadd.f32 %v3223_v58, %v3210_v38  ;;  %v3229_v27 = vadd.f32 %v3225_v11, %v3211_v57  ;;  %v9071_v44 = vsub.f32 %v7979_v22, %v8029_v20  ;;  %v9072_v12 = vsub.f32 %v7991_v21, %v8032_v33 }
 0x400   : > { %3752 = vrot.lane.b32.xlu1 %v8294_v37, %s5198_s17  ;;  %3750 = vrot.lane.b32.xlu0 %v8299_v36, %s5198_s17  ;;  %v3254_v61 = vadd.f32 %v3249_v56, %v3228_v10  ;;  %v3255_v0 = vadd.f32 %v3251_v54, %v3229_v27  ;;  %v4571_v38 = vadd.f32 %v8184_v17, %v9071_v44 }
 0x401   : > { %v4579_v25 = vld [vmem:[#allocation3 + $0xe0] sm:$0xff]  ;;  %3582 = vrot.lane.b32.xlu2 %v8101_v18, %s5201_s28  ;;  %v4572_v14 = vadd.f32 %v8188_v24, %v9072_v12  ;;  %v8504_v12 = vmul.f32 0.36787945, %v8280_v6 }
 0x402   : > { %v8403_v47 = vpop.permute.xlu1 %3297  ;;  %v4580_v26 = vld [vmem:[#allocation3 + $0xe8] sm:$0xff]  ;;  %v8405_v19 = vmul.f32 0.044402283, %v4579_v25  ;;  %v8407_v8 = vpop.permute.xlu0 %3295  ;;  %v4679_v3 = vmul.f32 0.05701366, %v4579_v25  ;;  %3260 = vst.msk [vmem:[#allocation4 + $0xe0] sm:$0xff] %vm380_vm3, %v3254_v61  ;;  %v4577_v22 = vsub.f32 %v4571_v38, %v8243_v53  ;;  %v3284_v38 = vadd.f32 %v8278_v5, %v8064_v23 }
 0x403   : > { %v8409_v7 = vmul.f32 0.044402283, %v4580_v26  ;;  %v3351_v4 = vpop.permute.xlu2 %3350  ;;  %v4680_v2 = vmul.f32 0.05701366, %v4580_v26  ;;  %3261 = vst.msk [vmem:[#allocation4 + $0xe8] sm:$0xff] %vm380_vm3, %v3255_v0  ;;  %v4578_v17 = vsub.f32 %v4572_v14, %v8248_v40  ;;  %v3286_v23 = vadd.f32 %v8380_v62, %v8079_v63  ;;  %v9073_v5 = vld [vmem:[#allocation28_spill] sm:$0xff] }
 0x404   : > { %v8415_v50 = vadd.f32 %v9067_v45, %v8405_v19  ;;  %v8421_v60 = vadd.f32 %v4679_v3, %v9068_v59  ;;  %v8441_v57 = vmul.f32 0.020974154, %v4579_v25  ;;  %v8449_v9 = vmul.f32 0.020974154, %v4580_v26 }
 0x405   : > { %v8427_v55 = vadd.f32 %v9069_v29, %v8409_v7  ;;  %v8433_v32 = vadd.f32 %v4680_v2, %v9070_v52  ;;  %v3317_v14 = vadd.f32 %v8334_v41, %v3284_v38  ;;  %v9075_v38 = vld [vmem:[#allocation23_spill] sm:$0xff] }
 0x406   : > { %v4583_v21 = vadd.f32 %v8441_v57, %v4577_v22  ;;  %v4584_v27 = vadd.f32 %v8449_v9, %v4578_v17 }
 0x407   : > { %v3332_v17 = vadd.f32 %v8362_v42, %v3317_v14  ;;  %v3304_v14 = vadd.f32 %v8403_v47, %v9075_v38 }
 0x408   : > { %3586 = vrot.lane.b32.xlu1 %v8139_v28, %s5201_s28  ;;  %3584 = vrot.lane.b32.xlu0 %v8108_v43, %s5201_s28 }
 0x409   : > { %3763 = vrot.lane.b32.xlu2 %v8287_v30, %s5200_s27  ;;  %v4585_v58 = vld [vmem:[#allocation4 + $0xe0] sm:$0xff]  ;;  %v3359_v6 = vadd.f32 %v3351_v4, %v3332_v17 }
 0x40a   : > { %v8453_v31 = vpop.permute.xlu1 %3312  ;;  %v8456_v20 = vpop.permute.xlu0 %3310  ;;  %v4586_v33 = vld [vmem:[#allocation4 + $0xe8] sm:$0xff]  ;;  %v8460_v24 = vmul.f32 0.022201141, %v4585_v58  ;;  %v8462_v10 = vmul.f32 0.026779689, %v4585_v58 }
 0x40b   : > { %v3363_v11 = vpop.permute.xlu2 %3362  ;;  %v8465_v56 = vmul.f32 0.022201141, %v4586_v33  ;;  %v8467_v53 = vmul.f32 0.026779689, %v4586_v33  ;;  %v8469_v54 = vmul.f32 0.02850683, %v4585_v58 }
 0x40c   : > { %v4589_v40 = vsub.f32 %v4583_v21, %v8460_v24  ;;  %v8472_v25 = vmul.f32 0.02850683, %v4586_v33  ;;  %v4785_v45 = vsub.f32 %v8441_v57, %v8460_v24  ;;  %v8517_v58 = vmul.f32 0.36787945, %v8294_v37 }
 0x40d   : > { %v4590_v0 = vsub.f32 %v4584_v27, %v8465_v56  ;;  %v4687_v26 = vsub.f32 %v8421_v60, %v8469_v54  ;;  %v3319_v33 = vadd.f32 %v8453_v31, %v3286_v23  ;;  %v3378_v37 = vmul.f32 0.7788008, %v3359_v6  ;;  %v9076_v23 = vld [vmem:[#allocation13_spill] sm:$0xff] }
 0x40e   : > { %5017 = vst.msk [vmem:[%s6256_s29 + $0xa0] sm:$0xff] %vm380_vm3, %v4589_v40  ;;  %v8525_v40 = vmul.f32 0.36787945, %v8299_v36  ;;  %v9078_v60 = vsub.f32 %v8415_v50, %v8462_v10  ;;  %v9080_v24 = vsub.f32 %v8427_v55, %v8467_v53 }
 0x40f   : > { %5018 = vst.msk [vmem:[%s6256_s29 + $0xa8] sm:$0xff] %vm380_vm3, %v4590_v0 }
 0x410   : > { %3767 = vrot.lane.b32.xlu1 %v8306_v16, %s5200_s27  ;;  %3765 = vrot.lane.b32.xlu0 %v8312_v49, %s5200_s27 }
 0x411   : > { %3775 = vrot.lane.b32.xlu2 %v8337_v15, %s5200_s27 }
 0x412   : > { %v3328_v29 = vpop.permute.xlu1 %3327  ;;  %v3326_v52 = vpop.permute.xlu0 %3325 }
 0x413   : > { %v8497_v44 = vpop.permute.xlu2 %3495  ;;  %v3334_v62 = vadd.f32 %v3328_v29, %v3319_v33  ;;  %v3374_v29 = vmul.f32 0.36787945, %v3359_v6 }
 0x418   : > { %3779 = vrot.lane.b32.xlu1 %v8340_v34, %s5200_s27  ;;  %3777 = vrot.lane.b32.xlu0 %v8366_v13, %s5200_s27  ;;  %v3285_v34 = vadd.f32 %v8385_v51, %v9073_v5  ;;  %v9074_v13 = vld [vmem:[#allocation11_spill] sm:$0xff] }
 0x419   : > { %3790 = vrot.lane.b32.xlu2 %v8504_v12, %s5201_s28  ;;  %v3302_v21 = vadd.f32 %v8297_v1, %v9074_v13  ;;  %v3411_v13 = vrot.slane %v3359_v6, 2 }
 0x41a   : > { %v3340_v15 = vpop.permute.xlu1 %3339  ;;  %v3338_v22 = vpop.permute.xlu0 %3337  ;;  %v3318_v42 = vadd.f32 %v8456_v20, %v3285_v34 }
 0x41b   : > { %v8522_v27 = vpop.permute.xlu2 %3513  ;;  %v3320_v63 = vadd.f32 %v8334_v41, %v3302_v21  ;;  %v3303_v41 = vadd.f32 %v8407_v8, %v9076_v23 }
 0x41c   : > { %v3333_v1 = vadd.f32 %v3326_v52, %v3318_v42  ;;  %v3384_v52 = vrot.slane %v3378_v37, 1  ;;  %v3322_v42 = vadd.f32 %v8453_v31, %v3304_v14 }
 0x41d   : > { %v3344_v36 = vadd.f32 %v8389_v46, %v3320_v63  ;;  %v3321_v46 = vadd.f32 %v8456_v20, %v3303_v41 }
 0x41f   : > { %v8540_v5 = vadd.f32 %v3363_v11, %v3344_v36  ;;  %v3346_v11 = vadd.f32 %v3340_v15, %v3322_v42  ;;  %v3345_v36 = vadd.f32 %v3338_v22, %v3321_v46 }
 0x420   : > { %3794 = vrot.lane.b32.xlu1 %v8517_v58, %s5201_s28  ;;  %3792 = vrot.lane.b32.xlu0 %v8525_v40, %s5201_s28 }
 0x421   : > { %3802 = vrot.lane.b32.xlu2 %v8287_v30, %s5201_s28  ;;  %v3393_v8 = vmul.f32 0.9394131, %v8540_v5 }
 0x422   : > { %v3355_v51 = vpop.permute.xlu1 %3354  ;;  %v3353_v0 = vpop.permute.xlu0 %3352 }
 0x423   : > { %v3361_v4 = vadd.f32 %v3355_v51, %v3334_v62  ;;  %v3360_v17 = vadd.f32 %v3353_v0, %v3333_v1  ;;  %v3432_v51 = vrot.slane %v3378_v37, 3  ;;  %v8547_v38 = vpop.permute.xlu2 %3528  ;;  %v3399_v46 = vrot.slane %v3393_v8, 1 }
 0x425   : > { %v3380_v34 = vmul.f32 0.7788008, %v3361_v4  ;;  %v3375_v21 = vmul.f32 0.36787945, %v3360_v17  ;;  %v3379_v33 = vmul.f32 0.7788008, %v3360_v17 }
 0x426   : > { %v3450_v62 = vmul.f32 0.36787945, %v3361_v4  ;;  %v3414_v47 = vrot.slane %v3361_v4, 2  ;;  %v3412_v0 = vrot.slane %v3360_v17, 2  ;;  %v3454_v17 = vrot.slane %v3374_v29, 4 }
 0x427   : > { %v3387_v63 = vrot.slane %v3380_v34, 1  ;;  %v3385_v1 = vrot.slane %v3379_v33, 1  ;;  %v3435_v6 = vrot.slane %v3380_v34, 3  ;;  %v3433_v37 = vrot.slane %v3379_v33, 3 }
 0x428   : > { %3806 = vrot.lane.b32.xlu1 %v8306_v16, %s5201_s28  ;;  %3804 = vrot.lane.b32.xlu0 %v8312_v49, %s5201_s28  ;;  %v3455_v4 = vrot.slane %v3375_v21, 4  ;;  %v3457_v23 = vrot.slane %v3450_v62, 4  ;;  %v3413_v15 = vsel %vm548_vm5, %v3411_v13, %v3412_v0  ;;  %v3415_v22 = vsel %vm548_vm5, %v3412_v0, %v3414_v47 }
 0x429   : > { %v3386_v31 = vsel %vm520_vm4, %v3384_v52, %v3385_v1  ;;  %v3388_v20 = vsel %vm520_vm4, %v3385_v1, %v3387_v63  ;;  %v3434_v52 = vsel %vm570_vm6, %v3432_v51, %v3433_v37  ;;  %v3436_v33 = vsel %vm570_vm6, %v3433_v37, %v3435_v6 }
 0x42a   : > { %v3367_v14 = vpop.permute.xlu1 %3366  ;;  %v3391_v41 = vadd.f32 %v3386_v31, %v3374_v29  ;;  %v3392_v3 = vadd.f32 %v3388_v20, %v3375_v21  ;;  %v3365_v59 = vpop.permute.xlu0 %3364  ;;  %v3456_v63 = vsel %vm593_vm7, %v3454_v17, %v3455_v4  ;;  %v3458_v21 = vsel %vm593_vm7, %v3455_v4, %v3457_v23 }
 0x42b   : > { %v3373_v34 = vadd.f32 %v3367_v14, %v3346_v11  ;;  %v3372_v42 = vadd.f32 %v3365_v59, %v3345_v36  ;;  %v3376_v51 = vmul.f32 0.7788008, %v8540_v5  ;;  %v3423_v6 = vrot.slane %v8540_v5, 2  ;;  %v8566_v17 = vpop.permute.xlu2 %3543 }
 0x42c   : > { %v3418_v61 = vadd.f32 %v3413_v15, %v3391_v41  ;;  %v3419_v2 = vadd.f32 %v3415_v22, %v3392_v3  ;;  %v3441_v41 = vrot.slane %v3393_v8, 3 }
 0x42d   : > { %v3395_v1 = vmul.f32 0.9394131, %v3373_v34  ;;  %v3394_v31 = vmul.f32 0.9394131, %v3372_v42  ;;  %v3426_v20 = vrot.slane %v3373_v34, 2  ;;  %v3424_v0 = vrot.slane %v3372_v42, 2 }
 0x42e   : > { %v3439_v62 = vadd.f32 %v3434_v52, %v3418_v61  ;;  %v3440_v29 = vadd.f32 %v3436_v33, %v3419_v2  ;;  %v3463_v47 = vmul.f32 0.7788008, %v3373_v34  ;;  %v3377_v36 = vmul.f32 0.7788008, %v3372_v42 }
 0x42f   : > { %v3402_v13 = vrot.slane %v3395_v1, 1  ;;  %v3400_v3 = vrot.slane %v3394_v31, 1  ;;  %v3444_v61 = vrot.slane %v3395_v1, 3  ;;  %v3442_v14 = vrot.slane %v3394_v31, 3 }
 0x430   : > { %v3461_v59 = vadd.f32 %v3456_v63, %v3439_v62  ;;  %v3462_v11 = vadd.f32 %v3458_v21, %v3440_v29  ;;  %v3470_v5 = vrot.slane %v3463_v47, 4  ;;  %v3425_v34 = vsel %vm548_vm5, %v3423_v6, %v3424_v0 }
 0x431   : > { %v3401_v2 = vsel %vm520_vm4, %v3399_v46, %v3400_v3  ;;  %v3403_v4 = vsel %vm520_vm4, %v3400_v3, %v3402_v13  ;;  %v3427_v42 = vsel %vm548_vm5, %v3424_v0, %v3426_v20  ;;  %v3468_v52 = vrot.slane %v3377_v36, 4 }
 0x432   : > { %v8561_v37 = vpop.permute.xlu1 %3499  ;;  %3477 = vst.msk [vmem:[#allocation3 + $0xf0] sm:$0xff] %vm380_vm3, %v3461_v59  ;;  %v8568_v23 = vpop.permute.xlu0 %3497  ;;  %v3406_v15 = vadd.f32 %v3401_v2, %v3376_v51  ;;  %v3407_v22 = vadd.f32 %v3403_v4, %v3377_v36  ;;  %v3467_v63 = vrot.slane %v3376_v51, 4  ;;  %v3443_v1 = vsel %vm570_vm6, %v3441_v41, %v3442_v14 }
 0x433   : > { %3478 = vst.msk [vmem:[#allocation3 + $0xf8] sm:$0xff] %vm380_vm3, %v3462_v11  ;;  %v3445_v62 = vsel %vm570_vm6, %v3442_v14, %v3444_v61  ;;  %v3471_v31 = vsel %vm593_vm7, %v3468_v52, %v3470_v5  ;;  %v8592_v4 = vpop.permute.xlu2 %3555  ;;  %v9077_v14 = vsub.f32 %v8433_v32, %v8472_v25  ;;  %v9081_v32 = vsub.f32 %v8200_v39, %v8250_v35 }
 0x434   : > { %v3430_v33 = vadd.f32 %v3425_v34, %v3406_v15  ;;  %v3431_v46 = vadd.f32 %v3427_v42, %v3407_v22  ;;  %v3469_v8 = vsel %vm593_vm7, %v3467_v63, %v3468_v52  ;;  %v9082_v15 = vld [vmem:[#allocation29_spill] sm:$0xff] }
 0x435   : > { %v4632_v25 = vadd.f32 %v8405_v19, %v9081_v32  ;;  %v9083_v22 = vsub.f32 %v8212_v48, %v9082_v15 }
 0x436   : > { %v3448_v29 = vadd.f32 %v3443_v1, %v3430_v33  ;;  %v3449_v21 = vadd.f32 %v3445_v62, %v3431_v46 }
 0x437   : > { %v4638_v55 = vsub.f32 %v4632_v25, %v8462_v10 }
 0x438   : > { %v3474_v47 = vadd.f32 %v3469_v8, %v3448_v29  ;;  %v3475_v59 = vadd.f32 %v3471_v31, %v3449_v21 }
 0x439   : > { %v4640_v13 = vld [vmem:[#allocation3 + $0xf0] sm:$0xff] }
 0x43a   : > { %v8577_v11 = vpop.permute.xlu1 %3517  ;;  %v4641_v20 = vld [vmem:[#allocation3 + $0xf8] sm:$0xff]  ;;  %v4691_v0 = vmul.f32 0.044402283, %v4640_v13  ;;  %v8579_v36 = vpop.permute.xlu0 %3515  ;;  %v4740_v51 = vmul.f32 0.05701366, %v4640_v13  ;;  %3480 = vst.msk [vmem:[#allocation4 + $0xf0] sm:$0xff] %vm380_vm3, %v3474_v47 }
 0x43b   : > { %v4692_v3 = vmul.f32 0.044402283, %v4641_v20  ;;  %v4741_v61 = vmul.f32 0.05701366, %v4641_v20  ;;  %3481 = vst.msk [vmem:[#allocation4 + $0xf8] sm:$0xff] %vm380_vm3, %v3475_v59  ;;  %v8652_v29 = vpop.permute.xlu2 %3715 }
 0x43c   : > { %v8584_v6 = vadd.f32 %v4691_v0, %v4687_v26  ;;  %v8589_v2 = vadd.f32 %v4785_v45, %v4691_v0  ;;  %v8602_v54 = vadd.f32 %v4740_v51, %v9078_v60  ;;  %v9079_v26 = vsub.f32 %v8449_v9, %v8465_v56  ;;  %v9085_v60 = vld [vmem:[#allocation12_spill] sm:$0xff] }
 0x43d   : > { %v8597_v41 = vadd.f32 %v4692_v3, %v9077_v14  ;;  %v8613_v45 = vadd.f32 %v4741_v61, %v9080_v24  ;;  %v8619_v50 = vmul.f32 0.020974154, %v4640_v13  ;;  %v4633_v9 = vadd.f32 %v8409_v7, %v9083_v22 }
 0x43e   : > { %v8607_v57 = vadd.f32 %v9079_v26, %v4692_v3  ;;  %v8625_v56 = vmul.f32 0.020974154, %v4641_v20  ;;  %v3504_v26 = vadd.f32 %v8497_v44, %v9085_v60 }
 0x43f   : > { %v4639_v42 = vsub.f32 %v4633_v9, %v8467_v53  ;;  %v4644_v35 = vadd.f32 %v8619_v50, %v4638_v55  ;;  %v9086_v9 = vld [vmem:[#allocation19_spill] sm:$0xff] }
 0x440   : > { %v3537_v32 = vadd.f32 %v8547_v38, %v3504_v26  ;;  %v3506_v55 = vadd.f32 %v8561_v37, %v9086_v9 }
 0x441   : > { %v4646_v39 = vld [vmem:[#allocation4 + $0xf0] sm:$0xff]  ;;  %v4645_v7 = vadd.f32 %v8625_v56, %v4639_v42  ;;  %v9087_v42 = vld [vmem:[#allocation18_spill] sm:$0xff] }
 0x442   : > { %v8627_v5 = vpop.permute.xlu1 %3532  ;;  %v8630_v34 = vpop.permute.xlu0 %3530  ;;  %v4647_v19 = vld [vmem:[#allocation4 + $0xf8] sm:$0xff]  ;;  %v8634_v52 = vmul.f32 0.022201141, %v4646_v39  ;;  %v8636_v48 = vmul.f32 0.026779689, %v4646_v39  ;;  %v3552_v22 = vadd.f32 %v8566_v17, %v3537_v32 }
 0x443   : > { %v8639_v33 = vmul.f32 0.022201141, %v4647_v19  ;;  %v8641_v46 = vmul.f32 0.026779689, %v4647_v19  ;;  %v8643_v10 = vmul.f32 0.02850683, %v4646_v39  ;;  %v3571_v51 = vpop.permute.xlu2 %3570  ;;  %v3505_v39 = vadd.f32 %v8568_v23, %v9087_v42 }
 0x444   : > { %v4650_v53 = vsub.f32 %v4644_v35, %v8634_v52  ;;  %v8648_v1 = vmul.f32 0.02850683, %v4647_v19  ;;  %v3539_v35 = vadd.f32 %v8627_v5, %v3506_v55  ;;  %v3579_v19 = vadd.f32 %v3571_v51, %v3552_v22 }
 0x445   : > { %9084 = vst [vmem:[#allocation24_spill] sm:$0xff] %v8639_v33  ;;  %v4651_v21 = vsub.f32 %v4645_v7, %v8639_v33  ;;  %v3538_v44 = vadd.f32 %v8630_v34, %v3505_v39 }
 0x446   : > { %5019 = vst.msk [vmem:[%s6256_s29 + $0xb0] sm:$0xff] %vm380_vm3, %v4650_v53  ;;  %v3598_v60 = vmul.f32 0.7788008, %v3579_v19  ;;  %v3594_v22 = vmul.f32 0.36787945, %v3579_v19  ;;  %v3631_v39 = vrot.slane %v3579_v19, 2 }
 0x447   : > { %5020 = vst.msk [vmem:[%s6256_s29 + $0xb8] sm:$0xff] %vm380_vm3, %v4651_v21 }
 0x448   : > { %v3604_v37 = vrot.slane %v3598_v60, 1  ;;  %v3674_v63 = vrot.slane %v3594_v22, 4 }
 0x44a   : > { %v3548_v0 = vpop.permute.xlu1 %3547  ;;  %v3546_v3 = vpop.permute.xlu0 %3545 }
 0x44b   : > { %v8680_v25 = vpop.permute.xlu2 %3733  ;;  %v3554_v7 = vadd.f32 %v3548_v0, %v3539_v35  ;;  %v3553_v53 = vadd.f32 %v3546_v3, %v3538_v44 }
 0x452   : > { %v8671_v61 = vpop.permute.xlu1 %3559  ;;  %v8673_v14 = vpop.permute.xlu0 %3557 }
 0x453   : > { %v8691_v62 = vpop.permute.xlu2 %3748 }
 0x45a   : > { %v8677_v24 = vpop.permute.xlu1 %3719  ;;  %v8682_v15 = vpop.permute.xlu0 %3717 }
 0x462   : > { %v3575_v21 = vpop.permute.xlu1 %3574  ;;  %v3573_v20 = vpop.permute.xlu0 %3572 }
 0x463   : > { %v3581_v26 = vadd.f32 %v3575_v21, %v3554_v7  ;;  %v3580_v13 = vadd.f32 %v3573_v20, %v3553_v53  ;;  %v3652_v7 = vrot.slane %v3598_v60, 3 }
 0x465   : > { %v3600_v17 = vmul.f32 0.7788008, %v3581_v26  ;;  %v3599_v32 = vmul.f32 0.7788008, %v3580_v13  ;;  %v3634_v59 = vrot.slane %v3581_v26, 2  ;;  %v3632_v51 = vrot.slane %v3580_v13, 2 }
 0x466   : > { %v3670_v23 = vmul.f32 0.36787945, %v3581_v26  ;;  %v3595_v42 = vmul.f32 0.36787945, %v3580_v13 }
 0x467   : > { %v3607_v9 = vrot.slane %v3600_v17, 1  ;;  %v3605_v55 = vrot.slane %v3599_v32, 1  ;;  %v3655_v0 = vrot.slane %v3600_v17, 3  ;;  %v3653_v44 = vrot.slane %v3599_v32, 3 }
 0x468   : > { %v3677_v31 = vrot.slane %v3670_v23, 4  ;;  %v3633_v26 = vsel %vm548_vm5, %v3631_v39, %v3632_v51  ;;  %v3635_v13 = vsel %vm548_vm5, %v3632_v51, %v3634_v59  ;;  %v3675_v8 = vrot.slane %v3595_v42, 4 }
 0x469   : > { %v3606_v3 = vsel %vm520_vm4, %v3604_v37, %v3605_v55  ;;  %v3608_v35 = vsel %vm520_vm4, %v3605_v55, %v3607_v9  ;;  %v3654_v37 = vsel %vm570_vm6, %v3652_v7, %v3653_v44  ;;  %v3656_v32 = vsel %vm570_vm6, %v3653_v44, %v3655_v0  ;;  %v3583_v9 = vpop.permute.xlu2 %3582 }
 0x46a   : > { %v8695_v20 = vpop.permute.xlu1 %3737  ;;  %v3611_v53 = vadd.f32 %v3606_v3, %v3594_v22  ;;  %v3612_v21 = vadd.f32 %v3608_v35, %v3595_v42  ;;  %v8697_v47 = vpop.permute.xlu0 %3735  ;;  %v3676_v3 = vsel %vm593_vm7, %v3674_v63, %v3675_v8  ;;  %v3678_v35 = vsel %vm593_vm7, %v3675_v8, %v3677_v31 }
 0x46b   : > { %v3522_v59 = vadd.f32 %v8522_v27, %v8101_v18  ;;  %v3524_v63 = vadd.f32 %v8577_v11, %v8139_v28  ;;  %v3523_v8 = vadd.f32 %v8579_v36, %v8108_v43 }
 0x46c   : > { %v3638_v19 = vadd.f32 %v3633_v26, %v3611_v53  ;;  %v3639_v17 = vadd.f32 %v3635_v13, %v3612_v21 }
 0x46d   : > { %v3540_v51 = vadd.f32 %v8547_v38, %v3522_v59  ;;  %v3542_v22 = vadd.f32 %v8627_v5, %v3524_v63  ;;  %v3541_v18 = vadd.f32 %v8630_v34, %v3523_v8 }
 0x46e   : > { %v3659_v55 = vadd.f32 %v3654_v37, %v3638_v19  ;;  %v3660_v60 = vadd.f32 %v3656_v32, %v3639_v17 }
 0x46f   : > { %v3564_v31 = vadd.f32 %v8592_v4, %v3540_v51  ;;  %v3566_v27 = vadd.f32 %v8671_v61, %v3542_v22 }
 0x470   : > { %v3681_v23 = vadd.f32 %v3676_v3, %v3659_v55  ;;  %v3682_v33 = vadd.f32 %v3678_v35, %v3660_v60 }
 0x471   : > { %v3591_v0 = vadd.f32 %v3583_v9, %v3564_v31  ;;  %v3764_v44 = vpop.permute.xlu2 %3763 }
 0x472   : > { %v8705_v39 = vpop.permute.xlu1 %3752  ;;  %3697 = vst.msk [vmem:[#allocation3 + $0x100] sm:$0xff] %vm380_vm3, %v3681_v23  ;;  %v8710_v42 = vpop.permute.xlu0 %3750 }
 0x473   : > { %3698 = vst.msk [vmem:[#allocation3 + $0x108] sm:$0xff] %vm380_vm3, %v3682_v33  ;;  %v3565_v33 = vadd.f32 %v8673_v14, %v3541_v18  ;;  %v3613_v28 = vmul.f32 0.9394131, %v3591_v0  ;;  %v3596_v61 = vmul.f32 0.7788008, %v3591_v0  ;;  %v3643_v37 = vrot.slane %v3591_v0, 2 }
 0x475   : > { %v3619_v43 = vrot.slane %v3613_v28, 1  ;;  %v3661_v35 = vrot.slane %v3613_v28, 3 }
 0x479   : > { %v3776_v32 = vpop.permute.xlu2 %3775 }
 0x47a   : > { %v3587_v7 = vpop.permute.xlu1 %3586  ;;  %v3585_v53 = vpop.permute.xlu0 %3584 }
 0x47b   : > { %v3593_v38 = vadd.f32 %v3587_v7, %v3566_v27  ;;  %v3592_v21 = vadd.f32 %v3585_v53, %v3565_v33  ;;  %v3687_v27 = vrot.slane %v3596_v61, 4  ;;  %v3724_v53 = vadd.f32 %v8652_v29, %v8504_v12  ;;  %v8742_v29 = vld [vmem:[#allocation3 + $0x108] sm:$0xff] }
 0x47c   : > { %v3725_v12 = vadd.f32 %v8682_v15, %v8525_v40 }
 0x47d   : > { %v3615_v11 = vmul.f32 0.9394131, %v3593_v38  ;;  %v3614_v26 = vmul.f32 0.9394131, %v3592_v21  ;;  %v3646_v4 = vrot.slane %v3593_v38, 2  ;;  %v3644_v34 = vrot.slane %v3592_v21, 2 }
 0x47e   : > { %v3683_v13 = vmul.f32 0.7788008, %v3593_v38  ;;  %v3597_v5 = vmul.f32 0.7788008, %v3592_v21 }
 0x47f   : > { %v3622_v36 = vrot.slane %v3615_v11, 1  ;;  %v3620_v19 = vrot.slane %v3614_v26, 1  ;;  %v3664_v14 = vrot.slane %v3615_v11, 3  ;;  %v3662_v3 = vrot.slane %v3614_v26, 3 }
 0x480   : > { %v3690_v51 = vrot.slane %v3683_v13, 4  ;;  %v3645_v63 = vsel %vm548_vm5, %v3643_v37, %v3644_v34  ;;  %v3647_v8 = vsel %vm548_vm5, %v3644_v34, %v3646_v4  ;;  %v3688_v31 = vrot.slane %v3597_v5, 4 }
 0x481   : > { %v3621_v55 = vsel %vm520_vm4, %v3619_v43, %v3620_v19  ;;  %v3623_v60 = vsel %vm520_vm4, %v3620_v19, %v3622_v36  ;;  %v3663_v0 = vsel %vm570_vm6, %v3661_v35, %v3662_v3  ;;  %v3665_v33 = vsel %vm570_vm6, %v3662_v3, %v3664_v14  ;;  %v3791_v13 = vpop.permute.xlu2 %3790  ;;  %v8737_v19 = vld [vmem:[#allocation3 + $0x100] sm:$0xff] }
 0x482   : > { %v3768_v17 = vpop.permute.xlu1 %3767  ;;  %v3766_v9 = vpop.permute.xlu0 %3765  ;;  %v3626_v23 = vadd.f32 %v3621_v55, %v3596_v61  ;;  %v3627_v59 = vadd.f32 %v3623_v60, %v3597_v5  ;;  %v3689_v21 = vsel %vm593_vm7, %v3687_v27, %v3688_v31  ;;  %v3691_v28 = vsel %vm593_vm7, %v3688_v31, %v3690_v51 }
 0x483   : > { %v3757_v4 = vadd.f32 %v8691_v62, %v3724_v53  ;;  %v3726_v5 = vadd.f32 %v8677_v24, %v8517_v58  ;;  %v4703_v14 = vmul.f32 0.020974154, %v8737_v19  ;;  %v3758_v55 = vadd.f32 %v8710_v42, %v3725_v12 }
 0x484   : > { %v3650_v22 = vadd.f32 %v3645_v63, %v3626_v23  ;;  %v3651_v18 = vadd.f32 %v3647_v8, %v3627_v59  ;;  %v3742_v58 = vadd.f32 %v8680_v25, %v8287_v30  ;;  %v4704_v24 = vmul.f32 0.020974154, %v8742_v29 }
 0x485   : > { %v3772_v34 = vadd.f32 %v3764_v44, %v3757_v4  ;;  %v3759_v61 = vadd.f32 %v8705_v39, %v3726_v5  ;;  %v3773_v3 = vadd.f32 %v3766_v9, %v3758_v55  ;;  %v9088_v51 = vsub.f32 %v8584_v6, %v8636_v48 }
 0x486   : > { %v3668_v7 = vadd.f32 %v3663_v0, %v3650_v22  ;;  %v3669_v38 = vadd.f32 %v3665_v33, %v3651_v18  ;;  %v3760_v40 = vadd.f32 %v8691_v62, %v3742_v58  ;;  %v3744_v8 = vadd.f32 %v8695_v20, %v8306_v16 }
 0x487   : > { %v3799_v37 = vadd.f32 %v3791_v13, %v3772_v34  ;;  %v3774_v44 = vadd.f32 %v3768_v17, %v3759_v61  ;;  %v4705_v63 = vadd.f32 %v4703_v14, %v9088_v51  ;;  %v9089_v62 = vsub.f32 %v8597_v41, %v8641_v46 }
 0x488   : > { %v3694_v26 = vadd.f32 %v3689_v21, %v3668_v7  ;;  %v3695_v43 = vadd.f32 %v3691_v28, %v3669_v38  ;;  %v3743_v31 = vadd.f32 %v8697_v47, %v8312_v49  ;;  %v3784_v22 = vadd.f32 %v3776_v32, %v3760_v40 }
 0x489   : > { %v3818_v15 = vmul.f32 0.7788008, %v3799_v37  ;;  %v4706_v9 = vadd.f32 %v4704_v24, %v9089_v62  ;;  %v3762_v18 = vadd.f32 %v8705_v39, %v3744_v8  ;;  %v3814_v16 = vmul.f32 0.36787945, %v3799_v37  ;;  %v3803_v47 = vpop.permute.xlu2 %3802 }
 0x48a   : > { %v3780_v11 = vpop.permute.xlu1 %3779  ;;  %v3778_v36 = vpop.permute.xlu0 %3777  ;;  %3700 = vst.msk [vmem:[#allocation4 + $0x100] sm:$0xff] %vm380_vm3, %v3694_v26  ;;  %v3851_v0 = vrot.slane %v3799_v37, 2  ;;  %v3761_v38 = vadd.f32 %v8710_v42, %v3743_v31  ;;  %v3811_v14 = vadd.f32 %v3803_v47, %v3784_v22 }
 0x48b   : > { %3701 = vst.msk [vmem:[#allocation4 + $0x108] sm:$0xff] %vm380_vm3, %v3695_v43  ;;  %v3824_v27 = vrot.slane %v3818_v15, 1  ;;  %v3872_v49 = vrot.slane %v3818_v15, 3  ;;  %v3786_v32 = vadd.f32 %v3780_v11, %v3762_v18  ;;  %v3894_v37 = vrot.slane %v3814_v16, 4 }
 0x48c   : > { %v3785_v55 = vadd.f32 %v3778_v36, %v3761_v38 }
 0x491   : > { %v8751_v23 = vld [vmem:[#allocation4 + $0x100] sm:$0xff] }
 0x492   : > { %v3795_v60 = vpop.permute.xlu1 %3794  ;;  %v3793_v35 = vpop.permute.xlu0 %3792  ;;  %v8758_v30 = vld [vmem:[#allocation4 + $0x108] sm:$0xff]  ;;  %v4709_v25 = vmul.f32 0.022201141, %v8751_v23 }
 0x493   : > { %v3801_v59 = vadd.f32 %v3795_v60, %v3774_v44  ;;  %v3800_v17 = vadd.f32 %v3793_v35, %v3773_v3  ;;  %v4710_v6 = vmul.f32 0.022201141, %v8758_v30 }
 0x494   : > { %v4711_v20 = vsub.f32 %v4705_v63, %v4709_v25  ;;  %v3833_v25 = vmul.f32 0.9394131, %v3811_v14 }
 0x495   : > { %v4712_v33 = vsub.f32 %v4706_v9, %v4710_v6  ;;  %v3854_v7 = vrot.slane %v3801_v59, 2  ;;  %v3820_v41 = vmul.f32 0.7788008, %v3801_v59  ;;  %v3890_v53 = vmul.f32 0.36787945, %v3801_v59 }
 0x496   : > { %5021 = vst.msk [vmem:[%s6256_s29 + $0xc0] sm:$0xff] %vm380_vm3, %v4711_v20  ;;  %v3852_v21 = vrot.slane %v3800_v17, 2  ;;  %v3815_v28 = vmul.f32 0.36787945, %v3800_v17  ;;  %v3819_v39 = vmul.f32 0.7788008, %v3800_v17 }
 0x497   : > { %5022 = vst.msk [vmem:[%s6256_s29 + $0xc8] sm:$0xff] %vm380_vm3, %v4712_v33  ;;  %v3827_v43 = vrot.slane %v3820_v41, 1  ;;  %v3875_v4 = vrot.slane %v3820_v41, 3  ;;  %v3897_v13 = vrot.slane %v3890_v53, 4  ;;  %v3839_v18 = vrot.slane %v3833_v25, 1 }
 0x498   : > { %v3853_v5 = vsel %vm548_vm5, %v3851_v0, %v3852_v21  ;;  %v3825_v34 = vrot.slane %v3819_v39, 1  ;;  %v3855_v42 = vsel %vm548_vm5, %v3852_v21, %v3854_v7  ;;  %v3873_v12 = vrot.slane %v3819_v39, 3 }
 0x499   : > { %v3895_v61 = vrot.slane %v3815_v28, 4  ;;  %v3816_v33 = vmul.f32 0.7788008, %v3811_v14  ;;  %v3863_v7 = vrot.slane %v3811_v14, 2 }
 0x49a   : > { %v3807_v26 = vpop.permute.xlu1 %3806  ;;  %v3826_v24 = vsel %vm520_vm4, %v3824_v27, %v3825_v34  ;;  %v3828_v11 = vsel %vm520_vm4, %v3825_v34, %v3827_v43  ;;  %v3874_v44 = vsel %vm570_vm6, %v3872_v49, %v3873_v12  ;;  %v3876_v60 = vsel %vm570_vm6, %v3873_v12, %v3875_v4  ;;  %v3805_v3 = vpop.permute.xlu0 %3804 }
 0x49b   : > { %v3813_v58 = vadd.f32 %v3807_v26, %v3786_v32  ;;  %v3831_v35 = vadd.f32 %v3826_v24, %v3814_v16  ;;  %v3832_v40 = vadd.f32 %v3828_v11, %v3815_v28  ;;  %v3896_v15 = vsel %vm593_vm7, %v3894_v37, %v3895_v61 }
 0x49c   : > { %v3898_v59 = vsel %vm593_vm7, %v3895_v61, %v3897_v13  ;;  %v3812_v36 = vadd.f32 %v3805_v3, %v3785_v55  ;;  %v3881_v28 = vrot.slane %v3833_v25, 3  ;;  %v3907_v34 = vrot.slane %v3816_v33, 4  ;;  %v4823_v3 = vld [vmem:[#allocation3 + $0x120] sm:$0xff] }
 0x49d   : > { %v3858_v51 = vadd.f32 %v3853_v5, %v3831_v35  ;;  %v3859_v63 = vadd.f32 %v3855_v42, %v3832_v40  ;;  %v3835_v8 = vmul.f32 0.9394131, %v3813_v58  ;;  %v3866_v16 = vrot.slane %v3813_v58, 2  ;;  %v4824_v35 = vld [vmem:[#allocation3 + $0x128] sm:$0xff] }
 0x49e   : > { %v3834_v22 = vmul.f32 0.9394131, %v3812_v36  ;;  %v3817_v20 = vmul.f32 0.7788008, %v3812_v36  ;;  %v3864_v0 = vrot.slane %v3812_v36, 2  ;;  %v9092_v36 = vsub.f32 %v8619_v50, %v8634_v52  ;;  %v9095_v52 = vld [vmem:[#allocation24_spill] sm:$0xff] }
 0x49f   : > { %v3879_v17 = vadd.f32 %v3874_v44, %v3858_v51  ;;  %v3880_v62 = vadd.f32 %v3876_v60, %v3859_v63  ;;  %v3842_v6 = vrot.slane %v3835_v8, 1  ;;  %v3903_v38 = vmul.f32 0.7788008, %v3813_v58 }
 0x4a0   : > { %v3840_v27 = vrot.slane %v3834_v22, 1  ;;  %v3884_v41 = vrot.slane %v3835_v8, 3  ;;  %v3882_v49 = vrot.slane %v3834_v22, 3  ;;  %v3865_v39 = vsel %vm548_vm5, %v3863_v7, %v3864_v0 }
 0x4a1   : > { %v3901_v9 = vadd.f32 %v3896_v15, %v3879_v17  ;;  %v3902_v31 = vadd.f32 %v3898_v59, %v3880_v62  ;;  %v3867_v26 = vsel %vm548_vm5, %v3864_v0, %v3866_v16  ;;  %v3908_v43 = vrot.slane %v3817_v20, 4  ;;  %v4829_v16 = vld [vmem:[#allocation4 + $0x120] sm:$0xff] }
 0x4a2   : > { %v3841_v53 = vsel %vm520_vm4, %v3839_v18, %v3840_v27  ;;  %v3843_v21 = vsel %vm520_vm4, %v3840_v27, %v3842_v6  ;;  %v3910_v4 = vrot.slane %v3903_v38, 4  ;;  %v3883_v42 = vsel %vm570_vm6, %v3881_v28, %v3882_v49 }
 0x4a3   : > { %3917 = vst.msk [vmem:[#allocation3 + $0x110] sm:$0xff] %vm380_vm3, %v3901_v9  ;;  %v3846_v47 = vadd.f32 %v3841_v53, %v3816_v33  ;;  %v3847_v32 = vadd.f32 %v3843_v21, %v3817_v20  ;;  %v3885_v12 = vsel %vm570_vm6, %v3882_v49, %v3884_v41  ;;  %v4752_v61 = vmul.f32 0.044402283, %v8737_v19  ;;  %v4830_v20 = vld [vmem:[#allocation4 + $0x128] sm:$0xff] }
 0x4a4   : > { %3918 = vst.msk [vmem:[#allocation3 + $0x118] sm:$0xff] %vm380_vm3, %v3902_v31  ;;  %v4753_v55 = vmul.f32 0.044402283, %v8742_v29  ;;  %v3909_v58 = vsel %vm593_vm7, %v3907_v34, %v3908_v43  ;;  %v4801_v24 = vmul.f32 0.05701366, %v8737_v19  ;;  %v3911_v11 = vsel %vm593_vm7, %v3908_v43, %v3910_v4 }
 0x4a5   : > { %v3870_v13 = vadd.f32 %v3865_v39, %v3846_v47  ;;  %v3871_v5 = vadd.f32 %v3867_v26, %v3847_v32  ;;  %v4802_v60 = vmul.f32 0.05701366, %v8742_v29  ;;  %v9090_v15 = vsub.f32 %v8602_v54, %v8643_v10 }
 0x4a6   : > { %v4758_v51 = vmul.f32 0.026779689, %v8751_v23  ;;  %v9091_v19 = vsub.f32 %v8613_v45, %v8648_v1  ;;  %v4852_v29 = vadd.f32 %v9092_v36, %v4752_v61  ;;  %v4759_v25 = vmul.f32 0.026779689, %v8758_v30 }
 0x4a7   : > { %v3888_v37 = vadd.f32 %v3883_v42, %v3870_v13  ;;  %v3889_v14 = vadd.f32 %v3885_v12, %v3871_v5  ;;  %v4754_v59 = vadd.f32 %v4752_v61, %v9090_v15  ;;  %v4807_v17 = vmul.f32 0.02850683, %v8751_v23  ;;  %v4885_v61 = vld [vmem:[#allocation3 + $0x130] sm:$0xff] }
 0x4a8   : > { %v4755_v8 = vadd.f32 %v4753_v55, %v9091_v19  ;;  %v9093_v54 = vsub.f32 %v8589_v2, %v8636_v48  ;;  %v4808_v9 = vmul.f32 0.02850683, %v8758_v30  ;;  %v4825_v31 = vmul.f32 0.020974154, %v4823_v3 }
 0x4a9   : > { %v3914_v44 = vadd.f32 %v3909_v58, %v3888_v37  ;;  %v3915_v40 = vadd.f32 %v3911_v11, %v3889_v14  ;;  %v4826_v45 = vmul.f32 0.020974154, %v4824_v35  ;;  %v9094_v1 = vsub.f32 %v8607_v57, %v8641_v46 }
 0x4aa   : > { %v4762_v63 = vld [vmem:[#allocation3 + $0x110] sm:$0xff]  ;;  %v4803_v10 = vadd.f32 %v4801_v24, %v9093_v54  ;;  %v9096_v6 = vsub.f32 %v8625_v56, %v9095_v52  ;;  %v4760_v27 = vsub.f32 %v4754_v59, %v4758_v51  ;;  %v4858_v0 = vsub.f32 %v4852_v29, %v4758_v51  ;;  %v4886_v24 = vld [vmem:[#allocation3 + $0x138] sm:$0xff] }
 0x4ab   : > { %3920 = vst.msk [vmem:[#allocation4 + $0x110] sm:$0xff] %vm380_vm3, %v3914_v44  ;;  %v4763_v62 = vld [vmem:[#allocation3 + $0x118] sm:$0xff]  ;;  %v4804_v50 = vadd.f32 %v4802_v60, %v9094_v1  ;;  %v4764_v23 = vmul.f32 0.020974154, %v4762_v63  ;;  %v4813_v18 = vmul.f32 0.044402283, %v4762_v63  ;;  %v4761_v33 = vsub.f32 %v4755_v8, %v4759_v25 }
 0x4ac   : > { %3921 = vst.msk [vmem:[#allocation4 + $0x118] sm:$0xff] %vm380_vm3, %v3915_v40  ;;  %v4853_v22 = vadd.f32 %v9096_v6, %v4753_v55  ;;  %v4765_v2 = vmul.f32 0.020974154, %v4763_v62  ;;  %v4814_v48 = vmul.f32 0.044402283, %v4763_v62  ;;  %v4809_v30 = vsub.f32 %v4803_v10, %v4807_v17  ;;  %v4893_v51 = vld [vmem:[#allocation4 + $0x138] sm:$0xff] }
 0x4ad   : > { %v4862_v38 = vmul.f32 0.05701366, %v4762_v63  ;;  %v4810_v41 = vsub.f32 %v4804_v50, %v4808_v9  ;;  %v4863_v53 = vmul.f32 0.05701366, %v4763_v62  ;;  %v4831_v57 = vmul.f32 0.022201141, %v4829_v16 }
 0x4ae   : > { %v4859_v7 = vsub.f32 %v4853_v22, %v4759_v25  ;;  %v4832_v46 = vmul.f32 0.022201141, %v4830_v20  ;;  %v4766_v21 = vadd.f32 %v4764_v23, %v4760_v27  ;;  %v4815_v49 = vadd.f32 %v4813_v18, %v4809_v30 }
 0x4af   : > { %v4874_v56 = vmul.f32 0.044402283, %v4823_v3  ;;  %v4875_v47 = vmul.f32 0.044402283, %v4824_v35  ;;  %v4767_v28 = vadd.f32 %v4765_v2, %v4761_v33  ;;  %v4816_v39 = vadd.f32 %v4814_v48, %v4810_v41  ;;  %v4892_v35 = vld [vmem:[#allocation4 + $0x130] sm:$0xff] }
 0x4b0   : > { %v4864_v13 = vadd.f32 %v4862_v38, %v4858_v0  ;;  %v4865_v12 = vadd.f32 %v4863_v53, %v4859_v7  ;;  %v4880_v58 = vmul.f32 0.026779689, %v4829_v16  ;;  %v4881_v3 = vmul.f32 0.026779689, %v4830_v20 }
 0x4b1   : > { %v4887_v59 = vmul.f32 0.020974154, %v4885_v61  ;;  %v4888_v8 = vmul.f32 0.020974154, %v4886_v24  ;;  %v4894_v25 = vmul.f32 0.022201141, %v4892_v35 }
 0x4b2   : > { %v4768_v32 = vld [vmem:[#allocation4 + $0x110] sm:$0xff]  ;;  %v4895_v54 = vmul.f32 0.022201141, %v4893_v51 }
 0x4b3   : > { %v4769_v26 = vld [vmem:[#allocation4 + $0x118] sm:$0xff]  ;;  %v4770_v43 = vmul.f32 0.022201141, %v4768_v32  ;;  %v4819_v4 = vmul.f32 0.026779689, %v4768_v32 }
 0x4b4   : > { %v4771_v5 = vmul.f32 0.022201141, %v4769_v26  ;;  %v4820_v34 = vmul.f32 0.026779689, %v4769_v26  ;;  %v4868_v42 = vmul.f32 0.02850683, %v4768_v32 }
 0x4b5   : > { %v4772_v37 = vsub.f32 %v4766_v21, %v4770_v43  ;;  %v4821_v14 = vsub.f32 %v4815_v49, %v4819_v4  ;;  %v4869_v55 = vmul.f32 0.02850683, %v4769_v26 }
 0x4b6   : > { %v4773_v11 = vsub.f32 %v4767_v28, %v4771_v5  ;;  %v4822_v44 = vsub.f32 %v4816_v39, %v4820_v34  ;;  %v4870_v60 = vsub.f32 %v4864_v13, %v4868_v42 }
 0x4b7   : > { %5023 = vst.msk [vmem:[%s6256_s29 + $0xd0] sm:$0xff] %vm380_vm3, %v4772_v37  ;;  %v4827_v40 = vadd.f32 %v4825_v31, %v4821_v14  ;;  %v4871_v15 = vsub.f32 %v4865_v12, %v4869_v55 }
 0x4b8   : > { %5024 = vst.msk [vmem:[%s6256_s29 + $0xd8] sm:$0xff] %vm380_vm3, %v4773_v11  ;;  %v4828_v63 = vadd.f32 %v4826_v45, %v4822_v44  ;;  %v4876_v19 = vadd.f32 %v4874_v56, %v4870_v60 }
 0x4b9   : > { %v4833_v36 = vsub.f32 %v4827_v40, %v4831_v57  ;;  %v4877_v29 = vadd.f32 %v4875_v47, %v4871_v15 }
 0x4ba   : > { %v4834_v17 = vsub.f32 %v4828_v63, %v4832_v46  ;;  %v4882_v62 = vsub.f32 %v4876_v19, %v4880_v58 }
 0x4bb   : > { %5025 = vst.msk [vmem:[%s6256_s29 + $0xe0] sm:$0xff] %vm380_vm3, %v4833_v36  ;;  %v4883_v10 = vsub.f32 %v4877_v29, %v4881_v3 }
 0x4bc   : > { %5026 = vst.msk [vmem:[%s6256_s29 + $0xe8] sm:$0xff] %vm380_vm3, %v4834_v17  ;;  %v4889_v9 = vadd.f32 %v4887_v59, %v4882_v62 }
 0x4bd   : > { %v4890_v31 = vadd.f32 %v4888_v8, %v4883_v10 }
 0x4be   : > { %v4896_v45 = vsub.f32 %v4889_v9, %v4894_v25 }
 0x4bf   : > { %v4897_v1 = vsub.f32 %v4890_v31, %v4895_v54 }
 0x4c0   : > { %5027 = vst.msk [vmem:[%s6256_s29 + $0xf0] sm:$0xff] %vm380_vm3, %v4896_v45 }
 0x4c1   : > { %5028 = vst.msk [vmem:[%s6256_s29 + $0xf8] sm:$0xff] %vm380_vm3, %v4897_v1 }
 0x4c2   : > { %5153 = shalt.err (!%p5150_p4)
}
 0x4c3   : > { %s5202_s21 = smov 128   ;;  %s5203_s25 = smov 8  }
 0x4c4   : > { %5038 = dma.vmem_to_hbm [thread:$0]  (%p5264_p11), %s4915_s4, 4096, %s4917_s5, %s4902_s11, %s5202_s21, %s5202_s21, %s5203_s25  }
 0x4c5 PF: > { %s4931_s17 = sand.u32 1, %s5180_s6   ;;  %p9097_p7 = scmp.ge.s32.totalorder %s5192_s9, 2 }
 0x4c6   : > { %s4932_s26 = scalar_lea.sflag [#allocation7], %s4931_s17 }
 0x4c7   : > { %p5045_p5 = pnand %p9097_p7, %p5268_p12 }
 0x4c9   : > { %p5046_p8 = pneg %p5045_p5 }
 0x4cb   : > { %5175 = dma.done.wait (%p5046_p8), %s4932_s26, 4096  }
 0x4cc   : > { %5177 = vsyncadd (%p5046_p8), %s4932_s26, 4294963200  ;;  %p14_p10 = scmp.ge.s32.totalorder %s5239_s12, 4   ;;  %s9098_s6 = smov %s5184_s7 }
 0x4cd   : > { %s9099_s7 = smov %s5188_s8  ;;  %s9100_s8 = smov %s5251_s15 }
 0x4ce   : > { %s9101_s9 = smov %s5239_s12  ;;  %16 = sbr.rel (!%p14_p10) target bundleno = 5 (0x5), region = 137 }
 0x4d3   :  { %4938 = vsyncpa [#allocation6], 1 }
 0x4d4   :  { %4940 = vsyncpa [#allocation6 + $0x1], 1 }
 0x4d5   :  { %4941 = vsyncpa [#allocation7], 1 }
 0x4d6   :  { %4943 = vsyncpa [#allocation7 + $0x1], 1 }

</bundles_post_ra>
